<compile_context>
chip_gen: v7x
topology: tpu7x:2x2x1
jax: 0.10.0
libtpu: 0.0.40
codegen_flags: <defaults>
</compile_context>

<pallas_src>
import functools
import math

import jax
import jax.numpy as jnp
from jax.experimental import pallas as pl
from jax.experimental.pallas import tpu as pltpu


# ---------------------------------------------------------------------------
# Pallas fused GEMM kernel:  out = act(A @ W + b)
#   - A, W are bf16 (halves HBM/VMEM traffic, full-rate MXU), accumulate in f32
#   - single K block -> no accumulator scratch, no pl.when phases
#   - bias add + SiLU fused in the epilogue (f32)
# ---------------------------------------------------------------------------
def _gemm_bias_act_kernel(a_ref, w_ref, b_ref, o_ref, *, apply_silu):
    y = jnp.dot(a_ref[...], w_ref[...], preferred_element_type=jnp.float32)
    y = y + b_ref[...]
    if apply_silu:
        y = y * jax.nn.sigmoid(y)          # SiLU epilogue (EUP)
    o_ref[...] = y.astype(o_ref.dtype)


_KERNELS = {
    True: functools.partial(_gemm_bias_act_kernel, apply_silu=True),
    False: functools.partial(_gemm_bias_act_kernel, apply_silu=False),
}


def pallas_gemm_bias_act(a, w, b, *, apply_silu):
    """a:(M,K) bf16, w:(K,N) bf16, b:(1,N) f32 -> act(a @ w + b):(M,N) f32.

    Shape-adaptive tiling: K and N are full-dim blocks (legal even when not
    128-multiples), M is split in two "parallel" steps only when large enough
    (gives the v7x megacore something to do; single step otherwise).
    """
    M, K = a.shape
    _, N = w.shape
    if M >= 256 and (M // 2) % 8 == 0:
        tm = M // 2
    else:
        tm = M
    grid = (M // tm,)
    return pl.pallas_call(
        _KERNELS[bool(apply_silu)],
        out_shape=jax.ShapeDtypeStruct((M, N), jnp.float32),
        grid_spec=pltpu.PrefetchScalarGridSpec(
            num_scalar_prefetch=0,
            grid=grid,
            in_specs=[
                pl.BlockSpec((tm, K), lambda i: (i, 0)),
                pl.BlockSpec((K, N), lambda i: (0, 0)),
                pl.BlockSpec((1, N), lambda i: (0, 0)),
            ],
            out_specs=pl.BlockSpec((tm, N), lambda i: (i, 0)),
        ),
        compiler_params=pltpu.CompilerParams(
            dimension_semantics=("parallel",)),
    )(a, w, b)


# ---------------------------------------------------------------------------
# Conv = Conv2d(bias=False) + BatchNorm2d (eval mode, folded) + SiLU
# Weights are folded / transposed / cast to bf16 once at init.
# ---------------------------------------------------------------------------
# TODO(synk): BatchNorm is modeled in eval mode (running_mean=0, running_var=1,
# eps=1e-3) and folded into the GEMM; training-mode batch statistics are not modeled.
class KeyGen:
    def __init__(self, key):
        self.key = key
        self.i = 0

    def __call__(self):
        self.i += 1
        return jax.random.fold_in(self.key, self.i)


def _im2col_nhwc(x, kh, kw, stride, pad):
    B, H, W, C = x.shape
    xp = jnp.pad(x, ((0, 0), (pad, pad), (pad, pad), (0, 0)))
    Hp, Wp = H + 2 * pad, W + 2 * pad
    Ho = (Hp - kh) // stride + 1
    Wo = (Wp - kw) // stride + 1
    cols = []
    for i in range(kh):
        for j in range(kw):
            cols.append(xp[:, i:i + Ho * stride:stride,
                           j:j + Wo * stride:stride, :])
    patches = jnp.concatenate(cols, axis=-1)      # (B, Ho, Wo, kh*kw*C)
    return patches.reshape(B * Ho * Wo, kh * kw * C), Ho, Wo


class ConvM:
    """Conv2d(bias=False) + BN(eval, folded) + optional SiLU, NHWC activations."""

    def __init__(self, kg, c1, c2, k=1, s=1, g=1, act=True):
        self.k, self.s, self.g, self.act = k, s, g, act
        key = kg()
        fan_out = c2 * k * k                      # kaiming_normal_, mode='fan_out'
        w = jax.random.normal(key, (c2, c1 // g, k, k), jnp.float32) \
            * math.sqrt(2.0 / fan_out)
        eps = 1e-3
        gamma = jnp.ones((c2,), jnp.float32)
        beta = jnp.zeros((c2,), jnp.float32)
        mean = jnp.zeros((c2,), jnp.float32)
        var = jnp.ones((c2,), jnp.float32)
        scale = gamma / jnp.sqrt(var + eps)
        bias = beta - mean * scale
        if g == 1:
            # Pre-fold BN scale and pre-transpose to the GEMM layout once.
            w_mat = jnp.transpose(w, (2, 3, 1, 0)).reshape(k * k * c1, c2)
            w_mat = w_mat * scale[None, :]
            self.w_mat = w_mat.astype(jnp.bfloat16)          # (K, N) bf16
            self.b_row = bias.reshape(1, c2)                 # (1, N) f32
        else:
            # depthwise (groups == channels) positional-encoding conv
            self.w_dw = w                                    # (C, 1, k, k)
            self.dw_scale = scale
            self.dw_bias = bias

    def __call__(self, x):                        # x: NHWC
        pad = self.k // 2                         # autopad
        if self.g == 1:
            B, H, W, C = x.shape
            if self.k == 1 and self.s == 1:
                patches, Ho, Wo = x.reshape(B * H * W, C), H, W
            else:
                patches, Ho, Wo = _im2col_nhwc(x, self.k, self.k, self.s, pad)
            out = pallas_gemm_bias_act(patches.astype(jnp.bfloat16),
                                       self.w_mat, self.b_row,
                                       apply_silu=self.act)
            return out.reshape(B, Ho, Wo, -1)
        return self._depthwise(x, pad)

    def _depthwise(self, x, pad):
        # TODO(synk): depthwise 3x3 positional-encoding conv is tiny; kept as plain JAX.
        B, H, W, C = x.shape
        k, s = self.k, self.s
        xp = jnp.pad(x, ((0, 0), (pad, pad), (pad, pad), (0, 0)))
        Ho = (H + 2 * pad - k) // s + 1
        Wo = (W + 2 * pad - k) // s + 1
        out = jnp.zeros((B, Ho, Wo, C), jnp.float32)
        for i in range(k):
            for j in range(k):
                out = out + xp[:, i:i + Ho * s:s, j:j + Wo * s:s, :] \
                    * self.w_dw[:, 0, i, j][None, None, None, :]
        out = out * self.dw_scale[None, None, None, :] \
            + self.dw_bias[None, None, None, :]
        if self.act:
            out = out * jax.nn.sigmoid(out)
        return out


# ---------------------------------------------------------------------------
# YOLO blocks (all NHWC internally)
# ---------------------------------------------------------------------------
class BottleneckM:
    def __init__(self, kg, c1, c2, shortcut=True, g=1, k=(3, 3), e=0.5):
        c_ = int(c2 * e)
        self.cv1 = ConvM(kg, c1, c_, k[0], 1)
        self.cv2 = ConvM(kg, c_, c2, k[1], 1, g)
        self.add = shortcut and c1 == c2

    def __call__(self, x):
        y = self.cv2(self.cv1(x))
        return x + y if self.add else y


class C3kM:
    def __init__(self, kg, c1, c2, n=1, shortcut=True, g=1, e=0.5, k=3):
        c_ = int(c2 * e)
        self.cv1 = ConvM(kg, c1, c_, 1, 1)
        self.cv2 = ConvM(kg, c1, c_, 1, 1)
        self.cv3 = ConvM(kg, 2 * c_, c2, 1)
        self.m = [BottleneckM(kg, c_, c_, shortcut, g, k=(k, k), e=1.0)
                  for _ in range(n)]

    def __call__(self, x):
        y1 = self.cv1(x)
        for m in self.m:
            y1 = m(y1)
        return self.cv3(jnp.concatenate([y1, self.cv2(x)], axis=-1))


class C3k2M:
    def __init__(self, kg, c1, c2, n=1, c3k=False, e=0.5, g=1, shortcut=True):
        self.c = int(c2 * e)
        self.cv1 = ConvM(kg, c1, 2 * self.c, 1, 1)
        self.cv2 = ConvM(kg, (2 + n) * self.c, c2, 1)
        self.m = [
            C3kM(kg, self.c, self.c, 2, shortcut, g) if c3k
            else BottleneckM(kg, self.c, self.c, shortcut, g, k=(3, 3), e=0.5)
            for _ in range(n)
        ]

    def __call__(self, x):
        t = self.cv1(x)
        y = [t[..., :self.c], t[..., self.c:]]
        for m in self.m:
            y.append(m(y[-1]))
        return self.cv2(jnp.concatenate(y, axis=-1))


def maxpool2d_nhwc(x, k):
    pad = k // 2
    return jax.lax.reduce_window(
        x, -jnp.inf, jax.lax.max,
        window_dimensions=(1, k, k, 1),
        window_strides=(1, 1, 1, 1),
        padding=((0, 0), (pad, pad), (pad, pad), (0, 0)))


class SPPFM:
    def __init__(self, kg, c1, c2, k=5):
        c_ = c1 // 2
        self.cv1 = ConvM(kg, c1, c_, 1, 1)
        self.cv2 = ConvM(kg, c_ * 4, c2, 1, 1)
        self.k = k

    def __call__(self, x):
        y = [self.cv1(x)]
        for _ in range(3):
            y.append(maxpool2d_nhwc(y[-1], self.k))
        return self.cv2(jnp.concatenate(y, axis=-1))


class AttentionM:
    def __init__(self, kg, dim, num_heads=8, attn_ratio=0.5):
        self.num_heads = num_heads
        self.head_dim = dim // num_heads
        self.key_dim = int(self.head_dim * attn_ratio)
        self.scale = self.key_dim ** -0.5
        nh_kd = self.key_dim * num_heads
        h = dim + nh_kd * 2
        self.qkv = ConvM(kg, dim, h, 1, act=False)
        self.proj = ConvM(kg, dim, dim, 1, act=False)
        self.pe = ConvM(kg, dim, dim, 3, 1, g=dim, act=False)

    def __call__(self, x):                        # x: NHWC
        B, H, W, C = x.shape
        N = H * W
        qkv = self.qkv(x)                                         # (B,H,W,h)
        qkv = jnp.transpose(qkv.reshape(B, N, -1), (0, 2, 1))     # (B,h,N)
        qkv = qkv.reshape(B, self.num_heads,
                          self.key_dim * 2 + self.head_dim, N)
        q = qkv[:, :, :self.key_dim, :]
        k = qkv[:, :, self.key_dim:2 * self.key_dim, :]
        v = qkv[:, :, 2 * self.key_dim:, :]
        # TODO(synk): per-head attention matmuls/softmax are tiny (N=H*W<=4) -> plain JAX.
        attn = jnp.einsum('bhdn,bhdm->bhnm', q, k) * self.scale
        attn = jax.nn.softmax(attn, axis=-1)
        o = jnp.einsum('bhdn,bhmn->bhdm', v, attn)

        def to_nhwc(t):                            # (B,nh,hd,N) -> (B,H,W,C)
            return jnp.transpose(t.reshape(B, C, N), (0, 2, 1)).reshape(B, H, W, C)

        v_img = to_nhwc(v)
        o_img = to_nhwc(o) + self.pe(v_img)
        return self.proj(o_img)


class PSABlockM:
    def __init__(self, kg, c, attn_ratio=0.5, num_heads=4, shortcut=True):
        self.attn = AttentionM(kg, c, num_heads=num_heads, attn_ratio=attn_ratio)
        self.ffn = [ConvM(kg, c, c * 2, 1), ConvM(kg, c * 2, c, 1, act=False)]
        self.add = shortcut

    def __call__(self, x):
        x = x + self.attn(x) if self.add else self.attn(x)
        y = self.ffn[1](self.ffn[0](x))
        return x + y if self.add else y


class C2PSAM:
    def __init__(self, kg, c1, c2, n=1, e=0.5):
        assert c1 == c2
        self.c = int(c1 * e)
        self.cv1 = ConvM(kg, c1, 2 * self.c, 1, 1)
        self.cv2 = ConvM(kg, 2 * self.c, c1, 1)
        self.m = [PSABlockM(kg, self.c, attn_ratio=0.5,
                            num_heads=max(self.c // 64, 1)) for _ in range(n)]

    def __call__(self, x):
        t = self.cv1(x)
        a, b = t[..., :self.c], t[..., self.c:]
        for m in self.m:
            b = m(b)
        return self.cv2(jnp.concatenate([a, b], axis=-1))


def upsample_nearest2_nhwc(x):
    return jnp.repeat(jnp.repeat(x, 2, axis=1), 2, axis=2)


class FPNM:
    def __init__(self, kg, width=0.25, depth=0.5):
        self.fusion2 = C3k2M(kg, int((1024 + 512) * width), int(1024 * width),
                             int(2 * depth), False)
        self.fusion1 = C3k2M(kg, int((1024 + 512) * width), int(512 * width),
                             int(2 * depth), False)

    def __call__(self, x1, x2, x3):
        p2 = jnp.concatenate([x2, upsample_nearest2_nhwc(x3)], axis=-1)
        p2 = self.fusion2(p2)
        p1 = jnp.concatenate([x1, upsample_nearest2_nhwc(p2)], axis=-1)
        p1 = self.fusion1(p1)
        return [p1, p2]


class FeatureExtractorYOLOFPN:
    def __init__(self, key):
        kg = KeyGen(key)
        w, d = 0.25, 0.5
        self.stage1 = [
            ConvM(kg, 3, int(64 * w), 3, 2),
            ConvM(kg, int(64 * w), int(128 * w), 3, 2),
            C3k2M(kg, int(128 * w), int(256 * w), int(2 * d), False, 0.25),
            ConvM(kg, int(256 * w), int(256 * w), 3, 2),
            C3k2M(kg, int(256 * w), int(512 * w), int(2 * d), False, 0.25),
        ]
        self.stage2 = [
            ConvM(kg, int(512 * w), int(512 * w), 3, 2),
            C3k2M(kg, int(512 * w), int(512 * w), int(2 * d), True),
        ]
        self.stage3 = [
            ConvM(kg, int(512 * w), int(1024 * w), 3, 2),
            C3k2M(kg, int(1024 * w), int(1024 * w), int(2 * d), True),
            SPPFM(kg, int(1024 * w), int(1024 * w), 5),
            C2PSAM(kg, int(1024 * w), int(1024 * w), int(2 * d), 0.25),
        ]
        self.fpn = FPNM(kg, w, d)
        # Whole-network jit: all transposes/concats/slices between pallas_calls
        # fuse and per-op dispatch disappears.
        self._jit_forward = jax.jit(self._forward)

    @staticmethod
    def _seq(mods, x):
        for m in mods:
            x = m(x)
        return x

    def _forward(self, x_nchw):
        x = jnp.transpose(x_nchw, (0, 2, 3, 1))   # NHWC internally, end-to-end
        x1 = self._seq(self.stage1, x)
        x2 = self._seq(self.stage2, x1)
        x3 = self._seq(self.stage3, x2)
        p1, p2 = self.fpn(x1, x2, x3)
        return (jnp.transpose(p1, (0, 3, 1, 2)),
                jnp.transpose(p2, (0, 3, 1, 2)))

    def __call__(self, x):
        return self._jit_forward(x)


if __name__ == "__main__":
    key = jax.random.PRNGKey(0)
    model = FeatureExtractorYOLOFPN(jax.random.fold_in(key, 1))
    x = jax.random.normal(jax.random.fold_in(key, 2), (2, 3, 32, 32), jnp.float32)
    p1, p2 = model(x)
    jax.block_until_ready((p1, p2))
    assert p1.shape == (2, 128, 4, 4), p1.shape   # stride-8 fused feature
    assert p2.shape == (2, 256, 2, 2), p2.shape   # stride-16 fused feature
    assert jnp.all(jnp.isfinite(p1)) and jnp.all(jnp.isfinite(p2))
    print("KERNEL_OK")
</pallas_src>

<mosaic_0001>
module attributes {stable_mosaic.version = 11 : i64} {
  func.func @_gemm_bias_act_kernel(%arg0: i32, %arg1: memref<256x27xbf16, #tpu.memory_space<vmem>>, %arg2: memref<27x16xbf16, #tpu.memory_space<vmem>>, %arg3: memref<1x16xf32, #tpu.memory_space<vmem>>, %arg4: memref<256x16xf32, #tpu.memory_space<vmem>>) attributes {dimension_semantics = [#tpu.dimension_semantics<parallel>], iteration_bounds = array<i64: 2>, scalar_prefetch = 0 : i64, scratch_operands = 0 : i64, tpu.core_type = #tpu.core_type<tc>, window_params = [{transform_indices = @transform_0, window_bounds = array<i64: 256, 27>}, {pipeline_mode = #tpu.pipeline_mode<synchronous>, transform_indices = @transform_1, window_bounds = array<i64: 27, 16>}, {pipeline_mode = #tpu.pipeline_mode<synchronous>, transform_indices = @transform_2, window_bounds = array<i64: 1, 16>}, {transform_indices = @transform_3, window_bounds = array<i64: 256, 16>}]} {
    %c0 = arith.constant 0 : index
    %c0_0 = arith.constant 0 : index
    %0 = vector.load %arg1[%c0, %c0_0] : memref<256x27xbf16, #tpu.memory_space<vmem>>, vector<256x27xbf16>
    %c0_1 = arith.constant 0 : index
    %c0_2 = arith.constant 0 : index
    %1 = vector.load %arg2[%c0_1, %c0_2] : memref<27x16xbf16, #tpu.memory_space<vmem>>, vector<27x16xbf16>
    %cst = arith.constant dense<0.000000e+00> : vector<256x16xf32>
    %2 = tpu.matmul %0, %1, %cst {dimension_numbers = #tpu.dot_dimension_numbers<[1], [0], [0], [1], [0, 0, 1, 1], [], []>} : vector<256x27xbf16>, vector<27x16xbf16>, vector<256x16xf32> -> vector<256x16xf32>
    %c0_3 = arith.constant 0 : index
    %c0_4 = arith.constant 0 : index
    %3 = vector.load %arg3[%c0_3, %c0_4] : memref<1x16xf32, #tpu.memory_space<vmem>>, vector<1x16xf32>
    %4 = vector.broadcast %3 : vector<1x16xf32> to vector<256x16xf32>
    %5 = arith.addf %2, %4 : vector<256x16xf32>
    %6 = arith.negf %5 : vector<256x16xf32>
    %7 = math.exp %6 : vector<256x16xf32>
    %cst_5 = arith.constant 1.000000e+00 : f32
    %8 = vector.broadcast %cst_5 : f32 to vector<256x16xf32>
    %9 = arith.addf %8, %7 : vector<256x16xf32>
    %10 = arith.divf %8, %9 : vector<256x16xf32>
    %11 = arith.mulf %5, %10 : vector<256x16xf32>
    %c0_6 = arith.constant 0 : index
    %c0_7 = arith.constant 0 : index
    %12 = vector.load %arg4[%c0_6, %c0_7] : memref<256x16xf32, #tpu.memory_space<vmem>>, vector<256x16xf32>
    tpu.vector_store %arg4[%c0_6, %c0_7], %11 {strides = array<i32>} : memref<256x16xf32, #tpu.memory_space<vmem>>, vector<256x16xf32>,
    return
  }
  func.func @transform_0(%arg0: i32) -> (i32, i32) {
    %c0_i32 = arith.constant 0 : i32
    %c0_i32_0 = arith.constant 0 : i32
    return %arg0, %c0_i32 : i32, i32
  }
  func.func @transform_1(%arg0: i32) -> (i32, i32) {
    %c0_i32 = arith.constant 0 : i32
    %c0_i32_0 = arith.constant 0 : i32
    %c0_i32_1 = arith.constant 0 : i32
    return %c0_i32, %c0_i32_0 : i32, i32
  }
  func.func @transform_2(%arg0: i32) -> (i32, i32) {
    %c0_i32 = arith.constant 0 : i32
    %c0_i32_0 = arith.constant 0 : i32
    %c0_i32_1 = arith.constant 0 : i32
    return %c0_i32, %c0_i32_0 : i32, i32
  }
  func.func @transform_3(%arg0: i32) -> (i32, i32) {
    %c0_i32 = arith.constant 0 : i32
    %c0_i32_0 = arith.constant 0 : i32
    return %arg0, %c0_i32 : i32, i32
  }
}

module attributes {stable_mosaic.version = 11 : i64} {
  func.func @_gemm_bias_act_kernel(%arg0: i32, %arg1: memref<128x144xbf16, #tpu.memory_space<vmem>>, %arg2: memref<144x32xbf16, #tpu.memory_space<vmem>>, %arg3: memref<1x32xf32, #tpu.memory_space<vmem>>, %arg4: memref<128x32xf32, #tpu.memory_space<vmem>>) attributes {dimension_semantics = [#tpu.dimension_semantics<parallel>], iteration_bounds = array<i64: 1>, scalar_prefetch = 0 : i64, scratch_operands = 0 : i64, tpu.core_type = #tpu.core_type<tc>, window_params = [{transform_indices = @transform_0, window_bounds = array<i64: 128, 144>}, {pipeline_mode = #tpu.pipeline_mode<synchronous>, transform_indices = @transform_1, window_bounds = array<i64: 144, 32>}, {pipeline_mode = #tpu.pipeline_mode<synchronous>, transform_indices = @transform_2, window_bounds = array<i64: 1, 32>}, {transform_indices = @transform_3, window_bounds = array<i64: 128, 32>}]} {
    %c0 = arith.constant 0 : index
    %c0_0 = arith.constant 0 : index
    %0 = vector.load %arg1[%c0, %c0_0] : memref<128x144xbf16, #tpu.memory_space<vmem>>, vector<128x144xbf16>
    %c0_1 = arith.constant 0 : index
    %c0_2 = arith.constant 0 : index
    %1 = vector.load %arg2[%c0_1, %c0_2] : memref<144x32xbf16, #tpu.memory_space<vmem>>, vector<144x32xbf16>
    %cst = arith.constant dense<0.000000e+00> : vector<128x32xf32>
    %2 = tpu.matmul %0, %1, %cst {dimension_numbers = #tpu.dot_dimension_numbers<[1], [0], [0], [1], [0, 0, 1, 1], [], []>} : vector<128x144xbf16>, vector<144x32xbf16>, vector<128x32xf32> -> vector<128x32xf32>
    %c0_3 = arith.constant 0 : index
    %c0_4 = arith.constant 0 : index
    %3 = vector.load %arg3[%c0_3, %c0_4] : memref<1x32xf32, #tpu.memory_space<vmem>>, vector<1x32xf32>
    %4 = vector.broadcast %3 : vector<1x32xf32> to vector<128x32xf32>
    %5 = arith.addf %2, %4 : vector<128x32xf32>
    %6 = arith.negf %5 : vector<128x32xf32>
    %7 = math.exp %6 : vector<128x32xf32>
    %cst_5 = arith.constant 1.000000e+00 : f32
    %8 = vector.broadcast %cst_5 : f32 to vector<128x32xf32>
    %9 = arith.addf %8, %7 : vector<128x32xf32>
    %10 = arith.divf %8, %9 : vector<128x32xf32>
    %11 = arith.mulf %5, %10 : vector<128x32xf32>
    %c0_6 = arith.constant 0 : index
    %c0_7 = arith.constant 0 : index
    %12 = vector.load %arg4[%c0_6, %c0_7] : memref<128x32xf32, #tpu.memory_space<vmem>>, vector<128x32xf32>
    tpu.vector_store %arg4[%c0_6, %c0_7], %11 {strides = array<i32>} : memref<128x32xf32, #tpu.memory_space<vmem>>, vector<128x32xf32>,
    return
  }
  func.func @transform_0(%arg0: i32) -> (i32, i32) {
    %c0_i32 = arith.constant 0 : i32
    %c0_i32_0 = arith.constant 0 : i32
    return %arg0, %c0_i32 : i32, i32
  }
  func.func @transform_1(%arg0: i32) -> (i32, i32) {
    %c0_i32 = arith.constant 0 : i32
    %c0_i32_0 = arith.constant 0 : i32
    %c0_i32_1 = arith.constant 0 : i32
    return %c0_i32, %c0_i32_0 : i32, i32
  }
  func.func @transform_2(%arg0: i32) -> (i32, i32) {
    %c0_i32 = arith.constant 0 : i32
    %c0_i32_0 = arith.constant 0 : i32
    %c0_i32_1 = arith.constant 0 : i32
    return %c0_i32, %c0_i32_0 : i32, i32
  }
  func.func @transform_3(%arg0: i32) -> (i32, i32) {
    %c0_i32 = arith.constant 0 : i32
    %c0_i32_0 = arith.constant 0 : i32
    return %arg0, %c0_i32 : i32, i32
  }
}

module attributes {stable_mosaic.version = 11 : i64} {
  func.func @_gemm_bias_act_kernel(%arg0: i32, %arg1: memref<128x32xbf16, #tpu.memory_space<vmem>>, %arg2: memref<32x32xbf16, #tpu.memory_space<vmem>>, %arg3: memref<1x32xf32, #tpu.memory_space<vmem>>, %arg4: memref<128x32xf32, #tpu.memory_space<vmem>>) attributes {dimension_semantics = [#tpu.dimension_semantics<parallel>], iteration_bounds = array<i64: 1>, scalar_prefetch = 0 : i64, scratch_operands = 0 : i64, tpu.core_type = #tpu.core_type<tc>, window_params = [{transform_indices = @transform_0, window_bounds = array<i64: 128, 32>}, {pipeline_mode = #tpu.pipeline_mode<synchronous>, transform_indices = @transform_1, window_bounds = array<i64: 32, 32>}, {pipeline_mode = #tpu.pipeline_mode<synchronous>, transform_indices = @transform_2, window_bounds = array<i64: 1, 32>}, {transform_indices = @transform_3, window_bounds = array<i64: 128, 32>}]} {
    %c0 = arith.constant 0 : index
    %c0_0 = arith.constant 0 : index
    %0 = vector.load %arg1[%c0, %c0_0] : memref<128x32xbf16, #tpu.memory_space<vmem>>, vector<128x32xbf16>
    %c0_1 = arith.constant 0 : index
    %c0_2 = arith.constant 0 : index
    %1 = vector.load %arg2[%c0_1, %c0_2] : memref<32x32xbf16, #tpu.memory_space<vmem>>, vector<32x32xbf16>
    %cst = arith.constant dense<0.000000e+00> : vector<128x32xf32>
    %2 = tpu.matmul %0, %1, %cst {dimension_numbers = #tpu.dot_dimension_numbers<[1], [0], [0], [1], [0, 0, 1, 1], [], []>} : vector<128x32xbf16>, vector<32x32xbf16>, vector<128x32xf32> -> vector<128x32xf32>
    %c0_3 = arith.constant 0 : index
    %c0_4 = arith.constant 0 : index
    %3 = vector.load %arg3[%c0_3, %c0_4] : memref<1x32xf32, #tpu.memory_space<vmem>>, vector<1x32xf32>
    %4 = vector.broadcast %3 : vector<1x32xf32> to vector<128x32xf32>
    %5 = arith.addf %2, %4 : vector<128x32xf32>
    %6 = arith.negf %5 : vector<128x32xf32>
    %7 = math.exp %6 : vector<128x32xf32>
    %cst_5 = arith.constant 1.000000e+00 : f32
    %8 = vector.broadcast %cst_5 : f32 to vector<128x32xf32>
    %9 = arith.addf %8, %7 : vector<128x32xf32>
    %10 = arith.divf %8, %9 : vector<128x32xf32>
    %11 = arith.mulf %5, %10 : vector<128x32xf32>
    %c0_6 = arith.constant 0 : index
    %c0_7 = arith.constant 0 : index
    %12 = vector.load %arg4[%c0_6, %c0_7] : memref<128x32xf32, #tpu.memory_space<vmem>>, vector<128x32xf32>
    tpu.vector_store %arg4[%c0_6, %c0_7], %11 {strides = array<i32>} : memref<128x32xf32, #tpu.memory_space<vmem>>, vector<128x32xf32>,
    return
  }
  func.func @transform_0(%arg0: i32) -> (i32, i32) {
    %c0_i32 = arith.constant 0 : i32
    %c0_i32_0 = arith.constant 0 : i32
    return %arg0, %c0_i32 : i32, i32
  }
  func.func @transform_1(%arg0: i32) -> (i32, i32) {
    %c0_i32 = arith.constant 0 : i32
    %c0_i32_0 = arith.constant 0 : i32
    %c0_i32_1 = arith.constant 0 : i32
    return %c0_i32, %c0_i32_0 : i32, i32
  }
  func.func @transform_2(%arg0: i32) -> (i32, i32) {
    %c0_i32 = arith.constant 0 : i32
    %c0_i32_0 = arith.constant 0 : i32
    %c0_i32_1 = arith.constant 0 : i32
    return %c0_i32, %c0_i32_0 : i32, i32
  }
  func.func @transform_3(%arg0: i32) -> (i32, i32) {
    %c0_i32 = arith.constant 0 : i32
    %c0_i32_0 = arith.constant 0 : i32
    return %arg0, %c0_i32 : i32, i32
  }
}

module attributes {stable_mosaic.version = 11 : i64} {
  func.func @_gemm_bias_act_kernel(%arg0: i32, %arg1: memref<128x144xbf16, #tpu.memory_space<vmem>>, %arg2: memref<144x8xbf16, #tpu.memory_space<vmem>>, %arg3: memref<1x8xf32, #tpu.memory_space<vmem>>, %arg4: memref<128x8xf32, #tpu.memory_space<vmem>>) attributes {dimension_semantics = [#tpu.dimension_semantics<parallel>], iteration_bounds = array<i64: 1>, scalar_prefetch = 0 : i64, scratch_operands = 0 : i64, tpu.core_type = #tpu.core_type<tc>, window_params = [{transform_indices = @transform_0, window_bounds = array<i64: 128, 144>}, {pipeline_mode = #tpu.pipeline_mode<synchronous>, transform_indices = @transform_1, window_bounds = array<i64: 144, 8>}, {pipeline_mode = #tpu.pipeline_mode<synchronous>, transform_indices = @transform_2, window_bounds = array<i64: 1, 8>}, {transform_indices = @transform_3, window_bounds = array<i64: 128, 8>}]} {
    %c0 = arith.constant 0 : index
    %c0_0 = arith.constant 0 : index
    %0 = vector.load %arg1[%c0, %c0_0] : memref<128x144xbf16, #tpu.memory_space<vmem>>, vector<128x144xbf16>
    %c0_1 = arith.constant 0 : index
    %c0_2 = arith.constant 0 : index
    %1 = vector.load %arg2[%c0_1, %c0_2] : memref<144x8xbf16, #tpu.memory_space<vmem>>, vector<144x8xbf16>
    %cst = arith.constant dense<0.000000e+00> : vector<128x8xf32>
    %2 = tpu.matmul %0, %1, %cst {dimension_numbers = #tpu.dot_dimension_numbers<[1], [0], [0], [1], [0, 0, 1, 1], [], []>} : vector<128x144xbf16>, vector<144x8xbf16>, vector<128x8xf32> -> vector<128x8xf32>
    %c0_3 = arith.constant 0 : index
    %c0_4 = arith.constant 0 : index
    %3 = vector.load %arg3[%c0_3, %c0_4] : memref<1x8xf32, #tpu.memory_space<vmem>>, vector<1x8xf32>
    %4 = vector.broadcast %3 : vector<1x8xf32> to vector<128x8xf32>
    %5 = arith.addf %2, %4 : vector<128x8xf32>
    %6 = arith.negf %5 : vector<128x8xf32>
    %7 = math.exp %6 : vector<128x8xf32>
    %cst_5 = arith.constant 1.000000e+00 : f32
    %8 = vector.broadcast %cst_5 : f32 to vector<128x8xf32>
    %9 = arith.addf %8, %7 : vector<128x8xf32>
    %10 = arith.divf %8, %9 : vector<128x8xf32>
    %11 = arith.mulf %5, %10 : vector<128x8xf32>
    %c0_6 = arith.constant 0 : index
    %c0_7 = arith.constant 0 : index
    %12 = vector.load %arg4[%c0_6, %c0_7] : memref<128x8xf32, #tpu.memory_space<vmem>>, vector<128x8xf32>
    tpu.vector_store %arg4[%c0_6, %c0_7], %11 {strides = array<i32>} : memref<128x8xf32, #tpu.memory_space<vmem>>, vector<128x8xf32>,
    return
  }
  func.func @transform_0(%arg0: i32) -> (i32, i32) {
    %c0_i32 = arith.constant 0 : i32
    %c0_i32_0 = arith.constant 0 : i32
    return %arg0, %c0_i32 : i32, i32
  }
  func.func @transform_1(%arg0: i32) -> (i32, i32) {
    %c0_i32 = arith.constant 0 : i32
    %c0_i32_0 = arith.constant 0 : i32
    %c0_i32_1 = arith.constant 0 : i32
    return %c0_i32, %c0_i32_0 : i32, i32
  }
  func.func @transform_2(%arg0: i32) -> (i32, i32) {
    %c0_i32 = arith.constant 0 : i32
    %c0_i32_0 = arith.constant 0 : i32
    %c0_i32_1 = arith.constant 0 : i32
    return %c0_i32, %c0_i32_0 : i32, i32
  }
  func.func @transform_3(%arg0: i32) -> (i32, i32) {
    %c0_i32 = arith.constant 0 : i32
    %c0_i32_0 = arith.constant 0 : i32
    return %arg0, %c0_i32 : i32, i32
  }
}

module attributes {stable_mosaic.version = 11 : i64} {
  func.func @_gemm_bias_act_kernel(%arg0: i32, %arg1: memref<128x72xbf16, #tpu.memory_space<vmem>>, %arg2: memref<72x16xbf16, #tpu.memory_space<vmem>>, %arg3: memref<1x16xf32, #tpu.memory_space<vmem>>, %arg4: memref<128x16xf32, #tpu.memory_space<vmem>>) attributes {dimension_semantics = [#tpu.dimension_semantics<parallel>], iteration_bounds = array<i64: 1>, scalar_prefetch = 0 : i64, scratch_operands = 0 : i64, tpu.core_type = #tpu.core_type<tc>, window_params = [{transform_indices = @transform_0, window_bounds = array<i64: 128, 72>}, {pipeline_mode = #tpu.pipeline_mode<synchronous>, transform_indices = @transform_1, window_bounds = array<i64: 72, 16>}, {pipeline_mode = #tpu.pipeline_mode<synchronous>, transform_indices = @transform_2, window_bounds = array<i64: 1, 16>}, {transform_indices = @transform_3, window_bounds = array<i64: 128, 16>}]} {
    %c0 = arith.constant 0 : index
    %c0_0 = arith.constant 0 : index
    %0 = vector.load %arg1[%c0, %c0_0] : memref<128x72xbf16, #tpu.memory_space<vmem>>, vector<128x72xbf16>
    %c0_1 = arith.constant 0 : index
    %c0_2 = arith.constant 0 : index
    %1 = vector.load %arg2[%c0_1, %c0_2] : memref<72x16xbf16, #tpu.memory_space<vmem>>, vector<72x16xbf16>
    %cst = arith.constant dense<0.000000e+00> : vector<128x16xf32>
    %2 = tpu.matmul %0, %1, %cst {dimension_numbers = #tpu.dot_dimension_numbers<[1], [0], [0], [1], [0, 0, 1, 1], [], []>} : vector<128x72xbf16>, vector<72x16xbf16>, vector<128x16xf32> -> vector<128x16xf32>
    %c0_3 = arith.constant 0 : index
    %c0_4 = arith.constant 0 : index
    %3 = vector.load %arg3[%c0_3, %c0_4] : memref<1x16xf32, #tpu.memory_space<vmem>>, vector<1x16xf32>
    %4 = vector.broadcast %3 : vector<1x16xf32> to vector<128x16xf32>
    %5 = arith.addf %2, %4 : vector<128x16xf32>
    %6 = arith.negf %5 : vector<128x16xf32>
    %7 = math.exp %6 : vector<128x16xf32>
    %cst_5 = arith.constant 1.000000e+00 : f32
    %8 = vector.broadcast %cst_5 : f32 to vector<128x16xf32>
    %9 = arith.addf %8, %7 : vector<128x16xf32>
    %10 = arith.divf %8, %9 : vector<128x16xf32>
    %11 = arith.mulf %5, %10 : vector<128x16xf32>
    %c0_6 = arith.constant 0 : index
    %c0_7 = arith.constant 0 : index
    %12 = vector.load %arg4[%c0_6, %c0_7] : memref<128x16xf32, #tpu.memory_space<vmem>>, vector<128x16xf32>
    tpu.vector_store %arg4[%c0_6, %c0_7], %11 {strides = array<i32>} : memref<128x16xf32, #tpu.memory_space<vmem>>, vector<128x16xf32>,
    return
  }
  func.func @transform_0(%arg0: i32) -> (i32, i32) {
    %c0_i32 = arith.constant 0 : i32
    %c0_i32_0 = arith.constant 0 : i32
    return %arg0, %c0_i32 : i32, i32
  }
  func.func @transform_1(%arg0: i32) -> (i32, i32) {
    %c0_i32 = arith.constant 0 : i32
    %c0_i32_0 = arith.constant 0 : i32
    %c0_i32_1 = arith.constant 0 : i32
    return %c0_i32, %c0_i32_0 : i32, i32
  }
  func.func @transform_2(%arg0: i32) -> (i32, i32) {
    %c0_i32 = arith.constant 0 : i32
    %c0_i32_0 = arith.constant 0 : i32
    %c0_i32_1 = arith.constant 0 : i32
    return %c0_i32, %c0_i32_0 : i32, i32
  }
  func.func @transform_3(%arg0: i32) -> (i32, i32) {
    %c0_i32 = arith.constant 0 : i32
    %c0_i32_0 = arith.constant 0 : i32
    return %arg0, %c0_i32 : i32, i32
  }
}

module attributes {stable_mosaic.version = 11 : i64} {
  func.func @_gemm_bias_act_kernel(%arg0: i32, %arg1: memref<128x48xbf16, #tpu.memory_space<vmem>>, %arg2: memref<48x64xbf16, #tpu.memory_space<vmem>>, %arg3: memref<1x64xf32, #tpu.memory_space<vmem>>, %arg4: memref<128x64xf32, #tpu.memory_space<vmem>>) attributes {dimension_semantics = [#tpu.dimension_semantics<parallel>], iteration_bounds = array<i64: 1>, scalar_prefetch = 0 : i64, scratch_operands = 0 : i64, tpu.core_type = #tpu.core_type<tc>, window_params = [{transform_indices = @transform_0, window_bounds = array<i64: 128, 48>}, {pipeline_mode = #tpu.pipeline_mode<synchronous>, transform_indices = @transform_1, window_bounds = array<i64: 48, 64>}, {pipeline_mode = #tpu.pipeline_mode<synchronous>, transform_indices = @transform_2, window_bounds = array<i64: 1, 64>}, {transform_indices = @transform_3, window_bounds = array<i64: 128, 64>}]} {
    %c0 = arith.constant 0 : index
    %c0_0 = arith.constant 0 : index
    %0 = vector.load %arg1[%c0, %c0_0] : memref<128x48xbf16, #tpu.memory_space<vmem>>, vector<128x48xbf16>
    %c0_1 = arith.constant 0 : index
    %c0_2 = arith.constant 0 : index
    %1 = vector.load %arg2[%c0_1, %c0_2] : memref<48x64xbf16, #tpu.memory_space<vmem>>, vector<48x64xbf16>
    %cst = arith.constant dense<0.000000e+00> : vector<128x64xf32>
    %2 = tpu.matmul %0, %1, %cst {dimension_numbers = #tpu.dot_dimension_numbers<[1], [0], [0], [1], [0, 0, 1, 1], [], []>} : vector<128x48xbf16>, vector<48x64xbf16>, vector<128x64xf32> -> vector<128x64xf32>
    %c0_3 = arith.constant 0 : index
    %c0_4 = arith.constant 0 : index
    %3 = vector.load %arg3[%c0_3, %c0_4] : memref<1x64xf32, #tpu.memory_space<vmem>>, vector<1x64xf32>
    %4 = vector.broadcast %3 : vector<1x64xf32> to vector<128x64xf32>
    %5 = arith.addf %2, %4 : vector<128x64xf32>
    %6 = arith.negf %5 : vector<128x64xf32>
    %7 = math.exp %6 : vector<128x64xf32>
    %cst_5 = arith.constant 1.000000e+00 : f32
    %8 = vector.broadcast %cst_5 : f32 to vector<128x64xf32>
    %9 = arith.addf %8, %7 : vector<128x64xf32>
    %10 = arith.divf %8, %9 : vector<128x64xf32>
    %11 = arith.mulf %5, %10 : vector<128x64xf32>
    %c0_6 = arith.constant 0 : index
    %c0_7 = arith.constant 0 : index
    %12 = vector.load %arg4[%c0_6, %c0_7] : memref<128x64xf32, #tpu.memory_space<vmem>>, vector<128x64xf32>
    tpu.vector_store %arg4[%c0_6, %c0_7], %11 {strides = array<i32>} : memref<128x64xf32, #tpu.memory_space<vmem>>, vector<128x64xf32>,
    return
  }
  func.func @transform_0(%arg0: i32) -> (i32, i32) {
    %c0_i32 = arith.constant 0 : i32
    %c0_i32_0 = arith.constant 0 : i32
    return %arg0, %c0_i32 : i32, i32
  }
  func.func @transform_1(%arg0: i32) -> (i32, i32) {
    %c0_i32 = arith.constant 0 : i32
    %c0_i32_0 = arith.constant 0 : i32
    %c0_i32_1 = arith.constant 0 : i32
    return %c0_i32, %c0_i32_0 : i32, i32
  }
  func.func @transform_2(%arg0: i32) -> (i32, i32) {
    %c0_i32 = arith.constant 0 : i32
    %c0_i32_0 = arith.constant 0 : i32
    %c0_i32_1 = arith.constant 0 : i32
    return %c0_i32, %c0_i32_0 : i32, i32
  }
  func.func @transform_3(%arg0: i32) -> (i32, i32) {
    %c0_i32 = arith.constant 0 : i32
    %c0_i32_0 = arith.constant 0 : i32
    return %arg0, %c0_i32 : i32, i32
  }
}

module attributes {stable_mosaic.version = 11 : i64} {
  func.func @_gemm_bias_act_kernel(%arg0: i32, %arg1: memref<32x64xbf16, #tpu.memory_space<vmem>>, %arg2: memref<64x64xbf16, #tpu.memory_space<vmem>>, %arg3: memref<1x64xf32, #tpu.memory_space<vmem>>, %arg4: memref<32x64xf32, #tpu.memory_space<vmem>>) attributes {dimension_semantics = [#tpu.dimension_semantics<parallel>], iteration_bounds = array<i64: 1>, scalar_prefetch = 0 : i64, scratch_operands = 0 : i64, tpu.core_type = #tpu.core_type<tc>, window_params = [{transform_indices = @transform_0, window_bounds = array<i64: 32, 64>}, {pipeline_mode = #tpu.pipeline_mode<synchronous>, transform_indices = @transform_1, window_bounds = array<i64: 64, 64>}, {pipeline_mode = #tpu.pipeline_mode<synchronous>, transform_indices = @transform_2, window_bounds = array<i64: 1, 64>}, {transform_indices = @transform_3, window_bounds = array<i64: 32, 64>}]} {
    %c0 = arith.constant 0 : index
    %c0_0 = arith.constant 0 : index
    %0 = vector.load %arg1[%c0, %c0_0] : memref<32x64xbf16, #tpu.memory_space<vmem>>, vector<32x64xbf16>
    %c0_1 = arith.constant 0 : index
    %c0_2 = arith.constant 0 : index
    %1 = vector.load %arg2[%c0_1, %c0_2] : memref<64x64xbf16, #tpu.memory_space<vmem>>, vector<64x64xbf16>
    %cst = arith.constant dense<0.000000e+00> : vector<32x64xf32>
    %2 = tpu.matmul %0, %1, %cst {dimension_numbers = #tpu.dot_dimension_numbers<[1], [0], [0], [1], [0, 0, 1, 1], [], []>} : vector<32x64xbf16>, vector<64x64xbf16>, vector<32x64xf32> -> vector<32x64xf32>
    %c0_3 = arith.constant 0 : index
    %c0_4 = arith.constant 0 : index
    %3 = vector.load %arg3[%c0_3, %c0_4] : memref<1x64xf32, #tpu.memory_space<vmem>>, vector<1x64xf32>
    %4 = vector.broadcast %3 : vector<1x64xf32> to vector<32x64xf32>
    %5 = arith.addf %2, %4 : vector<32x64xf32>
    %6 = arith.negf %5 : vector<32x64xf32>
    %7 = math.exp %6 : vector<32x64xf32>
    %cst_5 = arith.constant 1.000000e+00 : f32
    %8 = vector.broadcast %cst_5 : f32 to vector<32x64xf32>
    %9 = arith.addf %8, %7 : vector<32x64xf32>
    %10 = arith.divf %8, %9 : vector<32x64xf32>
    %11 = arith.mulf %5, %10 : vector<32x64xf32>
    %c0_6 = arith.constant 0 : index
    %c0_7 = arith.constant 0 : index
    %12 = vector.load %arg4[%c0_6, %c0_7] : memref<32x64xf32, #tpu.memory_space<vmem>>, vector<32x64xf32>
    tpu.vector_store %arg4[%c0_6, %c0_7], %11 {strides = array<i32>} : memref<32x64xf32, #tpu.memory_space<vmem>>, vector<32x64xf32>,
    return
  }
  func.func @transform_0(%arg0: i32) -> (i32, i32) {
    %c0_i32 = arith.constant 0 : i32
    %c0_i32_0 = arith.constant 0 : i32
    return %arg0, %c0_i32 : i32, i32
  }
  func.func @transform_1(%arg0: i32) -> (i32, i32) {
    %c0_i32 = arith.constant 0 : i32
    %c0_i32_0 = arith.constant 0 : i32
    %c0_i32_1 = arith.constant 0 : i32
    return %c0_i32, %c0_i32_0 : i32, i32
  }
  func.func @transform_2(%arg0: i32) -> (i32, i32) {
    %c0_i32 = arith.constant 0 : i32
    %c0_i32_0 = arith.constant 0 : i32
    %c0_i32_1 = arith.constant 0 : i32
    return %c0_i32, %c0_i32_0 : i32, i32
  }
  func.func @transform_3(%arg0: i32) -> (i32, i32) {
    %c0_i32 = arith.constant 0 : i32
    %c0_i32_0 = arith.constant 0 : i32
    return %arg0, %c0_i32 : i32, i32
  }
}

module attributes {stable_mosaic.version = 11 : i64} {
  func.func @_gemm_bias_act_kernel(%arg0: i32, %arg1: memref<32x288xbf16, #tpu.memory_space<vmem>>, %arg2: memref<288x16xbf16, #tpu.memory_space<vmem>>, %arg3: memref<1x16xf32, #tpu.memory_space<vmem>>, %arg4: memref<32x16xf32, #tpu.memory_space<vmem>>) attributes {dimension_semantics = [#tpu.dimension_semantics<parallel>], iteration_bounds = array<i64: 1>, scalar_prefetch = 0 : i64, scratch_operands = 0 : i64, tpu.core_type = #tpu.core_type<tc>, window_params = [{transform_indices = @transform_0, window_bounds = array<i64: 32, 288>}, {pipeline_mode = #tpu.pipeline_mode<synchronous>, transform_indices = @transform_1, window_bounds = array<i64: 288, 16>}, {pipeline_mode = #tpu.pipeline_mode<synchronous>, transform_indices = @transform_2, window_bounds = array<i64: 1, 16>}, {transform_indices = @transform_3, window_bounds = array<i64: 32, 16>}]} {
    %c0 = arith.constant 0 : index
    %c0_0 = arith.constant 0 : index
    %0 = vector.load %arg1[%c0, %c0_0] : memref<32x288xbf16, #tpu.memory_space<vmem>>, vector<32x288xbf16>
    %c0_1 = arith.constant 0 : index
    %c0_2 = arith.constant 0 : index
    %1 = vector.load %arg2[%c0_1, %c0_2] : memref<288x16xbf16, #tpu.memory_space<vmem>>, vector<288x16xbf16>
    %cst = arith.constant dense<0.000000e+00> : vector<32x16xf32>
    %2 = tpu.matmul %0, %1, %cst {dimension_numbers = #tpu.dot_dimension_numbers<[1], [0], [0], [1], [0, 0, 1, 1], [], []>} : vector<32x288xbf16>, vector<288x16xbf16>, vector<32x16xf32> -> vector<32x16xf32>
    %c0_3 = arith.constant 0 : index
    %c0_4 = arith.constant 0 : index
    %3 = vector.load %arg3[%c0_3, %c0_4] : memref<1x16xf32, #tpu.memory_space<vmem>>, vector<1x16xf32>
    %4 = vector.broadcast %3 : vector<1x16xf32> to vector<32x16xf32>
    %5 = arith.addf %2, %4 : vector<32x16xf32>
    %6 = arith.negf %5 : vector<32x16xf32>
    %7 = math.exp %6 : vector<32x16xf32>
    %cst_5 = arith.constant 1.000000e+00 : f32
    %8 = vector.broadcast %cst_5 : f32 to vector<32x16xf32>
    %9 = arith.addf %8, %7 : vector<32x16xf32>
    %10 = arith.divf %8, %9 : vector<32x16xf32>
    %11 = arith.mulf %5, %10 : vector<32x16xf32>
    %c0_6 = arith.constant 0 : index
    %c0_7 = arith.constant 0 : index
    %12 = vector.load %arg4[%c0_6, %c0_7] : memref<32x16xf32, #tpu.memory_space<vmem>>, vector<32x16xf32>
    tpu.vector_store %arg4[%c0_6, %c0_7], %11 {strides = array<i32>} : memref<32x16xf32, #tpu.memory_space<vmem>>, vector<32x16xf32>,
    return
  }
  func.func @transform_0(%arg0: i32) -> (i32, i32) {
    %c0_i32 = arith.constant 0 : i32
    %c0_i32_0 = arith.constant 0 : i32
    return %arg0, %c0_i32 : i32, i32
  }
  func.func @transform_1(%arg0: i32) -> (i32, i32) {
    %c0_i32 = arith.constant 0 : i32
    %c0_i32_0 = arith.constant 0 : i32
    %c0_i32_1 = arith.constant 0 : i32
    return %c0_i32, %c0_i32_0 : i32, i32
  }
  func.func @transform_2(%arg0: i32) -> (i32, i32) {
    %c0_i32 = arith.constant 0 : i32
    %c0_i32_0 = arith.constant 0 : i32
    %c0_i32_1 = arith.constant 0 : i32
    return %c0_i32, %c0_i32_0 : i32, i32
  }
  func.func @transform_3(%arg0: i32) -> (i32, i32) {
    %c0_i32 = arith.constant 0 : i32
    %c0_i32_0 = arith.constant 0 : i32
    return %arg0, %c0_i32 : i32, i32
  }
}

module attributes {stable_mosaic.version = 11 : i64} {
  func.func @_gemm_bias_act_kernel(%arg0: i32, %arg1: memref<32x576xbf16, #tpu.memory_space<vmem>>, %arg2: memref<576x64xbf16, #tpu.memory_space<vmem>>, %arg3: memref<1x64xf32, #tpu.memory_space<vmem>>, %arg4: memref<32x64xf32, #tpu.memory_space<vmem>>) attributes {dimension_semantics = [#tpu.dimension_semantics<parallel>], iteration_bounds = array<i64: 1>, scalar_prefetch = 0 : i64, scratch_operands = 0 : i64, tpu.core_type = #tpu.core_type<tc>, window_params = [{transform_indices = @transform_0, window_bounds = array<i64: 32, 576>}, {pipeline_mode = #tpu.pipeline_mode<synchronous>, transform_indices = @transform_1, window_bounds = array<i64: 576, 64>}, {pipeline_mode = #tpu.pipeline_mode<synchronous>, transform_indices = @transform_2, window_bounds = array<i64: 1, 64>}, {transform_indices = @transform_3, window_bounds = array<i64: 32, 64>}]} {
    %c0 = arith.constant 0 : index
    %c0_0 = arith.constant 0 : index
    %0 = vector.load %arg1[%c0, %c0_0] : memref<32x576xbf16, #tpu.memory_space<vmem>>, vector<32x576xbf16>
    %c0_1 = arith.constant 0 : index
    %c0_2 = arith.constant 0 : index
    %1 = vector.load %arg2[%c0_1, %c0_2] : memref<576x64xbf16, #tpu.memory_space<vmem>>, vector<576x64xbf16>
    %cst = arith.constant dense<0.000000e+00> : vector<32x64xf32>
    %2 = tpu.matmul %0, %1, %cst {dimension_numbers = #tpu.dot_dimension_numbers<[1], [0], [0], [1], [0, 0, 1, 1], [], []>} : vector<32x576xbf16>, vector<576x64xbf16>, vector<32x64xf32> -> vector<32x64xf32>
    %c0_3 = arith.constant 0 : index
    %c0_4 = arith.constant 0 : index
    %3 = vector.load %arg3[%c0_3, %c0_4] : memref<1x64xf32, #tpu.memory_space<vmem>>, vector<1x64xf32>
    %4 = vector.broadcast %3 : vector<1x64xf32> to vector<32x64xf32>
    %5 = arith.addf %2, %4 : vector<32x64xf32>
    %6 = arith.negf %5 : vector<32x64xf32>
    %7 = math.exp %6 : vector<32x64xf32>
    %cst_5 = arith.constant 1.000000e+00 : f32
    %8 = vector.broadcast %cst_5 : f32 to vector<32x64xf32>
    %9 = arith.addf %8, %7 : vector<32x64xf32>
    %10 = arith.divf %8, %9 : vector<32x64xf32>
    %11 = arith.mulf %5, %10 : vector<32x64xf32>
    %c0_6 = arith.constant 0 : index
    %c0_7 = arith.constant 0 : index
    %12 = vector.load %arg4[%c0_6, %c0_7] : memref<32x64xf32, #tpu.memory_space<vmem>>, vector<32x64xf32>
    tpu.vector_store %arg4[%c0_6, %c0_7], %11 {strides = array<i32>} : memref<32x64xf32, #tpu.memory_space<vmem>>, vector<32x64xf32>,
    return
  }
  func.func @transform_0(%arg0: i32) -> (i32, i32) {
    %c0_i32 = arith.constant 0 : i32
    %c0_i32_0 = arith.constant 0 : i32
    return %arg0, %c0_i32 : i32, i32
  }
  func.func @transform_1(%arg0: i32) -> (i32, i32) {
    %c0_i32 = arith.constant 0 : i32
    %c0_i32_0 = arith.constant 0 : i32
    %c0_i32_1 = arith.constant 0 : i32
    return %c0_i32, %c0_i32_0 : i32, i32
  }
  func.func @transform_2(%arg0: i32) -> (i32, i32) {
    %c0_i32 = arith.constant 0 : i32
    %c0_i32_0 = arith.constant 0 : i32
    %c0_i32_1 = arith.constant 0 : i32
    return %c0_i32, %c0_i32_0 : i32, i32
  }
  func.func @transform_3(%arg0: i32) -> (i32, i32) {
    %c0_i32 = arith.constant 0 : i32
    %c0_i32_0 = arith.constant 0 : i32
    return %arg0, %c0_i32 : i32, i32
  }
}

module attributes {stable_mosaic.version = 11 : i64} {
  func.func @_gemm_bias_act_kernel(%arg0: i32, %arg1: memref<32x144xbf16, #tpu.memory_space<vmem>>, %arg2: memref<144x32xbf16, #tpu.memory_space<vmem>>, %arg3: memref<1x32xf32, #tpu.memory_space<vmem>>, %arg4: memref<32x32xf32, #tpu.memory_space<vmem>>) attributes {dimension_semantics = [#tpu.dimension_semantics<parallel>], iteration_bounds = array<i64: 1>, scalar_prefetch = 0 : i64, scratch_operands = 0 : i64, tpu.core_type = #tpu.core_type<tc>, window_params = [{transform_indices = @transform_0, window_bounds = array<i64: 32, 144>}, {pipeline_mode = #tpu.pipeline_mode<synchronous>, transform_indices = @transform_1, window_bounds = array<i64: 144, 32>}, {pipeline_mode = #tpu.pipeline_mode<synchronous>, transform_indices = @transform_2, window_bounds = array<i64: 1, 32>}, {transform_indices = @transform_3, window_bounds = array<i64: 32, 32>}]} {
    %c0 = arith.constant 0 : index
    %c0_0 = arith.constant 0 : index
    %0 = vector.load %arg1[%c0, %c0_0] : memref<32x144xbf16, #tpu.memory_space<vmem>>, vector<32x144xbf16>
    %c0_1 = arith.constant 0 : index
    %c0_2 = arith.constant 0 : index
    %1 = vector.load %arg2[%c0_1, %c0_2] : memref<144x32xbf16, #tpu.memory_space<vmem>>, vector<144x32xbf16>
    %cst = arith.constant dense<0.000000e+00> : vector<32x32xf32>
    %2 = tpu.matmul %0, %1, %cst {dimension_numbers = #tpu.dot_dimension_numbers<[1], [0], [0], [1], [0, 0, 1, 1], [], []>} : vector<32x144xbf16>, vector<144x32xbf16>, vector<32x32xf32> -> vector<32x32xf32>
    %c0_3 = arith.constant 0 : index
    %c0_4 = arith.constant 0 : index
    %3 = vector.load %arg3[%c0_3, %c0_4] : memref<1x32xf32, #tpu.memory_space<vmem>>, vector<1x32xf32>
    %4 = vector.broadcast %3 : vector<1x32xf32> to vector<32x32xf32>
    %5 = arith.addf %2, %4 : vector<32x32xf32>
    %6 = arith.negf %5 : vector<32x32xf32>
    %7 = math.exp %6 : vector<32x32xf32>
    %cst_5 = arith.constant 1.000000e+00 : f32
    %8 = vector.broadcast %cst_5 : f32 to vector<32x32xf32>
    %9 = arith.addf %8, %7 : vector<32x32xf32>
    %10 = arith.divf %8, %9 : vector<32x32xf32>
    %11 = arith.mulf %5, %10 : vector<32x32xf32>
    %c0_6 = arith.constant 0 : index
    %c0_7 = arith.constant 0 : index
    %12 = vector.load %arg4[%c0_6, %c0_7] : memref<32x32xf32, #tpu.memory_space<vmem>>, vector<32x32xf32>
    tpu.vector_store %arg4[%c0_6, %c0_7], %11 {strides = array<i32>} : memref<32x32xf32, #tpu.memory_space<vmem>>, vector<32x32xf32>,
    return
  }
  func.func @transform_0(%arg0: i32) -> (i32, i32) {
    %c0_i32 = arith.constant 0 : i32
    %c0_i32_0 = arith.constant 0 : i32
    return %arg0, %c0_i32 : i32, i32
  }
  func.func @transform_1(%arg0: i32) -> (i32, i32) {
    %c0_i32 = arith.constant 0 : i32
    %c0_i32_0 = arith.constant 0 : i32
    %c0_i32_1 = arith.constant 0 : i32
    return %c0_i32, %c0_i32_0 : i32, i32
  }
  func.func @transform_2(%arg0: i32) -> (i32, i32) {
    %c0_i32 = arith.constant 0 : i32
    %c0_i32_0 = arith.constant 0 : i32
    %c0_i32_1 = arith.constant 0 : i32
    return %c0_i32, %c0_i32_0 : i32, i32
  }
  func.func @transform_3(%arg0: i32) -> (i32, i32) {
    %c0_i32 = arith.constant 0 : i32
    %c0_i32_0 = arith.constant 0 : i32
    return %arg0, %c0_i32 : i32, i32
  }
}

module attributes {stable_mosaic.version = 11 : i64} {
  func.func @_gemm_bias_act_kernel(%arg0: i32, %arg1: memref<32x96xbf16, #tpu.memory_space<vmem>>, %arg2: memref<96x128xbf16, #tpu.memory_space<vmem>>, %arg3: memref<1x128xf32, #tpu.memory_space<vmem>>, %arg4: memref<32x128xf32, #tpu.memory_space<vmem>>) attributes {dimension_semantics = [#tpu.dimension_semantics<parallel>], iteration_bounds = array<i64: 1>, scalar_prefetch = 0 : i64, scratch_operands = 0 : i64, tpu.core_type = #tpu.core_type<tc>, window_params = [{transform_indices = @transform_0, window_bounds = array<i64: 32, 96>}, {pipeline_mode = #tpu.pipeline_mode<synchronous>, transform_indices = @transform_1, window_bounds = array<i64: 96, 128>}, {pipeline_mode = #tpu.pipeline_mode<synchronous>, transform_indices = @transform_2, window_bounds = array<i64: 1, 128>}, {transform_indices = @transform_3, window_bounds = array<i64: 32, 128>}]} {
    %c0 = arith.constant 0 : index
    %c0_0 = arith.constant 0 : index
    %0 = vector.load %arg1[%c0, %c0_0] : memref<32x96xbf16, #tpu.memory_space<vmem>>, vector<32x96xbf16>
    %c0_1 = arith.constant 0 : index
    %c0_2 = arith.constant 0 : index
    %1 = vector.load %arg2[%c0_1, %c0_2] : memref<96x128xbf16, #tpu.memory_space<vmem>>, vector<96x128xbf16>
    %cst = arith.constant dense<0.000000e+00> : vector<32x128xf32>
    %2 = tpu.matmul %0, %1, %cst {dimension_numbers = #tpu.dot_dimension_numbers<[1], [0], [0], [1], [0, 0, 1, 1], [], []>} : vector<32x96xbf16>, vector<96x128xbf16>, vector<32x128xf32> -> vector<32x128xf32>
    %c0_3 = arith.constant 0 : index
    %c0_4 = arith.constant 0 : index
    %3 = vector.load %arg3[%c0_3, %c0_4] : memref<1x128xf32, #tpu.memory_space<vmem>>, vector<1x128xf32>
    %4 = vector.broadcast %3 : vector<1x128xf32> to vector<32x128xf32>
    %5 = arith.addf %2, %4 : vector<32x128xf32>
    %6 = arith.negf %5 : vector<32x128xf32>
    %7 = math.exp %6 : vector<32x128xf32>
    %cst_5 = arith.constant 1.000000e+00 : f32
    %8 = vector.broadcast %cst_5 : f32 to vector<32x128xf32>
    %9 = arith.addf %8, %7 : vector<32x128xf32>
    %10 = arith.divf %8, %9 : vector<32x128xf32>
    %11 = arith.mulf %5, %10 : vector<32x128xf32>
    %c0_6 = arith.constant 0 : index
    %c0_7 = arith.constant 0 : index
    %12 = vector.load %arg4[%c0_6, %c0_7] : memref<32x128xf32, #tpu.memory_space<vmem>>, vector<32x128xf32>
    tpu.vector_store %arg4[%c0_6, %c0_7], %11 {strides = array<i32>} : memref<32x128xf32, #tpu.memory_space<vmem>>, vector<32x128xf32>,
    return
  }
  func.func @transform_0(%arg0: i32) -> (i32, i32) {
    %c0_i32 = arith.constant 0 : i32
    %c0_i32_0 = arith.constant 0 : i32
    return %arg0, %c0_i32 : i32, i32
  }
  func.func @transform_1(%arg0: i32) -> (i32, i32) {
    %c0_i32 = arith.constant 0 : i32
    %c0_i32_0 = arith.constant 0 : i32
    %c0_i32_1 = arith.constant 0 : i32
    return %c0_i32, %c0_i32_0 : i32, i32
  }
  func.func @transform_2(%arg0: i32) -> (i32, i32) {
    %c0_i32 = arith.constant 0 : i32
    %c0_i32_0 = arith.constant 0 : i32
    %c0_i32_1 = arith.constant 0 : i32
    return %c0_i32, %c0_i32_0 : i32, i32
  }
  func.func @transform_3(%arg0: i32) -> (i32, i32) {
    %c0_i32 = arith.constant 0 : i32
    %c0_i32_0 = arith.constant 0 : i32
    return %arg0, %c0_i32 : i32, i32
  }
}

module attributes {stable_mosaic.version = 11 : i64} {
  func.func @_gemm_bias_act_kernel(%arg0: i32, %arg1: memref<8x1152xbf16, #tpu.memory_space<vmem>>, %arg2: memref<1152x128xbf16, #tpu.memory_space<vmem>>, %arg3: memref<1x128xf32, #tpu.memory_space<vmem>>, %arg4: memref<8x128xf32, #tpu.memory_space<vmem>>) attributes {dimension_semantics = [#tpu.dimension_semantics<parallel>], iteration_bounds = array<i64: 1>, scalar_prefetch = 0 : i64, scratch_operands = 0 : i64, tpu.core_type = #tpu.core_type<tc>, window_params = [{transform_indices = @transform_0, window_bounds = array<i64: 8, 1152>}, {pipeline_mode = #tpu.pipeline_mode<synchronous>, transform_indices = @transform_1, window_bounds = array<i64: 1152, 128>}, {pipeline_mode = #tpu.pipeline_mode<synchronous>, transform_indices = @transform_2, window_bounds = array<i64: 1, 128>}, {transform_indices = @transform_3, window_bounds = array<i64: 8, 128>}]} {
    %c0 = arith.constant 0 : index
    %c0_0 = arith.constant 0 : index
    %0 = vector.load %arg1[%c0, %c0_0] : memref<8x1152xbf16, #tpu.memory_space<vmem>>, vector<8x1152xbf16>
    %c0_1 = arith.constant 0 : index
    %c0_2 = arith.constant 0 : index
    %1 = vector.load %arg2[%c0_1, %c0_2] : memref<1152x128xbf16, #tpu.memory_space<vmem>>, vector<1152x128xbf16>
    %cst = arith.constant dense<0.000000e+00> : vector<8x128xf32>
    %2 = tpu.matmul %0, %1, %cst {dimension_numbers = #tpu.dot_dimension_numbers<[1], [0], [0], [1], [0, 0, 1, 1], [], []>} : vector<8x1152xbf16>, vector<1152x128xbf16>, vector<8x128xf32> -> vector<8x128xf32>
    %c0_3 = arith.constant 0 : index
    %c0_4 = arith.constant 0 : index
    %3 = vector.load %arg3[%c0_3, %c0_4] : memref<1x128xf32, #tpu.memory_space<vmem>>, vector<1x128xf32>
    %4 = vector.broadcast %3 : vector<1x128xf32> to vector<8x128xf32>
    %5 = arith.addf %2, %4 : vector<8x128xf32>
    %6 = arith.negf %5 : vector<8x128xf32>
    %7 = math.exp %6 : vector<8x128xf32>
    %cst_5 = arith.constant 1.000000e+00 : f32
    %8 = vector.broadcast %cst_5 : f32 to vector<8x128xf32>
    %9 = arith.addf %8, %7 : vector<8x128xf32>
    %10 = arith.divf %8, %9 : vector<8x128xf32>
    %11 = arith.mulf %5, %10 : vector<8x128xf32>
    %c0_6 = arith.constant 0 : index
    %c0_7 = arith.constant 0 : index
    %12 = vector.load %arg4[%c0_6, %c0_7] : memref<8x128xf32, #tpu.memory_space<vmem>>, vector<8x128xf32>
    tpu.vector_store %arg4[%c0_6, %c0_7], %11 {strides = array<i32>} : memref<8x128xf32, #tpu.memory_space<vmem>>, vector<8x128xf32>,
    return
  }
  func.func @transform_0(%arg0: i32) -> (i32, i32) {
    %c0_i32 = arith.constant 0 : i32
    %c0_i32_0 = arith.constant 0 : i32
    return %arg0, %c0_i32 : i32, i32
  }
  func.func @transform_1(%arg0: i32) -> (i32, i32) {
    %c0_i32 = arith.constant 0 : i32
    %c0_i32_0 = arith.constant 0 : i32
    %c0_i32_1 = arith.constant 0 : i32
    return %c0_i32, %c0_i32_0 : i32, i32
  }
  func.func @transform_2(%arg0: i32) -> (i32, i32) {
    %c0_i32 = arith.constant 0 : i32
    %c0_i32_0 = arith.constant 0 : i32
    %c0_i32_1 = arith.constant 0 : i32
    return %c0_i32, %c0_i32_0 : i32, i32
  }
  func.func @transform_3(%arg0: i32) -> (i32, i32) {
    %c0_i32 = arith.constant 0 : i32
    %c0_i32_0 = arith.constant 0 : i32
    return %arg0, %c0_i32 : i32, i32
  }
}

module attributes {stable_mosaic.version = 11 : i64} {
  func.func @_gemm_bias_act_kernel(%arg0: i32, %arg1: memref<8x128xbf16, #tpu.memory_space<vmem>>, %arg2: memref<128x128xbf16, #tpu.memory_space<vmem>>, %arg3: memref<1x128xf32, #tpu.memory_space<vmem>>, %arg4: memref<8x128xf32, #tpu.memory_space<vmem>>) attributes {dimension_semantics = [#tpu.dimension_semantics<parallel>], iteration_bounds = array<i64: 1>, scalar_prefetch = 0 : i64, scratch_operands = 0 : i64, tpu.core_type = #tpu.core_type<tc>, window_params = [{transform_indices = @transform_0, window_bounds = array<i64: 8, 128>}, {pipeline_mode = #tpu.pipeline_mode<synchronous>, transform_indices = @transform_1, window_bounds = array<i64: 128, 128>}, {pipeline_mode = #tpu.pipeline_mode<synchronous>, transform_indices = @transform_2, window_bounds = array<i64: 1, 128>}, {transform_indices = @transform_3, window_bounds = array<i64: 8, 128>}]} {
    %c0 = arith.constant 0 : index
    %c0_0 = arith.constant 0 : index
    %0 = vector.load %arg1[%c0, %c0_0] : memref<8x128xbf16, #tpu.memory_space<vmem>>, vector<8x128xbf16>
    %c0_1 = arith.constant 0 : index
    %c0_2 = arith.constant 0 : index
    %1 = vector.load %arg2[%c0_1, %c0_2] : memref<128x128xbf16, #tpu.memory_space<vmem>>, vector<128x128xbf16>
    %cst = arith.constant dense<0.000000e+00> : vector<8x128xf32>
    %2 = tpu.matmul %0, %1, %cst {dimension_numbers = #tpu.dot_dimension_numbers<[1], [0], [0], [1], [0, 0, 1, 1], [], []>} : vector<8x128xbf16>, vector<128x128xbf16>, vector<8x128xf32> -> vector<8x128xf32>
    %c0_3 = arith.constant 0 : index
    %c0_4 = arith.constant 0 : index
    %3 = vector.load %arg3[%c0_3, %c0_4] : memref<1x128xf32, #tpu.memory_space<vmem>>, vector<1x128xf32>
    %4 = vector.broadcast %3 : vector<1x128xf32> to vector<8x128xf32>
    %5 = arith.addf %2, %4 : vector<8x128xf32>
    %6 = arith.negf %5 : vector<8x128xf32>
    %7 = math.exp %6 : vector<8x128xf32>
    %cst_5 = arith.constant 1.000000e+00 : f32
    %8 = vector.broadcast %cst_5 : f32 to vector<8x128xf32>
    %9 = arith.addf %8, %7 : vector<8x128xf32>
    %10 = arith.divf %8, %9 : vector<8x128xf32>
    %11 = arith.mulf %5, %10 : vector<8x128xf32>
    %c0_6 = arith.constant 0 : index
    %c0_7 = arith.constant 0 : index
    %12 = vector.load %arg4[%c0_6, %c0_7] : memref<8x128xf32, #tpu.memory_space<vmem>>, vector<8x128xf32>
    tpu.vector_store %arg4[%c0_6, %c0_7], %11 {strides = array<i32>} : memref<8x128xf32, #tpu.memory_space<vmem>>, vector<8x128xf32>,
    return
  }
  func.func @transform_0(%arg0: i32) -> (i32, i32) {
    %c0_i32 = arith.constant 0 : i32
    %c0_i32_0 = arith.constant 0 : i32
    return %arg0, %c0_i32 : i32, i32
  }
  func.func @transform_1(%arg0: i32) -> (i32, i32) {
    %c0_i32 = arith.constant 0 : i32
    %c0_i32_0 = arith.constant 0 : i32
    %c0_i32_1 = arith.constant 0 : i32
    return %c0_i32, %c0_i32_0 : i32, i32
  }
  func.func @transform_2(%arg0: i32) -> (i32, i32) {
    %c0_i32 = arith.constant 0 : i32
    %c0_i32_0 = arith.constant 0 : i32
    %c0_i32_1 = arith.constant 0 : i32
    return %c0_i32, %c0_i32_0 : i32, i32
  }
  func.func @transform_3(%arg0: i32) -> (i32, i32) {
    %c0_i32 = arith.constant 0 : i32
    %c0_i32_0 = arith.constant 0 : i32
    return %arg0, %c0_i32 : i32, i32
  }
}

module attributes {stable_mosaic.version = 11 : i64} {
  func.func @_gemm_bias_act_kernel(%arg0: i32, %arg1: memref<8x288xbf16, #tpu.memory_space<vmem>>, %arg2: memref<288x32xbf16, #tpu.memory_space<vmem>>, %arg3: memref<1x32xf32, #tpu.memory_space<vmem>>, %arg4: memref<8x32xf32, #tpu.memory_space<vmem>>) attributes {dimension_semantics = [#tpu.dimension_semantics<parallel>], iteration_bounds = array<i64: 1>, scalar_prefetch = 0 : i64, scratch_operands = 0 : i64, tpu.core_type = #tpu.core_type<tc>, window_params = [{transform_indices = @transform_0, window_bounds = array<i64: 8, 288>}, {pipeline_mode = #tpu.pipeline_mode<synchronous>, transform_indices = @transform_1, window_bounds = array<i64: 288, 32>}, {pipeline_mode = #tpu.pipeline_mode<synchronous>, transform_indices = @transform_2, window_bounds = array<i64: 1, 32>}, {transform_indices = @transform_3, window_bounds = array<i64: 8, 32>}]} {
    %c0 = arith.constant 0 : index
    %c0_0 = arith.constant 0 : index
    %0 = vector.load %arg1[%c0, %c0_0] : memref<8x288xbf16, #tpu.memory_space<vmem>>, vector<8x288xbf16>
    %c0_1 = arith.constant 0 : index
    %c0_2 = arith.constant 0 : index
    %1 = vector.load %arg2[%c0_1, %c0_2] : memref<288x32xbf16, #tpu.memory_space<vmem>>, vector<288x32xbf16>
    %cst = arith.constant dense<0.000000e+00> : vector<8x32xf32>
    %2 = tpu.matmul %0, %1, %cst {dimension_numbers = #tpu.dot_dimension_numbers<[1], [0], [0], [1], [0, 0, 1, 1], [], []>} : vector<8x288xbf16>, vector<288x32xbf16>, vector<8x32xf32> -> vector<8x32xf32>
    %c0_3 = arith.constant 0 : index
    %c0_4 = arith.constant 0 : index
    %3 = vector.load %arg3[%c0_3, %c0_4] : memref<1x32xf32, #tpu.memory_space<vmem>>, vector<1x32xf32>
    %4 = vector.broadcast %3 : vector<1x32xf32> to vector<8x32xf32>
    %5 = arith.addf %2, %4 : vector<8x32xf32>
    %6 = arith.negf %5 : vector<8x32xf32>
    %7 = math.exp %6 : vector<8x32xf32>
    %cst_5 = arith.constant 1.000000e+00 : f32
    %8 = vector.broadcast %cst_5 : f32 to vector<8x32xf32>
    %9 = arith.addf %8, %7 : vector<8x32xf32>
    %10 = arith.divf %8, %9 : vector<8x32xf32>
    %11 = arith.mulf %5, %10 : vector<8x32xf32>
    %c0_6 = arith.constant 0 : index
    %c0_7 = arith.constant 0 : index
    %12 = vector.load %arg4[%c0_6, %c0_7] : memref<8x32xf32, #tpu.memory_space<vmem>>, vector<8x32xf32>
    tpu.vector_store %arg4[%c0_6, %c0_7], %11 {strides = array<i32>} : memref<8x32xf32, #tpu.memory_space<vmem>>, vector<8x32xf32>,
    return
  }
  func.func @transform_0(%arg0: i32) -> (i32, i32) {
    %c0_i32 = arith.constant 0 : i32
    %c0_i32_0 = arith.constant 0 : i32
    return %arg0, %c0_i32 : i32, i32
  }
  func.func @transform_1(%arg0: i32) -> (i32, i32) {
    %c0_i32 = arith.constant 0 : i32
    %c0_i32_0 = arith.constant 0 : i32
    %c0_i32_1 = arith.constant 0 : i32
    return %c0_i32, %c0_i32_0 : i32, i32
  }
  func.func @transform_2(%arg0: i32) -> (i32, i32) {
    %c0_i32 = arith.constant 0 : i32
    %c0_i32_0 = arith.constant 0 : i32
    %c0_i32_1 = arith.constant 0 : i32
    return %c0_i32, %c0_i32_0 : i32, i32
  }
  func.func @transform_3(%arg0: i32) -> (i32, i32) {
    %c0_i32 = arith.constant 0 : i32
    %c0_i32_0 = arith.constant 0 : i32
    return %arg0, %c0_i32 : i32, i32
  }
}

module attributes {stable_mosaic.version = 11 : i64} {
  func.func @_gemm_bias_act_kernel(%arg0: i32, %arg1: memref<8x64xbf16, #tpu.memory_space<vmem>>, %arg2: memref<64x32xbf16, #tpu.memory_space<vmem>>, %arg3: memref<1x32xf32, #tpu.memory_space<vmem>>, %arg4: memref<8x32xf32, #tpu.memory_space<vmem>>) attributes {dimension_semantics = [#tpu.dimension_semantics<parallel>], iteration_bounds = array<i64: 1>, scalar_prefetch = 0 : i64, scratch_operands = 0 : i64, tpu.core_type = #tpu.core_type<tc>, window_params = [{transform_indices = @transform_0, window_bounds = array<i64: 8, 64>}, {pipeline_mode = #tpu.pipeline_mode<synchronous>, transform_indices = @transform_1, window_bounds = array<i64: 64, 32>}, {pipeline_mode = #tpu.pipeline_mode<synchronous>, transform_indices = @transform_2, window_bounds = array<i64: 1, 32>}, {transform_indices = @transform_3, window_bounds = array<i64: 8, 32>}]} {
    %c0 = arith.constant 0 : index
    %c0_0 = arith.constant 0 : index
    %0 = vector.load %arg1[%c0, %c0_0] : memref<8x64xbf16, #tpu.memory_space<vmem>>, vector<8x64xbf16>
    %c0_1 = arith.constant 0 : index
    %c0_2 = arith.constant 0 : index
    %1 = vector.load %arg2[%c0_1, %c0_2] : memref<64x32xbf16, #tpu.memory_space<vmem>>, vector<64x32xbf16>
    %cst = arith.constant dense<0.000000e+00> : vector<8x32xf32>
    %2 = tpu.matmul %0, %1, %cst {dimension_numbers = #tpu.dot_dimension_numbers<[1], [0], [0], [1], [0, 0, 1, 1], [], []>} : vector<8x64xbf16>, vector<64x32xbf16>, vector<8x32xf32> -> vector<8x32xf32>
    %c0_3 = arith.constant 0 : index
    %c0_4 = arith.constant 0 : index
    %3 = vector.load %arg3[%c0_3, %c0_4] : memref<1x32xf32, #tpu.memory_space<vmem>>, vector<1x32xf32>
    %4 = vector.broadcast %3 : vector<1x32xf32> to vector<8x32xf32>
    %5 = arith.addf %2, %4 : vector<8x32xf32>
    %6 = arith.negf %5 : vector<8x32xf32>
    %7 = math.exp %6 : vector<8x32xf32>
    %cst_5 = arith.constant 1.000000e+00 : f32
    %8 = vector.broadcast %cst_5 : f32 to vector<8x32xf32>
    %9 = arith.addf %8, %7 : vector<8x32xf32>
    %10 = arith.divf %8, %9 : vector<8x32xf32>
    %11 = arith.mulf %5, %10 : vector<8x32xf32>
    %c0_6 = arith.constant 0 : index
    %c0_7 = arith.constant 0 : index
    %12 = vector.load %arg4[%c0_6, %c0_7] : memref<8x32xf32, #tpu.memory_space<vmem>>, vector<8x32xf32>
    tpu.vector_store %arg4[%c0_6, %c0_7], %11 {strides = array<i32>} : memref<8x32xf32, #tpu.memory_space<vmem>>, vector<8x32xf32>,
    return
  }
  func.func @transform_0(%arg0: i32) -> (i32, i32) {
    %c0_i32 = arith.constant 0 : i32
    %c0_i32_0 = arith.constant 0 : i32
    return %arg0, %c0_i32 : i32, i32
  }
  func.func @transform_1(%arg0: i32) -> (i32, i32) {
    %c0_i32 = arith.constant 0 : i32
    %c0_i32_0 = arith.constant 0 : i32
    %c0_i32_1 = arith.constant 0 : i32
    return %c0_i32, %c0_i32_0 : i32, i32
  }
  func.func @transform_2(%arg0: i32) -> (i32, i32) {
    %c0_i32 = arith.constant 0 : i32
    %c0_i32_0 = arith.constant 0 : i32
    %c0_i32_1 = arith.constant 0 : i32
    return %c0_i32, %c0_i32_0 : i32, i32
  }
  func.func @transform_3(%arg0: i32) -> (i32, i32) {
    %c0_i32 = arith.constant 0 : i32
    %c0_i32_0 = arith.constant 0 : i32
    return %arg0, %c0_i32 : i32, i32
  }
}

module attributes {stable_mosaic.version = 11 : i64} {
  func.func @_gemm_bias_act_kernel(%arg0: i32, %arg1: memref<8x192xbf16, #tpu.memory_space<vmem>>, %arg2: memref<192x128xbf16, #tpu.memory_space<vmem>>, %arg3: memref<1x128xf32, #tpu.memory_space<vmem>>, %arg4: memref<8x128xf32, #tpu.memory_space<vmem>>) attributes {dimension_semantics = [#tpu.dimension_semantics<parallel>], iteration_bounds = array<i64: 1>, scalar_prefetch = 0 : i64, scratch_operands = 0 : i64, tpu.core_type = #tpu.core_type<tc>, window_params = [{transform_indices = @transform_0, window_bounds = array<i64: 8, 192>}, {pipeline_mode = #tpu.pipeline_mode<synchronous>, transform_indices = @transform_1, window_bounds = array<i64: 192, 128>}, {pipeline_mode = #tpu.pipeline_mode<synchronous>, transform_indices = @transform_2, window_bounds = array<i64: 1, 128>}, {transform_indices = @transform_3, window_bounds = array<i64: 8, 128>}]} {
    %c0 = arith.constant 0 : index
    %c0_0 = arith.constant 0 : index
    %0 = vector.load %arg1[%c0, %c0_0] : memref<8x192xbf16, #tpu.memory_space<vmem>>, vector<8x192xbf16>
    %c0_1 = arith.constant 0 : index
    %c0_2 = arith.constant 0 : index
    %1 = vector.load %arg2[%c0_1, %c0_2] : memref<192x128xbf16, #tpu.memory_space<vmem>>, vector<192x128xbf16>
    %cst = arith.constant dense<0.000000e+00> : vector<8x128xf32>
    %2 = tpu.matmul %0, %1, %cst {dimension_numbers = #tpu.dot_dimension_numbers<[1], [0], [0], [1], [0, 0, 1, 1], [], []>} : vector<8x192xbf16>, vector<192x128xbf16>, vector<8x128xf32> -> vector<8x128xf32>
    %c0_3 = arith.constant 0 : index
    %c0_4 = arith.constant 0 : index
    %3 = vector.load %arg3[%c0_3, %c0_4] : memref<1x128xf32, #tpu.memory_space<vmem>>, vector<1x128xf32>
    %4 = vector.broadcast %3 : vector<1x128xf32> to vector<8x128xf32>
    %5 = arith.addf %2, %4 : vector<8x128xf32>
    %6 = arith.negf %5 : vector<8x128xf32>
    %7 = math.exp %6 : vector<8x128xf32>
    %cst_5 = arith.constant 1.000000e+00 : f32
    %8 = vector.broadcast %cst_5 : f32 to vector<8x128xf32>
    %9 = arith.addf %8, %7 : vector<8x128xf32>
    %10 = arith.divf %8, %9 : vector<8x128xf32>
    %11 = arith.mulf %5, %10 : vector<8x128xf32>
    %c0_6 = arith.constant 0 : index
    %c0_7 = arith.constant 0 : index
    %12 = vector.load %arg4[%c0_6, %c0_7] : memref<8x128xf32, #tpu.memory_space<vmem>>, vector<8x128xf32>
    tpu.vector_store %arg4[%c0_6, %c0_7], %11 {strides = array<i32>} : memref<8x128xf32, #tpu.memory_space<vmem>>, vector<8x128xf32>,
    return
  }
  func.func @transform_0(%arg0: i32) -> (i32, i32) {
    %c0_i32 = arith.constant 0 : i32
    %c0_i32_0 = arith.constant 0 : i32
    return %arg0, %c0_i32 : i32, i32
  }
  func.func @transform_1(%arg0: i32) -> (i32, i32) {
    %c0_i32 = arith.constant 0 : i32
    %c0_i32_0 = arith.constant 0 : i32
    %c0_i32_1 = arith.constant 0 : i32
    return %c0_i32, %c0_i32_0 : i32, i32
  }
  func.func @transform_2(%arg0: i32) -> (i32, i32) {
    %c0_i32 = arith.constant 0 : i32
    %c0_i32_0 = arith.constant 0 : i32
    %c0_i32_1 = arith.constant 0 : i32
    return %c0_i32, %c0_i32_0 : i32, i32
  }
  func.func @transform_3(%arg0: i32) -> (i32, i32) {
    %c0_i32 = arith.constant 0 : i32
    %c0_i32_0 = arith.constant 0 : i32
    return %arg0, %c0_i32 : i32, i32
  }
}

module attributes {stable_mosaic.version = 11 : i64} {
  func.func @_gemm_bias_act_kernel(%arg0: i32, %arg1: memref<8x64xbf16, #tpu.memory_space<vmem>>, %arg2: memref<64x64xbf16, #tpu.memory_space<vmem>>, %arg3: memref<1x64xf32, #tpu.memory_space<vmem>>, %arg4: memref<8x64xf32, #tpu.memory_space<vmem>>) attributes {dimension_semantics = [#tpu.dimension_semantics<parallel>], iteration_bounds = array<i64: 1>, scalar_prefetch = 0 : i64, scratch_operands = 0 : i64, tpu.core_type = #tpu.core_type<tc>, window_params = [{transform_indices = @transform_0, window_bounds = array<i64: 8, 64>}, {pipeline_mode = #tpu.pipeline_mode<synchronous>, transform_indices = @transform_1, window_bounds = array<i64: 64, 64>}, {pipeline_mode = #tpu.pipeline_mode<synchronous>, transform_indices = @transform_2, window_bounds = array<i64: 1, 64>}, {transform_indices = @transform_3, window_bounds = array<i64: 8, 64>}]} {
    %c0 = arith.constant 0 : index
    %c0_0 = arith.constant 0 : index
    %0 = vector.load %arg1[%c0, %c0_0] : memref<8x64xbf16, #tpu.memory_space<vmem>>, vector<8x64xbf16>
    %c0_1 = arith.constant 0 : index
    %c0_2 = arith.constant 0 : index
    %1 = vector.load %arg2[%c0_1, %c0_2] : memref<64x64xbf16, #tpu.memory_space<vmem>>, vector<64x64xbf16>
    %cst = arith.constant dense<0.000000e+00> : vector<8x64xf32>
    %2 = tpu.matmul %0, %1, %cst {dimension_numbers = #tpu.dot_dimension_numbers<[1], [0], [0], [1], [0, 0, 1, 1], [], []>} : vector<8x64xbf16>, vector<64x64xbf16>, vector<8x64xf32> -> vector<8x64xf32>
    %c0_3 = arith.constant 0 : index
    %c0_4 = arith.constant 0 : index
    %3 = vector.load %arg3[%c0_3, %c0_4] : memref<1x64xf32, #tpu.memory_space<vmem>>, vector<1x64xf32>
    %4 = vector.broadcast %3 : vector<1x64xf32> to vector<8x64xf32>
    %5 = arith.addf %2, %4 : vector<8x64xf32>
    %6 = arith.negf %5 : vector<8x64xf32>
    %7 = math.exp %6 : vector<8x64xf32>
    %cst_5 = arith.constant 1.000000e+00 : f32
    %8 = vector.broadcast %cst_5 : f32 to vector<8x64xf32>
    %9 = arith.addf %8, %7 : vector<8x64xf32>
    %10 = arith.divf %8, %9 : vector<8x64xf32>
    %11 = arith.mulf %5, %10 : vector<8x64xf32>
    %c0_6 = arith.constant 0 : index
    %c0_7 = arith.constant 0 : index
    %12 = vector.load %arg4[%c0_6, %c0_7] : memref<8x64xf32, #tpu.memory_space<vmem>>, vector<8x64xf32>
    tpu.vector_store %arg4[%c0_6, %c0_7], %11 {strides = array<i32>} : memref<8x64xf32, #tpu.memory_space<vmem>>, vector<8x64xf32>,
    return
  }
  func.func @transform_0(%arg0: i32) -> (i32, i32) {
    %c0_i32 = arith.constant 0 : i32
    %c0_i32_0 = arith.constant 0 : i32
    return %arg0, %c0_i32 : i32, i32
  }
  func.func @transform_1(%arg0: i32) -> (i32, i32) {
    %c0_i32 = arith.constant 0 : i32
    %c0_i32_0 = arith.constant 0 : i32
    %c0_i32_1 = arith.constant 0 : i32
    return %c0_i32, %c0_i32_0 : i32, i32
  }
  func.func @transform_2(%arg0: i32) -> (i32, i32) {
    %c0_i32 = arith.constant 0 : i32
    %c0_i32_0 = arith.constant 0 : i32
    %c0_i32_1 = arith.constant 0 : i32
    return %c0_i32, %c0_i32_0 : i32, i32
  }
  func.func @transform_3(%arg0: i32) -> (i32, i32) {
    %c0_i32 = arith.constant 0 : i32
    %c0_i32_0 = arith.constant 0 : i32
    return %arg0, %c0_i32 : i32, i32
  }
}

module attributes {stable_mosaic.version = 11 : i64} {
  func.func @_gemm_bias_act_kernel(%arg0: i32, %arg1: memref<2x256xbf16, #tpu.memory_space<vmem>>, %arg2: memref<256x256xbf16, #tpu.memory_space<vmem>>, %arg3: memref<1x256xf32, #tpu.memory_space<vmem>>, %arg4: memref<2x256xf32, #tpu.memory_space<vmem>>) attributes {dimension_semantics = [#tpu.dimension_semantics<parallel>], iteration_bounds = array<i64: 1>, scalar_prefetch = 0 : i64, scratch_operands = 0 : i64, tpu.core_type = #tpu.core_type<tc>, window_params = [{transform_indices = @transform_0, window_bounds = array<i64: 2, 256>}, {pipeline_mode = #tpu.pipeline_mode<synchronous>, transform_indices = @transform_1, window_bounds = array<i64: 256, 256>}, {pipeline_mode = #tpu.pipeline_mode<synchronous>, transform_indices = @transform_2, window_bounds = array<i64: 1, 256>}, {transform_indices = @transform_3, window_bounds = array<i64: 2, 256>}]} {
    %c0 = arith.constant 0 : index
    %c0_0 = arith.constant 0 : index
    %0 = vector.load %arg1[%c0, %c0_0] : memref<2x256xbf16, #tpu.memory_space<vmem>>, vector<2x256xbf16>
    %c0_1 = arith.constant 0 : index
    %c0_2 = arith.constant 0 : index
    %1 = vector.load %arg2[%c0_1, %c0_2] : memref<256x256xbf16, #tpu.memory_space<vmem>>, vector<256x256xbf16>
    %cst = arith.constant dense<0.000000e+00> : vector<2x256xf32>
    %2 = tpu.matmul %0, %1, %cst {dimension_numbers = #tpu.dot_dimension_numbers<[1], [0], [0], [1], [0, 0, 1, 1], [], []>} : vector<2x256xbf16>, vector<256x256xbf16>, vector<2x256xf32> -> vector<2x256xf32>
    %c0_3 = arith.constant 0 : index
    %c0_4 = arith.constant 0 : index
    %3 = vector.load %arg3[%c0_3, %c0_4] : memref<1x256xf32, #tpu.memory_space<vmem>>, vector<1x256xf32>
    %4 = vector.broadcast %3 : vector<1x256xf32> to vector<2x256xf32>
    %5 = arith.addf %2, %4 : vector<2x256xf32>
    %6 = arith.negf %5 : vector<2x256xf32>
    %7 = math.exp %6 : vector<2x256xf32>
    %cst_5 = arith.constant 1.000000e+00 : f32
    %8 = vector.broadcast %cst_5 : f32 to vector<2x256xf32>
    %9 = arith.addf %8, %7 : vector<2x256xf32>
    %10 = arith.divf %8, %9 : vector<2x256xf32>
    %11 = arith.mulf %5, %10 : vector<2x256xf32>
    %c0_6 = arith.constant 0 : index
    %c0_7 = arith.constant 0 : index
    %12 = vector.load %arg4[%c0_6, %c0_7] : memref<2x256xf32, #tpu.memory_space<vmem>>, vector<2x256xf32>
    tpu.vector_store %arg4[%c0_6, %c0_7], %11 {strides = array<i32>} : memref<2x256xf32, #tpu.memory_space<vmem>>, vector<2x256xf32>,
    return
  }
  func.func @transform_0(%arg0: i32) -> (i32, i32) {
    %c0_i32 = arith.constant 0 : i32
    %c0_i32_0 = arith.constant 0 : i32
    return %arg0, %c0_i32 : i32, i32
  }
  func.func @transform_1(%arg0: i32) -> (i32, i32) {
    %c0_i32 = arith.constant 0 : i32
    %c0_i32_0 = arith.constant 0 : i32
    %c0_i32_1 = arith.constant 0 : i32
    return %c0_i32, %c0_i32_0 : i32, i32
  }
  func.func @transform_2(%arg0: i32) -> (i32, i32) {
    %c0_i32 = arith.constant 0 : i32
    %c0_i32_0 = arith.constant 0 : i32
    %c0_i32_1 = arith.constant 0 : i32
    return %c0_i32, %c0_i32_0 : i32, i32
  }
  func.func @transform_3(%arg0: i32) -> (i32, i32) {
    %c0_i32 = arith.constant 0 : i32
    %c0_i32_0 = arith.constant 0 : i32
    return %arg0, %c0_i32 : i32, i32
  }
}

module attributes {stable_mosaic.version = 11 : i64} {
  func.func @_gemm_bias_act_kernel(%arg0: i32, %arg1: memref<2x1152xbf16, #tpu.memory_space<vmem>>, %arg2: memref<1152x256xbf16, #tpu.memory_space<vmem>>, %arg3: memref<1x256xf32, #tpu.memory_space<vmem>>, %arg4: memref<2x256xf32, #tpu.memory_space<vmem>>) attributes {dimension_semantics = [#tpu.dimension_semantics<parallel>], iteration_bounds = array<i64: 1>, scalar_prefetch = 0 : i64, scratch_operands = 0 : i64, tpu.core_type = #tpu.core_type<tc>, window_params = [{transform_indices = @transform_0, window_bounds = array<i64: 2, 1152>}, {pipeline_mode = #tpu.pipeline_mode<synchronous>, transform_indices = @transform_1, window_bounds = array<i64: 1152, 256>}, {pipeline_mode = #tpu.pipeline_mode<synchronous>, transform_indices = @transform_2, window_bounds = array<i64: 1, 256>}, {transform_indices = @transform_3, window_bounds = array<i64: 2, 256>}]} {
    %c0 = arith.constant 0 : index
    %c0_0 = arith.constant 0 : index
    %0 = vector.load %arg1[%c0, %c0_0] : memref<2x1152xbf16, #tpu.memory_space<vmem>>, vector<2x1152xbf16>
    %c0_1 = arith.constant 0 : index
    %c0_2 = arith.constant 0 : index
    %1 = vector.load %arg2[%c0_1, %c0_2] : memref<1152x256xbf16, #tpu.memory_space<vmem>>, vector<1152x256xbf16>
    %cst = arith.constant dense<0.000000e+00> : vector<2x256xf32>
    %2 = tpu.matmul %0, %1, %cst {dimension_numbers = #tpu.dot_dimension_numbers<[1], [0], [0], [1], [0, 0, 1, 1], [], []>} : vector<2x1152xbf16>, vector<1152x256xbf16>, vector<2x256xf32> -> vector<2x256xf32>
    %c0_3 = arith.constant 0 : index
    %c0_4 = arith.constant 0 : index
    %3 = vector.load %arg3[%c0_3, %c0_4] : memref<1x256xf32, #tpu.memory_space<vmem>>, vector<1x256xf32>
    %4 = vector.broadcast %3 : vector<1x256xf32> to vector<2x256xf32>
    %5 = arith.addf %2, %4 : vector<2x256xf32>
    %6 = arith.negf %5 : vector<2x256xf32>
    %7 = math.exp %6 : vector<2x256xf32>
    %cst_5 = arith.constant 1.000000e+00 : f32
    %8 = vector.broadcast %cst_5 : f32 to vector<2x256xf32>
    %9 = arith.addf %8, %7 : vector<2x256xf32>
    %10 = arith.divf %8, %9 : vector<2x256xf32>
    %11 = arith.mulf %5, %10 : vector<2x256xf32>
    %c0_6 = arith.constant 0 : index
    %c0_7 = arith.constant 0 : index
    %12 = vector.load %arg4[%c0_6, %c0_7] : memref<2x256xf32, #tpu.memory_space<vmem>>, vector<2x256xf32>
    tpu.vector_store %arg4[%c0_6, %c0_7], %11 {strides = array<i32>} : memref<2x256xf32, #tpu.memory_space<vmem>>, vector<2x256xf32>,
    return
  }
  func.func @transform_0(%arg0: i32) -> (i32, i32) {
    %c0_i32 = arith.constant 0 : i32
    %c0_i32_0 = arith.constant 0 : i32
    return %arg0, %c0_i32 : i32, i32
  }
  func.func @transform_1(%arg0: i32) -> (i32, i32) {
    %c0_i32 = arith.constant 0 : i32
    %c0_i32_0 = arith.constant 0 : i32
    %c0_i32_1 = arith.constant 0 : i32
    return %c0_i32, %c0_i32_0 : i32, i32
  }
  func.func @transform_2(%arg0: i32) -> (i32, i32) {
    %c0_i32 = arith.constant 0 : i32
    %c0_i32_0 = arith.constant 0 : i32
    %c0_i32_1 = arith.constant 0 : i32
    return %c0_i32, %c0_i32_0 : i32, i32
  }
  func.func @transform_3(%arg0: i32) -> (i32, i32) {
    %c0_i32 = arith.constant 0 : i32
    %c0_i32_0 = arith.constant 0 : i32
    return %arg0, %c0_i32 : i32, i32
  }
}

module attributes {stable_mosaic.version = 11 : i64} {
  func.func @_gemm_bias_act_kernel(%arg0: i32, %arg1: memref<2x128xbf16, #tpu.memory_space<vmem>>, %arg2: memref<128x64xbf16, #tpu.memory_space<vmem>>, %arg3: memref<1x64xf32, #tpu.memory_space<vmem>>, %arg4: memref<2x64xf32, #tpu.memory_space<vmem>>) attributes {dimension_semantics = [#tpu.dimension_semantics<parallel>], iteration_bounds = array<i64: 1>, scalar_prefetch = 0 : i64, scratch_operands = 0 : i64, tpu.core_type = #tpu.core_type<tc>, window_params = [{transform_indices = @transform_0, window_bounds = array<i64: 2, 128>}, {pipeline_mode = #tpu.pipeline_mode<synchronous>, transform_indices = @transform_1, window_bounds = array<i64: 128, 64>}, {pipeline_mode = #tpu.pipeline_mode<synchronous>, transform_indices = @transform_2, window_bounds = array<i64: 1, 64>}, {transform_indices = @transform_3, window_bounds = array<i64: 2, 64>}]} {
    %c0 = arith.constant 0 : index
    %c0_0 = arith.constant 0 : index
    %0 = vector.load %arg1[%c0, %c0_0] : memref<2x128xbf16, #tpu.memory_space<vmem>>, vector<2x128xbf16>
    %c0_1 = arith.constant 0 : index
    %c0_2 = arith.constant 0 : index
    %1 = vector.load %arg2[%c0_1, %c0_2] : memref<128x64xbf16, #tpu.memory_space<vmem>>, vector<128x64xbf16>
    %cst = arith.constant dense<0.000000e+00> : vector<2x64xf32>
    %2 = tpu.matmul %0, %1, %cst {dimension_numbers = #tpu.dot_dimension_numbers<[1], [0], [0], [1], [0, 0, 1, 1], [], []>} : vector<2x128xbf16>, vector<128x64xbf16>, vector<2x64xf32> -> vector<2x64xf32>
    %c0_3 = arith.constant 0 : index
    %c0_4 = arith.constant 0 : index
    %3 = vector.load %arg3[%c0_3, %c0_4] : memref<1x64xf32, #tpu.memory_space<vmem>>, vector<1x64xf32>
    %4 = vector.broadcast %3 : vector<1x64xf32> to vector<2x64xf32>
    %5 = arith.addf %2, %4 : vector<2x64xf32>
    %6 = arith.negf %5 : vector<2x64xf32>
    %7 = math.exp %6 : vector<2x64xf32>
    %cst_5 = arith.constant 1.000000e+00 : f32
    %8 = vector.broadcast %cst_5 : f32 to vector<2x64xf32>
    %9 = arith.addf %8, %7 : vector<2x64xf32>
    %10 = arith.divf %8, %9 : vector<2x64xf32>
    %11 = arith.mulf %5, %10 : vector<2x64xf32>
    %c0_6 = arith.constant 0 : index
    %c0_7 = arith.constant 0 : index
    %12 = vector.load %arg4[%c0_6, %c0_7] : memref<2x64xf32, #tpu.memory_space<vmem>>, vector<2x64xf32>
    tpu.vector_store %arg4[%c0_6, %c0_7], %11 {strides = array<i32>} : memref<2x64xf32, #tpu.memory_space<vmem>>, vector<2x64xf32>,
    return
  }
  func.func @transform_0(%arg0: i32) -> (i32, i32) {
    %c0_i32 = arith.constant 0 : i32
    %c0_i32_0 = arith.constant 0 : i32
    return %arg0, %c0_i32 : i32, i32
  }
  func.func @transform_1(%arg0: i32) -> (i32, i32) {
    %c0_i32 = arith.constant 0 : i32
    %c0_i32_0 = arith.constant 0 : i32
    %c0_i32_1 = arith.constant 0 : i32
    return %c0_i32, %c0_i32_0 : i32, i32
  }
  func.func @transform_2(%arg0: i32) -> (i32, i32) {
    %c0_i32 = arith.constant 0 : i32
    %c0_i32_0 = arith.constant 0 : i32
    %c0_i32_1 = arith.constant 0 : i32
    return %c0_i32, %c0_i32_0 : i32, i32
  }
  func.func @transform_3(%arg0: i32) -> (i32, i32) {
    %c0_i32 = arith.constant 0 : i32
    %c0_i32_0 = arith.constant 0 : i32
    return %arg0, %c0_i32 : i32, i32
  }
}

module attributes {stable_mosaic.version = 11 : i64} {
  func.func @_gemm_bias_act_kernel(%arg0: i32, %arg1: memref<2x576xbf16, #tpu.memory_space<vmem>>, %arg2: memref<576x64xbf16, #tpu.memory_space<vmem>>, %arg3: memref<1x64xf32, #tpu.memory_space<vmem>>, %arg4: memref<2x64xf32, #tpu.memory_space<vmem>>) attributes {dimension_semantics = [#tpu.dimension_semantics<parallel>], iteration_bounds = array<i64: 1>, scalar_prefetch = 0 : i64, scratch_operands = 0 : i64, tpu.core_type = #tpu.core_type<tc>, window_params = [{transform_indices = @transform_0, window_bounds = array<i64: 2, 576>}, {pipeline_mode = #tpu.pipeline_mode<synchronous>, transform_indices = @transform_1, window_bounds = array<i64: 576, 64>}, {pipeline_mode = #tpu.pipeline_mode<synchronous>, transform_indices = @transform_2, window_bounds = array<i64: 1, 64>}, {transform_indices = @transform_3, window_bounds = array<i64: 2, 64>}]} {
    %c0 = arith.constant 0 : index
    %c0_0 = arith.constant 0 : index
    %0 = vector.load %arg1[%c0, %c0_0] : memref<2x576xbf16, #tpu.memory_space<vmem>>, vector<2x576xbf16>
    %c0_1 = arith.constant 0 : index
    %c0_2 = arith.constant 0 : index
    %1 = vector.load %arg2[%c0_1, %c0_2] : memref<576x64xbf16, #tpu.memory_space<vmem>>, vector<576x64xbf16>
    %cst = arith.constant dense<0.000000e+00> : vector<2x64xf32>
    %2 = tpu.matmul %0, %1, %cst {dimension_numbers = #tpu.dot_dimension_numbers<[1], [0], [0], [1], [0, 0, 1, 1], [], []>} : vector<2x576xbf16>, vector<576x64xbf16>, vector<2x64xf32> -> vector<2x64xf32>
    %c0_3 = arith.constant 0 : index
    %c0_4 = arith.constant 0 : index
    %3 = vector.load %arg3[%c0_3, %c0_4] : memref<1x64xf32, #tpu.memory_space<vmem>>, vector<1x64xf32>
    %4 = vector.broadcast %3 : vector<1x64xf32> to vector<2x64xf32>
    %5 = arith.addf %2, %4 : vector<2x64xf32>
    %6 = arith.negf %5 : vector<2x64xf32>
    %7 = math.exp %6 : vector<2x64xf32>
    %cst_5 = arith.constant 1.000000e+00 : f32
    %8 = vector.broadcast %cst_5 : f32 to vector<2x64xf32>
    %9 = arith.addf %8, %7 : vector<2x64xf32>
    %10 = arith.divf %8, %9 : vector<2x64xf32>
    %11 = arith.mulf %5, %10 : vector<2x64xf32>
    %c0_6 = arith.constant 0 : index
    %c0_7 = arith.constant 0 : index
    %12 = vector.load %arg4[%c0_6, %c0_7] : memref<2x64xf32, #tpu.memory_space<vmem>>, vector<2x64xf32>
    tpu.vector_store %arg4[%c0_6, %c0_7], %11 {strides = array<i32>} : memref<2x64xf32, #tpu.memory_space<vmem>>, vector<2x64xf32>,
    return
  }
  func.func @transform_0(%arg0: i32) -> (i32, i32) {
    %c0_i32 = arith.constant 0 : i32
    %c0_i32_0 = arith.constant 0 : i32
    return %arg0, %c0_i32 : i32, i32
  }
  func.func @transform_1(%arg0: i32) -> (i32, i32) {
    %c0_i32 = arith.constant 0 : i32
    %c0_i32_0 = arith.constant 0 : i32
    %c0_i32_1 = arith.constant 0 : i32
    return %c0_i32, %c0_i32_0 : i32, i32
  }
  func.func @transform_2(%arg0: i32) -> (i32, i32) {
    %c0_i32 = arith.constant 0 : i32
    %c0_i32_0 = arith.constant 0 : i32
    %c0_i32_1 = arith.constant 0 : i32
    return %c0_i32, %c0_i32_0 : i32, i32
  }
  func.func @transform_3(%arg0: i32) -> (i32, i32) {
    %c0_i32 = arith.constant 0 : i32
    %c0_i32_0 = arith.constant 0 : i32
    return %arg0, %c0_i32 : i32, i32
  }
}

module attributes {stable_mosaic.version = 11 : i64} {
  func.func @_gemm_bias_act_kernel(%arg0: i32, %arg1: memref<2x128xbf16, #tpu.memory_space<vmem>>, %arg2: memref<128x128xbf16, #tpu.memory_space<vmem>>, %arg3: memref<1x128xf32, #tpu.memory_space<vmem>>, %arg4: memref<2x128xf32, #tpu.memory_space<vmem>>) attributes {dimension_semantics = [#tpu.dimension_semantics<parallel>], iteration_bounds = array<i64: 1>, scalar_prefetch = 0 : i64, scratch_operands = 0 : i64, tpu.core_type = #tpu.core_type<tc>, window_params = [{transform_indices = @transform_0, window_bounds = array<i64: 2, 128>}, {pipeline_mode = #tpu.pipeline_mode<synchronous>, transform_indices = @transform_1, window_bounds = array<i64: 128, 128>}, {pipeline_mode = #tpu.pipeline_mode<synchronous>, transform_indices = @transform_2, window_bounds = array<i64: 1, 128>}, {transform_indices = @transform_3, window_bounds = array<i64: 2, 128>}]} {
    %c0 = arith.constant 0 : index
    %c0_0 = arith.constant 0 : index
    %0 = vector.load %arg1[%c0, %c0_0] : memref<2x128xbf16, #tpu.memory_space<vmem>>, vector<2x128xbf16>
    %c0_1 = arith.constant 0 : index
    %c0_2 = arith.constant 0 : index
    %1 = vector.load %arg2[%c0_1, %c0_2] : memref<128x128xbf16, #tpu.memory_space<vmem>>, vector<128x128xbf16>
    %cst = arith.constant dense<0.000000e+00> : vector<2x128xf32>
    %2 = tpu.matmul %0, %1, %cst {dimension_numbers = #tpu.dot_dimension_numbers<[1], [0], [0], [1], [0, 0, 1, 1], [], []>} : vector<2x128xbf16>, vector<128x128xbf16>, vector<2x128xf32> -> vector<2x128xf32>
    %c0_3 = arith.constant 0 : index
    %c0_4 = arith.constant 0 : index
    %3 = vector.load %arg3[%c0_3, %c0_4] : memref<1x128xf32, #tpu.memory_space<vmem>>, vector<1x128xf32>
    %4 = vector.broadcast %3 : vector<1x128xf32> to vector<2x128xf32>
    %5 = arith.addf %2, %4 : vector<2x128xf32>
    %6 = arith.negf %5 : vector<2x128xf32>
    %7 = math.exp %6 : vector<2x128xf32>
    %cst_5 = arith.constant 1.000000e+00 : f32
    %8 = vector.broadcast %cst_5 : f32 to vector<2x128xf32>
    %9 = arith.addf %8, %7 : vector<2x128xf32>
    %10 = arith.divf %8, %9 : vector<2x128xf32>
    %11 = arith.mulf %5, %10 : vector<2x128xf32>
    %c0_6 = arith.constant 0 : index
    %c0_7 = arith.constant 0 : index
    %12 = vector.load %arg4[%c0_6, %c0_7] : memref<2x128xf32, #tpu.memory_space<vmem>>, vector<2x128xf32>
    tpu.vector_store %arg4[%c0_6, %c0_7], %11 {strides = array<i32>} : memref<2x128xf32, #tpu.memory_space<vmem>>, vector<2x128xf32>,
    return
  }
  func.func @transform_0(%arg0: i32) -> (i32, i32) {
    %c0_i32 = arith.constant 0 : i32
    %c0_i32_0 = arith.constant 0 : i32
    return %arg0, %c0_i32 : i32, i32
  }
  func.func @transform_1(%arg0: i32) -> (i32, i32) {
    %c0_i32 = arith.constant 0 : i32
    %c0_i32_0 = arith.constant 0 : i32
    %c0_i32_1 = arith.constant 0 : i32
    return %c0_i32, %c0_i32_0 : i32, i32
  }
  func.func @transform_2(%arg0: i32) -> (i32, i32) {
    %c0_i32 = arith.constant 0 : i32
    %c0_i32_0 = arith.constant 0 : i32
    %c0_i32_1 = arith.constant 0 : i32
    return %c0_i32, %c0_i32_0 : i32, i32
  }
  func.func @transform_3(%arg0: i32) -> (i32, i32) {
    %c0_i32 = arith.constant 0 : i32
    %c0_i32_0 = arith.constant 0 : i32
    return %arg0, %c0_i32 : i32, i32
  }
}

module attributes {stable_mosaic.version = 11 : i64} {
  func.func @_gemm_bias_act_kernel(%arg0: i32, %arg1: memref<2x384xbf16, #tpu.memory_space<vmem>>, %arg2: memref<384x256xbf16, #tpu.memory_space<vmem>>, %arg3: memref<1x256xf32, #tpu.memory_space<vmem>>, %arg4: memref<2x256xf32, #tpu.memory_space<vmem>>) attributes {dimension_semantics = [#tpu.dimension_semantics<parallel>], iteration_bounds = array<i64: 1>, scalar_prefetch = 0 : i64, scratch_operands = 0 : i64, tpu.core_type = #tpu.core_type<tc>, window_params = [{transform_indices = @transform_0, window_bounds = array<i64: 2, 384>}, {pipeline_mode = #tpu.pipeline_mode<synchronous>, transform_indices = @transform_1, window_bounds = array<i64: 384, 256>}, {pipeline_mode = #tpu.pipeline_mode<synchronous>, transform_indices = @transform_2, window_bounds = array<i64: 1, 256>}, {transform_indices = @transform_3, window_bounds = array<i64: 2, 256>}]} {
    %c0 = arith.constant 0 : index
    %c0_0 = arith.constant 0 : index
    %0 = vector.load %arg1[%c0, %c0_0] : memref<2x384xbf16, #tpu.memory_space<vmem>>, vector<2x384xbf16>
    %c0_1 = arith.constant 0 : index
    %c0_2 = arith.constant 0 : index
    %1 = vector.load %arg2[%c0_1, %c0_2] : memref<384x256xbf16, #tpu.memory_space<vmem>>, vector<384x256xbf16>
    %cst = arith.constant dense<0.000000e+00> : vector<2x256xf32>
    %2 = tpu.matmul %0, %1, %cst {dimension_numbers = #tpu.dot_dimension_numbers<[1], [0], [0], [1], [0, 0, 1, 1], [], []>} : vector<2x384xbf16>, vector<384x256xbf16>, vector<2x256xf32> -> vector<2x256xf32>
    %c0_3 = arith.constant 0 : index
    %c0_4 = arith.constant 0 : index
    %3 = vector.load %arg3[%c0_3, %c0_4] : memref<1x256xf32, #tpu.memory_space<vmem>>, vector<1x256xf32>
    %4 = vector.broadcast %3 : vector<1x256xf32> to vector<2x256xf32>
    %5 = arith.addf %2, %4 : vector<2x256xf32>
    %6 = arith.negf %5 : vector<2x256xf32>
    %7 = math.exp %6 : vector<2x256xf32>
    %cst_5 = arith.constant 1.000000e+00 : f32
    %8 = vector.broadcast %cst_5 : f32 to vector<2x256xf32>
    %9 = arith.addf %8, %7 : vector<2x256xf32>
    %10 = arith.divf %8, %9 : vector<2x256xf32>
    %11 = arith.mulf %5, %10 : vector<2x256xf32>
    %c0_6 = arith.constant 0 : index
    %c0_7 = arith.constant 0 : index
    %12 = vector.load %arg4[%c0_6, %c0_7] : memref<2x256xf32, #tpu.memory_space<vmem>>, vector<2x256xf32>
    tpu.vector_store %arg4[%c0_6, %c0_7], %11 {strides = array<i32>} : memref<2x256xf32, #tpu.memory_space<vmem>>, vector<2x256xf32>,
    return
  }
  func.func @transform_0(%arg0: i32) -> (i32, i32) {
    %c0_i32 = arith.constant 0 : i32
    %c0_i32_0 = arith.constant 0 : i32
    return %arg0, %c0_i32 : i32, i32
  }
  func.func @transform_1(%arg0: i32) -> (i32, i32) {
    %c0_i32 = arith.constant 0 : i32
    %c0_i32_0 = arith.constant 0 : i32
    %c0_i32_1 = arith.constant 0 : i32
    return %c0_i32, %c0_i32_0 : i32, i32
  }
  func.func @transform_2(%arg0: i32) -> (i32, i32) {
    %c0_i32 = arith.constant 0 : i32
    %c0_i32_0 = arith.constant 0 : i32
    %c0_i32_1 = arith.constant 0 : i32
    return %c0_i32, %c0_i32_0 : i32, i32
  }
  func.func @transform_3(%arg0: i32) -> (i32, i32) {
    %c0_i32 = arith.constant 0 : i32
    %c0_i32_0 = arith.constant 0 : i32
    return %arg0, %c0_i32 : i32, i32
  }
}

module attributes {stable_mosaic.version = 11 : i64} {
  func.func @_gemm_bias_act_kernel(%arg0: i32, %arg1: memref<2x256xbf16, #tpu.memory_space<vmem>>, %arg2: memref<256x128xbf16, #tpu.memory_space<vmem>>, %arg3: memref<1x128xf32, #tpu.memory_space<vmem>>, %arg4: memref<2x128xf32, #tpu.memory_space<vmem>>) attributes {dimension_semantics = [#tpu.dimension_semantics<parallel>], iteration_bounds = array<i64: 1>, scalar_prefetch = 0 : i64, scratch_operands = 0 : i64, tpu.core_type = #tpu.core_type<tc>, window_params = [{transform_indices = @transform_0, window_bounds = array<i64: 2, 256>}, {pipeline_mode = #tpu.pipeline_mode<synchronous>, transform_indices = @transform_1, window_bounds = array<i64: 256, 128>}, {pipeline_mode = #tpu.pipeline_mode<synchronous>, transform_indices = @transform_2, window_bounds = array<i64: 1, 128>}, {transform_indices = @transform_3, window_bounds = array<i64: 2, 128>}]} {
    %c0 = arith.constant 0 : index
    %c0_0 = arith.constant 0 : index
    %0 = vector.load %arg1[%c0, %c0_0] : memref<2x256xbf16, #tpu.memory_space<vmem>>, vector<2x256xbf16>
    %c0_1 = arith.constant 0 : index
    %c0_2 = arith.constant 0 : index
    %1 = vector.load %arg2[%c0_1, %c0_2] : memref<256x128xbf16, #tpu.memory_space<vmem>>, vector<256x128xbf16>
    %cst = arith.constant dense<0.000000e+00> : vector<2x128xf32>
    %2 = tpu.matmul %0, %1, %cst {dimension_numbers = #tpu.dot_dimension_numbers<[1], [0], [0], [1], [0, 0, 1, 1], [], []>} : vector<2x256xbf16>, vector<256x128xbf16>, vector<2x128xf32> -> vector<2x128xf32>
    %c0_3 = arith.constant 0 : index
    %c0_4 = arith.constant 0 : index
    %3 = vector.load %arg3[%c0_3, %c0_4] : memref<1x128xf32, #tpu.memory_space<vmem>>, vector<1x128xf32>
    %4 = vector.broadcast %3 : vector<1x128xf32> to vector<2x128xf32>
    %5 = arith.addf %2, %4 : vector<2x128xf32>
    %6 = arith.negf %5 : vector<2x128xf32>
    %7 = math.exp %6 : vector<2x128xf32>
    %cst_5 = arith.constant 1.000000e+00 : f32
    %8 = vector.broadcast %cst_5 : f32 to vector<2x128xf32>
    %9 = arith.addf %8, %7 : vector<2x128xf32>
    %10 = arith.divf %8, %9 : vector<2x128xf32>
    %11 = arith.mulf %5, %10 : vector<2x128xf32>
    %c0_6 = arith.constant 0 : index
    %c0_7 = arith.constant 0 : index
    %12 = vector.load %arg4[%c0_6, %c0_7] : memref<2x128xf32, #tpu.memory_space<vmem>>, vector<2x128xf32>
    tpu.vector_store %arg4[%c0_6, %c0_7], %11 {strides = array<i32>} : memref<2x128xf32, #tpu.memory_space<vmem>>, vector<2x128xf32>,
    return
  }
  func.func @transform_0(%arg0: i32) -> (i32, i32) {
    %c0_i32 = arith.constant 0 : i32
    %c0_i32_0 = arith.constant 0 : i32
    return %arg0, %c0_i32 : i32, i32
  }
  func.func @transform_1(%arg0: i32) -> (i32, i32) {
    %c0_i32 = arith.constant 0 : i32
    %c0_i32_0 = arith.constant 0 : i32
    %c0_i32_1 = arith.constant 0 : i32
    return %c0_i32, %c0_i32_0 : i32, i32
  }
  func.func @transform_2(%arg0: i32) -> (i32, i32) {
    %c0_i32 = arith.constant 0 : i32
    %c0_i32_0 = arith.constant 0 : i32
    %c0_i32_1 = arith.constant 0 : i32
    return %c0_i32, %c0_i32_0 : i32, i32
  }
  func.func @transform_3(%arg0: i32) -> (i32, i32) {
    %c0_i32 = arith.constant 0 : i32
    %c0_i32_0 = arith.constant 0 : i32
    return %arg0, %c0_i32 : i32, i32
  }
}

module attributes {stable_mosaic.version = 11 : i64} {
  func.func @_gemm_bias_act_kernel(%arg0: i32, %arg1: memref<2x64xbf16, #tpu.memory_space<vmem>>, %arg2: memref<64x128xbf16, #tpu.memory_space<vmem>>, %arg3: memref<1x128xf32, #tpu.memory_space<vmem>>, %arg4: memref<2x128xf32, #tpu.memory_space<vmem>>) attributes {dimension_semantics = [#tpu.dimension_semantics<parallel>], iteration_bounds = array<i64: 1>, scalar_prefetch = 0 : i64, scratch_operands = 0 : i64, tpu.core_type = #tpu.core_type<tc>, window_params = [{transform_indices = @transform_0, window_bounds = array<i64: 2, 64>}, {pipeline_mode = #tpu.pipeline_mode<synchronous>, transform_indices = @transform_1, window_bounds = array<i64: 64, 128>}, {pipeline_mode = #tpu.pipeline_mode<synchronous>, transform_indices = @transform_2, window_bounds = array<i64: 1, 128>}, {transform_indices = @transform_3, window_bounds = array<i64: 2, 128>}]} {
    %c0 = arith.constant 0 : index
    %c0_0 = arith.constant 0 : index
    %0 = vector.load %arg1[%c0, %c0_0] : memref<2x64xbf16, #tpu.memory_space<vmem>>, vector<2x64xbf16>
    %c0_1 = arith.constant 0 : index
    %c0_2 = arith.constant 0 : index
    %1 = vector.load %arg2[%c0_1, %c0_2] : memref<64x128xbf16, #tpu.memory_space<vmem>>, vector<64x128xbf16>
    %cst = arith.constant dense<0.000000e+00> : vector<2x128xf32>
    %2 = tpu.matmul %0, %1, %cst {dimension_numbers = #tpu.dot_dimension_numbers<[1], [0], [0], [1], [0, 0, 1, 1], [], []>} : vector<2x64xbf16>, vector<64x128xbf16>, vector<2x128xf32> -> vector<2x128xf32>
    %c0_3 = arith.constant 0 : index
    %c0_4 = arith.constant 0 : index
    %3 = vector.load %arg3[%c0_3, %c0_4] : memref<1x128xf32, #tpu.memory_space<vmem>>, vector<1x128xf32>
    %4 = vector.broadcast %3 : vector<1x128xf32> to vector<2x128xf32>
    %5 = arith.addf %2, %4 : vector<2x128xf32>
    %c0_5 = arith.constant 0 : index
    %c0_6 = arith.constant 0 : index
    %6 = vector.load %arg4[%c0_5, %c0_6] : memref<2x128xf32, #tpu.memory_space<vmem>>, vector<2x128xf32>
    tpu.vector_store %arg4[%c0_5, %c0_6], %5 {strides = array<i32>} : memref<2x128xf32, #tpu.memory_space<vmem>>, vector<2x128xf32>,
    return
  }
  func.func @transform_0(%arg0: i32) -> (i32, i32) {
    %c0_i32 = arith.constant 0 : i32
    %c0_i32_0 = arith.constant 0 : i32
    return %arg0, %c0_i32 : i32, i32
  }
  func.func @transform_1(%arg0: i32) -> (i32, i32) {
    %c0_i32 = arith.constant 0 : i32
    %c0_i32_0 = arith.constant 0 : i32
    %c0_i32_1 = arith.constant 0 : i32
    return %c0_i32, %c0_i32_0 : i32, i32
  }
  func.func @transform_2(%arg0: i32) -> (i32, i32) {
    %c0_i32 = arith.constant 0 : i32
    %c0_i32_0 = arith.constant 0 : i32
    %c0_i32_1 = arith.constant 0 : i32
    return %c0_i32, %c0_i32_0 : i32, i32
  }
  func.func @transform_3(%arg0: i32) -> (i32, i32) {
    %c0_i32 = arith.constant 0 : i32
    %c0_i32_0 = arith.constant 0 : i32
    return %arg0, %c0_i32 : i32, i32
  }
}

module attributes {stable_mosaic.version = 11 : i64} {
  func.func @_gemm_bias_act_kernel(%arg0: i32, %arg1: memref<2x512xbf16, #tpu.memory_space<vmem>>, %arg2: memref<512x256xbf16, #tpu.memory_space<vmem>>, %arg3: memref<1x256xf32, #tpu.memory_space<vmem>>, %arg4: memref<2x256xf32, #tpu.memory_space<vmem>>) attributes {dimension_semantics = [#tpu.dimension_semantics<parallel>], iteration_bounds = array<i64: 1>, scalar_prefetch = 0 : i64, scratch_operands = 0 : i64, tpu.core_type = #tpu.core_type<tc>, window_params = [{transform_indices = @transform_0, window_bounds = array<i64: 2, 512>}, {pipeline_mode = #tpu.pipeline_mode<synchronous>, transform_indices = @transform_1, window_bounds = array<i64: 512, 256>}, {pipeline_mode = #tpu.pipeline_mode<synchronous>, transform_indices = @transform_2, window_bounds = array<i64: 1, 256>}, {transform_indices = @transform_3, window_bounds = array<i64: 2, 256>}]} {
    %c0 = arith.constant 0 : index
    %c0_0 = arith.constant 0 : index
    %0 = vector.load %arg1[%c0, %c0_0] : memref<2x512xbf16, #tpu.memory_space<vmem>>, vector<2x512xbf16>
    %c0_1 = arith.constant 0 : index
    %c0_2 = arith.constant 0 : index
    %1 = vector.load %arg2[%c0_1, %c0_2] : memref<512x256xbf16, #tpu.memory_space<vmem>>, vector<512x256xbf16>
    %cst = arith.constant dense<0.000000e+00> : vector<2x256xf32>
    %2 = tpu.matmul %0, %1, %cst {dimension_numbers = #tpu.dot_dimension_numbers<[1], [0], [0], [1], [0, 0, 1, 1], [], []>} : vector<2x512xbf16>, vector<512x256xbf16>, vector<2x256xf32> -> vector<2x256xf32>
    %c0_3 = arith.constant 0 : index
    %c0_4 = arith.constant 0 : index
    %3 = vector.load %arg3[%c0_3, %c0_4] : memref<1x256xf32, #tpu.memory_space<vmem>>, vector<1x256xf32>
    %4 = vector.broadcast %3 : vector<1x256xf32> to vector<2x256xf32>
    %5 = arith.addf %2, %4 : vector<2x256xf32>
    %6 = arith.negf %5 : vector<2x256xf32>
    %7 = math.exp %6 : vector<2x256xf32>
    %cst_5 = arith.constant 1.000000e+00 : f32
    %8 = vector.broadcast %cst_5 : f32 to vector<2x256xf32>
    %9 = arith.addf %8, %7 : vector<2x256xf32>
    %10 = arith.divf %8, %9 : vector<2x256xf32>
    %11 = arith.mulf %5, %10 : vector<2x256xf32>
    %c0_6 = arith.constant 0 : index
    %c0_7 = arith.constant 0 : index
    %12 = vector.load %arg4[%c0_6, %c0_7] : memref<2x256xf32, #tpu.memory_space<vmem>>, vector<2x256xf32>
    tpu.vector_store %arg4[%c0_6, %c0_7], %11 {strides = array<i32>} : memref<2x256xf32, #tpu.memory_space<vmem>>, vector<2x256xf32>,
    return
  }
  func.func @transform_0(%arg0: i32) -> (i32, i32) {
    %c0_i32 = arith.constant 0 : i32
    %c0_i32_0 = arith.constant 0 : i32
    return %arg0, %c0_i32 : i32, i32
  }
  func.func @transform_1(%arg0: i32) -> (i32, i32) {
    %c0_i32 = arith.constant 0 : i32
    %c0_i32_0 = arith.constant 0 : i32
    %c0_i32_1 = arith.constant 0 : i32
    return %c0_i32, %c0_i32_0 : i32, i32
  }
  func.func @transform_2(%arg0: i32) -> (i32, i32) {
    %c0_i32 = arith.constant 0 : i32
    %c0_i32_0 = arith.constant 0 : i32
    %c0_i32_1 = arith.constant 0 : i32
    return %c0_i32, %c0_i32_0 : i32, i32
  }
  func.func @transform_3(%arg0: i32) -> (i32, i32) {
    %c0_i32 = arith.constant 0 : i32
    %c0_i32_0 = arith.constant 0 : i32
    return %arg0, %c0_i32 : i32, i32
  }
}

module attributes {stable_mosaic.version = 11 : i64} {
  func.func @_gemm_bias_act_kernel(%arg0: i32, %arg1: memref<2x64xbf16, #tpu.memory_space<vmem>>, %arg2: memref<64x64xbf16, #tpu.memory_space<vmem>>, %arg3: memref<1x64xf32, #tpu.memory_space<vmem>>, %arg4: memref<2x64xf32, #tpu.memory_space<vmem>>) attributes {dimension_semantics = [#tpu.dimension_semantics<parallel>], iteration_bounds = array<i64: 1>, scalar_prefetch = 0 : i64, scratch_operands = 0 : i64, tpu.core_type = #tpu.core_type<tc>, window_params = [{transform_indices = @transform_0, window_bounds = array<i64: 2, 64>}, {pipeline_mode = #tpu.pipeline_mode<synchronous>, transform_indices = @transform_1, window_bounds = array<i64: 64, 64>}, {pipeline_mode = #tpu.pipeline_mode<synchronous>, transform_indices = @transform_2, window_bounds = array<i64: 1, 64>}, {transform_indices = @transform_3, window_bounds = array<i64: 2, 64>}]} {
    %c0 = arith.constant 0 : index
    %c0_0 = arith.constant 0 : index
    %0 = vector.load %arg1[%c0, %c0_0] : memref<2x64xbf16, #tpu.memory_space<vmem>>, vector<2x64xbf16>
    %c0_1 = arith.constant 0 : index
    %c0_2 = arith.constant 0 : index
    %1 = vector.load %arg2[%c0_1, %c0_2] : memref<64x64xbf16, #tpu.memory_space<vmem>>, vector<64x64xbf16>
    %cst = arith.constant dense<0.000000e+00> : vector<2x64xf32>
    %2 = tpu.matmul %0, %1, %cst {dimension_numbers = #tpu.dot_dimension_numbers<[1], [0], [0], [1], [0, 0, 1, 1], [], []>} : vector<2x64xbf16>, vector<64x64xbf16>, vector<2x64xf32> -> vector<2x64xf32>
    %c0_3 = arith.constant 0 : index
    %c0_4 = arith.constant 0 : index
    %3 = vector.load %arg3[%c0_3, %c0_4] : memref<1x64xf32, #tpu.memory_space<vmem>>, vector<1x64xf32>
    %4 = vector.broadcast %3 : vector<1x64xf32> to vector<2x64xf32>
    %5 = arith.addf %2, %4 : vector<2x64xf32>
    %c0_5 = arith.constant 0 : index
    %c0_6 = arith.constant 0 : index
    %6 = vector.load %arg4[%c0_5, %c0_6] : memref<2x64xf32, #tpu.memory_space<vmem>>, vector<2x64xf32>
    tpu.vector_store %arg4[%c0_5, %c0_6], %5 {strides = array<i32>} : memref<2x64xf32, #tpu.memory_space<vmem>>, vector<2x64xf32>,
    return
  }
  func.func @transform_0(%arg0: i32) -> (i32, i32) {
    %c0_i32 = arith.constant 0 : i32
    %c0_i32_0 = arith.constant 0 : i32
    return %arg0, %c0_i32 : i32, i32
  }
  func.func @transform_1(%arg0: i32) -> (i32, i32) {
    %c0_i32 = arith.constant 0 : i32
    %c0_i32_0 = arith.constant 0 : i32
    %c0_i32_1 = arith.constant 0 : i32
    return %c0_i32, %c0_i32_0 : i32, i32
  }
  func.func @transform_2(%arg0: i32) -> (i32, i32) {
    %c0_i32 = arith.constant 0 : i32
    %c0_i32_0 = arith.constant 0 : i32
    %c0_i32_1 = arith.constant 0 : i32
    return %c0_i32, %c0_i32_0 : i32, i32
  }
  func.func @transform_3(%arg0: i32) -> (i32, i32) {
    %c0_i32 = arith.constant 0 : i32
    %c0_i32_0 = arith.constant 0 : i32
    return %arg0, %c0_i32 : i32, i32
  }
}

module attributes {stable_mosaic.version = 11 : i64} {
  func.func @_gemm_bias_act_kernel(%arg0: i32, %arg1: memref<2x64xbf16, #tpu.memory_space<vmem>>, %arg2: memref<64x128xbf16, #tpu.memory_space<vmem>>, %arg3: memref<1x128xf32, #tpu.memory_space<vmem>>, %arg4: memref<2x128xf32, #tpu.memory_space<vmem>>) attributes {dimension_semantics = [#tpu.dimension_semantics<parallel>], iteration_bounds = array<i64: 1>, scalar_prefetch = 0 : i64, scratch_operands = 0 : i64, tpu.core_type = #tpu.core_type<tc>, window_params = [{transform_indices = @transform_0, window_bounds = array<i64: 2, 64>}, {pipeline_mode = #tpu.pipeline_mode<synchronous>, transform_indices = @transform_1, window_bounds = array<i64: 64, 128>}, {pipeline_mode = #tpu.pipeline_mode<synchronous>, transform_indices = @transform_2, window_bounds = array<i64: 1, 128>}, {transform_indices = @transform_3, window_bounds = array<i64: 2, 128>}]} {
    %c0 = arith.constant 0 : index
    %c0_0 = arith.constant 0 : index
    %0 = vector.load %arg1[%c0, %c0_0] : memref<2x64xbf16, #tpu.memory_space<vmem>>, vector<2x64xbf16>
    %c0_1 = arith.constant 0 : index
    %c0_2 = arith.constant 0 : index
    %1 = vector.load %arg2[%c0_1, %c0_2] : memref<64x128xbf16, #tpu.memory_space<vmem>>, vector<64x128xbf16>
    %cst = arith.constant dense<0.000000e+00> : vector<2x128xf32>
    %2 = tpu.matmul %0, %1, %cst {dimension_numbers = #tpu.dot_dimension_numbers<[1], [0], [0], [1], [0, 0, 1, 1], [], []>} : vector<2x64xbf16>, vector<64x128xbf16>, vector<2x128xf32> -> vector<2x128xf32>
    %c0_3 = arith.constant 0 : index
    %c0_4 = arith.constant 0 : index
    %3 = vector.load %arg3[%c0_3, %c0_4] : memref<1x128xf32, #tpu.memory_space<vmem>>, vector<1x128xf32>
    %4 = vector.broadcast %3 : vector<1x128xf32> to vector<2x128xf32>
    %5 = arith.addf %2, %4 : vector<2x128xf32>
    %6 = arith.negf %5 : vector<2x128xf32>
    %7 = math.exp %6 : vector<2x128xf32>
    %cst_5 = arith.constant 1.000000e+00 : f32
    %8 = vector.broadcast %cst_5 : f32 to vector<2x128xf32>
    %9 = arith.addf %8, %7 : vector<2x128xf32>
    %10 = arith.divf %8, %9 : vector<2x128xf32>
    %11 = arith.mulf %5, %10 : vector<2x128xf32>
    %c0_6 = arith.constant 0 : index
    %c0_7 = arith.constant 0 : index
    %12 = vector.load %arg4[%c0_6, %c0_7] : memref<2x128xf32, #tpu.memory_space<vmem>>, vector<2x128xf32>
    tpu.vector_store %arg4[%c0_6, %c0_7], %11 {strides = array<i32>} : memref<2x128xf32, #tpu.memory_space<vmem>>, vector<2x128xf32>,
    return
  }
  func.func @transform_0(%arg0: i32) -> (i32, i32) {
    %c0_i32 = arith.constant 0 : i32
    %c0_i32_0 = arith.constant 0 : i32
    return %arg0, %c0_i32 : i32, i32
  }
  func.func @transform_1(%arg0: i32) -> (i32, i32) {
    %c0_i32 = arith.constant 0 : i32
    %c0_i32_0 = arith.constant 0 : i32
    %c0_i32_1 = arith.constant 0 : i32
    return %c0_i32, %c0_i32_0 : i32, i32
  }
  func.func @transform_2(%arg0: i32) -> (i32, i32) {
    %c0_i32 = arith.constant 0 : i32
    %c0_i32_0 = arith.constant 0 : i32
    %c0_i32_1 = arith.constant 0 : i32
    return %c0_i32, %c0_i32_0 : i32, i32
  }
  func.func @transform_3(%arg0: i32) -> (i32, i32) {
    %c0_i32 = arith.constant 0 : i32
    %c0_i32_0 = arith.constant 0 : i32
    return %arg0, %c0_i32 : i32, i32
  }
}

module attributes {stable_mosaic.version = 11 : i64} {
  func.func @_gemm_bias_act_kernel(%arg0: i32, %arg1: memref<2x128xbf16, #tpu.memory_space<vmem>>, %arg2: memref<128x64xbf16, #tpu.memory_space<vmem>>, %arg3: memref<1x64xf32, #tpu.memory_space<vmem>>, %arg4: memref<2x64xf32, #tpu.memory_space<vmem>>) attributes {dimension_semantics = [#tpu.dimension_semantics<parallel>], iteration_bounds = array<i64: 1>, scalar_prefetch = 0 : i64, scratch_operands = 0 : i64, tpu.core_type = #tpu.core_type<tc>, window_params = [{transform_indices = @transform_0, window_bounds = array<i64: 2, 128>}, {pipeline_mode = #tpu.pipeline_mode<synchronous>, transform_indices = @transform_1, window_bounds = array<i64: 128, 64>}, {pipeline_mode = #tpu.pipeline_mode<synchronous>, transform_indices = @transform_2, window_bounds = array<i64: 1, 64>}, {transform_indices = @transform_3, window_bounds = array<i64: 2, 64>}]} {
    %c0 = arith.constant 0 : index
    %c0_0 = arith.constant 0 : index
    %0 = vector.load %arg1[%c0, %c0_0] : memref<2x128xbf16, #tpu.memory_space<vmem>>, vector<2x128xbf16>
    %c0_1 = arith.constant 0 : index
    %c0_2 = arith.constant 0 : index
    %1 = vector.load %arg2[%c0_1, %c0_2] : memref<128x64xbf16, #tpu.memory_space<vmem>>, vector<128x64xbf16>
    %cst = arith.constant dense<0.000000e+00> : vector<2x64xf32>
    %2 = tpu.matmul %0, %1, %cst {dimension_numbers = #tpu.dot_dimension_numbers<[1], [0], [0], [1], [0, 0, 1, 1], [], []>} : vector<2x128xbf16>, vector<128x64xbf16>, vector<2x64xf32> -> vector<2x64xf32>
    %c0_3 = arith.constant 0 : index
    %c0_4 = arith.constant 0 : index
    %3 = vector.load %arg3[%c0_3, %c0_4] : memref<1x64xf32, #tpu.memory_space<vmem>>, vector<1x64xf32>
    %4 = vector.broadcast %3 : vector<1x64xf32> to vector<2x64xf32>
    %5 = arith.addf %2, %4 : vector<2x64xf32>
    %c0_5 = arith.constant 0 : index
    %c0_6 = arith.constant 0 : index
    %6 = vector.load %arg4[%c0_5, %c0_6] : memref<2x64xf32, #tpu.memory_space<vmem>>, vector<2x64xf32>
    tpu.vector_store %arg4[%c0_5, %c0_6], %5 {strides = array<i32>} : memref<2x64xf32, #tpu.memory_space<vmem>>, vector<2x64xf32>,
    return
  }
  func.func @transform_0(%arg0: i32) -> (i32, i32) {
    %c0_i32 = arith.constant 0 : i32
    %c0_i32_0 = arith.constant 0 : i32
    return %arg0, %c0_i32 : i32, i32
  }
  func.func @transform_1(%arg0: i32) -> (i32, i32) {
    %c0_i32 = arith.constant 0 : i32
    %c0_i32_0 = arith.constant 0 : i32
    %c0_i32_1 = arith.constant 0 : i32
    return %c0_i32, %c0_i32_0 : i32, i32
  }
  func.func @transform_2(%arg0: i32) -> (i32, i32) {
    %c0_i32 = arith.constant 0 : i32
    %c0_i32_0 = arith.constant 0 : i32
    %c0_i32_1 = arith.constant 0 : i32
    return %c0_i32, %c0_i32_0 : i32, i32
  }
  func.func @transform_3(%arg0: i32) -> (i32, i32) {
    %c0_i32 = arith.constant 0 : i32
    %c0_i32_0 = arith.constant 0 : i32
    return %arg0, %c0_i32 : i32, i32
  }
}

module attributes {stable_mosaic.version = 11 : i64} {
  func.func @_gemm_bias_act_kernel(%arg0: i32, %arg1: memref<2x128xbf16, #tpu.memory_space<vmem>>, %arg2: memref<128x256xbf16, #tpu.memory_space<vmem>>, %arg3: memref<1x256xf32, #tpu.memory_space<vmem>>, %arg4: memref<2x256xf32, #tpu.memory_space<vmem>>) attributes {dimension_semantics = [#tpu.dimension_semantics<parallel>], iteration_bounds = array<i64: 1>, scalar_prefetch = 0 : i64, scratch_operands = 0 : i64, tpu.core_type = #tpu.core_type<tc>, window_params = [{transform_indices = @transform_0, window_bounds = array<i64: 2, 128>}, {pipeline_mode = #tpu.pipeline_mode<synchronous>, transform_indices = @transform_1, window_bounds = array<i64: 128, 256>}, {pipeline_mode = #tpu.pipeline_mode<synchronous>, transform_indices = @transform_2, window_bounds = array<i64: 1, 256>}, {transform_indices = @transform_3, window_bounds = array<i64: 2, 256>}]} {
    %c0 = arith.constant 0 : index
    %c0_0 = arith.constant 0 : index
    %0 = vector.load %arg1[%c0, %c0_0] : memref<2x128xbf16, #tpu.memory_space<vmem>>, vector<2x128xbf16>
    %c0_1 = arith.constant 0 : index
    %c0_2 = arith.constant 0 : index
    %1 = vector.load %arg2[%c0_1, %c0_2] : memref<128x256xbf16, #tpu.memory_space<vmem>>, vector<128x256xbf16>
    %cst = arith.constant dense<0.000000e+00> : vector<2x256xf32>
    %2 = tpu.matmul %0, %1, %cst {dimension_numbers = #tpu.dot_dimension_numbers<[1], [0], [0], [1], [0, 0, 1, 1], [], []>} : vector<2x128xbf16>, vector<128x256xbf16>, vector<2x256xf32> -> vector<2x256xf32>
    %c0_3 = arith.constant 0 : index
    %c0_4 = arith.constant 0 : index
    %3 = vector.load %arg3[%c0_3, %c0_4] : memref<1x256xf32, #tpu.memory_space<vmem>>, vector<1x256xf32>
    %4 = vector.broadcast %3 : vector<1x256xf32> to vector<2x256xf32>
    %5 = arith.addf %2, %4 : vector<2x256xf32>
    %6 = arith.negf %5 : vector<2x256xf32>
    %7 = math.exp %6 : vector<2x256xf32>
    %cst_5 = arith.constant 1.000000e+00 : f32
    %8 = vector.broadcast %cst_5 : f32 to vector<2x256xf32>
    %9 = arith.addf %8, %7 : vector<2x256xf32>
    %10 = arith.divf %8, %9 : vector<2x256xf32>
    %11 = arith.mulf %5, %10 : vector<2x256xf32>
    %c0_6 = arith.constant 0 : index
    %c0_7 = arith.constant 0 : index
    %12 = vector.load %arg4[%c0_6, %c0_7] : memref<2x256xf32, #tpu.memory_space<vmem>>, vector<2x256xf32>
    tpu.vector_store %arg4[%c0_6, %c0_7], %11 {strides = array<i32>} : memref<2x256xf32, #tpu.memory_space<vmem>>, vector<2x256xf32>,
    return
  }
  func.func @transform_0(%arg0: i32) -> (i32, i32) {
    %c0_i32 = arith.constant 0 : i32
    %c0_i32_0 = arith.constant 0 : i32
    return %arg0, %c0_i32 : i32, i32
  }
  func.func @transform_1(%arg0: i32) -> (i32, i32) {
    %c0_i32 = arith.constant 0 : i32
    %c0_i32_0 = arith.constant 0 : i32
    %c0_i32_1 = arith.constant 0 : i32
    return %c0_i32, %c0_i32_0 : i32, i32
  }
  func.func @transform_2(%arg0: i32) -> (i32, i32) {
    %c0_i32 = arith.constant 0 : i32
    %c0_i32_0 = arith.constant 0 : i32
    %c0_i32_1 = arith.constant 0 : i32
    return %c0_i32, %c0_i32_0 : i32, i32
  }
  func.func @transform_3(%arg0: i32) -> (i32, i32) {
    %c0_i32 = arith.constant 0 : i32
    %c0_i32_0 = arith.constant 0 : i32
    return %arg0, %c0_i32 : i32, i32
  }
}

module attributes {stable_mosaic.version = 11 : i64} {
  func.func @_gemm_bias_act_kernel(%arg0: i32, %arg1: memref<8x384xbf16, #tpu.memory_space<vmem>>, %arg2: memref<384x256xbf16, #tpu.memory_space<vmem>>, %arg3: memref<1x256xf32, #tpu.memory_space<vmem>>, %arg4: memref<8x256xf32, #tpu.memory_space<vmem>>) attributes {dimension_semantics = [#tpu.dimension_semantics<parallel>], iteration_bounds = array<i64: 1>, scalar_prefetch = 0 : i64, scratch_operands = 0 : i64, tpu.core_type = #tpu.core_type<tc>, window_params = [{transform_indices = @transform_0, window_bounds = array<i64: 8, 384>}, {pipeline_mode = #tpu.pipeline_mode<synchronous>, transform_indices = @transform_1, window_bounds = array<i64: 384, 256>}, {pipeline_mode = #tpu.pipeline_mode<synchronous>, transform_indices = @transform_2, window_bounds = array<i64: 1, 256>}, {transform_indices = @transform_3, window_bounds = array<i64: 8, 256>}]} {
    %c0 = arith.constant 0 : index
    %c0_0 = arith.constant 0 : index
    %0 = vector.load %arg1[%c0, %c0_0] : memref<8x384xbf16, #tpu.memory_space<vmem>>, vector<8x384xbf16>
    %c0_1 = arith.constant 0 : index
    %c0_2 = arith.constant 0 : index
    %1 = vector.load %arg2[%c0_1, %c0_2] : memref<384x256xbf16, #tpu.memory_space<vmem>>, vector<384x256xbf16>
    %cst = arith.constant dense<0.000000e+00> : vector<8x256xf32>
    %2 = tpu.matmul %0, %1, %cst {dimension_numbers = #tpu.dot_dimension_numbers<[1], [0], [0], [1], [0, 0, 1, 1], [], []>} : vector<8x384xbf16>, vector<384x256xbf16>, vector<8x256xf32> -> vector<8x256xf32>
    %c0_3 = arith.constant 0 : index
    %c0_4 = arith.constant 0 : index
    %3 = vector.load %arg3[%c0_3, %c0_4] : memref<1x256xf32, #tpu.memory_space<vmem>>, vector<1x256xf32>
    %4 = vector.broadcast %3 : vector<1x256xf32> to vector<8x256xf32>
    %5 = arith.addf %2, %4 : vector<8x256xf32>
    %6 = arith.negf %5 : vector<8x256xf32>
    %7 = math.exp %6 : vector<8x256xf32>
    %cst_5 = arith.constant 1.000000e+00 : f32
    %8 = vector.broadcast %cst_5 : f32 to vector<8x256xf32>
    %9 = arith.addf %8, %7 : vector<8x256xf32>
    %10 = arith.divf %8, %9 : vector<8x256xf32>
    %11 = arith.mulf %5, %10 : vector<8x256xf32>
    %c0_6 = arith.constant 0 : index
    %c0_7 = arith.constant 0 : index
    %12 = vector.load %arg4[%c0_6, %c0_7] : memref<8x256xf32, #tpu.memory_space<vmem>>, vector<8x256xf32>
    tpu.vector_store %arg4[%c0_6, %c0_7], %11 {strides = array<i32>} : memref<8x256xf32, #tpu.memory_space<vmem>>, vector<8x256xf32>,
    return
  }
  func.func @transform_0(%arg0: i32) -> (i32, i32) {
    %c0_i32 = arith.constant 0 : i32
    %c0_i32_0 = arith.constant 0 : i32
    return %arg0, %c0_i32 : i32, i32
  }
  func.func @transform_1(%arg0: i32) -> (i32, i32) {
    %c0_i32 = arith.constant 0 : i32
    %c0_i32_0 = arith.constant 0 : i32
    %c0_i32_1 = arith.constant 0 : i32
    return %c0_i32, %c0_i32_0 : i32, i32
  }
  func.func @transform_2(%arg0: i32) -> (i32, i32) {
    %c0_i32 = arith.constant 0 : i32
    %c0_i32_0 = arith.constant 0 : i32
    %c0_i32_1 = arith.constant 0 : i32
    return %c0_i32, %c0_i32_0 : i32, i32
  }
  func.func @transform_3(%arg0: i32) -> (i32, i32) {
    %c0_i32 = arith.constant 0 : i32
    %c0_i32_0 = arith.constant 0 : i32
    return %arg0, %c0_i32 : i32, i32
  }
}

module attributes {stable_mosaic.version = 11 : i64} {
  func.func @_gemm_bias_act_kernel(%arg0: i32, %arg1: memref<8x1152xbf16, #tpu.memory_space<vmem>>, %arg2: memref<1152x64xbf16, #tpu.memory_space<vmem>>, %arg3: memref<1x64xf32, #tpu.memory_space<vmem>>, %arg4: memref<8x64xf32, #tpu.memory_space<vmem>>) attributes {dimension_semantics = [#tpu.dimension_semantics<parallel>], iteration_bounds = array<i64: 1>, scalar_prefetch = 0 : i64, scratch_operands = 0 : i64, tpu.core_type = #tpu.core_type<tc>, window_params = [{transform_indices = @transform_0, window_bounds = array<i64: 8, 1152>}, {pipeline_mode = #tpu.pipeline_mode<synchronous>, transform_indices = @transform_1, window_bounds = array<i64: 1152, 64>}, {pipeline_mode = #tpu.pipeline_mode<synchronous>, transform_indices = @transform_2, window_bounds = array<i64: 1, 64>}, {transform_indices = @transform_3, window_bounds = array<i64: 8, 64>}]} {
    %c0 = arith.constant 0 : index
    %c0_0 = arith.constant 0 : index
    %0 = vector.load %arg1[%c0, %c0_0] : memref<8x1152xbf16, #tpu.memory_space<vmem>>, vector<8x1152xbf16>
    %c0_1 = arith.constant 0 : index
    %c0_2 = arith.constant 0 : index
    %1 = vector.load %arg2[%c0_1, %c0_2] : memref<1152x64xbf16, #tpu.memory_space<vmem>>, vector<1152x64xbf16>
    %cst = arith.constant dense<0.000000e+00> : vector<8x64xf32>
    %2 = tpu.matmul %0, %1, %cst {dimension_numbers = #tpu.dot_dimension_numbers<[1], [0], [0], [1], [0, 0, 1, 1], [], []>} : vector<8x1152xbf16>, vector<1152x64xbf16>, vector<8x64xf32> -> vector<8x64xf32>
    %c0_3 = arith.constant 0 : index
    %c0_4 = arith.constant 0 : index
    %3 = vector.load %arg3[%c0_3, %c0_4] : memref<1x64xf32, #tpu.memory_space<vmem>>, vector<1x64xf32>
    %4 = vector.broadcast %3 : vector<1x64xf32> to vector<8x64xf32>
    %5 = arith.addf %2, %4 : vector<8x64xf32>
    %6 = arith.negf %5 : vector<8x64xf32>
    %7 = math.exp %6 : vector<8x64xf32>
    %cst_5 = arith.constant 1.000000e+00 : f32
    %8 = vector.broadcast %cst_5 : f32 to vector<8x64xf32>
    %9 = arith.addf %8, %7 : vector<8x64xf32>
    %10 = arith.divf %8, %9 : vector<8x64xf32>
    %11 = arith.mulf %5, %10 : vector<8x64xf32>
    %c0_6 = arith.constant 0 : index
    %c0_7 = arith.constant 0 : index
    %12 = vector.load %arg4[%c0_6, %c0_7] : memref<8x64xf32, #tpu.memory_space<vmem>>, vector<8x64xf32>
    tpu.vector_store %arg4[%c0_6, %c0_7], %11 {strides = array<i32>} : memref<8x64xf32, #tpu.memory_space<vmem>>, vector<8x64xf32>,
    return
  }
  func.func @transform_0(%arg0: i32) -> (i32, i32) {
    %c0_i32 = arith.constant 0 : i32
    %c0_i32_0 = arith.constant 0 : i32
    return %arg0, %c0_i32 : i32, i32
  }
  func.func @transform_1(%arg0: i32) -> (i32, i32) {
    %c0_i32 = arith.constant 0 : i32
    %c0_i32_0 = arith.constant 0 : i32
    %c0_i32_1 = arith.constant 0 : i32
    return %c0_i32, %c0_i32_0 : i32, i32
  }
  func.func @transform_2(%arg0: i32) -> (i32, i32) {
    %c0_i32 = arith.constant 0 : i32
    %c0_i32_0 = arith.constant 0 : i32
    %c0_i32_1 = arith.constant 0 : i32
    return %c0_i32, %c0_i32_0 : i32, i32
  }
  func.func @transform_3(%arg0: i32) -> (i32, i32) {
    %c0_i32 = arith.constant 0 : i32
    %c0_i32_0 = arith.constant 0 : i32
    return %arg0, %c0_i32 : i32, i32
  }
}

module attributes {stable_mosaic.version = 11 : i64} {
  func.func @_gemm_bias_act_kernel(%arg0: i32, %arg1: memref<8x576xbf16, #tpu.memory_space<vmem>>, %arg2: memref<576x128xbf16, #tpu.memory_space<vmem>>, %arg3: memref<1x128xf32, #tpu.memory_space<vmem>>, %arg4: memref<8x128xf32, #tpu.memory_space<vmem>>) attributes {dimension_semantics = [#tpu.dimension_semantics<parallel>], iteration_bounds = array<i64: 1>, scalar_prefetch = 0 : i64, scratch_operands = 0 : i64, tpu.core_type = #tpu.core_type<tc>, window_params = [{transform_indices = @transform_0, window_bounds = array<i64: 8, 576>}, {pipeline_mode = #tpu.pipeline_mode<synchronous>, transform_indices = @transform_1, window_bounds = array<i64: 576, 128>}, {pipeline_mode = #tpu.pipeline_mode<synchronous>, transform_indices = @transform_2, window_bounds = array<i64: 1, 128>}, {transform_indices = @transform_3, window_bounds = array<i64: 8, 128>}]} {
    %c0 = arith.constant 0 : index
    %c0_0 = arith.constant 0 : index
    %0 = vector.load %arg1[%c0, %c0_0] : memref<8x576xbf16, #tpu.memory_space<vmem>>, vector<8x576xbf16>
    %c0_1 = arith.constant 0 : index
    %c0_2 = arith.constant 0 : index
    %1 = vector.load %arg2[%c0_1, %c0_2] : memref<576x128xbf16, #tpu.memory_space<vmem>>, vector<576x128xbf16>
    %cst = arith.constant dense<0.000000e+00> : vector<8x128xf32>
    %2 = tpu.matmul %0, %1, %cst {dimension_numbers = #tpu.dot_dimension_numbers<[1], [0], [0], [1], [0, 0, 1, 1], [], []>} : vector<8x576xbf16>, vector<576x128xbf16>, vector<8x128xf32> -> vector<8x128xf32>
    %c0_3 = arith.constant 0 : index
    %c0_4 = arith.constant 0 : index
    %3 = vector.load %arg3[%c0_3, %c0_4] : memref<1x128xf32, #tpu.memory_space<vmem>>, vector<1x128xf32>
    %4 = vector.broadcast %3 : vector<1x128xf32> to vector<8x128xf32>
    %5 = arith.addf %2, %4 : vector<8x128xf32>
    %6 = arith.negf %5 : vector<8x128xf32>
    %7 = math.exp %6 : vector<8x128xf32>
    %cst_5 = arith.constant 1.000000e+00 : f32
    %8 = vector.broadcast %cst_5 : f32 to vector<8x128xf32>
    %9 = arith.addf %8, %7 : vector<8x128xf32>
    %10 = arith.divf %8, %9 : vector<8x128xf32>
    %11 = arith.mulf %5, %10 : vector<8x128xf32>
    %c0_6 = arith.constant 0 : index
    %c0_7 = arith.constant 0 : index
    %12 = vector.load %arg4[%c0_6, %c0_7] : memref<8x128xf32, #tpu.memory_space<vmem>>, vector<8x128xf32>
    tpu.vector_store %arg4[%c0_6, %c0_7], %11 {strides = array<i32>} : memref<8x128xf32, #tpu.memory_space<vmem>>, vector<8x128xf32>,
    return
  }
  func.func @transform_0(%arg0: i32) -> (i32, i32) {
    %c0_i32 = arith.constant 0 : i32
    %c0_i32_0 = arith.constant 0 : i32
    return %arg0, %c0_i32 : i32, i32
  }
  func.func @transform_1(%arg0: i32) -> (i32, i32) {
    %c0_i32 = arith.constant 0 : i32
    %c0_i32_0 = arith.constant 0 : i32
    %c0_i32_1 = arith.constant 0 : i32
    return %c0_i32, %c0_i32_0 : i32, i32
  }
  func.func @transform_2(%arg0: i32) -> (i32, i32) {
    %c0_i32 = arith.constant 0 : i32
    %c0_i32_0 = arith.constant 0 : i32
    %c0_i32_1 = arith.constant 0 : i32
    return %c0_i32, %c0_i32_0 : i32, i32
  }
  func.func @transform_3(%arg0: i32) -> (i32, i32) {
    %c0_i32 = arith.constant 0 : i32
    %c0_i32_0 = arith.constant 0 : i32
    return %arg0, %c0_i32 : i32, i32
  }
}

module attributes {stable_mosaic.version = 11 : i64} {
  func.func @_gemm_bias_act_kernel(%arg0: i32, %arg1: memref<32x384xbf16, #tpu.memory_space<vmem>>, %arg2: memref<384x128xbf16, #tpu.memory_space<vmem>>, %arg3: memref<1x128xf32, #tpu.memory_space<vmem>>, %arg4: memref<32x128xf32, #tpu.memory_space<vmem>>) attributes {dimension_semantics = [#tpu.dimension_semantics<parallel>], iteration_bounds = array<i64: 1>, scalar_prefetch = 0 : i64, scratch_operands = 0 : i64, tpu.core_type = #tpu.core_type<tc>, window_params = [{transform_indices = @transform_0, window_bounds = array<i64: 32, 384>}, {pipeline_mode = #tpu.pipeline_mode<synchronous>, transform_indices = @transform_1, window_bounds = array<i64: 384, 128>}, {pipeline_mode = #tpu.pipeline_mode<synchronous>, transform_indices = @transform_2, window_bounds = array<i64: 1, 128>}, {transform_indices = @transform_3, window_bounds = array<i64: 32, 128>}]} {
    %c0 = arith.constant 0 : index
    %c0_0 = arith.constant 0 : index
    %0 = vector.load %arg1[%c0, %c0_0] : memref<32x384xbf16, #tpu.memory_space<vmem>>, vector<32x384xbf16>
    %c0_1 = arith.constant 0 : index
    %c0_2 = arith.constant 0 : index
    %1 = vector.load %arg2[%c0_1, %c0_2] : memref<384x128xbf16, #tpu.memory_space<vmem>>, vector<384x128xbf16>
    %cst = arith.constant dense<0.000000e+00> : vector<32x128xf32>
    %2 = tpu.matmul %0, %1, %cst {dimension_numbers = #tpu.dot_dimension_numbers<[1], [0], [0], [1], [0, 0, 1, 1], [], []>} : vector<32x384xbf16>, vector<384x128xbf16>, vector<32x128xf32> -> vector<32x128xf32>
    %c0_3 = arith.constant 0 : index
    %c0_4 = arith.constant 0 : index
    %3 = vector.load %arg3[%c0_3, %c0_4] : memref<1x128xf32, #tpu.memory_space<vmem>>, vector<1x128xf32>
    %4 = vector.broadcast %3 : vector<1x128xf32> to vector<32x128xf32>
    %5 = arith.addf %2, %4 : vector<32x128xf32>
    %6 = arith.negf %5 : vector<32x128xf32>
    %7 = math.exp %6 : vector<32x128xf32>
    %cst_5 = arith.constant 1.000000e+00 : f32
    %8 = vector.broadcast %cst_5 : f32 to vector<32x128xf32>
    %9 = arith.addf %8, %7 : vector<32x128xf32>
    %10 = arith.divf %8, %9 : vector<32x128xf32>
    %11 = arith.mulf %5, %10 : vector<32x128xf32>
    %c0_6 = arith.constant 0 : index
    %c0_7 = arith.constant 0 : index
    %12 = vector.load %arg4[%c0_6, %c0_7] : memref<32x128xf32, #tpu.memory_space<vmem>>, vector<32x128xf32>
    tpu.vector_store %arg4[%c0_6, %c0_7], %11 {strides = array<i32>} : memref<32x128xf32, #tpu.memory_space<vmem>>, vector<32x128xf32>,
    return
  }
  func.func @transform_0(%arg0: i32) -> (i32, i32) {
    %c0_i32 = arith.constant 0 : i32
    %c0_i32_0 = arith.constant 0 : i32
    return %arg0, %c0_i32 : i32, i32
  }
  func.func @transform_1(%arg0: i32) -> (i32, i32) {
    %c0_i32 = arith.constant 0 : i32
    %c0_i32_0 = arith.constant 0 : i32
    %c0_i32_1 = arith.constant 0 : i32
    return %c0_i32, %c0_i32_0 : i32, i32
  }
  func.func @transform_2(%arg0: i32) -> (i32, i32) {
    %c0_i32 = arith.constant 0 : i32
    %c0_i32_0 = arith.constant 0 : i32
    %c0_i32_1 = arith.constant 0 : i32
    return %c0_i32, %c0_i32_0 : i32, i32
  }
  func.func @transform_3(%arg0: i32) -> (i32, i32) {
    %c0_i32 = arith.constant 0 : i32
    %c0_i32_0 = arith.constant 0 : i32
    return %arg0, %c0_i32 : i32, i32
  }
}

module attributes {stable_mosaic.version = 11 : i64} {
  func.func @_gemm_bias_act_kernel(%arg0: i32, %arg1: memref<32x576xbf16, #tpu.memory_space<vmem>>, %arg2: memref<576x32xbf16, #tpu.memory_space<vmem>>, %arg3: memref<1x32xf32, #tpu.memory_space<vmem>>, %arg4: memref<32x32xf32, #tpu.memory_space<vmem>>) attributes {dimension_semantics = [#tpu.dimension_semantics<parallel>], iteration_bounds = array<i64: 1>, scalar_prefetch = 0 : i64, scratch_operands = 0 : i64, tpu.core_type = #tpu.core_type<tc>, window_params = [{transform_indices = @transform_0, window_bounds = array<i64: 32, 576>}, {pipeline_mode = #tpu.pipeline_mode<synchronous>, transform_indices = @transform_1, window_bounds = array<i64: 576, 32>}, {pipeline_mode = #tpu.pipeline_mode<synchronous>, transform_indices = @transform_2, window_bounds = array<i64: 1, 32>}, {transform_indices = @transform_3, window_bounds = array<i64: 32, 32>}]} {
    %c0 = arith.constant 0 : index
    %c0_0 = arith.constant 0 : index
    %0 = vector.load %arg1[%c0, %c0_0] : memref<32x576xbf16, #tpu.memory_space<vmem>>, vector<32x576xbf16>
    %c0_1 = arith.constant 0 : index
    %c0_2 = arith.constant 0 : index
    %1 = vector.load %arg2[%c0_1, %c0_2] : memref<576x32xbf16, #tpu.memory_space<vmem>>, vector<576x32xbf16>
    %cst = arith.constant dense<0.000000e+00> : vector<32x32xf32>
    %2 = tpu.matmul %0, %1, %cst {dimension_numbers = #tpu.dot_dimension_numbers<[1], [0], [0], [1], [0, 0, 1, 1], [], []>} : vector<32x576xbf16>, vector<576x32xbf16>, vector<32x32xf32> -> vector<32x32xf32>
    %c0_3 = arith.constant 0 : index
    %c0_4 = arith.constant 0 : index
    %3 = vector.load %arg3[%c0_3, %c0_4] : memref<1x32xf32, #tpu.memory_space<vmem>>, vector<1x32xf32>
    %4 = vector.broadcast %3 : vector<1x32xf32> to vector<32x32xf32>
    %5 = arith.addf %2, %4 : vector<32x32xf32>
    %6 = arith.negf %5 : vector<32x32xf32>
    %7 = math.exp %6 : vector<32x32xf32>
    %cst_5 = arith.constant 1.000000e+00 : f32
    %8 = vector.broadcast %cst_5 : f32 to vector<32x32xf32>
    %9 = arith.addf %8, %7 : vector<32x32xf32>
    %10 = arith.divf %8, %9 : vector<32x32xf32>
    %11 = arith.mulf %5, %10 : vector<32x32xf32>
    %c0_6 = arith.constant 0 : index
    %c0_7 = arith.constant 0 : index
    %12 = vector.load %arg4[%c0_6, %c0_7] : memref<32x32xf32, #tpu.memory_space<vmem>>, vector<32x32xf32>
    tpu.vector_store %arg4[%c0_6, %c0_7], %11 {strides = array<i32>} : memref<32x32xf32, #tpu.memory_space<vmem>>, vector<32x32xf32>,
    return
  }
  func.func @transform_0(%arg0: i32) -> (i32, i32) {
    %c0_i32 = arith.constant 0 : i32
    %c0_i32_0 = arith.constant 0 : i32
    return %arg0, %c0_i32 : i32, i32
  }
  func.func @transform_1(%arg0: i32) -> (i32, i32) {
    %c0_i32 = arith.constant 0 : i32
    %c0_i32_0 = arith.constant 0 : i32
    %c0_i32_1 = arith.constant 0 : i32
    return %c0_i32, %c0_i32_0 : i32, i32
  }
  func.func @transform_2(%arg0: i32) -> (i32, i32) {
    %c0_i32 = arith.constant 0 : i32
    %c0_i32_0 = arith.constant 0 : i32
    %c0_i32_1 = arith.constant 0 : i32
    return %c0_i32, %c0_i32_0 : i32, i32
  }
  func.func @transform_3(%arg0: i32) -> (i32, i32) {
    %c0_i32 = arith.constant 0 : i32
    %c0_i32_0 = arith.constant 0 : i32
    return %arg0, %c0_i32 : i32, i32
  }
}

module attributes {stable_mosaic.version = 11 : i64} {
  func.func @_gemm_bias_act_kernel(%arg0: i32, %arg1: memref<32x192xbf16, #tpu.memory_space<vmem>>, %arg2: memref<192x128xbf16, #tpu.memory_space<vmem>>, %arg3: memref<1x128xf32, #tpu.memory_space<vmem>>, %arg4: memref<32x128xf32, #tpu.memory_space<vmem>>) attributes {dimension_semantics = [#tpu.dimension_semantics<parallel>], iteration_bounds = array<i64: 1>, scalar_prefetch = 0 : i64, scratch_operands = 0 : i64, tpu.core_type = #tpu.core_type<tc>, window_params = [{transform_indices = @transform_0, window_bounds = array<i64: 32, 192>}, {pipeline_mode = #tpu.pipeline_mode<synchronous>, transform_indices = @transform_1, window_bounds = array<i64: 192, 128>}, {pipeline_mode = #tpu.pipeline_mode<synchronous>, transform_indices = @transform_2, window_bounds = array<i64: 1, 128>}, {transform_indices = @transform_3, window_bounds = array<i64: 32, 128>}]} {
    %c0 = arith.constant 0 : index
    %c0_0 = arith.constant 0 : index
    %0 = vector.load %arg1[%c0, %c0_0] : memref<32x192xbf16, #tpu.memory_space<vmem>>, vector<32x192xbf16>
    %c0_1 = arith.constant 0 : index
    %c0_2 = arith.constant 0 : index
    %1 = vector.load %arg2[%c0_1, %c0_2] : memref<192x128xbf16, #tpu.memory_space<vmem>>, vector<192x128xbf16>
    %cst = arith.constant dense<0.000000e+00> : vector<32x128xf32>
    %2 = tpu.matmul %0, %1, %cst {dimension_numbers = #tpu.dot_dimension_numbers<[1], [0], [0], [1], [0, 0, 1, 1], [], []>} : vector<32x192xbf16>, vector<192x128xbf16>, vector<32x128xf32> -> vector<32x128xf32>
    %c0_3 = arith.constant 0 : index
    %c0_4 = arith.constant 0 : index
    %3 = vector.load %arg3[%c0_3, %c0_4] : memref<1x128xf32, #tpu.memory_space<vmem>>, vector<1x128xf32>
    %4 = vector.broadcast %3 : vector<1x128xf32> to vector<32x128xf32>
    %5 = arith.addf %2, %4 : vector<32x128xf32>
    %6 = arith.negf %5 : vector<32x128xf32>
    %7 = math.exp %6 : vector<32x128xf32>
    %cst_5 = arith.constant 1.000000e+00 : f32
    %8 = vector.broadcast %cst_5 : f32 to vector<32x128xf32>
    %9 = arith.addf %8, %7 : vector<32x128xf32>
    %10 = arith.divf %8, %9 : vector<32x128xf32>
    %11 = arith.mulf %5, %10 : vector<32x128xf32>
    %c0_6 = arith.constant 0 : index
    %c0_7 = arith.constant 0 : index
    %12 = vector.load %arg4[%c0_6, %c0_7] : memref<32x128xf32, #tpu.memory_space<vmem>>, vector<32x128xf32>
    tpu.vector_store %arg4[%c0_6, %c0_7], %11 {strides = array<i32>} : memref<32x128xf32, #tpu.memory_space<vmem>>, vector<32x128xf32>,
    return
  }
  func.func @transform_0(%arg0: i32) -> (i32, i32) {
    %c0_i32 = arith.constant 0 : i32
    %c0_i32_0 = arith.constant 0 : i32
    return %arg0, %c0_i32 : i32, i32
  }
  func.func @transform_1(%arg0: i32) -> (i32, i32) {
    %c0_i32 = arith.constant 0 : i32
    %c0_i32_0 = arith.constant 0 : i32
    %c0_i32_1 = arith.constant 0 : i32
    return %c0_i32, %c0_i32_0 : i32, i32
  }
  func.func @transform_2(%arg0: i32) -> (i32, i32) {
    %c0_i32 = arith.constant 0 : i32
    %c0_i32_0 = arith.constant 0 : i32
    %c0_i32_1 = arith.constant 0 : i32
    return %c0_i32, %c0_i32_0 : i32, i32
  }
  func.func @transform_3(%arg0: i32) -> (i32, i32) {
    %c0_i32 = arith.constant 0 : i32
    %c0_i32_0 = arith.constant 0 : i32
    return %arg0, %c0_i32 : i32, i32
  }
}

module attributes {stable_mosaic.version = 11 : i64} {
  func.func @_gemm_bias_act_kernel(%arg0: i32, %arg1: memref<32x288xbf16, #tpu.memory_space<vmem>>, %arg2: memref<288x64xbf16, #tpu.memory_space<vmem>>, %arg3: memref<1x64xf32, #tpu.memory_space<vmem>>, %arg4: memref<32x64xf32, #tpu.memory_space<vmem>>) attributes {dimension_semantics = [#tpu.dimension_semantics<parallel>], iteration_bounds = array<i64: 1>, scalar_prefetch = 0 : i64, scratch_operands = 0 : i64, tpu.core_type = #tpu.core_type<tc>, window_params = [{transform_indices = @transform_0, window_bounds = array<i64: 32, 288>}, {pipeline_mode = #tpu.pipeline_mode<synchronous>, transform_indices = @transform_1, window_bounds = array<i64: 288, 64>}, {pipeline_mode = #tpu.pipeline_mode<synchronous>, transform_indices = @transform_2, window_bounds = array<i64: 1, 64>}, {transform_indices = @transform_3, window_bounds = array<i64: 32, 64>}]} {
    %c0 = arith.constant 0 : index
    %c0_0 = arith.constant 0 : index
    %0 = vector.load %arg1[%c0, %c0_0] : memref<32x288xbf16, #tpu.memory_space<vmem>>, vector<32x288xbf16>
    %c0_1 = arith.constant 0 : index
    %c0_2 = arith.constant 0 : index
    %1 = vector.load %arg2[%c0_1, %c0_2] : memref<288x64xbf16, #tpu.memory_space<vmem>>, vector<288x64xbf16>
    %cst = arith.constant dense<0.000000e+00> : vector<32x64xf32>
    %2 = tpu.matmul %0, %1, %cst {dimension_numbers = #tpu.dot_dimension_numbers<[1], [0], [0], [1], [0, 0, 1, 1], [], []>} : vector<32x288xbf16>, vector<288x64xbf16>, vector<32x64xf32> -> vector<32x64xf32>
    %c0_3 = arith.constant 0 : index
    %c0_4 = arith.constant 0 : index
    %3 = vector.load %arg3[%c0_3, %c0_4] : memref<1x64xf32, #tpu.memory_space<vmem>>, vector<1x64xf32>
    %4 = vector.broadcast %3 : vector<1x64xf32> to vector<32x64xf32>
    %5 = arith.addf %2, %4 : vector<32x64xf32>
    %6 = arith.negf %5 : vector<32x64xf32>
    %7 = math.exp %6 : vector<32x64xf32>
    %cst_5 = arith.constant 1.000000e+00 : f32
    %8 = vector.broadcast %cst_5 : f32 to vector<32x64xf32>
    %9 = arith.addf %8, %7 : vector<32x64xf32>
    %10 = arith.divf %8, %9 : vector<32x64xf32>
    %11 = arith.mulf %5, %10 : vector<32x64xf32>
    %c0_6 = arith.constant 0 : index
    %c0_7 = arith.constant 0 : index
    %12 = vector.load %arg4[%c0_6, %c0_7] : memref<32x64xf32, #tpu.memory_space<vmem>>, vector<32x64xf32>
    tpu.vector_store %arg4[%c0_6, %c0_7], %11 {strides = array<i32>} : memref<32x64xf32, #tpu.memory_space<vmem>>, vector<32x64xf32>,
    return
  }
  func.func @transform_0(%arg0: i32) -> (i32, i32) {
    %c0_i32 = arith.constant 0 : i32
    %c0_i32_0 = arith.constant 0 : i32
    return %arg0, %c0_i32 : i32, i32
  }
  func.func @transform_1(%arg0: i32) -> (i32, i32) {
    %c0_i32 = arith.constant 0 : i32
    %c0_i32_0 = arith.constant 0 : i32
    %c0_i32_1 = arith.constant 0 : i32
    return %c0_i32, %c0_i32_0 : i32, i32
  }
  func.func @transform_2(%arg0: i32) -> (i32, i32) {
    %c0_i32 = arith.constant 0 : i32
    %c0_i32_0 = arith.constant 0 : i32
    %c0_i32_1 = arith.constant 0 : i32
    return %c0_i32, %c0_i32_0 : i32, i32
  }
  func.func @transform_3(%arg0: i32) -> (i32, i32) {
    %c0_i32 = arith.constant 0 : i32
    %c0_i32_0 = arith.constant 0 : i32
    return %arg0, %c0_i32 : i32, i32
  }
}

</mosaic_0001>

<bundles_post_ra>
// kernel: _forward.47
= control target key start
LH: loop header
LB: loop body
LE: loop exit
PB: predicated region body
PF: predicated region fallthrough
CT: control target
= control target key end

     0   :  { %s1159_s12 = smov 0   ;;  %s1478_s0 = inlined_call_operand.vmem [shape: bf16[512,27], index: 0, kind: input, shape index: {}]   ;;  %s1479_s1 = inlined_call_operand.vmem [shape: bf16[27,16], index: 1, kind: input, shape index: {}]   ;;  %s1480_s2 = inlined_call_operand.vmem [shape: f32[1,16], index: 2, kind: input, shape index: {}]   ;;  %s1481_s3 = inlined_call_operand.vmem [shape: f32[512,16], index: 3, kind: output, shape index: {}]  }
   0x1 LB: > { %s839_s13 = sadd.s32 4294967295, %s1136_s12   ;;  %p843_p0 = scmp.ge.s32.totalorder %s1136_s12, 1  ;;  %s1136_s12 = sphi %s1159_s12, %s13_s12  }
   0x2   : > { %p138_p1 = scmp.lt.s32.totalorder %s1136_s12, 3 }
   0x4   : > { %p139_p2 = pnand %p843_p0, %p138_p1 }
   0x5   : > { %v984_v0 = vld [vmem:[%s1479_s1] sm:$0xff] (!%p139_p2)   ;;  %vm358_vm0 = vcmask (!%p139_p2), 1044480   ;;  %v985_v1 = vld [vmem:[%s1479_s1 + $0x8] sm:$0x3f] (!%p139_p2)   ;;  %vm359_vm1 = vcmask (!%p139_p2), 1045504   ;;  %s844_s18 = sshll.u32 (!%p139_p2), %s839_s13, 5 }
   0x6   : > { %142 = sbr.rel (%p139_p2) target bundleno = 320 (0x140), region = 32  ;;  %935 = vmatprep.subr.bf16.mxu0 (!%p139_p2), %v984_v0  ;;  %971 = vmatprep.subr.bf16.mxu1 (!%p139_p2), %v984_v0  ;;  %v1138_v2 = vmov (!%p139_p2), 65535   ;;  %p163_p3 = scmp.lt.s32.totalorder (!%p139_p2), %s844_s18, 63  ;;  %vm309_vm2 = vcmask (!%p139_p2), 220160   ;;  %v1216_v22 = vld [vmem:[%s1480_s2] ss:$0 sm:$0xff] (!%p139_p2) }
   0x7   : > { %936 = vmatpush3.bf16.msra.mxu0 (!%p139_p2), %v984_v0  ;;  %973 = vmatpush3.bf16.msra.mxu1 (!%p139_p2), %v984_v0  ;;  %v360_v3 = vsel (!%p139_p2), %vm358_vm0, 4294967295, %v1138_v2  ;;  %vm750_vm3 = vcmask (!%p139_p2), 130048  }
   0x8   : > { %v361_v4 = vsel (!%p139_p2), %vm359_vm1, %v360_v3, 0 }
   0x9   : > { %v363_v5 = vand.u32 (!%p139_p2), %v985_v1, %v361_v4 }
   0xb   : > { %937 = vmatprep.subr.bf16.mxu0 (!%p139_p2), %v363_v5  ;;  %972 = vmatprep.subr.bf16.mxu1 (!%p139_p2), %v363_v5 }
   0xc   : > { %938 = vmatpush3.bf16.msra.mxu0 (!%p139_p2), %v363_v5  ;;  %974 = vmatpush3.bf16.msra.mxu1 (!%p139_p2), %v363_v5 }
   0xd   : > { %s1483_s18 = smov (!%p163_p3, %s844_s18), 63 }
   0xe   : > { %s845_s19 = sshll.u32 %s1483_s18, 2  ;;  %s847_s25 = sshll.u32 %s1483_s18, 3 }
   0xf   : > { %s1179_s22 = scalar_lea.vmem %s1478_s0, %s845_s19  ;;  %s1306_s28 = scalar_lea.vmem %s1481_s3, %s847_s25 }
  0x10   : > { %v986_v6 = vld [vmem:[%s1179_s22] sm:$0xff]   ;;  %v988_v8 = vld [vmem:[%s1179_s22 + $0x8] sm:$0xff]   ;;  %v990_v10 = vld [vmem:[%s1179_s22 + $0x10] sm:$0xff]  }
  0x11   : > { %v987_v7 = vld [vmem:[%s1179_s22 + $0x40] sm:$0xff]   ;;  %939 = vmatprep.mubr.msk.bf16.mxu0 %vm309_vm2, %v986_v6  ;;  %v989_v9 = vld [vmem:[%s1179_s22 + $0x48] sm:$0xff]   ;;  %v991_v11 = vld [vmem:[%s1179_s22 + $0x50] sm:$0xff]  }
  0x12   : > { %955 = vmatprep.mubr.msk.bf16.mxu1 %vm309_vm2, %v987_v7  ;;  %940 = vmatmul.mubr.msk.bf16.vlgmr.msra.gmra.mrb[0].mxu0 %vm309_vm2, %v988_v8  ;;  %v992_v12 = vld [vmem:[%s1179_s22 + $0x18] sm:$0xff]   ;;  %v994_v14 = vld [vmem:[%s1179_s22 + $0x20] sm:$0xff]   ;;  %v996_v16 = vld [vmem:[%s1179_s22 + $0x28] sm:$0xff]  }
  0x13   : > { %956 = vmatmul.mubr.msk.bf16.vlgmr.msra.gmra.mrb[0].mxu1 %vm309_vm2, %v989_v9  ;;  %943 = vmatprep.mubr.msk.bf16.mxu0 %vm309_vm2, %v990_v10  ;;  %v993_v13 = vld [vmem:[%s1179_s22 + $0x58] sm:$0xff]   ;;  %v995_v15 = vld [vmem:[%s1179_s22 + $0x60] sm:$0xff]   ;;  %v997_v17 = vld [vmem:[%s1179_s22 + $0x68] sm:$0xff]  }
  0x14   : > { %959 = vmatprep.mubr.msk.bf16.mxu1 %vm309_vm2, %v991_v11  ;;  %v998_v18 = vld [vmem:[%s1179_s22 + $0x30] sm:$0xff]   ;;  %v1000_v20 = vld [vmem:[%s1179_s22 + $0x38] sm:$0xff]  }
  0x15   : > { %v999_v19 = vld [vmem:[%s1179_s22 + $0x70] sm:$0xff]   ;;  %v1001_v21 = vld [vmem:[%s1179_s22 + $0x78] sm:$0xff]  }
  0x1a   : > { %944 = vmatmul.mubr.msk.bf16.gmra.mrb[4].mxu0 %vm309_vm2, %v992_v12 }
  0x1b   : > { %960 = vmatmul.mubr.msk.bf16.gmra.mrb[4].mxu1 %vm309_vm2, %v993_v13  ;;  %947 = vmatprep.mubr.msk.bf16.mxu0 %vm309_vm2, %v994_v14 }
  0x1c   : > { %963 = vmatprep.mubr.msk.bf16.mxu1 %vm309_vm2, %v995_v15 }
  0x22   : > { %948 = vmatmul.mubr.msk.bf16.gmra.mrb[8].mxu0 %vm309_vm2, %v996_v16 }
  0x23   : > { %964 = vmatmul.mubr.msk.bf16.gmra.mrb[8].mxu1 %vm309_vm2, %v997_v17  ;;  %951 = vmatprep.mubr.msk.bf16.mxu0 %vm309_vm2, %v998_v18 }
  0x24   : > { %967 = vmatprep.mubr.msk.bf16.mxu1 %vm309_vm2, %v999_v19 }
  0x2a   : > { %952 = vmatmul.mubr.msk.bf16.gmra.mrb[12].mxu0 %vm309_vm2, %v1000_v20 }
  0x2b   : > { %968 = vmatmul.mubr.msk.bf16.gmra.mrb[12].mxu1 %vm309_vm2, %v1001_v21 }
  0xe5   : > { %v941_v23 = vpop.f32.mrb[0].mxu0 }
  0xe6   : > { %v1219_v24 = vadd.f32 %v941_v23, %v1216_v22  ;;  %v957_v25 = vpop.f32.mrb[0].mxu1  ;;  %v399_v26 = vpop.f32.mrb[1].mxu0 }
  0xe7   : > { %v1222_v27 = vadd.f32 %v957_v25, %v1216_v22  ;;  %v1225_v28 = vadd.f32 %v1216_v22, %v399_v26  ;;  %v463_v29 = vpop.f32.mrb[1].mxu1  ;;  %v942_v30 = vpop.f32.mrb[2].mxu0 }
  0xe8   : > { %v885_v31 = vmul.f32 -1.442695, %v1219_v24  ;;  %v1229_v32 = vadd.f32 %v1216_v22, %v463_v29  ;;  %v1232_v33 = vadd.f32 %v942_v30, %v1216_v22  ;;  %v958_v34 = vpop.f32.mrb[2].mxu1  ;;  %v402_v35 = vpop.f32.mrb[3].mxu0 }
  0xe9   : > { %v901_v36 = vmul.f32 -1.442695, %v1222_v27  ;;  %v883_v37 = vmul.f32 -1.442695, %v1225_v28  ;;  %v1237_v38 = vadd.f32 %v958_v34, %v1216_v22  ;;  %v1240_v39 = vadd.f32 %v1216_v22, %v402_v35  ;;  %v466_v40 = vpop.f32.mrb[3].mxu1 }
  0xea   : > { %1002 = vpow2.f32 %v885_v31  ;;  %v899_v41 = vmul.f32 -1.442695, %v1229_v32  ;;  %v886_v42 = vmul.f32 -1.442695, %v1232_v33  ;;  %v1245_v43 = vadd.f32 %v1216_v22, %v466_v40 }
  0xeb   : > { %1004 = vpow2.f32 %v901_v36  ;;  %v902_v44 = vmul.f32 -1.442695, %v1237_v38  ;;  %v884_v45 = vmul.f32 -1.442695, %v1240_v39 }
  0xec   : > { %1006 = vpow2.f32 %v883_v37  ;;  %v900_v46 = vmul.f32 -1.442695, %v1245_v43 }
  0xed   : > { %1008 = vpow2.f32 %v899_v41  ;;  %v945_v47 = vpop.f32.mrb[4].mxu0 }
  0xee   : > { %1010 = vpow2.f32 %v886_v42  ;;  %v1251_v48 = vadd.f32 %v945_v47, %v1216_v22  ;;  %v961_v49 = vpop.f32.mrb[4].mxu1  ;;  %v415_v50 = vpop.f32.mrb[5].mxu0 }
  0xef   : > { %1012 = vpow2.f32 %v902_v44  ;;  %v1254_v51 = vadd.f32 %v961_v49, %v1216_v22  ;;  %v1257_v52 = vadd.f32 %v1216_v22, %v415_v50  ;;  %v479_v53 = vpop.f32.mrb[5].mxu1  ;;  %v946_v54 = vpop.f32.mrb[6].mxu0 }
  0xf0   : > { %1014 = vpow2.f32 %v884_v45  ;;  %v889_v55 = vmul.f32 -1.442695, %v1251_v48  ;;  %v1261_v56 = vadd.f32 %v1216_v22, %v479_v53  ;;  %v1264_v57 = vadd.f32 %v946_v54, %v1216_v22  ;;  %v962_v58 = vpop.f32.mrb[6].mxu1  ;;  %v418_v59 = vpop.f32.mrb[7].mxu0 }
  0xf1   : > { %1016 = vpow2.f32 %v900_v46  ;;  %v905_v60 = vmul.f32 -1.442695, %v1254_v51  ;;  %v887_v61 = vmul.f32 -1.442695, %v1257_v52  ;;  %v482_v62 = vpop.f32.mrb[7].mxu1  ;;  %v1277_v30 = vadd.f32 %v962_v58, %v1216_v22 }
  0xf2   : > { %1018 = vpow2.f32 %v889_v55  ;;  %v903_v63 = vmul.f32 -1.442695, %v1261_v56  ;;  %v890_v0 = vmul.f32 -1.442695, %v1264_v57  ;;  %v1280_v35 = vadd.f32 %v1216_v22, %v418_v59 }
  0xf3   : > { %1020 = vpow2.f32 %v905_v60  ;;  %v1284_v41 = vadd.f32 %v1216_v22, %v482_v62  ;;  %v906_v55 = vmul.f32 -1.442695, %v1277_v30 }
  0xf4   : > { %v1003_v1 = vpop.eup %1002  ;;  %1022 = vpow2.f32 %v887_v61 }
  0xf5   : > { %v1005_v2 = vpop.eup %1004  ;;  %v624_v3 = vadd.f32 1.0, %v1003_v1  ;;  %1024 = vpow2.f32 %v903_v63  ;;  %v949_v4 = vpop.f32.mrb[8].mxu0  ;;  %v888_v63 = vmul.f32 -1.442695, %v1280_v35 }
  0xf6   : > { %v1007_v5 = vpop.eup %1006  ;;  %v640_v6 = vadd.f32 1.0, %v1005_v2  ;;  %1026 = vpow2.f32 %v890_v0  ;;  %v965_v7 = vpop.f32.mrb[8].mxu1  ;;  %v1289_v47 = vadd.f32 %v949_v4, %v1216_v22  ;;  %v904_v4 = vmul.f32 -1.442695, %v1284_v41 }
  0xf7   : > { %v431_v8 = vpop.f32.mrb[9].mxu0  ;;  %v1009_v9 = vpop.eup %1008  ;;  %1028 = vrcp.f32 %v624_v3  ;;  %v622_v10 = vadd.f32 1.0, %v1007_v5  ;;  %v1297_v58 = vadd.f32 %v965_v7, %v1216_v22 }
  0xf8   : > { %v495_v11 = vpop.f32.mrb[9].mxu1  ;;  %v950_v12 = vpop.f32.mrb[10].mxu0  ;;  %1030 = vrcp.f32 %v640_v6  ;;  %v638_v14 = vadd.f32 1.0, %v1009_v9  ;;  %v1310_v0 = vadd.f32 %v1216_v22, %v431_v8  ;;  %v893_v8 = vmul.f32 -1.442695, %v1289_v47 }
  0xf9   : > { %v1011_v13 = vpop.eup %1010  ;;  %v1270_v15 = vpop.f32.mrb[10].mxu1  ;;  %1032 = vrcp.f32 %v622_v10  ;;  %v1317_v5 = vadd.f32 %v1216_v22, %v495_v11  ;;  %v1322_v9 = vadd.f32 %v950_v12, %v1216_v22  ;;  %v909_v11 = vmul.f32 -1.442695, %v1297_v58 }
  0xfa   : > { %v1272_v16 = vpop.f32.mrb[11].mxu0  ;;  %v1013_v17 = vpop.eup %1012  ;;  %v625_v18 = vadd.f32 1.0, %v1011_v13  ;;  %1034 = vrcp.f32 %v638_v14  ;;  %v1330_v13 = vadd.f32 %v1270_v15, %v1216_v22  ;;  %v891_v12 = vmul.f32 -1.442695, %v1310_v0 }
  0xfb   : > { %v1274_v19 = vpop.f32.mrb[11].mxu1  ;;  %v1015_v20 = vpop.eup %1014  ;;  %v641_v21 = vadd.f32 1.0, %v1013_v17  ;;  %v907_v15 = vmul.f32 -1.442695, %v1317_v5 }
  0xfc   : > { %v1017_v23 = vpop.eup %1016  ;;  %1036 = vrcp.f32 %v625_v18  ;;  %v623_v25 = vadd.f32 1.0, %v1015_v20 }
  0xfd   : > { %v1019_v26 = vpop.eup %1018  ;;  %1038 = vrcp.f32 %v641_v21  ;;  %v639_v29 = vadd.f32 1.0, %v1017_v23  ;;  %v953_v36 = vpop.f32.mrb[12].mxu0 }
  0xfe   : > { %v1021_v31 = vpop.eup %1020  ;;  %1040 = vrcp.f32 %v623_v25  ;;  %v628_v34 = vadd.f32 1.0, %v1019_v26  ;;  %v969_v42 = vpop.f32.mrb[12].mxu1  ;;  %v1353_v23 = vadd.f32 %v953_v36, %v1216_v22 }
  0xff   : > { %v1023_v37 = vpop.eup %1022  ;;  %1042 = vrcp.f32 %v639_v29  ;;  %v644_v40 = vadd.f32 1.0, %v1021_v31  ;;  %v1286_v44 = vpop.f32.mrb[13].mxu0  ;;  %v1360_v26 = vadd.f32 %v969_v42, %v1216_v22 }
 0x100   : > { %v1025_v45 = vpop.eup %1024  ;;  %1044 = vrcp.f32 %v628_v34  ;;  %v626_v46 = vadd.f32 1.0, %v1023_v37  ;;  %v1291_v49 = vpop.f32.mrb[13].mxu1 }
 0x101   : > { %v1293_v50 = vpop.f32.mrb[14].mxu0  ;;  %v1027_v53 = vpop.eup %1026  ;;  %1046 = vrcp.f32 %v644_v40  ;;  %v642_v54 = vadd.f32 1.0, %v1025_v45 }
 0x102   : > { %v1299_v59 = vpop.f32.mrb[14].mxu1  ;;  %v1301_v60 = vpop.f32.mrb[15].mxu0  ;;  %1048 = vrcp.f32 %v626_v46  ;;  %v629_v62 = vadd.f32 1.0, %v1027_v53 }
 0x103   : > { %v1029_v61 = vpop.eup %1028  ;;  %v1312_v1 = vpop.f32.mrb[15].mxu1  ;;  %1050 = vrcp.f32 %v642_v54 }
 0x104   : > { %v1031_v2 = vpop.eup %1030  ;;  %v720_v3 = vmul.f32 %v1029_v61, %v1219_v24  ;;  %1052 = vrcp.f32 %v629_v62 }
 0x105   : > { %v1033_v6 = vpop.eup %1032  ;;  %v736_v7 = vmul.f32 %v1031_v2, %v1222_v27  ;;  %1054 = vpow2.f32 %v906_v55 }
 0x106   : > { %v1035_v10 = vpop.eup %1034  ;;  %753 = vst.msk [vmem:[%s1306_s28 + $0x10] sm:$0xff] %vm750_vm3, %v720_v3  ;;  %v718_v24 = vmul.f32 %v1033_v6, %v1225_v28  ;;  %1056 = vpow2.f32 %v888_v63  ;;  %v1338_v28 = vadd.f32 %v1216_v22, %v1272_v16  ;;  %v894_v16 = vmul.f32 -1.442695, %v1322_v9 }
 0x107   : > { %v1037_v27 = vpop.eup %1036  ;;  %769 = vst.msk [vmem:[%s1306_s28 + $0x90] sm:$0xff] %vm750_vm3, %v736_v7  ;;  %v734_v14 = vmul.f32 %v1035_v10, %v1229_v32  ;;  %1058 = vpow2.f32 %v904_v4  ;;  %v1346_v32 = vadd.f32 %v1216_v22, %v1274_v19  ;;  %v910_v19 = vmul.f32 -1.442695, %v1330_v13 }
 0x108   : > { %v1039_v17 = vpop.eup %1038  ;;  %751 = vst.msk [vmem:[%s1306_s28] sm:$0xff] %vm750_vm3, %v718_v24  ;;  %v721_v18 = vmul.f32 %v1037_v27, %v1232_v33  ;;  %1060 = vpow2.f32 %v893_v8  ;;  %v892_v31 = vmul.f32 -1.442695, %v1338_v28  ;;  %v1390_v27 = vadd.f32 %v1216_v22, %v1286_v44 }
 0x109   : > { %v1041_v20 = vpop.eup %1040  ;;  %767 = vst.msk [vmem:[%s1306_s28 + $0x80] sm:$0xff] %vm750_vm3, %v734_v14  ;;  %v737_v21 = vmul.f32 %v1039_v17, %v1237_v38  ;;  %1062 = vpow2.f32 %v909_v11  ;;  %v908_v36 = vmul.f32 -1.442695, %v1346_v32  ;;  %v1394_v17 = vadd.f32 %v1216_v22, %v1291_v49 }
 0x10a   : > { %v1043_v33 = vpop.eup %1042  ;;  %754 = vst.msk [vmem:[%s1306_s28 + $0x18] sm:$0xff] %vm750_vm3, %v721_v18  ;;  %v719_v25 = vmul.f32 %v1041_v20, %v1240_v39  ;;  %1064 = vpow2.f32 %v891_v12  ;;  %v1398_v20 = vadd.f32 %v1293_v50, %v1216_v22  ;;  %v1402_v44 = vadd.f32 %v1299_v59, %v1216_v22 }
 0x10b   : > { %v1045_v38 = vpop.eup %1044  ;;  %770 = vst.msk [vmem:[%s1306_s28 + $0x98] sm:$0xff] %vm750_vm3, %v737_v21  ;;  %v735_v29 = vmul.f32 %v1043_v33, %v1245_v43  ;;  %1066 = vpow2.f32 %v907_v15  ;;  %v897_v43 = vmul.f32 -1.442695, %v1353_v23  ;;  %v895_v49 = vmul.f32 -1.442695, %v1390_v27 }
 0x10c   : > { %v1047_v34 = vpop.eup %1046  ;;  %752 = vst.msk [vmem:[%s1306_s28 + $0x8] sm:$0xff] %vm750_vm3, %v719_v25  ;;  %v724_v39 = vmul.f32 %v1045_v38, %v1251_v48  ;;  %1068 = vpow2.f32 %v894_v16  ;;  %v913_v48 = vmul.f32 -1.442695, %v1360_v26  ;;  %v1412_v59 = vadd.f32 %v1216_v22, %v1312_v1 }
 0x10d   : > { %v1049_v37 = vpop.eup %1048  ;;  %768 = vst.msk [vmem:[%s1306_s28 + $0x88] sm:$0xff] %vm750_vm3, %v735_v29  ;;  %v740_v40 = vmul.f32 %v1047_v34, %v1254_v51  ;;  %1070 = vpow2.f32 %v910_v19  ;;  %v1407_v19 = vadd.f32 %v1216_v22, %v1301_v60  ;;  %v911_v29 = vmul.f32 -1.442695, %v1394_v17 }
 0x10e   : > { %v1051_v42 = vpop.eup %1050  ;;  %757 = vst.msk [vmem:[%s1306_s28 + $0x30] sm:$0xff] %vm750_vm3, %v724_v39  ;;  %v722_v45 = vmul.f32 %v1049_v37, %v1257_v52  ;;  %1072 = vpow2.f32 %v892_v31  ;;  %v898_v39 = vmul.f32 -1.442695, %v1398_v20  ;;  %v914_v37 = vmul.f32 -1.442695, %v1402_v44 }
 0x10f   : > { %v1053_v46 = vpop.eup %1052  ;;  %773 = vst.msk [vmem:[%s1306_s28 + $0xb0] sm:$0xff] %vm750_vm3, %v740_v40  ;;  %v738_v53 = vmul.f32 %v1051_v42, %v1261_v56  ;;  %1074 = vpow2.f32 %v908_v36 }
 0x110   : > { %v1055_v51 = vpop.eup %1054  ;;  %755 = vst.msk [vmem:[%s1306_s28 + $0x20] sm:$0xff] %vm750_vm3, %v722_v45  ;;  %v725_v54 = vmul.f32 %v1053_v46, %v1264_v57  ;;  %1076 = vpow2.f32 %v897_v43 }
 0x111   : > { %v1057_v55 = vpop.eup %1056  ;;  %771 = vst.msk [vmem:[%s1306_s28 + $0xa0] sm:$0xff] %vm750_vm3, %v738_v53  ;;  %v645_v52 = vadd.f32 1.0, %v1055_v51  ;;  %1078 = vpow2.f32 %v913_v48 }
 0x112   : > { %v1059_v61 = vpop.eup %1058  ;;  %758 = vst.msk [vmem:[%s1306_s28 + $0x38] sm:$0xff] %vm750_vm3, %v725_v54  ;;  %v627_v62 = vadd.f32 1.0, %v1057_v55 }
 0x113   : > { %v1061_v63 = vpop.eup %1060  ;;  %1080 = vrcp.f32 %v645_v52  ;;  %v643_v56 = vadd.f32 1.0, %v1059_v61 }
 0x114   : > { %v1063_v2 = vpop.eup %1062  ;;  %1082 = vrcp.f32 %v627_v62  ;;  %v632_v3 = vadd.f32 1.0, %v1061_v63 }
 0x115   : > { %v1065_v4 = vpop.eup %1064  ;;  %1084 = vrcp.f32 %v643_v56  ;;  %v648_v57 = vadd.f32 1.0, %v1063_v2 }
 0x116   : > { %v1067_v6 = vpop.eup %1066  ;;  %1086 = vrcp.f32 %v632_v3  ;;  %v630_v7 = vadd.f32 1.0, %v1065_v4 }
 0x117   : > { %v1069_v8 = vpop.eup %1068  ;;  %1088 = vrcp.f32 %v648_v57  ;;  %v646_v10 = vadd.f32 1.0, %v1067_v6 }
 0x118   : > { %v1071_v24 = vpop.eup %1070  ;;  %1090 = vrcp.f32 %v630_v7  ;;  %v633_v11 = vadd.f32 1.0, %v1069_v8 }
 0x119   : > { %v1073_v14 = vpop.eup %1072  ;;  %1092 = vrcp.f32 %v646_v10  ;;  %v649_v12 = vadd.f32 1.0, %v1071_v24 }
 0x11a   : > { %v1075_v18 = vpop.eup %1074  ;;  %1094 = vrcp.f32 %v633_v11  ;;  %v631_v15 = vadd.f32 1.0, %v1073_v14 }
 0x11b   : > { %v1077_v21 = vpop.eup %1076  ;;  %1096 = vrcp.f32 %v649_v12  ;;  %v647_v16 = vadd.f32 1.0, %v1075_v18 }
 0x11c   : > { %v1079_v33 = vpop.eup %1078  ;;  %1098 = vrcp.f32 %v631_v15  ;;  %v636_v25 = vadd.f32 1.0, %v1077_v21 }
 0x11d   : > { %v1081_v38 = vpop.eup %1080  ;;  %1100 = vrcp.f32 %v647_v16  ;;  %v652_v50 = vadd.f32 1.0, %v1079_v33 }
 0x11e   : > { %v1083_v31 = vpop.eup %1082  ;;  %v741_v34 = vmul.f32 %v1081_v38, %v1277_v30  ;;  %1102 = vrcp.f32 %v636_v25  ;;  %v896_v30 = vmul.f32 -1.442695, %v1407_v19 }
 0x11f   : > { %v1085_v36 = vpop.eup %1084  ;;  %v723_v60 = vmul.f32 %v1083_v31, %v1280_v35  ;;  %1104 = vrcp.f32 %v652_v50  ;;  %v912_v35 = vmul.f32 -1.442695, %v1412_v59 }
 0x120   : > { %v1087_v40 = vpop.eup %1086  ;;  %774 = vst.msk [vmem:[%s1306_s28 + $0xb8] sm:$0xff] %vm750_vm3, %v741_v34  ;;  %v739_v22 = vmul.f32 %v1085_v36, %v1284_v41  ;;  %1106 = vpow2.f32 %v895_v49 }
 0x121   : > { %v1089_v1 = vpop.eup %1088  ;;  %756 = vst.msk [vmem:[%s1306_s28 + $0x28] sm:$0xff] %vm750_vm3, %v723_v60  ;;  %v728_v43 = vmul.f32 %v1087_v40, %v1289_v47  ;;  %1108 = vpow2.f32 %v911_v29 }
 0x122   : > { %v1091_v42 = vpop.eup %1090  ;;  %772 = vst.msk [vmem:[%s1306_s28 + $0xa8] sm:$0xff] %vm750_vm3, %v739_v22  ;;  %v744_v45 = vmul.f32 %v1089_v1, %v1297_v58  ;;  %1110 = vpow2.f32 %v898_v39 }
 0x123   : > { %v1093_v41 = vpop.eup %1092  ;;  %761 = vst.msk [vmem:[%s1306_s28 + $0x50] sm:$0xff] %vm750_vm3, %v728_v43  ;;  %v726_v48 = vmul.f32 %v1091_v42, %v1310_v0  ;;  %1112 = vpow2.f32 %v914_v37 }
 0x124   : > { %v1095_v47 = vpop.eup %1094  ;;  %777 = vst.msk [vmem:[%s1306_s28 + $0xd0] sm:$0xff] %vm750_vm3, %v744_v45  ;;  %v742_v46 = vmul.f32 %v1093_v41, %v1317_v5  ;;  %1114 = vpow2.f32 %v896_v30 }
 0x125   : > { %v1097_v53 = vpop.eup %1096  ;;  %759 = vst.msk [vmem:[%s1306_s28 + $0x40] sm:$0xff] %vm750_vm3, %v726_v48  ;;  %v729_v58 = vmul.f32 %v1095_v47, %v1322_v9  ;;  %1116 = vpow2.f32 %v912_v35 }
 0x126   : > { %v1099_v51 = vpop.eup %1098  ;;  %775 = vst.msk [vmem:[%s1306_s28 + $0xc0] sm:$0xff] %vm750_vm3, %v742_v46  ;;  %v745_v0 = vmul.f32 %v1097_v53, %v1330_v13 }
 0x127   : > { %v1101_v54 = vpop.eup %1100  ;;  %762 = vst.msk [vmem:[%s1306_s28 + $0x58] sm:$0xff] %vm750_vm3, %v729_v58  ;;  %v727_v5 = vmul.f32 %v1099_v51, %v1338_v28 }
 0x128   : > { %v1103_v55 = vpop.eup %1102  ;;  %778 = vst.msk [vmem:[%s1306_s28 + $0xd8] sm:$0xff] %vm750_vm3, %v745_v0  ;;  %v743_v52 = vmul.f32 %v1101_v54, %v1346_v32 }
 0x129   : > { %v1105_v61 = vpop.eup %1104  ;;  %760 = vst.msk [vmem:[%s1306_s28 + $0x48] sm:$0xff] %vm750_vm3, %v727_v5  ;;  %v732_v9 = vmul.f32 %v1103_v55, %v1353_v23 }
 0x12a   : > { %v1107_v62 = vpop.eup %1106  ;;  %776 = vst.msk [vmem:[%s1306_s28 + $0xc8] sm:$0xff] %vm750_vm3, %v743_v52  ;;  %v748_v13 = vmul.f32 %v1105_v61, %v1360_v26 }
 0x12b   : > { %v1109_v63 = vpop.eup %1108  ;;  %765 = vst.msk [vmem:[%s1306_s28 + $0x70] sm:$0xff] %vm750_vm3, %v732_v9  ;;  %v634_v56 = vadd.f32 1.0, %v1107_v62 }
 0x12c   : > { %v1111_v28 = vpop.eup %1110  ;;  %781 = vst.msk [vmem:[%s1306_s28 + $0xf0] sm:$0xff] %vm750_vm3, %v748_v13  ;;  %v650_v2 = vadd.f32 1.0, %v1109_v63 }
 0x12d   : > { %v1113_v3 = vpop.eup %1112  ;;  %1118 = vrcp.f32 %v634_v56  ;;  %v637_v32 = vadd.f32 1.0, %v1111_v28 }
 0x12e   : > { %v1115_v4 = vpop.eup %1114  ;;  %1120 = vrcp.f32 %v650_v2  ;;  %v653_v23 = vadd.f32 1.0, %v1113_v3 }
 0x12f   : > { %v1117_v57 = vpop.eup %1116  ;;  %1122 = vrcp.f32 %v637_v32  ;;  %v635_v6 = vadd.f32 1.0, %v1115_v4 }
 0x130   : > { %1124 = vrcp.f32 %v653_v23  ;;  %v651_v26 = vadd.f32 1.0, %v1117_v57 }
 0x131   : > { %1126 = vrcp.f32 %v635_v6 }
 0x132   : > { %1128 = vrcp.f32 %v651_v26 }
 0x137   : > { %v1119_v7 = vpop.eup %1118 }
 0x138   : > { %v1121_v8 = vpop.eup %1120  ;;  %v730_v10 = vmul.f32 %v1119_v7, %v1390_v27 }
 0x139   : > { %v1123_v24 = vpop.eup %1122  ;;  %v746_v11 = vmul.f32 %v1121_v8, %v1394_v17 }
 0x13a   : > { %v1125_v14 = vpop.eup %1124  ;;  %763 = vst.msk [vmem:[%s1306_s28 + $0x60] sm:$0xff] %vm750_vm3, %v730_v10  ;;  %v733_v12 = vmul.f32 %v1123_v24, %v1398_v20 }
 0x13b   : > { %v1127_v18 = vpop.eup %1126  ;;  %779 = vst.msk [vmem:[%s1306_s28 + $0xe0] sm:$0xff] %vm750_vm3, %v746_v11  ;;  %v749_v15 = vmul.f32 %v1125_v14, %v1402_v44 }
 0x13c   : > { %v1129_v21 = vpop.eup %1128  ;;  %766 = vst.msk [vmem:[%s1306_s28 + $0x78] sm:$0xff] %vm750_vm3, %v733_v12  ;;  %v731_v16 = vmul.f32 %v1127_v18, %v1407_v19 }
 0x13d   : > { %782 = vst.msk [vmem:[%s1306_s28 + $0xf8] sm:$0xff] %vm750_vm3, %v749_v15  ;;  %v747_v27 = vmul.f32 %v1129_v21, %v1412_v59 }
 0x13e   : > { %764 = vst.msk [vmem:[%s1306_s28 + $0x68] sm:$0xff] %vm750_vm3, %v731_v16 }
 0x13f   : > { %780 = vst.msk [vmem:[%s1306_s28 + $0xe8] sm:$0xff] %vm750_vm3, %v747_v27 }
 0x140 PF: > { %s13_s12 = sadd.s32 1, %s1136_s12  }
 0x141   : > { %p10_p4 = scmp.ge.s32.totalorder %s13_s12, 4  }
 0x143   :  { %12 = sbr.rel (!%p10_p4) target bundleno = 1 (0x1), region = 62 }

// kernel: _forward.49
= control target key start
LH: loop header
LB: loop body
LE: loop exit
PB: predicated region body
PF: predicated region fallthrough
CT: control target
= control target key end

     0   :  { %vm94_vm0 = vcmask 261120   ;;  %s698_s1 = inlined_call_operand.vmem [shape: bf16[32,32], index: 1, kind: input, shape index: {}]   ;;  %s699_s0 = inlined_call_operand.vmem [shape: bf16[128,32], index: 0, kind: input, shape index: {}]   ;;  %s700_s2 = inlined_call_operand.vmem [shape: f32[1,32], index: 2, kind: input, shape index: {}]   ;;  %s701_s3 = inlined_call_operand.vmem [shape: f32[128,32], index: 3, kind: output, shape index: {}]  }
   0x1   :  { %v417_v0 = vld [vmem:[%s698_s1] sm:$0xff]   ;;  %v418_v1 = vld [vmem:[%s698_s1 + $0x8] sm:$0xff]   ;;  %v423_v6 = vld [vmem:[%s699_s0 + $0x10] sm:$0xff]  }
   0x2   :  { %393 = vmatprep.subr.bf16.mxu0 %v417_v0  ;;  %413 = vmatprep.subr.bf16.mxu1 %v417_v0  ;;  %v419_v2 = vld [vmem:[%s699_s0] sm:$0xff]   ;;  %v421_v4 = vld [vmem:[%s699_s0 + $0x8] sm:$0xff]   ;;  %v424_v7 = vld [vmem:[%s699_s0 + $0x30] sm:$0xff]  }
   0x3   :  { %394 = vmatpush3.bf16.msra.mxu0 %v417_v0  ;;  %415 = vmatpush3.bf16.msra.mxu1 %v417_v0  ;;  %v420_v3 = vld [vmem:[%s699_s0 + $0x20] sm:$0xff]   ;;  %v422_v5 = vld [vmem:[%s699_s0 + $0x28] sm:$0xff]   ;;  %v425_v8 = vld [vmem:[%s699_s0 + $0x18] sm:$0xff]  }
   0x4   :  { %395 = vmatprep.subr.bf16.mxu0 %v418_v1  ;;  %414 = vmatprep.subr.bf16.mxu1 %v418_v1  ;;  %v426_v9 = vld [vmem:[%s699_s0 + $0x38] sm:$0xff]   ;;  %v552_v10 = vld [vmem:[%s700_s2] ss:$0 sm:$0xff] }
   0x5   :  { %397 = vmatprep.mubr.msk.bf16.mxu0 %vm94_vm0, %v419_v2  ;;  %405 = vmatprep.mubr.msk.bf16.mxu1 %vm94_vm0, %v420_v3 }
   0x7   :  { %396 = vmatpush3.bf16.msra.mxu0 %v418_v1  ;;  %416 = vmatpush3.bf16.msra.mxu1 %v418_v1 }
   0xa   :  { %398 = vmatmul.mubr.msk.bf16.vlgmr.msra.gmra.mrb[0].mxu0 %vm94_vm0, %v421_v4  ;;  %406 = vmatmul.mubr.msk.bf16.vlgmr.msra.gmra.mrb[0].mxu1 %vm94_vm0, %v422_v5 }
   0xb   :  { %401 = vmatprep.mubr.msk.bf16.mxu0 %vm94_vm0, %v423_v6  ;;  %409 = vmatprep.mubr.msk.bf16.mxu1 %vm94_vm0, %v424_v7 }
  0x12   :  { %402 = vmatmul.mubr.msk.bf16.gmra.mrb[4].mxu0 %vm94_vm0, %v425_v8  ;;  %410 = vmatmul.mubr.msk.bf16.gmra.mrb[4].mxu1 %vm94_vm0, %v426_v9 }
  0xdd   :  { %v399_v11 = vpop.f32.mrb[0].mxu0  ;;  %v407_v12 = vpop.f32.mrb[0].mxu1 }
  0xde   :  { %v555_v13 = vadd.f32 %v399_v11, %v552_v10  ;;  %v558_v14 = vadd.f32 %v407_v12, %v552_v10  ;;  %v153_v15 = vpop.f32.mrb[1].mxu0  ;;  %v185_v16 = vpop.f32.mrb[1].mxu1 }
  0xdf   :  { %v561_v17 = vadd.f32 %v552_v10, %v153_v15  ;;  %v564_v18 = vadd.f32 %v552_v10, %v185_v16  ;;  %v400_v19 = vpop.f32.mrb[2].mxu0  ;;  %v408_v20 = vpop.f32.mrb[2].mxu1 }
  0xe0   :  { %v369_v21 = vmul.f32 -1.442695, %v555_v13  ;;  %v377_v22 = vmul.f32 -1.442695, %v558_v14  ;;  %v569_v23 = vadd.f32 %v400_v19, %v552_v10  ;;  %v572_v24 = vadd.f32 %v408_v20, %v552_v10  ;;  %v156_v25 = vpop.f32.mrb[3].mxu0  ;;  %v188_v26 = vpop.f32.mrb[3].mxu1 }
  0xe1   :  { %v367_v27 = vmul.f32 -1.442695, %v561_v17  ;;  %v375_v28 = vmul.f32 -1.442695, %v564_v18  ;;  %v577_v29 = vadd.f32 %v552_v10, %v156_v25  ;;  %v580_v30 = vadd.f32 %v552_v10, %v188_v26 }
  0xe2   :  { %427 = vpow2.f32 %v369_v21  ;;  %v370_v31 = vmul.f32 -1.442695, %v569_v23  ;;  %v378_v32 = vmul.f32 -1.442695, %v572_v24 }
  0xe3   :  { %429 = vpow2.f32 %v377_v22  ;;  %v368_v33 = vmul.f32 -1.442695, %v577_v29  ;;  %v376_v34 = vmul.f32 -1.442695, %v580_v30 }
  0xe4   :  { %431 = vpow2.f32 %v367_v27 }
  0xe5   :  { %433 = vpow2.f32 %v375_v28  ;;  %v403_v35 = vpop.f32.mrb[4].mxu0  ;;  %v411_v36 = vpop.f32.mrb[4].mxu1 }
  0xe6   :  { %435 = vpow2.f32 %v370_v31  ;;  %v587_v37 = vadd.f32 %v403_v35, %v552_v10  ;;  %v590_v38 = vadd.f32 %v411_v36, %v552_v10  ;;  %v169_v39 = vpop.f32.mrb[5].mxu0  ;;  %v201_v40 = vpop.f32.mrb[5].mxu1 }
  0xe7   :  { %437 = vpow2.f32 %v378_v32  ;;  %v593_v41 = vadd.f32 %v552_v10, %v169_v39  ;;  %v596_v42 = vadd.f32 %v552_v10, %v201_v40  ;;  %v404_v43 = vpop.f32.mrb[6].mxu0  ;;  %v412_v44 = vpop.f32.mrb[6].mxu1 }
  0xe8   :  { %439 = vpow2.f32 %v368_v33  ;;  %v373_v45 = vmul.f32 -1.442695, %v587_v37  ;;  %v381_v46 = vmul.f32 -1.442695, %v590_v38  ;;  %v601_v47 = vadd.f32 %v404_v43, %v552_v10  ;;  %v172_v48 = vpop.f32.mrb[7].mxu0  ;;  %v204_v49 = vpop.f32.mrb[7].mxu1 }
  0xe9   :  { %441 = vpow2.f32 %v376_v34  ;;  %v371_v50 = vmul.f32 -1.442695, %v593_v41  ;;  %v379_v51 = vmul.f32 -1.442695, %v596_v42  ;;  %v607_v6 = vadd.f32 %v412_v44, %v552_v10 }
  0xea   :  { %443 = vpow2.f32 %v373_v45  ;;  %v374_v52 = vmul.f32 -1.442695, %v601_v47  ;;  %v610_v9 = vadd.f32 %v552_v10, %v172_v48  ;;  %v613_v15 = vadd.f32 %v552_v10, %v204_v49 }
  0xeb   :  { %445 = vpow2.f32 %v381_v46  ;;  %v382_v22 = vmul.f32 -1.442695, %v607_v6 }
  0xec   :  { %v428_v53 = vpop.eup %427  ;;  %447 = vpow2.f32 %v371_v50  ;;  %v372_v27 = vmul.f32 -1.442695, %v610_v9  ;;  %v380_v10 = vmul.f32 -1.442695, %v613_v15 }
  0xed   :  { %v430_v54 = vpop.eup %429  ;;  %v266_v55 = vadd.f32 1.0, %v428_v53  ;;  %449 = vpow2.f32 %v379_v51 }
  0xee   :  { %v432_v56 = vpop.eup %431  ;;  %v274_v57 = vadd.f32 1.0, %v430_v54  ;;  %451 = vpow2.f32 %v374_v52 }
  0xef   :  { %v434_v58 = vpop.eup %433  ;;  %453 = vrcp.f32 %v266_v55  ;;  %v264_v59 = vadd.f32 1.0, %v432_v56 }
  0xf0   :  { %v436_v60 = vpop.eup %435  ;;  %455 = vrcp.f32 %v274_v57  ;;  %v272_v61 = vadd.f32 1.0, %v434_v58 }
  0xf1   :  { %v438_v62 = vpop.eup %437  ;;  %457 = vrcp.f32 %v264_v59  ;;  %v267_v63 = vadd.f32 1.0, %v436_v60 }
  0xf2   :  { %v440_v0 = vpop.eup %439  ;;  %459 = vrcp.f32 %v272_v61  ;;  %v275_v1 = vadd.f32 1.0, %v438_v62 }
  0xf3   :  { %v442_v2 = vpop.eup %441  ;;  %461 = vrcp.f32 %v267_v63  ;;  %v265_v3 = vadd.f32 1.0, %v440_v0 }
  0xf4   :  { %v444_v4 = vpop.eup %443  ;;  %463 = vrcp.f32 %v275_v1  ;;  %v273_v5 = vadd.f32 1.0, %v442_v2 }
  0xf5   :  { %v446_v7 = vpop.eup %445  ;;  %465 = vrcp.f32 %v265_v3  ;;  %v270_v8 = vadd.f32 1.0, %v444_v4 }
  0xf6   :  { %v448_v11 = vpop.eup %447  ;;  %467 = vrcp.f32 %v273_v5  ;;  %v278_v12 = vadd.f32 1.0, %v446_v7 }
  0xf7   :  { %v450_v16 = vpop.eup %449  ;;  %469 = vrcp.f32 %v270_v8  ;;  %v268_v19 = vadd.f32 1.0, %v448_v11 }
  0xf8   :  { %v452_v20 = vpop.eup %451  ;;  %471 = vrcp.f32 %v278_v12  ;;  %v276_v21 = vadd.f32 1.0, %v450_v16 }
  0xf9   :  { %v454_v25 = vpop.eup %453  ;;  %473 = vrcp.f32 %v268_v19  ;;  %v271_v26 = vadd.f32 1.0, %v452_v20 }
  0xfa   :  { %v456_v28 = vpop.eup %455  ;;  %v314_v31 = vmul.f32 %v454_v25, %v555_v13  ;;  %475 = vrcp.f32 %v276_v21 }
  0xfb   :  { %v458_v32 = vpop.eup %457  ;;  %v322_v33 = vmul.f32 %v456_v28, %v558_v14  ;;  %477 = vrcp.f32 %v271_v26 }
  0xfc   :  { %v460_v34 = vpop.eup %459  ;;  %330 = vst.msk [vmem:[%s701_s3 + $0x10] sm:$0xff] %vm94_vm0, %v314_v31  ;;  %v312_v35 = vmul.f32 %v458_v32, %v561_v17  ;;  %479 = vpow2.f32 %v382_v22 }
  0xfd   :  { %v462_v36 = vpop.eup %461  ;;  %338 = vst.msk [vmem:[%s701_s3 + $0x50] sm:$0xff] %vm94_vm0, %v322_v33  ;;  %v320_v13 = vmul.f32 %v460_v34, %v564_v18  ;;  %481 = vpow2.f32 %v372_v27 }
  0xfe   :  { %v464_v14 = vpop.eup %463  ;;  %328 = vst.msk [vmem:[%s701_s3] sm:$0xff] %vm94_vm0, %v312_v35  ;;  %v315_v39 = vmul.f32 %v462_v36, %v569_v23  ;;  %483 = vpow2.f32 %v380_v10 }
  0xff   :  { %v466_v17 = vpop.eup %465  ;;  %336 = vst.msk [vmem:[%s701_s3 + $0x40] sm:$0xff] %vm94_vm0, %v320_v13  ;;  %v323_v40 = vmul.f32 %v464_v14, %v572_v24 }
 0x100   :  { %v468_v43 = vpop.eup %467  ;;  %331 = vst.msk [vmem:[%s701_s3 + $0x18] sm:$0xff] %vm94_vm0, %v315_v39  ;;  %v313_v18 = vmul.f32 %v466_v17, %v577_v29 }
 0x101   :  { %v470_v44 = vpop.eup %469  ;;  %339 = vst.msk [vmem:[%s701_s3 + $0x58] sm:$0xff] %vm94_vm0, %v323_v40  ;;  %v321_v23 = vmul.f32 %v468_v43, %v580_v30 }
 0x102   :  { %v472_v45 = vpop.eup %471  ;;  %329 = vst.msk [vmem:[%s701_s3 + $0x8] sm:$0xff] %vm94_vm0, %v313_v18  ;;  %v318_v24 = vmul.f32 %v470_v44, %v587_v37 }
 0x103   :  { %v474_v46 = vpop.eup %473  ;;  %337 = vst.msk [vmem:[%s701_s3 + $0x48] sm:$0xff] %vm94_vm0, %v321_v23  ;;  %v326_v29 = vmul.f32 %v472_v45, %v590_v38 }
 0x104   :  { %v476_v48 = vpop.eup %475  ;;  %334 = vst.msk [vmem:[%s701_s3 + $0x30] sm:$0xff] %vm94_vm0, %v318_v24  ;;  %v316_v30 = vmul.f32 %v474_v46, %v593_v41 }
 0x105   :  { %v478_v49 = vpop.eup %477  ;;  %342 = vst.msk [vmem:[%s701_s3 + $0x70] sm:$0xff] %vm94_vm0, %v326_v29  ;;  %v324_v37 = vmul.f32 %v476_v48, %v596_v42 }
 0x106   :  { %v480_v50 = vpop.eup %479  ;;  %332 = vst.msk [vmem:[%s701_s3 + $0x20] sm:$0xff] %vm94_vm0, %v316_v30  ;;  %v319_v38 = vmul.f32 %v478_v49, %v601_v47 }
 0x107   :  { %v482_v51 = vpop.eup %481  ;;  %340 = vst.msk [vmem:[%s701_s3 + $0x60] sm:$0xff] %vm94_vm0, %v324_v37  ;;  %v279_v41 = vadd.f32 1.0, %v480_v50 }
 0x108   :  { %v484_v52 = vpop.eup %483  ;;  %335 = vst.msk [vmem:[%s701_s3 + $0x38] sm:$0xff] %vm94_vm0, %v319_v38  ;;  %v269_v42 = vadd.f32 1.0, %v482_v51 }
 0x109   :  { %485 = vrcp.f32 %v279_v41  ;;  %v277_v53 = vadd.f32 1.0, %v484_v52 }
 0x10a   :  { %487 = vrcp.f32 %v269_v42 }
 0x10b   :  { %489 = vrcp.f32 %v277_v53 }
 0x113   :  { %v486_v54 = vpop.eup %485 }
 0x114   :  { %v488_v47 = vpop.eup %487  ;;  %v327_v55 = vmul.f32 %v486_v54, %v607_v6 }
 0x115   :  { %v490_v56 = vpop.eup %489  ;;  %v317_v57 = vmul.f32 %v488_v47, %v610_v9 }
 0x116   :  { %343 = vst.msk [vmem:[%s701_s3 + $0x78] sm:$0xff] %vm94_vm0, %v327_v55  ;;  %v325_v58 = vmul.f32 %v490_v56, %v613_v15 }
 0x117   :  { %333 = vst.msk [vmem:[%s701_s3 + $0x28] sm:$0xff] %vm94_vm0, %v317_v57 }
 0x118   :  { %341 = vst.msk [vmem:[%s701_s3 + $0x68] sm:$0xff] %vm94_vm0, %v325_v58 }

// kernel: _forward.48
= control target key start
LH: loop header
LB: loop body
LE: loop exit
PB: predicated region body
PF: predicated region fallthrough
CT: control target
= control target key end

     0   :  { %v603_v0 = vmov 0   ;;  %vm182_vm0 = vcmask 130048   ;;  %vm416_vm1 = vcmask 261120   ;;  %s856_s1 = inlined_call_operand.vmem [shape: bf16[144,32], index: 1, kind: input, shape index: {}]   ;;  %s857_s0 = inlined_call_operand.vmem [shape: bf16[128,144], index: 0, kind: input, shape index: {}]   ;;  %s858_s2 = inlined_call_operand.vmem [shape: f32[1,32], index: 2, kind: input, shape index: {}]   ;;  %s859_s3 = inlined_call_operand.vmem [shape: f32[128,32], index: 3, kind: output, shape index: {}]  }
   0x1   :  { %207 = vmatprep.subr.bf16.mxu0 %v603_v0  ;;  %487 = vmatprep.subr.bf16.mxu1 %v603_v0  ;;  %v506_v1 = vld [vmem:[%s856_s1] sm:$0xff]   ;;  %v507_v2 = vld [vmem:[%s856_s1 + $0x8] sm:$0xff]   ;;  %v508_v3 = vld [vmem:[%s856_s1 + $0x10] sm:$0xff]  }
   0x2   :  { %208 = vmatpush1.bf16.msra.mxu0 %v506_v1  ;;  %496 = vmatpush1.bf16.msra.mxu1 %v506_v1  ;;  %v509_v4 = vld [vmem:[%s856_s1 + $0x18] sm:$0xff]   ;;  %v517_v5 = vld [vmem:[%s857_s0 + $0x4] ss:$8 sps:$4 sm:$0xff]   ;;  %v512_v9 = vld [vmem:[%s856_s1 + $0x30] sm:$0xff]  }
   0x3   :  { %209 = vmatprep.subr.bf16.mxu0 %v603_v0  ;;  %488 = vmatprep.subr.bf16.mxu1 %v603_v0  ;;  %v520_v6 = vld [vmem:[%s857_s0 + $0x44] ss:$8 sps:$4 sm:$0xff]   ;;  %v513_v10 = vld [vmem:[%s856_s1 + $0x38] sm:$0xff]   ;;  %v515_v12 = vld [vmem:[%s857_s0] ss:$8 sps:$4 sm:$0xff]  }
   0x4   :  { %463 = vmatprep.mubr.msk.bf16.mxu0 %vm182_vm0, %v517_v5  ;;  %467 = vmatprep.mubr.msk.bf16.mxu1 %vm182_vm0, %v520_v6  ;;  %v510_v7 = vld [vmem:[%s856_s1 + $0x20] sm:$0xff]   ;;  %v511_v8 = vld [vmem:[%s856_s1 + $0x28] sm:$0xff]   ;;  %v521_v14 = vld [vmem:[%s857_s0 + $0x14] ss:$8 sps:$4 sm:$0xff]  }
   0x5   :  { %v514_v11 = vld [vmem:[%s856_s1 + $0x40] sm:$0xff]   ;;  %v523_v15 = vld [vmem:[%s857_s0 + $0x54] ss:$8 sps:$4 sm:$0xff]   ;;  %v525_v16 = vld [vmem:[%s857_s0 + $0x10] ss:$8 sps:$4 sm:$0xff]  }
   0x6   :  { %210 = vmatpush1.bf16.msra.mxu0 %v507_v2  ;;  %497 = vmatpush1.bf16.msra.mxu1 %v507_v2  ;;  %v518_v13 = vld [vmem:[%s857_s0 + $0x40] ss:$8 sps:$4 sm:$0xff]   ;;  %v526_v17 = vld [vmem:[%s857_s0 + $0x50] ss:$8 sps:$4 sm:$0xff]   ;;  %v527_v18 = vld [vmem:[%s857_s0 + $0x24] ss:$8 sps:$4 sm:$0xff]  }
   0x7   :  { %211 = vmatprep.subr.bf16.mxu0 %v603_v0  ;;  %489 = vmatprep.subr.bf16.mxu1 %v603_v0  ;;  %v529_v19 = vld [vmem:[%s857_s0 + $0x64] ss:$8 sps:$4 sm:$0xff]   ;;  %v531_v20 = vld [vmem:[%s857_s0 + $0x20] ss:$8 sps:$4 sm:$0xff]   ;;  %v533_v22 = vld [vmem:[%s857_s0 + $0x34] ss:$8 sps:$4 sm:$0xff]  }
   0x8   :  { %v532_v21 = vld [vmem:[%s857_s0 + $0x60] ss:$8 sps:$4 sm:$0xff]   ;;  %v535_v23 = vld [vmem:[%s857_s0 + $0x74] ss:$8 sps:$4 sm:$0xff]   ;;  %v537_v24 = vld [vmem:[%s857_s0 + $0x30] ss:$8 sps:$4 sm:$0xff]  }
   0x9   :  { %v538_v25 = vld [vmem:[%s857_s0 + $0x70] ss:$8 sps:$4 sm:$0xff]   ;;  %v710_v26 = vld [vmem:[%s858_s2] ss:$0 sm:$0xff] }
   0xa   :  { %212 = vmatpush1.bf16.msra.mxu0 %v508_v3  ;;  %498 = vmatpush1.bf16.msra.mxu1 %v508_v3 }
   0xb   :  { %213 = vmatprep.subr.bf16.mxu0 %v603_v0  ;;  %490 = vmatprep.subr.bf16.mxu1 %v603_v0 }
   0xe   :  { %214 = vmatpush1.bf16.msra.mxu0 %v509_v4  ;;  %499 = vmatpush1.bf16.msra.mxu1 %v509_v4 }
   0xf   :  { %215 = vmatprep.subr.bf16.mxu0 %v603_v0  ;;  %491 = vmatprep.subr.bf16.mxu1 %v603_v0 }
  0x12   :  { %216 = vmatpush1.bf16.msra.mxu0 %v510_v7  ;;  %500 = vmatpush1.bf16.msra.mxu1 %v510_v7 }
  0x13   :  { %217 = vmatprep.subr.bf16.mxu0 %v603_v0  ;;  %492 = vmatprep.subr.bf16.mxu1 %v603_v0 }
  0x16   :  { %218 = vmatpush1.bf16.msra.mxu0 %v511_v8  ;;  %501 = vmatpush1.bf16.msra.mxu1 %v511_v8 }
  0x17   :  { %219 = vmatprep.subr.bf16.mxu0 %v603_v0  ;;  %493 = vmatprep.subr.bf16.mxu1 %v603_v0 }
  0x1a   :  { %220 = vmatpush1.bf16.msra.mxu0 %v512_v9  ;;  %502 = vmatpush1.bf16.msra.mxu1 %v512_v9 }
  0x1b   :  { %221 = vmatprep.subr.bf16.mxu0 %v603_v0  ;;  %494 = vmatprep.subr.bf16.mxu1 %v603_v0 }
  0x1e   :  { %222 = vmatpush1.bf16.msra.mxu0 %v513_v10  ;;  %503 = vmatpush1.bf16.msra.mxu1 %v513_v10 }
  0x1f   :  { %223 = vmatprep.subr.bf16.mxu0 %v603_v0  ;;  %495 = vmatprep.subr.bf16.mxu1 %v603_v0 }
  0x22   :  { %224 = vmatpush1.bf16.msra.mxu0 %v514_v11  ;;  %504 = vmatpush1.bf16.msra.mxu1 %v514_v11 }
  0x25   :  { %240 = vmatmul.mubr.bf16.vlgmr.msra.gmra.mrb[0].mxu0 %v515_v12  ;;  %272 = vmatmul.mubr.bf16.vlgmr.msra.gmra.mrb[0].mxu1 %v518_v13 }
  0x26   :  { %464 = vmatprep.mubr.msk.bf16.mxu0 %vm182_vm0, %v521_v14  ;;  %468 = vmatprep.mubr.msk.bf16.mxu1 %vm182_vm0, %v523_v15 }
  0x2d   :  { %248 = vmatmul.mubr.bf16.gmra.mrb[4].mxu0 %v525_v16  ;;  %280 = vmatmul.mubr.bf16.gmra.mrb[4].mxu1 %v526_v17 }
  0x2e   :  { %465 = vmatprep.mubr.msk.bf16.mxu0 %vm182_vm0, %v527_v18  ;;  %469 = vmatprep.mubr.msk.bf16.mxu1 %vm182_vm0, %v529_v19 }
  0x35   :  { %256 = vmatmul.mubr.bf16.gmra.mrb[8].mxu0 %v531_v20  ;;  %288 = vmatmul.mubr.bf16.gmra.mrb[8].mxu1 %v532_v21 }
  0x36   :  { %466 = vmatprep.mubr.msk.bf16.mxu0 %vm182_vm0, %v533_v22  ;;  %470 = vmatprep.mubr.msk.bf16.mxu1 %vm182_vm0, %v535_v23 }
  0x3d   :  { %264 = vmatmul.mubr.bf16.gmra.mrb[12].mxu0 %v537_v24  ;;  %296 = vmatmul.mubr.bf16.gmra.mrb[12].mxu1 %v538_v25 }
  0xf8   :  { %v241_v27 = vpop.f32.mrb[0].mxu0  ;;  %v273_v28 = vpop.f32.mrb[0].mxu1 }
  0xf9   :  { %v713_v29 = vadd.f32 %v710_v26, %v241_v27  ;;  %v716_v30 = vadd.f32 %v710_v26, %v273_v28  ;;  %v243_v31 = vpop.f32.mrb[1].mxu0  ;;  %v275_v32 = vpop.f32.mrb[1].mxu1 }
  0xfa   :  { %v244_v33 = vpop.f32.mrb[2].mxu0  ;;  %v276_v34 = vpop.f32.mrb[2].mxu1 }
  0xfb   :  { %v471_v35 = vmul.f32 -1.442695, %v713_v29  ;;  %v479_v36 = vmul.f32 -1.442695, %v716_v30  ;;  %v721_v37 = vadd.f32 %v710_v26, %v244_v33  ;;  %v724_v38 = vadd.f32 %v710_v26, %v276_v34  ;;  %v246_v39 = vpop.f32.mrb[3].mxu0  ;;  %v278_v40 = vpop.f32.mrb[3].mxu1 }
  0xfd   :  { %539 = vpow2.f32 %v471_v35  ;;  %v472_v41 = vmul.f32 -1.442695, %v721_v37  ;;  %v480_v42 = vmul.f32 -1.442695, %v724_v38 }
  0xfe   :  { %541 = vpow2.f32 %v479_v36 }
  0xff   :  { %543 = vpow2.f32 %v472_v41 }
 0x100   :  { %545 = vpow2.f32 %v480_v42  ;;  %v249_v43 = vpop.f32.mrb[4].mxu0  ;;  %v281_v44 = vpop.f32.mrb[4].mxu1 }
 0x101   :  { %v729_v45 = vadd.f32 %v710_v26, %v249_v43  ;;  %v732_v46 = vadd.f32 %v710_v26, %v281_v44  ;;  %v251_v47 = vpop.f32.mrb[5].mxu0  ;;  %v283_v48 = vpop.f32.mrb[5].mxu1 }
 0x102   :  { %v252_v49 = vpop.f32.mrb[6].mxu0  ;;  %v284_v50 = vpop.f32.mrb[6].mxu1 }
 0x103   :  { %v473_v51 = vmul.f32 -1.442695, %v729_v45  ;;  %v481_v52 = vmul.f32 -1.442695, %v732_v46  ;;  %v737_v53 = vadd.f32 %v710_v26, %v252_v49  ;;  %v740_v54 = vadd.f32 %v710_v26, %v284_v50  ;;  %v254_v55 = vpop.f32.mrb[7].mxu0  ;;  %v286_v56 = vpop.f32.mrb[7].mxu1 }
 0x105   :  { %547 = vpow2.f32 %v473_v51  ;;  %v474_v57 = vmul.f32 -1.442695, %v737_v53  ;;  %v482_v58 = vmul.f32 -1.442695, %v740_v54 }
 0x106   :  { %549 = vpow2.f32 %v481_v52 }
 0x107   :  { %v540_v59 = vpop.eup %539  ;;  %551 = vpow2.f32 %v474_v57 }
 0x108   :  { %v542_v60 = vpop.eup %541  ;;  %v352_v61 = vadd.f32 1.0, %v540_v59  ;;  %553 = vpow2.f32 %v482_v58  ;;  %v257_v62 = vpop.f32.mrb[8].mxu0 }
 0x109   :  { %v289_v63 = vpop.f32.mrb[8].mxu1  ;;  %v544_v0 = vpop.eup %543  ;;  %v360_v1 = vadd.f32 1.0, %v542_v60  ;;  %v745_v2 = vadd.f32 %v710_v26, %v257_v62 }
 0x10a   :  { %v748_v3 = vadd.f32 %v710_v26, %v289_v63  ;;  %v259_v4 = vpop.f32.mrb[9].mxu0  ;;  %v291_v5 = vpop.f32.mrb[9].mxu1  ;;  %555 = vrcp.f32 %v352_v61  ;;  %v353_v7 = vadd.f32 1.0, %v544_v0 }
 0x10b   :  { %v546_v6 = vpop.eup %545  ;;  %v260_v8 = vpop.f32.mrb[10].mxu0  ;;  %557 = vrcp.f32 %v360_v1  ;;  %v475_v11 = vmul.f32 -1.442695, %v745_v2 }
 0x10c   :  { %v292_v9 = vpop.f32.mrb[10].mxu1  ;;  %v361_v10 = vadd.f32 1.0, %v546_v6  ;;  %v483_v12 = vmul.f32 -1.442695, %v748_v3  ;;  %v262_v13 = vpop.f32.mrb[11].mxu0  ;;  %559 = vrcp.f32 %v353_v7  ;;  %v753_v14 = vadd.f32 %v710_v26, %v260_v8 }
 0x10d   :  { %v756_v15 = vadd.f32 %v710_v26, %v292_v9  ;;  %v294_v16 = vpop.f32.mrb[11].mxu1 }
 0x10e   :  { %561 = vrcp.f32 %v361_v10  ;;  %v476_v17 = vmul.f32 -1.442695, %v753_v14 }
 0x10f   :  { %563 = vpow2.f32 %v475_v11  ;;  %v484_v18 = vmul.f32 -1.442695, %v756_v15  ;;  %v548_v19 = vpop.eup %547 }
 0x110   :  { %565 = vpow2.f32 %v483_v12  ;;  %v550_v20 = vpop.eup %549  ;;  %v354_v21 = vadd.f32 1.0, %v548_v19  ;;  %v265_v22 = vpop.f32.mrb[12].mxu0 }
 0x111   :  { %567 = vpow2.f32 %v476_v17  ;;  %v297_v23 = vpop.f32.mrb[12].mxu1  ;;  %v552_v24 = vpop.eup %551  ;;  %v362_v25 = vadd.f32 1.0, %v550_v20  ;;  %v761_v27 = vadd.f32 %v710_v26, %v265_v22 }
 0x112   :  { %569 = vpow2.f32 %v484_v18  ;;  %v764_v28 = vadd.f32 %v710_v26, %v297_v23  ;;  %v267_v31 = vpop.f32.mrb[13].mxu0  ;;  %v299_v32 = vpop.f32.mrb[13].mxu1  ;;  %v355_v34 = vadd.f32 1.0, %v552_v24 }
 0x113   :  { %v554_v33 = vpop.eup %553  ;;  %571 = vrcp.f32 %v354_v21  ;;  %v268_v35 = vpop.f32.mrb[14].mxu0  ;;  %v477_v40 = vmul.f32 -1.442695, %v761_v27 }
 0x114   :  { %v300_v36 = vpop.f32.mrb[14].mxu1  ;;  %573 = vrcp.f32 %v362_v25  ;;  %v363_v39 = vadd.f32 1.0, %v554_v33  ;;  %v485_v41 = vmul.f32 -1.442695, %v764_v28  ;;  %v270_v42 = vpop.f32.mrb[15].mxu0  ;;  %v769_v44 = vadd.f32 %v710_v26, %v268_v35 }
 0x115   :  { %v556_v43 = vpop.eup %555  ;;  %575 = vrcp.f32 %v355_v34  ;;  %v772_v47 = vadd.f32 %v710_v26, %v300_v36  ;;  %v302_v48 = vpop.f32.mrb[15].mxu1 }
 0x116   :  { %v558_v49 = vpop.eup %557  ;;  %v400_v50 = vmul.f32 %v556_v43, %v713_v29  ;;  %577 = vrcp.f32 %v363_v39  ;;  %v478_v55 = vmul.f32 -1.442695, %v769_v44 }
 0x117   :  { %v560_v51 = vpop.eup %559  ;;  %v408_v52 = vmul.f32 %v558_v49, %v716_v30  ;;  %579 = vpow2.f32 %v477_v40  ;;  %v486_v56 = vmul.f32 -1.442695, %v772_v47 }
 0x118   :  { %v562_v57 = vpop.eup %561  ;;  %417 = vst.msk [vmem:[%s859_s3] sm:$0xff] %vm416_vm1, %v400_v50  ;;  %v401_v26 = vmul.f32 %v560_v51, %v721_v37  ;;  %581 = vpow2.f32 %v485_v41 }
 0x119   :  { %v564_v58 = vpop.eup %563  ;;  %425 = vst.msk [vmem:[%s859_s3 + $0x40] sm:$0xff] %vm416_vm1, %v408_v52  ;;  %v409_v29 = vmul.f32 %v562_v57, %v724_v38  ;;  %583 = vpow2.f32 %v478_v55 }
 0x11a   :  { %v566_v30 = vpop.eup %565  ;;  %418 = vst.msk [vmem:[%s859_s3 + $0x8] sm:$0xff] %vm416_vm1, %v401_v26  ;;  %v356_v59 = vadd.f32 1.0, %v564_v58  ;;  %585 = vpow2.f32 %v486_v56 }
 0x11b   :  { %v568_v60 = vpop.eup %567  ;;  %426 = vst.msk [vmem:[%s859_s3 + $0x48] sm:$0xff] %vm416_vm1, %v409_v29  ;;  %v364_v37 = vadd.f32 1.0, %v566_v30 }
 0x11c   :  { %v570_v61 = vpop.eup %569  ;;  %587 = vrcp.f32 %v356_v59  ;;  %v357_v62 = vadd.f32 1.0, %v568_v60 }
 0x11d   :  { %v572_v38 = vpop.eup %571  ;;  %589 = vrcp.f32 %v364_v37  ;;  %v365_v63 = vadd.f32 1.0, %v570_v61 }
 0x11e   :  { %v574_v0 = vpop.eup %573  ;;  %v402_v1 = vmul.f32 %v572_v38, %v729_v45  ;;  %591 = vrcp.f32 %v357_v62 }
 0x11f   :  { %v576_v4 = vpop.eup %575  ;;  %v410_v5 = vmul.f32 %v574_v0, %v732_v46  ;;  %593 = vrcp.f32 %v365_v63 }
 0x120   :  { %v578_v6 = vpop.eup %577  ;;  %419 = vst.msk [vmem:[%s859_s3 + $0x10] sm:$0xff] %vm416_vm1, %v402_v1  ;;  %v403_v7 = vmul.f32 %v576_v4, %v737_v53 }
 0x121   :  { %v580_v8 = vpop.eup %579  ;;  %427 = vst.msk [vmem:[%s859_s3 + $0x50] sm:$0xff] %vm416_vm1, %v410_v5  ;;  %v411_v45 = vmul.f32 %v578_v6, %v740_v54 }
 0x122   :  { %v582_v9 = vpop.eup %581  ;;  %420 = vst.msk [vmem:[%s859_s3 + $0x18] sm:$0xff] %vm416_vm1, %v403_v7  ;;  %v358_v46 = vadd.f32 1.0, %v580_v8 }
 0x123   :  { %v584_v10 = vpop.eup %583  ;;  %428 = vst.msk [vmem:[%s859_s3 + $0x58] sm:$0xff] %vm416_vm1, %v411_v45  ;;  %v366_v53 = vadd.f32 1.0, %v582_v9 }
 0x124   :  { %v586_v11 = vpop.eup %585  ;;  %595 = vrcp.f32 %v358_v46  ;;  %v359_v12 = vadd.f32 1.0, %v584_v10 }
 0x125   :  { %597 = vrcp.f32 %v366_v53  ;;  %v367_v13 = vadd.f32 1.0, %v586_v11 }
 0x126   :  { %v588_v54 = vpop.eup %587  ;;  %599 = vrcp.f32 %v359_v12 }
 0x127   :  { %v590_v16 = vpop.eup %589  ;;  %v404_v17 = vmul.f32 %v588_v54, %v745_v2  ;;  %601 = vrcp.f32 %v367_v13 }
 0x128   :  { %v592_v18 = vpop.eup %591  ;;  %v412_v19 = vmul.f32 %v590_v16, %v748_v3 }
 0x129   :  { %v594_v20 = vpop.eup %593  ;;  %421 = vst.msk [vmem:[%s859_s3 + $0x20] sm:$0xff] %vm416_vm1, %v404_v17  ;;  %v405_v21 = vmul.f32 %v592_v18, %v753_v14 }
 0x12a   :  { %429 = vst.msk [vmem:[%s859_s3 + $0x60] sm:$0xff] %vm416_vm1, %v412_v19  ;;  %v413_v22 = vmul.f32 %v594_v20, %v756_v15 }
 0x12b   :  { %422 = vst.msk [vmem:[%s859_s3 + $0x28] sm:$0xff] %vm416_vm1, %v405_v21 }
 0x12c   :  { %430 = vst.msk [vmem:[%s859_s3 + $0x68] sm:$0xff] %vm416_vm1, %v413_v22 }
 0x12e   :  { %v596_v2 = vpop.eup %595 }
 0x12f   :  { %v598_v3 = vpop.eup %597  ;;  %v406_v14 = vmul.f32 %v596_v2, %v761_v27 }
 0x130   :  { %v600_v23 = vpop.eup %599  ;;  %v414_v24 = vmul.f32 %v598_v3, %v764_v28 }
 0x131   :  { %v602_v25 = vpop.eup %601  ;;  %423 = vst.msk [vmem:[%s859_s3 + $0x30] sm:$0xff] %vm416_vm1, %v406_v14  ;;  %v407_v15 = vmul.f32 %v600_v23, %v769_v44 }
 0x132   :  { %431 = vst.msk [vmem:[%s859_s3 + $0x70] sm:$0xff] %vm416_vm1, %v414_v24  ;;  %v415_v31 = vmul.f32 %v602_v25, %v772_v47 }
 0x133   :  { %424 = vst.msk [vmem:[%s859_s3 + $0x38] sm:$0xff] %vm416_vm1, %v407_v15 }
 0x134   :  { %432 = vst.msk [vmem:[%s859_s3 + $0x78] sm:$0xff] %vm416_vm1, %v415_v31 }

// kernel: _forward.50
= control target key start
LH: loop header
LB: loop body
LE: loop exit
PB: predicated region body
PF: predicated region fallthrough
CT: control target
= control target key end

     0   :  { %v603_v0 = vmov 0   ;;  %vm182_vm0 = vcmask 130048   ;;  %vm416_vm1 = vcmask 64512   ;;  %s856_s1 = inlined_call_operand.vmem [shape: bf16[144,8], index: 1, kind: input, shape index: {}]   ;;  %s857_s0 = inlined_call_operand.vmem [shape: bf16[128,144], index: 0, kind: input, shape index: {}]   ;;  %s858_s2 = inlined_call_operand.vmem [shape: f32[1,8], index: 2, kind: input, shape index: {}]   ;;  %s859_s3 = inlined_call_operand.vmem [shape: f32[128,8], index: 3, kind: output, shape index: {}]  }
   0x1   :  { %207 = vmatprep.subr.bf16.mxu0 %v603_v0  ;;  %487 = vmatprep.subr.bf16.mxu1 %v603_v0  ;;  %v506_v1 = vld [vmem:[%s856_s1] sm:$0xff]   ;;  %v507_v2 = vld [vmem:[%s856_s1 + $0x8] sm:$0xff]   ;;  %v508_v3 = vld [vmem:[%s856_s1 + $0x10] sm:$0xff]  }
   0x2   :  { %208 = vmatpush1.bf16.msra.mxu0 %v506_v1  ;;  %496 = vmatpush1.bf16.msra.mxu1 %v506_v1  ;;  %v509_v4 = vld [vmem:[%s856_s1 + $0x18] sm:$0xff]   ;;  %v517_v5 = vld [vmem:[%s857_s0 + $0x4] ss:$8 sps:$4 sm:$0xff]   ;;  %v512_v9 = vld [vmem:[%s856_s1 + $0x30] sm:$0xff]  }
   0x3   :  { %209 = vmatprep.subr.bf16.mxu0 %v603_v0  ;;  %488 = vmatprep.subr.bf16.mxu1 %v603_v0  ;;  %v520_v6 = vld [vmem:[%s857_s0 + $0x44] ss:$8 sps:$4 sm:$0xff]   ;;  %v513_v10 = vld [vmem:[%s856_s1 + $0x38] sm:$0xff]   ;;  %v515_v12 = vld [vmem:[%s857_s0] ss:$8 sps:$4 sm:$0xff]  }
   0x4   :  { %463 = vmatprep.mubr.msk.bf16.mxu0 %vm182_vm0, %v517_v5  ;;  %467 = vmatprep.mubr.msk.bf16.mxu1 %vm182_vm0, %v520_v6  ;;  %v510_v7 = vld [vmem:[%s856_s1 + $0x20] sm:$0xff]   ;;  %v511_v8 = vld [vmem:[%s856_s1 + $0x28] sm:$0xff]   ;;  %v521_v14 = vld [vmem:[%s857_s0 + $0x14] ss:$8 sps:$4 sm:$0xff]  }
   0x5   :  { %v514_v11 = vld [vmem:[%s856_s1 + $0x40] sm:$0xff]   ;;  %v523_v15 = vld [vmem:[%s857_s0 + $0x54] ss:$8 sps:$4 sm:$0xff]   ;;  %v525_v16 = vld [vmem:[%s857_s0 + $0x10] ss:$8 sps:$4 sm:$0xff]  }
   0x6   :  { %210 = vmatpush1.bf16.msra.mxu0 %v507_v2  ;;  %497 = vmatpush1.bf16.msra.mxu1 %v507_v2  ;;  %v518_v13 = vld [vmem:[%s857_s0 + $0x40] ss:$8 sps:$4 sm:$0xff]   ;;  %v526_v17 = vld [vmem:[%s857_s0 + $0x50] ss:$8 sps:$4 sm:$0xff]   ;;  %v527_v18 = vld [vmem:[%s857_s0 + $0x24] ss:$8 sps:$4 sm:$0xff]  }
   0x7   :  { %211 = vmatprep.subr.bf16.mxu0 %v603_v0  ;;  %489 = vmatprep.subr.bf16.mxu1 %v603_v0  ;;  %v529_v19 = vld [vmem:[%s857_s0 + $0x64] ss:$8 sps:$4 sm:$0xff]   ;;  %v531_v20 = vld [vmem:[%s857_s0 + $0x20] ss:$8 sps:$4 sm:$0xff]   ;;  %v533_v22 = vld [vmem:[%s857_s0 + $0x34] ss:$8 sps:$4 sm:$0xff]  }
   0x8   :  { %v532_v21 = vld [vmem:[%s857_s0 + $0x60] ss:$8 sps:$4 sm:$0xff]   ;;  %v535_v23 = vld [vmem:[%s857_s0 + $0x74] ss:$8 sps:$4 sm:$0xff]   ;;  %v537_v24 = vld [vmem:[%s857_s0 + $0x30] ss:$8 sps:$4 sm:$0xff]  }
   0x9   :  { %v538_v25 = vld [vmem:[%s857_s0 + $0x70] ss:$8 sps:$4 sm:$0xff]   ;;  %v710_v26 = vld [vmem:[%s858_s2] ss:$0 sm:$0xff] }
   0xa   :  { %212 = vmatpush1.bf16.msra.mxu0 %v508_v3  ;;  %498 = vmatpush1.bf16.msra.mxu1 %v508_v3 }
   0xb   :  { %213 = vmatprep.subr.bf16.mxu0 %v603_v0  ;;  %490 = vmatprep.subr.bf16.mxu1 %v603_v0 }
   0xe   :  { %214 = vmatpush1.bf16.msra.mxu0 %v509_v4  ;;  %499 = vmatpush1.bf16.msra.mxu1 %v509_v4 }
   0xf   :  { %215 = vmatprep.subr.bf16.mxu0 %v603_v0  ;;  %491 = vmatprep.subr.bf16.mxu1 %v603_v0 }
  0x12   :  { %216 = vmatpush1.bf16.msra.mxu0 %v510_v7  ;;  %500 = vmatpush1.bf16.msra.mxu1 %v510_v7 }
  0x13   :  { %217 = vmatprep.subr.bf16.mxu0 %v603_v0  ;;  %492 = vmatprep.subr.bf16.mxu1 %v603_v0 }
  0x16   :  { %218 = vmatpush1.bf16.msra.mxu0 %v511_v8  ;;  %501 = vmatpush1.bf16.msra.mxu1 %v511_v8 }
  0x17   :  { %219 = vmatprep.subr.bf16.mxu0 %v603_v0  ;;  %493 = vmatprep.subr.bf16.mxu1 %v603_v0 }
  0x1a   :  { %220 = vmatpush1.bf16.msra.mxu0 %v512_v9  ;;  %502 = vmatpush1.bf16.msra.mxu1 %v512_v9 }
  0x1b   :  { %221 = vmatprep.subr.bf16.mxu0 %v603_v0  ;;  %494 = vmatprep.subr.bf16.mxu1 %v603_v0 }
  0x1e   :  { %222 = vmatpush1.bf16.msra.mxu0 %v513_v10  ;;  %503 = vmatpush1.bf16.msra.mxu1 %v513_v10 }
  0x1f   :  { %223 = vmatprep.subr.bf16.mxu0 %v603_v0  ;;  %495 = vmatprep.subr.bf16.mxu1 %v603_v0 }
  0x22   :  { %224 = vmatpush1.bf16.msra.mxu0 %v514_v11  ;;  %504 = vmatpush1.bf16.msra.mxu1 %v514_v11 }
  0x25   :  { %240 = vmatmul.mubr.bf16.vlgmr.msra.gmra.mrb[0].mxu0 %v515_v12  ;;  %272 = vmatmul.mubr.bf16.vlgmr.msra.gmra.mrb[0].mxu1 %v518_v13 }
  0x26   :  { %464 = vmatprep.mubr.msk.bf16.mxu0 %vm182_vm0, %v521_v14  ;;  %468 = vmatprep.mubr.msk.bf16.mxu1 %vm182_vm0, %v523_v15 }
  0x2d   :  { %248 = vmatmul.mubr.bf16.gmra.mrb[4].mxu0 %v525_v16  ;;  %280 = vmatmul.mubr.bf16.gmra.mrb[4].mxu1 %v526_v17 }
  0x2e   :  { %465 = vmatprep.mubr.msk.bf16.mxu0 %vm182_vm0, %v527_v18  ;;  %469 = vmatprep.mubr.msk.bf16.mxu1 %vm182_vm0, %v529_v19 }
  0x35   :  { %256 = vmatmul.mubr.bf16.gmra.mrb[8].mxu0 %v531_v20  ;;  %288 = vmatmul.mubr.bf16.gmra.mrb[8].mxu1 %v532_v21 }
  0x36   :  { %466 = vmatprep.mubr.msk.bf16.mxu0 %vm182_vm0, %v533_v22  ;;  %470 = vmatprep.mubr.msk.bf16.mxu1 %vm182_vm0, %v535_v23 }
  0x3d   :  { %264 = vmatmul.mubr.bf16.gmra.mrb[12].mxu0 %v537_v24  ;;  %296 = vmatmul.mubr.bf16.gmra.mrb[12].mxu1 %v538_v25 }
  0xf8   :  { %v241_v27 = vpop.f32.mrb[0].mxu0  ;;  %v273_v28 = vpop.f32.mrb[0].mxu1 }
  0xf9   :  { %v713_v29 = vadd.f32 %v710_v26, %v241_v27  ;;  %v716_v30 = vadd.f32 %v710_v26, %v273_v28  ;;  %v243_v31 = vpop.f32.mrb[1].mxu0  ;;  %v275_v32 = vpop.f32.mrb[1].mxu1 }
  0xfa   :  { %v244_v33 = vpop.f32.mrb[2].mxu0  ;;  %v276_v34 = vpop.f32.mrb[2].mxu1 }
  0xfb   :  { %v471_v35 = vmul.f32 -1.442695, %v713_v29  ;;  %v479_v36 = vmul.f32 -1.442695, %v716_v30  ;;  %v721_v37 = vadd.f32 %v710_v26, %v244_v33  ;;  %v724_v38 = vadd.f32 %v710_v26, %v276_v34  ;;  %v246_v39 = vpop.f32.mrb[3].mxu0  ;;  %v278_v40 = vpop.f32.mrb[3].mxu1 }
  0xfd   :  { %539 = vpow2.f32 %v471_v35  ;;  %v472_v41 = vmul.f32 -1.442695, %v721_v37  ;;  %v480_v42 = vmul.f32 -1.442695, %v724_v38 }
  0xfe   :  { %541 = vpow2.f32 %v479_v36 }
  0xff   :  { %543 = vpow2.f32 %v472_v41 }
 0x100   :  { %545 = vpow2.f32 %v480_v42  ;;  %v249_v43 = vpop.f32.mrb[4].mxu0  ;;  %v281_v44 = vpop.f32.mrb[4].mxu1 }
 0x101   :  { %v729_v45 = vadd.f32 %v710_v26, %v249_v43  ;;  %v732_v46 = vadd.f32 %v710_v26, %v281_v44  ;;  %v251_v47 = vpop.f32.mrb[5].mxu0  ;;  %v283_v48 = vpop.f32.mrb[5].mxu1 }
 0x102   :  { %v252_v49 = vpop.f32.mrb[6].mxu0  ;;  %v284_v50 = vpop.f32.mrb[6].mxu1 }
 0x103   :  { %v473_v51 = vmul.f32 -1.442695, %v729_v45  ;;  %v481_v52 = vmul.f32 -1.442695, %v732_v46  ;;  %v737_v53 = vadd.f32 %v710_v26, %v252_v49  ;;  %v740_v54 = vadd.f32 %v710_v26, %v284_v50  ;;  %v254_v55 = vpop.f32.mrb[7].mxu0  ;;  %v286_v56 = vpop.f32.mrb[7].mxu1 }
 0x105   :  { %547 = vpow2.f32 %v473_v51  ;;  %v474_v57 = vmul.f32 -1.442695, %v737_v53  ;;  %v482_v58 = vmul.f32 -1.442695, %v740_v54 }
 0x106   :  { %549 = vpow2.f32 %v481_v52 }
 0x107   :  { %v540_v59 = vpop.eup %539  ;;  %551 = vpow2.f32 %v474_v57 }
 0x108   :  { %v542_v60 = vpop.eup %541  ;;  %v352_v61 = vadd.f32 1.0, %v540_v59  ;;  %553 = vpow2.f32 %v482_v58  ;;  %v257_v62 = vpop.f32.mrb[8].mxu0 }
 0x109   :  { %v289_v63 = vpop.f32.mrb[8].mxu1  ;;  %v544_v0 = vpop.eup %543  ;;  %v360_v1 = vadd.f32 1.0, %v542_v60  ;;  %v745_v2 = vadd.f32 %v710_v26, %v257_v62 }
 0x10a   :  { %v748_v3 = vadd.f32 %v710_v26, %v289_v63  ;;  %v259_v4 = vpop.f32.mrb[9].mxu0  ;;  %v291_v5 = vpop.f32.mrb[9].mxu1  ;;  %555 = vrcp.f32 %v352_v61  ;;  %v353_v7 = vadd.f32 1.0, %v544_v0 }
 0x10b   :  { %v546_v6 = vpop.eup %545  ;;  %v260_v8 = vpop.f32.mrb[10].mxu0  ;;  %557 = vrcp.f32 %v360_v1  ;;  %v475_v11 = vmul.f32 -1.442695, %v745_v2 }
 0x10c   :  { %v292_v9 = vpop.f32.mrb[10].mxu1  ;;  %v361_v10 = vadd.f32 1.0, %v546_v6  ;;  %v483_v12 = vmul.f32 -1.442695, %v748_v3  ;;  %v262_v13 = vpop.f32.mrb[11].mxu0  ;;  %559 = vrcp.f32 %v353_v7  ;;  %v753_v14 = vadd.f32 %v710_v26, %v260_v8 }
 0x10d   :  { %v756_v15 = vadd.f32 %v710_v26, %v292_v9  ;;  %v294_v16 = vpop.f32.mrb[11].mxu1 }
 0x10e   :  { %561 = vrcp.f32 %v361_v10  ;;  %v476_v17 = vmul.f32 -1.442695, %v753_v14 }
 0x10f   :  { %563 = vpow2.f32 %v475_v11  ;;  %v484_v18 = vmul.f32 -1.442695, %v756_v15  ;;  %v548_v19 = vpop.eup %547 }
 0x110   :  { %565 = vpow2.f32 %v483_v12  ;;  %v550_v20 = vpop.eup %549  ;;  %v354_v21 = vadd.f32 1.0, %v548_v19  ;;  %v265_v22 = vpop.f32.mrb[12].mxu0 }
 0x111   :  { %567 = vpow2.f32 %v476_v17  ;;  %v297_v23 = vpop.f32.mrb[12].mxu1  ;;  %v552_v24 = vpop.eup %551  ;;  %v362_v25 = vadd.f32 1.0, %v550_v20  ;;  %v761_v27 = vadd.f32 %v710_v26, %v265_v22 }
 0x112   :  { %569 = vpow2.f32 %v484_v18  ;;  %v764_v28 = vadd.f32 %v710_v26, %v297_v23  ;;  %v267_v31 = vpop.f32.mrb[13].mxu0  ;;  %v299_v32 = vpop.f32.mrb[13].mxu1  ;;  %v355_v34 = vadd.f32 1.0, %v552_v24 }
 0x113   :  { %v554_v33 = vpop.eup %553  ;;  %571 = vrcp.f32 %v354_v21  ;;  %v268_v35 = vpop.f32.mrb[14].mxu0  ;;  %v477_v40 = vmul.f32 -1.442695, %v761_v27 }
 0x114   :  { %v300_v36 = vpop.f32.mrb[14].mxu1  ;;  %573 = vrcp.f32 %v362_v25  ;;  %v363_v39 = vadd.f32 1.0, %v554_v33  ;;  %v485_v41 = vmul.f32 -1.442695, %v764_v28  ;;  %v270_v42 = vpop.f32.mrb[15].mxu0  ;;  %v769_v44 = vadd.f32 %v710_v26, %v268_v35 }
 0x115   :  { %v556_v43 = vpop.eup %555  ;;  %575 = vrcp.f32 %v355_v34  ;;  %v772_v47 = vadd.f32 %v710_v26, %v300_v36  ;;  %v302_v48 = vpop.f32.mrb[15].mxu1 }
 0x116   :  { %v558_v49 = vpop.eup %557  ;;  %v400_v50 = vmul.f32 %v556_v43, %v713_v29  ;;  %577 = vrcp.f32 %v363_v39  ;;  %v478_v55 = vmul.f32 -1.442695, %v769_v44 }
 0x117   :  { %v560_v51 = vpop.eup %559  ;;  %v408_v52 = vmul.f32 %v558_v49, %v716_v30  ;;  %579 = vpow2.f32 %v477_v40  ;;  %v486_v56 = vmul.f32 -1.442695, %v772_v47 }
 0x118   :  { %v562_v57 = vpop.eup %561  ;;  %417 = vst.msk [vmem:[%s859_s3] sm:$0xff] %vm416_vm1, %v400_v50  ;;  %v401_v26 = vmul.f32 %v560_v51, %v721_v37  ;;  %581 = vpow2.f32 %v485_v41 }
 0x119   :  { %v564_v58 = vpop.eup %563  ;;  %425 = vst.msk [vmem:[%s859_s3 + $0x40] sm:$0xff] %vm416_vm1, %v408_v52  ;;  %v409_v29 = vmul.f32 %v562_v57, %v724_v38  ;;  %583 = vpow2.f32 %v478_v55 }
 0x11a   :  { %v566_v30 = vpop.eup %565  ;;  %418 = vst.msk [vmem:[%s859_s3 + $0x8] sm:$0xff] %vm416_vm1, %v401_v26  ;;  %v356_v59 = vadd.f32 1.0, %v564_v58  ;;  %585 = vpow2.f32 %v486_v56 }
 0x11b   :  { %v568_v60 = vpop.eup %567  ;;  %426 = vst.msk [vmem:[%s859_s3 + $0x48] sm:$0xff] %vm416_vm1, %v409_v29  ;;  %v364_v37 = vadd.f32 1.0, %v566_v30 }
 0x11c   :  { %v570_v61 = vpop.eup %569  ;;  %587 = vrcp.f32 %v356_v59  ;;  %v357_v62 = vadd.f32 1.0, %v568_v60 }
 0x11d   :  { %v572_v38 = vpop.eup %571  ;;  %589 = vrcp.f32 %v364_v37  ;;  %v365_v63 = vadd.f32 1.0, %v570_v61 }
 0x11e   :  { %v574_v0 = vpop.eup %573  ;;  %v402_v1 = vmul.f32 %v572_v38, %v729_v45  ;;  %591 = vrcp.f32 %v357_v62 }
 0x11f   :  { %v576_v4 = vpop.eup %575  ;;  %v410_v5 = vmul.f32 %v574_v0, %v732_v46  ;;  %593 = vrcp.f32 %v365_v63 }
 0x120   :  { %v578_v6 = vpop.eup %577  ;;  %419 = vst.msk [vmem:[%s859_s3 + $0x10] sm:$0xff] %vm416_vm1, %v402_v1  ;;  %v403_v7 = vmul.f32 %v576_v4, %v737_v53 }
 0x121   :  { %v580_v8 = vpop.eup %579  ;;  %427 = vst.msk [vmem:[%s859_s3 + $0x50] sm:$0xff] %vm416_vm1, %v410_v5  ;;  %v411_v45 = vmul.f32 %v578_v6, %v740_v54 }
 0x122   :  { %v582_v9 = vpop.eup %581  ;;  %420 = vst.msk [vmem:[%s859_s3 + $0x18] sm:$0xff] %vm416_vm1, %v403_v7  ;;  %v358_v46 = vadd.f32 1.0, %v580_v8 }
 0x123   :  { %v584_v10 = vpop.eup %583  ;;  %428 = vst.msk [vmem:[%s859_s3 + $0x58] sm:$0xff] %vm416_vm1, %v411_v45  ;;  %v366_v53 = vadd.f32 1.0, %v582_v9 }
 0x124   :  { %v586_v11 = vpop.eup %585  ;;  %595 = vrcp.f32 %v358_v46  ;;  %v359_v12 = vadd.f32 1.0, %v584_v10 }
 0x125   :  { %597 = vrcp.f32 %v366_v53  ;;  %v367_v13 = vadd.f32 1.0, %v586_v11 }
 0x126   :  { %v588_v54 = vpop.eup %587  ;;  %599 = vrcp.f32 %v359_v12 }
 0x127   :  { %v590_v16 = vpop.eup %589  ;;  %v404_v17 = vmul.f32 %v588_v54, %v745_v2  ;;  %601 = vrcp.f32 %v367_v13 }
 0x128   :  { %v592_v18 = vpop.eup %591  ;;  %v412_v19 = vmul.f32 %v590_v16, %v748_v3 }
 0x129   :  { %v594_v20 = vpop.eup %593  ;;  %421 = vst.msk [vmem:[%s859_s3 + $0x20] sm:$0xff] %vm416_vm1, %v404_v17  ;;  %v405_v21 = vmul.f32 %v592_v18, %v753_v14 }
 0x12a   :  { %429 = vst.msk [vmem:[%s859_s3 + $0x60] sm:$0xff] %vm416_vm1, %v412_v19  ;;  %v413_v22 = vmul.f32 %v594_v20, %v756_v15 }
 0x12b   :  { %422 = vst.msk [vmem:[%s859_s3 + $0x28] sm:$0xff] %vm416_vm1, %v405_v21 }
 0x12c   :  { %430 = vst.msk [vmem:[%s859_s3 + $0x68] sm:$0xff] %vm416_vm1, %v413_v22 }
 0x12e   :  { %v596_v2 = vpop.eup %595 }
 0x12f   :  { %v598_v3 = vpop.eup %597  ;;  %v406_v14 = vmul.f32 %v596_v2, %v761_v27 }
 0x130   :  { %v600_v23 = vpop.eup %599  ;;  %v414_v24 = vmul.f32 %v598_v3, %v764_v28 }
 0x131   :  { %v602_v25 = vpop.eup %601  ;;  %423 = vst.msk [vmem:[%s859_s3 + $0x30] sm:$0xff] %vm416_vm1, %v406_v14  ;;  %v407_v15 = vmul.f32 %v600_v23, %v769_v44 }
 0x132   :  { %431 = vst.msk [vmem:[%s859_s3 + $0x70] sm:$0xff] %vm416_vm1, %v414_v24  ;;  %v415_v31 = vmul.f32 %v602_v25, %v772_v47 }
 0x133   :  { %424 = vst.msk [vmem:[%s859_s3 + $0x38] sm:$0xff] %vm416_vm1, %v407_v15 }
 0x134   :  { %432 = vst.msk [vmem:[%s859_s3 + $0x78] sm:$0xff] %vm416_vm1, %v415_v31 }

// kernel: _forward.51
= control target key start
LH: loop header
LB: loop body
LE: loop exit
PB: predicated region body
PF: predicated region fallthrough
CT: control target
= control target key end

     0   :  { %vm114_vm0 = vcmask 588800   ;;  %vm139_vm1 = vcmask 1043456   ;;  %vm352_vm2 = vcmask 130048   ;;  %s755_s1 = inlined_call_operand.vmem [shape: bf16[72,16], index: 1, kind: input, shape index: {}]   ;;  %s756_s0 = inlined_call_operand.vmem [shape: bf16[128,72], index: 0, kind: input, shape index: {}]   ;;  %s757_s2 = inlined_call_operand.vmem [shape: f32[1,16], index: 2, kind: input, shape index: {}]   ;;  %s758_s3 = inlined_call_operand.vmem [shape: f32[128,16], index: 3, kind: output, shape index: {}]  }
   0x1   :  { %v462_v0 = vld [vmem:[%s755_s1] sm:$0xff]   ;;  %v463_v1 = vld [vmem:[%s755_s1 + $0x8] sm:$0xff]   ;;  %v464_v2 = vld [vmem:[%s755_s1 + $0x10] sm:$0xff]  }
   0x2   :  { %424 = vmatprep.subr.bf16.mxu0 %v462_v0  ;;  %450 = vmatprep.subr.bf16.mxu1 %v462_v0  ;;  %v467_v3 = vld [vmem:[%s756_s0] sm:$0xff]   ;;  %v465_v5 = vld [vmem:[%s755_s1 + $0x18] sm:$0xff]   ;;  %v469_v8 = vld [vmem:[%s756_s0 + $0x8] sm:$0xff]  }
   0x3   :  { %425 = vmatpush3.bf16.msra.mxu0 %v462_v0  ;;  %455 = vmatpush3.bf16.msra.mxu1 %v462_v0  ;;  %v468_v4 = vld [vmem:[%s756_s0 + $0x20] sm:$0xff]   ;;  %v470_v9 = vld [vmem:[%s756_s0 + $0x28] sm:$0xff]   ;;  %v471_v10 = vld [vmem:[%s756_s0 + $0x10] sm:$0xff]  }
   0x4   :  { %426 = vmatprep.subr.bf16.mxu0 %v463_v1  ;;  %451 = vmatprep.subr.bf16.mxu1 %v463_v1  ;;  %v466_v6 = vld [vmem:[%s755_s1 + $0x20] ss:$0 sps:$4 sm:$0xff]   ;;  %v472_v11 = vld [vmem:[%s756_s0 + $0x30] sm:$0xff]   ;;  %v473_v12 = vld [vmem:[%s756_s0 + $0x18] sm:$0xff]  }
   0x5   :  { %434 = vmatprep.mubr.msk.bf16.mxu0 %vm114_vm0, %v467_v3  ;;  %442 = vmatprep.mubr.msk.bf16.mxu1 %vm114_vm0, %v468_v4  ;;  %v141_v7 = vsel %vm139_vm1, %v466_v6, 0  ;;  %v474_v13 = vld [vmem:[%s756_s0 + $0x38] sm:$0xff]   ;;  %v609_v14 = vld [vmem:[%s757_s2] ss:$0 sm:$0xff] }
   0x7   :  { %427 = vmatpush3.bf16.msra.mxu0 %v463_v1  ;;  %456 = vmatpush3.bf16.msra.mxu1 %v463_v1 }
   0x8   :  { %428 = vmatprep.subr.bf16.mxu0 %v464_v2  ;;  %452 = vmatprep.subr.bf16.mxu1 %v464_v2 }
   0xb   :  { %429 = vmatpush3.bf16.msra.mxu0 %v464_v2  ;;  %457 = vmatpush3.bf16.msra.mxu1 %v464_v2 }
   0xc   :  { %430 = vmatprep.subr.bf16.mxu0 %v465_v5  ;;  %453 = vmatprep.subr.bf16.mxu1 %v465_v5 }
   0xf   :  { %431 = vmatpush3.bf16.msra.mxu0 %v465_v5  ;;  %458 = vmatpush3.bf16.msra.mxu1 %v465_v5 }
  0x10   :  { %460 = vmatprep.subr.msk.bf16.mxu0 %vm139_vm1, %v466_v6  ;;  %461 = vmatprep.subr.msk.bf16.mxu1 %vm139_vm1, %v466_v6 }
  0x13   :  { %433 = vmatpush3.bf16.msra.mxu0 %v141_v7  ;;  %459 = vmatpush3.bf16.msra.mxu1 %v141_v7 }
  0x16   :  { %435 = vmatmul.mubr.msk.bf16.vlgmr.msra.gmra.mrb[0].mxu0 %vm114_vm0, %v469_v8  ;;  %443 = vmatmul.mubr.msk.bf16.vlgmr.msra.gmra.mrb[0].mxu1 %vm114_vm0, %v470_v9 }
  0x17   :  { %438 = vmatprep.mubr.msk.bf16.mxu0 %vm114_vm0, %v471_v10  ;;  %446 = vmatprep.mubr.msk.bf16.mxu1 %vm114_vm0, %v472_v11 }
  0x1e   :  { %439 = vmatmul.mubr.msk.bf16.gmra.mrb[4].mxu0 %vm114_vm0, %v473_v12  ;;  %447 = vmatmul.mubr.msk.bf16.gmra.mrb[4].mxu1 %vm114_vm0, %v474_v13 }
  0xe9   :  { %v436_v15 = vpop.f32.mrb[0].mxu0  ;;  %v444_v16 = vpop.f32.mrb[0].mxu1 }
  0xea   :  { %v612_v17 = vadd.f32 %v436_v15, %v609_v14  ;;  %v615_v18 = vadd.f32 %v444_v16, %v609_v14  ;;  %v177_v19 = vpop.f32.mrb[1].mxu0  ;;  %v209_v20 = vpop.f32.mrb[1].mxu1 }
  0xeb   :  { %v618_v21 = vadd.f32 %v609_v14, %v177_v19  ;;  %v621_v22 = vadd.f32 %v609_v14, %v209_v20  ;;  %v437_v23 = vpop.f32.mrb[2].mxu0  ;;  %v445_v24 = vpop.f32.mrb[2].mxu1 }
  0xec   :  { %v397_v25 = vmul.f32 -1.442695, %v612_v17  ;;  %v405_v26 = vmul.f32 -1.442695, %v615_v18  ;;  %v626_v27 = vadd.f32 %v437_v23, %v609_v14  ;;  %v629_v28 = vadd.f32 %v445_v24, %v609_v14  ;;  %v180_v29 = vpop.f32.mrb[3].mxu0  ;;  %v212_v30 = vpop.f32.mrb[3].mxu1 }
  0xed   :  { %v395_v31 = vmul.f32 -1.442695, %v618_v21  ;;  %v403_v32 = vmul.f32 -1.442695, %v621_v22  ;;  %v634_v33 = vadd.f32 %v609_v14, %v180_v29  ;;  %v637_v34 = vadd.f32 %v609_v14, %v212_v30 }
  0xee   :  { %475 = vpow2.f32 %v397_v25  ;;  %v398_v35 = vmul.f32 -1.442695, %v626_v27  ;;  %v406_v36 = vmul.f32 -1.442695, %v629_v28 }
  0xef   :  { %477 = vpow2.f32 %v405_v26  ;;  %v396_v37 = vmul.f32 -1.442695, %v634_v33  ;;  %v404_v38 = vmul.f32 -1.442695, %v637_v34 }
  0xf0   :  { %479 = vpow2.f32 %v395_v31 }
  0xf1   :  { %481 = vpow2.f32 %v403_v32  ;;  %v440_v39 = vpop.f32.mrb[4].mxu0  ;;  %v448_v40 = vpop.f32.mrb[4].mxu1 }
  0xf2   :  { %483 = vpow2.f32 %v398_v35  ;;  %v644_v41 = vadd.f32 %v440_v39, %v609_v14  ;;  %v647_v42 = vadd.f32 %v448_v40, %v609_v14  ;;  %v193_v43 = vpop.f32.mrb[5].mxu0  ;;  %v225_v44 = vpop.f32.mrb[5].mxu1 }
  0xf3   :  { %485 = vpow2.f32 %v406_v36  ;;  %v650_v45 = vadd.f32 %v609_v14, %v193_v43  ;;  %v653_v46 = vadd.f32 %v609_v14, %v225_v44  ;;  %v441_v47 = vpop.f32.mrb[6].mxu0  ;;  %v449_v48 = vpop.f32.mrb[6].mxu1 }
  0xf4   :  { %487 = vpow2.f32 %v396_v37  ;;  %v401_v49 = vmul.f32 -1.442695, %v644_v41  ;;  %v409_v50 = vmul.f32 -1.442695, %v647_v42  ;;  %v658_v51 = vadd.f32 %v441_v47, %v609_v14  ;;  %v196_v52 = vpop.f32.mrb[7].mxu0  ;;  %v228_v53 = vpop.f32.mrb[7].mxu1 }
  0xf5   :  { %489 = vpow2.f32 %v404_v38  ;;  %v399_v54 = vmul.f32 -1.442695, %v650_v45  ;;  %v407_v55 = vmul.f32 -1.442695, %v653_v46  ;;  %v664_v10 = vadd.f32 %v449_v48, %v609_v14 }
  0xf6   :  { %491 = vpow2.f32 %v401_v49  ;;  %v402_v56 = vmul.f32 -1.442695, %v658_v51  ;;  %v667_v13 = vadd.f32 %v609_v14, %v196_v52  ;;  %v670_v19 = vadd.f32 %v609_v14, %v228_v53 }
  0xf7   :  { %493 = vpow2.f32 %v409_v50  ;;  %v410_v26 = vmul.f32 -1.442695, %v664_v10 }
  0xf8   :  { %v476_v57 = vpop.eup %475  ;;  %495 = vpow2.f32 %v399_v54  ;;  %v400_v31 = vmul.f32 -1.442695, %v667_v13  ;;  %v408_v14 = vmul.f32 -1.442695, %v670_v19 }
  0xf9   :  { %v478_v58 = vpop.eup %477  ;;  %v290_v59 = vadd.f32 1.0, %v476_v57  ;;  %497 = vpow2.f32 %v407_v55 }
  0xfa   :  { %v480_v60 = vpop.eup %479  ;;  %v298_v61 = vadd.f32 1.0, %v478_v58  ;;  %499 = vpow2.f32 %v402_v56 }
  0xfb   :  { %v482_v62 = vpop.eup %481  ;;  %501 = vrcp.f32 %v290_v59  ;;  %v288_v63 = vadd.f32 1.0, %v480_v60 }
  0xfc   :  { %v484_v0 = vpop.eup %483  ;;  %503 = vrcp.f32 %v298_v61  ;;  %v296_v1 = vadd.f32 1.0, %v482_v62 }
  0xfd   :  { %v486_v2 = vpop.eup %485  ;;  %505 = vrcp.f32 %v288_v63  ;;  %v291_v3 = vadd.f32 1.0, %v484_v0 }
  0xfe   :  { %v488_v4 = vpop.eup %487  ;;  %507 = vrcp.f32 %v296_v1  ;;  %v299_v5 = vadd.f32 1.0, %v486_v2 }
  0xff   :  { %v490_v6 = vpop.eup %489  ;;  %509 = vrcp.f32 %v291_v3  ;;  %v289_v7 = vadd.f32 1.0, %v488_v4 }
 0x100   :  { %v492_v8 = vpop.eup %491  ;;  %511 = vrcp.f32 %v299_v5  ;;  %v297_v9 = vadd.f32 1.0, %v490_v6 }
 0x101   :  { %v494_v11 = vpop.eup %493  ;;  %513 = vrcp.f32 %v289_v7  ;;  %v294_v12 = vadd.f32 1.0, %v492_v8 }
 0x102   :  { %v496_v15 = vpop.eup %495  ;;  %515 = vrcp.f32 %v297_v9  ;;  %v302_v16 = vadd.f32 1.0, %v494_v11 }
 0x103   :  { %v498_v20 = vpop.eup %497  ;;  %517 = vrcp.f32 %v294_v12  ;;  %v292_v23 = vadd.f32 1.0, %v496_v15 }
 0x104   :  { %v500_v24 = vpop.eup %499  ;;  %519 = vrcp.f32 %v302_v16  ;;  %v300_v25 = vadd.f32 1.0, %v498_v20 }
 0x105   :  { %v502_v29 = vpop.eup %501  ;;  %521 = vrcp.f32 %v292_v23  ;;  %v295_v30 = vadd.f32 1.0, %v500_v24 }
 0x106   :  { %v504_v32 = vpop.eup %503  ;;  %v338_v35 = vmul.f32 %v502_v29, %v612_v17  ;;  %523 = vrcp.f32 %v300_v25 }
 0x107   :  { %v506_v36 = vpop.eup %505  ;;  %v346_v37 = vmul.f32 %v504_v32, %v615_v18  ;;  %525 = vrcp.f32 %v295_v30 }
 0x108   :  { %v508_v38 = vpop.eup %507  ;;  %355 = vst.msk [vmem:[%s758_s3 + $0x10] sm:$0xff] %vm352_vm2, %v338_v35  ;;  %v336_v39 = vmul.f32 %v506_v36, %v618_v21  ;;  %527 = vpow2.f32 %v410_v26 }
 0x109   :  { %v510_v40 = vpop.eup %509  ;;  %363 = vst.msk [vmem:[%s758_s3 + $0x50] sm:$0xff] %vm352_vm2, %v346_v37  ;;  %v344_v17 = vmul.f32 %v508_v38, %v621_v22  ;;  %529 = vpow2.f32 %v400_v31 }
 0x10a   :  { %v512_v18 = vpop.eup %511  ;;  %353 = vst.msk [vmem:[%s758_s3] sm:$0xff] %vm352_vm2, %v336_v39  ;;  %v339_v43 = vmul.f32 %v510_v40, %v626_v27  ;;  %531 = vpow2.f32 %v408_v14 }
 0x10b   :  { %v514_v21 = vpop.eup %513  ;;  %361 = vst.msk [vmem:[%s758_s3 + $0x40] sm:$0xff] %vm352_vm2, %v344_v17  ;;  %v347_v44 = vmul.f32 %v512_v18, %v629_v28 }
 0x10c   :  { %v516_v47 = vpop.eup %515  ;;  %356 = vst.msk [vmem:[%s758_s3 + $0x18] sm:$0xff] %vm352_vm2, %v339_v43  ;;  %v337_v22 = vmul.f32 %v514_v21, %v634_v33 }
 0x10d   :  { %v518_v48 = vpop.eup %517  ;;  %364 = vst.msk [vmem:[%s758_s3 + $0x58] sm:$0xff] %vm352_vm2, %v347_v44  ;;  %v345_v27 = vmul.f32 %v516_v47, %v637_v34 }
 0x10e   :  { %v520_v49 = vpop.eup %519  ;;  %354 = vst.msk [vmem:[%s758_s3 + $0x8] sm:$0xff] %vm352_vm2, %v337_v22  ;;  %v342_v28 = vmul.f32 %v518_v48, %v644_v41 }
 0x10f   :  { %v522_v50 = vpop.eup %521  ;;  %362 = vst.msk [vmem:[%s758_s3 + $0x48] sm:$0xff] %vm352_vm2, %v345_v27  ;;  %v350_v33 = vmul.f32 %v520_v49, %v647_v42 }
 0x110   :  { %v524_v52 = vpop.eup %523  ;;  %359 = vst.msk [vmem:[%s758_s3 + $0x30] sm:$0xff] %vm352_vm2, %v342_v28  ;;  %v340_v34 = vmul.f32 %v522_v50, %v650_v45 }
 0x111   :  { %v526_v53 = vpop.eup %525  ;;  %367 = vst.msk [vmem:[%s758_s3 + $0x70] sm:$0xff] %vm352_vm2, %v350_v33  ;;  %v348_v41 = vmul.f32 %v524_v52, %v653_v46 }
 0x112   :  { %v528_v54 = vpop.eup %527  ;;  %357 = vst.msk [vmem:[%s758_s3 + $0x20] sm:$0xff] %vm352_vm2, %v340_v34  ;;  %v343_v42 = vmul.f32 %v526_v53, %v658_v51 }
 0x113   :  { %v530_v55 = vpop.eup %529  ;;  %365 = vst.msk [vmem:[%s758_s3 + $0x60] sm:$0xff] %vm352_vm2, %v348_v41  ;;  %v303_v45 = vadd.f32 1.0, %v528_v54 }
 0x114   :  { %v532_v56 = vpop.eup %531  ;;  %360 = vst.msk [vmem:[%s758_s3 + $0x38] sm:$0xff] %vm352_vm2, %v343_v42  ;;  %v293_v46 = vadd.f32 1.0, %v530_v55 }
 0x115   :  { %533 = vrcp.f32 %v303_v45  ;;  %v301_v57 = vadd.f32 1.0, %v532_v56 }
 0x116   :  { %535 = vrcp.f32 %v293_v46 }
 0x117   :  { %537 = vrcp.f32 %v301_v57 }
 0x11f   :  { %v534_v58 = vpop.eup %533 }
 0x120   :  { %v536_v51 = vpop.eup %535  ;;  %v351_v59 = vmul.f32 %v534_v58, %v664_v10 }
 0x121   :  { %v538_v60 = vpop.eup %537  ;;  %v341_v61 = vmul.f32 %v536_v51, %v667_v13 }
 0x122   :  { %368 = vst.msk [vmem:[%s758_s3 + $0x78] sm:$0xff] %vm352_vm2, %v351_v59  ;;  %v349_v62 = vmul.f32 %v538_v60, %v670_v19 }
 0x123   :  { %358 = vst.msk [vmem:[%s758_s3 + $0x28] sm:$0xff] %vm352_vm2, %v341_v61 }
 0x124   :  { %366 = vst.msk [vmem:[%s758_s3 + $0x68] sm:$0xff] %vm352_vm2, %v349_v62 }

// kernel: _forward.52
= control target key start
LH: loop header
LB: loop body
LE: loop exit
PB: predicated region body
PF: predicated region fallthrough
CT: control target
= control target key end

     0   :  { %vm102_vm0 = vcmask 392192   ;;  %vm336_vm1 = vcmask 523264   ;;  %s717_s1 = inlined_call_operand.vmem [shape: bf16[48,64], index: 1, kind: input, shape index: {}]   ;;  %s718_s0 = inlined_call_operand.vmem [shape: bf16[128,48], index: 0, kind: input, shape index: {}]   ;;  %s719_s2 = inlined_call_operand.vmem [shape: f32[1,64], index: 2, kind: input, shape index: {}]   ;;  %s720_s3 = inlined_call_operand.vmem [shape: f32[128,64], index: 3, kind: output, shape index: {}]  }
   0x1   :  { %v432_v0 = vld [vmem:[%s717_s1] sm:$0xff]   ;;  %v433_v1 = vld [vmem:[%s717_s1 + $0x8] sm:$0xff]   ;;  %v434_v2 = vld [vmem:[%s717_s1 + $0x10] sm:$0xff]  }
   0x2   :  { %404 = vmatprep.subr.bf16.mxu0 %v432_v0  ;;  %426 = vmatprep.subr.bf16.mxu1 %v432_v0  ;;  %v435_v3 = vld [vmem:[%s718_s0] sm:$0xff]   ;;  %v437_v5 = vld [vmem:[%s718_s0 + $0x8] sm:$0xff]   ;;  %v439_v7 = vld [vmem:[%s718_s0 + $0x10] sm:$0xff]  }
   0x3   :  { %405 = vmatpush3.bf16.msra.mxu0 %v432_v0  ;;  %429 = vmatpush3.bf16.msra.mxu1 %v432_v0  ;;  %v436_v4 = vld [vmem:[%s718_s0 + $0x20] sm:$0xff]   ;;  %v438_v6 = vld [vmem:[%s718_s0 + $0x28] sm:$0xff]   ;;  %v440_v8 = vld [vmem:[%s718_s0 + $0x30] sm:$0xff]  }
   0x4   :  { %406 = vmatprep.subr.bf16.mxu0 %v433_v1  ;;  %427 = vmatprep.subr.bf16.mxu1 %v433_v1  ;;  %v441_v9 = vld [vmem:[%s718_s0 + $0x18] sm:$0xff]   ;;  %v571_v11 = vld [vmem:[%s719_s2] ss:$0 sm:$0xff] }
   0x5   :  { %410 = vmatprep.mubr.msk.bf16.mxu0 %vm102_vm0, %v435_v3  ;;  %418 = vmatprep.mubr.msk.bf16.mxu1 %vm102_vm0, %v436_v4  ;;  %v442_v10 = vld [vmem:[%s718_s0 + $0x38] sm:$0xff]  }
   0x7   :  { %407 = vmatpush3.bf16.msra.mxu0 %v433_v1  ;;  %430 = vmatpush3.bf16.msra.mxu1 %v433_v1 }
   0x8   :  { %408 = vmatprep.subr.bf16.mxu0 %v434_v2  ;;  %428 = vmatprep.subr.bf16.mxu1 %v434_v2 }
   0xb   :  { %409 = vmatpush3.bf16.msra.mxu0 %v434_v2  ;;  %431 = vmatpush3.bf16.msra.mxu1 %v434_v2 }
   0xe   :  { %411 = vmatmul.mubr.msk.bf16.vlgmr.msra.gmra.mrb[0].mxu0 %vm102_vm0, %v437_v5  ;;  %419 = vmatmul.mubr.msk.bf16.vlgmr.msra.gmra.mrb[0].mxu1 %vm102_vm0, %v438_v6 }
   0xf   :  { %414 = vmatprep.mubr.msk.bf16.mxu0 %vm102_vm0, %v439_v7  ;;  %422 = vmatprep.mubr.msk.bf16.mxu1 %vm102_vm0, %v440_v8 }
  0x16   :  { %415 = vmatmul.mubr.msk.bf16.gmra.mrb[4].mxu0 %vm102_vm0, %v441_v9  ;;  %423 = vmatmul.mubr.msk.bf16.gmra.mrb[4].mxu1 %vm102_vm0, %v442_v10 }
  0xe1   :  { %v412_v12 = vpop.f32.mrb[0].mxu0  ;;  %v420_v13 = vpop.f32.mrb[0].mxu1 }
  0xe2   :  { %v574_v14 = vadd.f32 %v412_v12, %v571_v11  ;;  %v577_v15 = vadd.f32 %v420_v13, %v571_v11  ;;  %v161_v16 = vpop.f32.mrb[1].mxu0  ;;  %v193_v17 = vpop.f32.mrb[1].mxu1 }
  0xe3   :  { %v580_v18 = vadd.f32 %v571_v11, %v161_v16  ;;  %v583_v19 = vadd.f32 %v571_v11, %v193_v17  ;;  %v413_v20 = vpop.f32.mrb[2].mxu0  ;;  %v421_v21 = vpop.f32.mrb[2].mxu1 }
  0xe4   :  { %v379_v22 = vmul.f32 -1.442695, %v574_v14  ;;  %v387_v23 = vmul.f32 -1.442695, %v577_v15  ;;  %v588_v24 = vadd.f32 %v413_v20, %v571_v11  ;;  %v591_v25 = vadd.f32 %v421_v21, %v571_v11  ;;  %v164_v26 = vpop.f32.mrb[3].mxu0  ;;  %v196_v27 = vpop.f32.mrb[3].mxu1 }
  0xe5   :  { %v377_v28 = vmul.f32 -1.442695, %v580_v18  ;;  %v385_v29 = vmul.f32 -1.442695, %v583_v19  ;;  %v596_v30 = vadd.f32 %v571_v11, %v164_v26  ;;  %v599_v31 = vadd.f32 %v571_v11, %v196_v27 }
  0xe6   :  { %443 = vpow2.f32 %v379_v22  ;;  %v380_v32 = vmul.f32 -1.442695, %v588_v24  ;;  %v388_v33 = vmul.f32 -1.442695, %v591_v25 }
  0xe7   :  { %445 = vpow2.f32 %v387_v23  ;;  %v378_v34 = vmul.f32 -1.442695, %v596_v30  ;;  %v386_v35 = vmul.f32 -1.442695, %v599_v31 }
  0xe8   :  { %447 = vpow2.f32 %v377_v28 }
  0xe9   :  { %449 = vpow2.f32 %v385_v29  ;;  %v416_v36 = vpop.f32.mrb[4].mxu0  ;;  %v424_v37 = vpop.f32.mrb[4].mxu1 }
  0xea   :  { %451 = vpow2.f32 %v380_v32  ;;  %v606_v38 = vadd.f32 %v416_v36, %v571_v11  ;;  %v609_v39 = vadd.f32 %v424_v37, %v571_v11  ;;  %v177_v40 = vpop.f32.mrb[5].mxu0  ;;  %v209_v41 = vpop.f32.mrb[5].mxu1 }
  0xeb   :  { %453 = vpow2.f32 %v388_v33  ;;  %v612_v42 = vadd.f32 %v571_v11, %v177_v40  ;;  %v615_v43 = vadd.f32 %v571_v11, %v209_v41  ;;  %v417_v44 = vpop.f32.mrb[6].mxu0  ;;  %v425_v45 = vpop.f32.mrb[6].mxu1 }
  0xec   :  { %455 = vpow2.f32 %v378_v34  ;;  %v383_v46 = vmul.f32 -1.442695, %v606_v38  ;;  %v391_v47 = vmul.f32 -1.442695, %v609_v39  ;;  %v620_v48 = vadd.f32 %v417_v44, %v571_v11  ;;  %v180_v49 = vpop.f32.mrb[7].mxu0  ;;  %v212_v50 = vpop.f32.mrb[7].mxu1 }
  0xed   :  { %457 = vpow2.f32 %v386_v35  ;;  %v381_v51 = vmul.f32 -1.442695, %v612_v42  ;;  %v389_v52 = vmul.f32 -1.442695, %v615_v43  ;;  %v626_v7 = vadd.f32 %v425_v45, %v571_v11 }
  0xee   :  { %459 = vpow2.f32 %v383_v46  ;;  %v384_v53 = vmul.f32 -1.442695, %v620_v48  ;;  %v629_v10 = vadd.f32 %v571_v11, %v180_v49  ;;  %v632_v16 = vadd.f32 %v571_v11, %v212_v50 }
  0xef   :  { %461 = vpow2.f32 %v391_v47  ;;  %v392_v23 = vmul.f32 -1.442695, %v626_v7 }
  0xf0   :  { %v444_v54 = vpop.eup %443  ;;  %463 = vpow2.f32 %v381_v51  ;;  %v382_v28 = vmul.f32 -1.442695, %v629_v10  ;;  %v390_v11 = vmul.f32 -1.442695, %v632_v16 }
  0xf1   :  { %v446_v55 = vpop.eup %445  ;;  %v274_v56 = vadd.f32 1.0, %v444_v54  ;;  %465 = vpow2.f32 %v389_v52 }
  0xf2   :  { %v448_v57 = vpop.eup %447  ;;  %v282_v58 = vadd.f32 1.0, %v446_v55  ;;  %467 = vpow2.f32 %v384_v53 }
  0xf3   :  { %v450_v59 = vpop.eup %449  ;;  %469 = vrcp.f32 %v274_v56  ;;  %v272_v60 = vadd.f32 1.0, %v448_v57 }
  0xf4   :  { %v452_v61 = vpop.eup %451  ;;  %471 = vrcp.f32 %v282_v58  ;;  %v280_v62 = vadd.f32 1.0, %v450_v59 }
  0xf5   :  { %v454_v63 = vpop.eup %453  ;;  %473 = vrcp.f32 %v272_v60  ;;  %v275_v0 = vadd.f32 1.0, %v452_v61 }
  0xf6   :  { %v456_v1 = vpop.eup %455  ;;  %475 = vrcp.f32 %v280_v62  ;;  %v283_v2 = vadd.f32 1.0, %v454_v63 }
  0xf7   :  { %v458_v3 = vpop.eup %457  ;;  %477 = vrcp.f32 %v275_v0  ;;  %v273_v4 = vadd.f32 1.0, %v456_v1 }
  0xf8   :  { %v460_v5 = vpop.eup %459  ;;  %479 = vrcp.f32 %v283_v2  ;;  %v281_v6 = vadd.f32 1.0, %v458_v3 }
  0xf9   :  { %v462_v8 = vpop.eup %461  ;;  %481 = vrcp.f32 %v273_v4  ;;  %v278_v9 = vadd.f32 1.0, %v460_v5 }
  0xfa   :  { %v464_v12 = vpop.eup %463  ;;  %483 = vrcp.f32 %v281_v6  ;;  %v286_v13 = vadd.f32 1.0, %v462_v8 }
  0xfb   :  { %v466_v17 = vpop.eup %465  ;;  %485 = vrcp.f32 %v278_v9  ;;  %v276_v20 = vadd.f32 1.0, %v464_v12 }
  0xfc   :  { %v468_v21 = vpop.eup %467  ;;  %487 = vrcp.f32 %v286_v13  ;;  %v284_v22 = vadd.f32 1.0, %v466_v17 }
  0xfd   :  { %v470_v26 = vpop.eup %469  ;;  %489 = vrcp.f32 %v276_v20  ;;  %v279_v27 = vadd.f32 1.0, %v468_v21 }
  0xfe   :  { %v472_v29 = vpop.eup %471  ;;  %v322_v32 = vmul.f32 %v470_v26, %v574_v14  ;;  %491 = vrcp.f32 %v284_v22 }
  0xff   :  { %v474_v33 = vpop.eup %473  ;;  %v330_v34 = vmul.f32 %v472_v29, %v577_v15  ;;  %493 = vrcp.f32 %v279_v27 }
 0x100   :  { %v476_v35 = vpop.eup %475  ;;  %339 = vst.msk [vmem:[%s720_s3 + $0x10] sm:$0xff] %vm336_vm1, %v322_v32  ;;  %v320_v36 = vmul.f32 %v474_v33, %v580_v18  ;;  %495 = vpow2.f32 %v392_v23 }
 0x101   :  { %v478_v37 = vpop.eup %477  ;;  %347 = vst.msk [vmem:[%s720_s3 + $0x50] sm:$0xff] %vm336_vm1, %v330_v34  ;;  %v328_v14 = vmul.f32 %v476_v35, %v583_v19  ;;  %497 = vpow2.f32 %v382_v28 }
 0x102   :  { %v480_v15 = vpop.eup %479  ;;  %337 = vst.msk [vmem:[%s720_s3] sm:$0xff] %vm336_vm1, %v320_v36  ;;  %v323_v40 = vmul.f32 %v478_v37, %v588_v24  ;;  %499 = vpow2.f32 %v390_v11 }
 0x103   :  { %v482_v18 = vpop.eup %481  ;;  %345 = vst.msk [vmem:[%s720_s3 + $0x40] sm:$0xff] %vm336_vm1, %v328_v14  ;;  %v331_v41 = vmul.f32 %v480_v15, %v591_v25 }
 0x104   :  { %v484_v44 = vpop.eup %483  ;;  %340 = vst.msk [vmem:[%s720_s3 + $0x18] sm:$0xff] %vm336_vm1, %v323_v40  ;;  %v321_v19 = vmul.f32 %v482_v18, %v596_v30 }
 0x105   :  { %v486_v45 = vpop.eup %485  ;;  %348 = vst.msk [vmem:[%s720_s3 + $0x58] sm:$0xff] %vm336_vm1, %v331_v41  ;;  %v329_v24 = vmul.f32 %v484_v44, %v599_v31 }
 0x106   :  { %v488_v46 = vpop.eup %487  ;;  %338 = vst.msk [vmem:[%s720_s3 + $0x8] sm:$0xff] %vm336_vm1, %v321_v19  ;;  %v326_v25 = vmul.f32 %v486_v45, %v606_v38 }
 0x107   :  { %v490_v47 = vpop.eup %489  ;;  %346 = vst.msk [vmem:[%s720_s3 + $0x48] sm:$0xff] %vm336_vm1, %v329_v24  ;;  %v334_v30 = vmul.f32 %v488_v46, %v609_v39 }
 0x108   :  { %v492_v49 = vpop.eup %491  ;;  %343 = vst.msk [vmem:[%s720_s3 + $0x30] sm:$0xff] %vm336_vm1, %v326_v25  ;;  %v324_v31 = vmul.f32 %v490_v47, %v612_v42 }
 0x109   :  { %v494_v50 = vpop.eup %493  ;;  %351 = vst.msk [vmem:[%s720_s3 + $0x70] sm:$0xff] %vm336_vm1, %v334_v30  ;;  %v332_v38 = vmul.f32 %v492_v49, %v615_v43 }
 0x10a   :  { %v496_v51 = vpop.eup %495  ;;  %341 = vst.msk [vmem:[%s720_s3 + $0x20] sm:$0xff] %vm336_vm1, %v324_v31  ;;  %v327_v39 = vmul.f32 %v494_v50, %v620_v48 }
 0x10b   :  { %v498_v52 = vpop.eup %497  ;;  %349 = vst.msk [vmem:[%s720_s3 + $0x60] sm:$0xff] %vm336_vm1, %v332_v38  ;;  %v287_v42 = vadd.f32 1.0, %v496_v51 }
 0x10c   :  { %v500_v53 = vpop.eup %499  ;;  %344 = vst.msk [vmem:[%s720_s3 + $0x38] sm:$0xff] %vm336_vm1, %v327_v39  ;;  %v277_v43 = vadd.f32 1.0, %v498_v52 }
 0x10d   :  { %501 = vrcp.f32 %v287_v42  ;;  %v285_v54 = vadd.f32 1.0, %v500_v53 }
 0x10e   :  { %503 = vrcp.f32 %v277_v43 }
 0x10f   :  { %505 = vrcp.f32 %v285_v54 }
 0x117   :  { %v502_v55 = vpop.eup %501 }
 0x118   :  { %v504_v48 = vpop.eup %503  ;;  %v335_v56 = vmul.f32 %v502_v55, %v626_v7 }
 0x119   :  { %v506_v57 = vpop.eup %505  ;;  %v325_v58 = vmul.f32 %v504_v48, %v629_v10 }
 0x11a   :  { %352 = vst.msk [vmem:[%s720_s3 + $0x78] sm:$0xff] %vm336_vm1, %v335_v56  ;;  %v333_v59 = vmul.f32 %v506_v57, %v632_v16 }
 0x11b   :  { %342 = vst.msk [vmem:[%s720_s3 + $0x28] sm:$0xff] %vm336_vm1, %v325_v58 }
 0x11c   :  { %350 = vst.msk [vmem:[%s720_s3 + $0x68] sm:$0xff] %vm336_vm1, %v333_v59 }

// kernel: _forward.54
= control target key start
LH: loop header
LB: loop body
LE: loop exit
PB: predicated region body
PF: predicated region fallthrough
CT: control target
= control target key end

     0   :  { %vm68_vm0 = vcmask 523264   ;;  %s272_s1 = inlined_call_operand.vmem [shape: bf16[64,64], index: 1, kind: input, shape index: {}]   ;;  %s273_s0 = inlined_call_operand.vmem [shape: bf16[32,64], index: 0, kind: input, shape index: {}]   ;;  %s274_s2 = inlined_call_operand.vmem [shape: f32[1,64], index: 2, kind: input, shape index: {}]   ;;  %s275_s3 = inlined_call_operand.vmem [shape: f32[32,64], index: 3, kind: output, shape index: {}]  }
   0x1   :  { %v191_v0 = vld [vmem:[%s272_s1] sm:$0xff]   ;;  %v192_v1 = vld [vmem:[%s272_s1 + $0x8] sm:$0xff]   ;;  %v193_v2 = vld [vmem:[%s272_s1 + $0x10] sm:$0xff]  }
   0x2   :  { %179 = vmatprep.subr.bf16.mxu0 %v191_v0  ;;  %v195_v3 = vld [vmem:[%s273_s0] sm:$0xff]   ;;  %v194_v4 = vld [vmem:[%s272_s1 + $0x18] sm:$0xff]   ;;  %v196_v5 = vld [vmem:[%s273_s0 + $0x8] sm:$0xff]  }
   0x3   :  { %180 = vmatpush3.bf16.msra.mxu0 %v191_v0  ;;  %187 = vmatprep.mubr.msk.bf16.mxu0 %vm68_vm0, %v195_v3  ;;  %v160_v6 = vld [vmem:[%s274_s2] ss:$0 sm:$0xff] }
   0x4   :  { %181 = vmatprep.subr.bf16.mxu0 %v192_v1 }
   0x7   :  { %182 = vmatpush3.bf16.msra.mxu0 %v192_v1 }
   0x8   :  { %183 = vmatprep.subr.bf16.mxu0 %v193_v2 }
   0xb   :  { %184 = vmatpush3.bf16.msra.mxu0 %v193_v2 }
   0xc   :  { %185 = vmatprep.subr.bf16.mxu0 %v194_v4 }
   0xf   :  { %186 = vmatpush3.bf16.msra.mxu0 %v194_v4 }
  0x12   :  { %188 = vmatmul.mubr.msk.bf16.vlgmr.msra.gmra.mrb[0].mxu0 %vm68_vm0, %v196_v5 }
  0xe5   :  { %v189_v7 = vpop.f32.mrb[0].mxu0 }
  0xe6   :  { %v118_v8 = vadd.f32 %v189_v7, %v160_v6  ;;  %v109_v9 = vpop.f32.mrb[1].mxu0 }
  0xe7   :  { %v110_v10 = vadd.f32 %v160_v6, %v109_v9  ;;  %v190_v11 = vpop.f32.mrb[2].mxu0 }
  0xe8   :  { %v171_v12 = vmul.f32 -1.442695, %v118_v8  ;;  %v121_v13 = vadd.f32 %v190_v11, %v160_v6  ;;  %v112_v14 = vpop.f32.mrb[3].mxu0 }
  0xe9   :  { %v169_v15 = vmul.f32 -1.442695, %v110_v10  ;;  %v113_v16 = vadd.f32 %v160_v6, %v112_v14 }
  0xea   :  { %197 = vpow2.f32 %v171_v12  ;;  %v172_v17 = vmul.f32 -1.442695, %v121_v13 }
  0xeb   :  { %199 = vpow2.f32 %v169_v15  ;;  %v170_v18 = vmul.f32 -1.442695, %v113_v16 }
  0xec   :  { %201 = vpow2.f32 %v172_v17 }
  0xed   :  { %203 = vpow2.f32 %v170_v18 }
  0xf4   :  { %v198_v19 = vpop.eup %197 }
  0xf5   :  { %v200_v20 = vpop.eup %199  ;;  %v138_v21 = vadd.f32 1.0, %v198_v19 }
  0xf6   :  { %v202_v22 = vpop.eup %201  ;;  %v136_v23 = vadd.f32 1.0, %v200_v20 }
  0xf7   :  { %v204_v24 = vpop.eup %203  ;;  %205 = vrcp.f32 %v138_v21  ;;  %v139_v25 = vadd.f32 1.0, %v202_v22 }
  0xf8   :  { %207 = vrcp.f32 %v136_v23  ;;  %v137_v26 = vadd.f32 1.0, %v204_v24 }
  0xf9   :  { %209 = vrcp.f32 %v139_v25 }
  0xfa   :  { %211 = vrcp.f32 %v137_v26 }
 0x101   :  { %v206_v27 = vpop.eup %205 }
 0x102   :  { %v208_v28 = vpop.eup %207  ;;  %v150_v29 = vmul.f32 %v206_v27, %v118_v8 }
 0x103   :  { %v210_v30 = vpop.eup %209  ;;  %v148_v31 = vmul.f32 %v208_v28, %v110_v10 }
 0x104   :  { %v212_v32 = vpop.eup %211  ;;  %154 = vst.msk [vmem:[%s275_s3 + $0x10] sm:$0xff] %vm68_vm0, %v150_v29  ;;  %v151_v33 = vmul.f32 %v210_v30, %v121_v13 }
 0x105   :  { %152 = vst.msk [vmem:[%s275_s3] sm:$0xff] %vm68_vm0, %v148_v31  ;;  %v149_v34 = vmul.f32 %v212_v32, %v113_v16 }
 0x106   :  { %155 = vst.msk [vmem:[%s275_s3 + $0x18] sm:$0xff] %vm68_vm0, %v151_v33 }
 0x107   :  { %153 = vst.msk [vmem:[%s275_s3 + $0x8] sm:$0xff] %vm68_vm0, %v149_v34 }

// kernel: _forward.55
= control target key start
LH: loop header
LB: loop body
LE: loop exit
PB: predicated region body
PF: predicated region fallthrough
CT: control target
= control target key end

     0   :  { %vm204_vm0 = vcmask 261120   ;;  %vm337_vm1 = vcmask 130048   ;;  %s566_s1 = inlined_call_operand.vmem [shape: bf16[288,16], index: 1, kind: input, shape index: {}]   ;;  %s567_s0 = inlined_call_operand.vmem [shape: bf16[32,288], index: 0, kind: input, shape index: {}]   ;;  %s568_s2 = inlined_call_operand.vmem [shape: f32[1,16], index: 2, kind: input, shape index: {}]   ;;  %s569_s3 = inlined_call_operand.vmem [shape: f32[32,16], index: 3, kind: output, shape index: {}]  }
   0x1   :  { %v417_v0 = vld [vmem:[%s566_s1 + $0x40] sm:$0xff]   ;;  %v419_v2 = vld [vmem:[%s566_s1 + $0x48] sm:$0xff]   ;;  %v421_v4 = vld [vmem:[%s566_s1 + $0x50] sm:$0xff]  }
   0x2   :  { %v418_v1 = vld [vmem:[%s566_s1] sm:$0xff]   ;;  %377 = vmatprep.subr.bf16.mxu0 %v417_v0  ;;  %v420_v3 = vld [vmem:[%s566_s1 + $0x8] sm:$0xff]   ;;  %v422_v5 = vld [vmem:[%s566_s1 + $0x10] sm:$0xff]  }
   0x3   :  { %378 = vmatpush3.bf16.msra.mxu0 %v418_v1  ;;  %v423_v6 = vld [vmem:[%s566_s1 + $0x58] sm:$0xff]   ;;  %v425_v8 = vld [vmem:[%s566_s1 + $0x60] sm:$0xff]   ;;  %v427_v11 = vld [vmem:[%s566_s1 + $0x68] sm:$0xff]  }
   0x4   :  { %379 = vmatprep.subr.bf16.mxu0 %v419_v2  ;;  %v424_v7 = vld [vmem:[%s566_s1 + $0x18] sm:$0xff]   ;;  %v426_v9 = vld [vmem:[%s566_s1 + $0x20] sm:$0xff]   ;;  %v428_v12 = vld [vmem:[%s566_s1 + $0x28] sm:$0xff]  }
   0x5   :  { %v432_v10 = vld [vmem:[%s566_s1 + $0x80] sm:$0xff]   ;;  %v429_v13 = vld [vmem:[%s566_s1 + $0x70] sm:$0xff]   ;;  %v437_v15 = vld [vmem:[%s566_s1 + $0x88] sm:$0xff]  }
   0x6   :  { %409 = vmatprep.subr.bf16.mxu1 %v432_v10  ;;  %v436_v14 = vld [vmem:[%s567_s0 + $0x4] ss:$12 sps:$4 sm:$0xff]   ;;  %v438_v16 = vld [vmem:[%s567_s0 + $0x8] ss:$12 sps:$4 sm:$0xff]   ;;  %v439_v17 = vld [vmem:[%s567_s0 + $0x20] ss:$12 sps:$4 sm:$0xff]  }
   0x7   :  { %380 = vmatpush3.bf16.msra.mxu0 %v420_v3  ;;  %410 = vmatpush3.bf16.msra.mxu1 %v432_v10  ;;  %v430_v18 = vld [vmem:[%s566_s1 + $0x30] sm:$0xff]   ;;  %v431_v19 = vld [vmem:[%s566_s1 + $0x78] sm:$0xff]   ;;  %v434_v21 = vld [vmem:[%s567_s0] ss:$12 sps:$4 sm:$0xff]  }
   0x8   :  { %381 = vmatprep.subr.bf16.mxu0 %v421_v4  ;;  %243 = vmatprep.mubr.bf16.mxu0 %v436_v14  ;;  %v433_v20 = vld [vmem:[%s566_s1 + $0x38] sm:$0xff]   ;;  %v346_v30 = vld [vmem:[%s568_s2] ss:$0 sm:$0xff] }
   0x9   :  { %411 = vmatprep.subr.bf16.mxu1 %v437_v15  ;;  %413 = vmatprep.mubr.msk.bf16.mxu1 %vm204_vm0, %v438_v16  ;;  %v440_v22 = vld [vmem:[%s567_s0 + $0x1c] ss:$12 sps:$4 sm:$0xff]   ;;  %v442_v23 = vld [vmem:[%s567_s0 + $0x18] ss:$12 sps:$4 sm:$0xff]  }
   0xb   :  { %382 = vmatpush3.bf16.msra.mxu0 %v422_v5  ;;  %412 = vmatpush3.bf16.msra.mxu1 %v437_v15 }
   0xc   :  { %383 = vmatprep.subr.bf16.mxu0 %v423_v6 }
   0xe   :  { %414 = vmatmul.mubr.msk.bf16.vlgmr.msra.gmra.mrb[0].mxu1 %vm204_vm0, %v439_v17 }
   0xf   :  { %384 = vmatpush3.bf16.msra.mxu0 %v424_v7 }
  0x10   :  { %385 = vmatprep.subr.bf16.mxu0 %v425_v8 }
  0x13   :  { %386 = vmatpush3.bf16.msra.mxu0 %v426_v9 }
  0x14   :  { %387 = vmatprep.subr.bf16.mxu0 %v427_v11 }
  0x17   :  { %388 = vmatpush3.bf16.msra.mxu0 %v428_v12 }
  0x18   :  { %389 = vmatprep.subr.bf16.mxu0 %v429_v13 }
  0x1b   :  { %390 = vmatpush3.bf16.msra.mxu0 %v430_v18 }
  0x1c   :  { %391 = vmatprep.subr.bf16.mxu0 %v431_v19 }
  0x1f   :  { %392 = vmatpush3.bf16.msra.mxu0 %v433_v20 }
  0x22   :  { %244 = vmatmul.mubr.bf16.vlgmr.msra.gmra.mrb[0].mxu0 %v434_v21 }
  0x23   :  { %251 = vmatprep.mubr.bf16.mxu0 %v440_v22 }
  0x2a   :  { %252 = vmatmul.mubr.bf16.gmra.mrb[4].mxu0 %v442_v23 }
  0xe1   :  { %v415_v24 = vpop.f32.mrb[0].mxu1 }
  0xe2   :  { %v294_v25 = vpop.f32.mrb[1].mxu1 }
  0xe3   :  { %v416_v26 = vpop.f32.mrb[2].mxu1 }
  0xe4   :  { %v297_v27 = vpop.f32.mrb[3].mxu1 }
  0xf5   :  { %v393_v28 = vpop.f32.mrb[0].mxu0 }
  0xf6   :  { %v394_v29 = vpop.f32.mrb[1].mxu0 }
  0xf7   :  { %v395_v31 = vadd.f32 %v394_v29, %v393_v28  ;;  %v396_v32 = vpop.f32.mrb[2].mxu0 }
  0xf8   :  { %v397_v33 = vpop.f32.mrb[3].mxu0 }
  0xf9   :  { %v398_v34 = vadd.f32 %v397_v33, %v396_v32  ;;  %v246_v35 = vadd.f32 %v395_v31, %v346_v30 }
  0xfb   :  { %v295_v36 = vadd.f32 %v294_v25, %v246_v35  ;;  %v249_v37 = vadd.f32 %v398_v34, %v346_v30 }
  0xfd   :  { %v373_v38 = vmul.f32 -1.442695, %v295_v36  ;;  %v298_v39 = vadd.f32 %v297_v27, %v249_v37  ;;  %v399_v40 = vpop.f32.mrb[4].mxu0 }
  0xfe   :  { %v400_v41 = vpop.f32.mrb[5].mxu0 }
  0xff   :  { %443 = vpow2.f32 %v373_v38  ;;  %v374_v42 = vmul.f32 -1.442695, %v298_v39  ;;  %v401_v43 = vadd.f32 %v400_v41, %v399_v40  ;;  %v402_v44 = vpop.f32.mrb[6].mxu0 }
 0x100   :  { %v403_v45 = vpop.f32.mrb[7].mxu0 }
 0x101   :  { %445 = vpow2.f32 %v374_v42  ;;  %v254_v46 = vadd.f32 %v401_v43, %v346_v30  ;;  %v404_v47 = vadd.f32 %v403_v45, %v402_v44 }
 0x103   :  { %v303_v48 = vadd.f32 %v415_v24, %v254_v46  ;;  %v257_v49 = vadd.f32 %v404_v47, %v346_v30 }
 0x105   :  { %v375_v50 = vmul.f32 -1.442695, %v303_v48  ;;  %v306_v51 = vadd.f32 %v416_v26, %v257_v49 }
 0x107   :  { %447 = vpow2.f32 %v375_v50  ;;  %v376_v52 = vmul.f32 -1.442695, %v306_v51 }
 0x109   :  { %v444_v53 = vpop.eup %443  ;;  %449 = vpow2.f32 %v376_v52 }
 0x10a   :  { %v321_v54 = vadd.f32 1.0, %v444_v53 }
 0x10b   :  { %v446_v55 = vpop.eup %445 }
 0x10c   :  { %451 = vrcp.f32 %v321_v54  ;;  %v322_v56 = vadd.f32 1.0, %v446_v55 }
 0x10e   :  { %453 = vrcp.f32 %v322_v56 }
 0x111   :  { %v448_v57 = vpop.eup %447 }
 0x112   :  { %v323_v58 = vadd.f32 1.0, %v448_v57 }
 0x113   :  { %v450_v59 = vpop.eup %449 }
 0x114   :  { %455 = vrcp.f32 %v323_v58  ;;  %v324_v60 = vadd.f32 1.0, %v450_v59 }
 0x116   :  { %v452_v61 = vpop.eup %451  ;;  %457 = vrcp.f32 %v324_v60 }
 0x117   :  { %v333_v62 = vmul.f32 %v452_v61, %v295_v36 }
 0x118   :  { %v454_v63 = vpop.eup %453 }
 0x119   :  { %338 = vst.msk [vmem:[%s569_s3] sm:$0xff] %vm337_vm1, %v333_v62  ;;  %v334_v0 = vmul.f32 %v454_v63, %v298_v39 }
 0x11b   :  { %339 = vst.msk [vmem:[%s569_s3 + $0x8] sm:$0xff] %vm337_vm1, %v334_v0 }
 0x11e   :  { %v456_v1 = vpop.eup %455 }
 0x11f   :  { %v335_v2 = vmul.f32 %v456_v1, %v303_v48 }
 0x120   :  { %v458_v3 = vpop.eup %457 }
 0x121   :  { %340 = vst.msk [vmem:[%s569_s3 + $0x10] sm:$0xff] %vm337_vm1, %v335_v2  ;;  %v336_v4 = vmul.f32 %v458_v3, %v306_v51 }
 0x123   :  { %341 = vst.msk [vmem:[%s569_s3 + $0x18] sm:$0xff] %vm337_vm1, %v336_v4 }

// kernel: _forward.56
= control target key start
LH: loop header
LB: loop body
LE: loop exit
PB: predicated region body
PF: predicated region fallthrough
CT: control target
= control target key end

     0   :  { %v279_v0 = vmov 0   ;;  %vm116_vm0 = vcmask 130048   ;;  %vm200_vm1 = vcmask 261120   ;;  %s354_s1 = inlined_call_operand.vmem [shape: bf16[144,32], index: 1, kind: input, shape index: {}]   ;;  %s355_s0 = inlined_call_operand.vmem [shape: bf16[32,144], index: 0, kind: input, shape index: {}]   ;;  %s356_s2 = inlined_call_operand.vmem [shape: f32[1,32], index: 2, kind: input, shape index: {}]   ;;  %s357_s3 = inlined_call_operand.vmem [shape: f32[32,32], index: 3, kind: output, shape index: {}]  }
   0x1   :  { %123 = vmatprep.subr.bf16.mxu0 %v279_v0  ;;  %229 = vmatprep.subr.bf16.mxu1 %v279_v0  ;;  %v248_v1 = vld [vmem:[%s354_s1] sm:$0xff]   ;;  %v249_v2 = vld [vmem:[%s354_s1 + $0x8] sm:$0xff]   ;;  %v250_v3 = vld [vmem:[%s354_s1 + $0x10] sm:$0xff]  }
   0x2   :  { %124 = vmatpush1.bf16.msra.mxu0 %v248_v1  ;;  %238 = vmatpush1.bf16.msra.mxu1 %v248_v1  ;;  %v251_v4 = vld [vmem:[%s354_s1 + $0x18] sm:$0xff]   ;;  %v259_v5 = vld [vmem:[%s355_s0 + $0x4] ss:$8 sps:$4 sm:$0xff]   ;;  %v254_v9 = vld [vmem:[%s354_s1 + $0x30] sm:$0xff]  }
   0x3   :  { %125 = vmatprep.subr.bf16.mxu0 %v279_v0  ;;  %230 = vmatprep.subr.bf16.mxu1 %v279_v0  ;;  %v262_v6 = vld [vmem:[%s355_s0 + $0x14] ss:$8 sps:$4 sm:$0xff]   ;;  %v252_v7 = vld [vmem:[%s354_s1 + $0x20] sm:$0xff]   ;;  %v253_v8 = vld [vmem:[%s354_s1 + $0x28] sm:$0xff]  }
   0x4   :  { %223 = vmatprep.mubr.msk.bf16.mxu0 %vm116_vm0, %v259_v5  ;;  %224 = vmatprep.mubr.msk.bf16.mxu1 %vm116_vm0, %v262_v6  ;;  %v255_v10 = vld [vmem:[%s354_s1 + $0x38] sm:$0xff]   ;;  %v256_v11 = vld [vmem:[%s354_s1 + $0x40] sm:$0xff]  }
   0x5   :  { %v257_v12 = vld [vmem:[%s355_s0] ss:$8 sps:$4 sm:$0xff]   ;;  %v260_v13 = vld [vmem:[%s355_s0 + $0x10] ss:$8 sps:$4 sm:$0xff]  }
   0x6   :  { %126 = vmatpush1.bf16.msra.mxu0 %v249_v2  ;;  %239 = vmatpush1.bf16.msra.mxu1 %v249_v2  ;;  %v209_v14 = vld [vmem:[%s356_s2] ss:$0 sm:$0xff] }
   0x7   :  { %127 = vmatprep.subr.bf16.mxu0 %v279_v0  ;;  %231 = vmatprep.subr.bf16.mxu1 %v279_v0 }
   0xa   :  { %128 = vmatpush1.bf16.msra.mxu0 %v250_v3  ;;  %240 = vmatpush1.bf16.msra.mxu1 %v250_v3 }
   0xb   :  { %129 = vmatprep.subr.bf16.mxu0 %v279_v0  ;;  %232 = vmatprep.subr.bf16.mxu1 %v279_v0 }
   0xe   :  { %130 = vmatpush1.bf16.msra.mxu0 %v251_v4  ;;  %241 = vmatpush1.bf16.msra.mxu1 %v251_v4 }
   0xf   :  { %131 = vmatprep.subr.bf16.mxu0 %v279_v0  ;;  %233 = vmatprep.subr.bf16.mxu1 %v279_v0 }
  0x12   :  { %132 = vmatpush1.bf16.msra.mxu0 %v252_v7  ;;  %242 = vmatpush1.bf16.msra.mxu1 %v252_v7 }
  0x13   :  { %133 = vmatprep.subr.bf16.mxu0 %v279_v0  ;;  %234 = vmatprep.subr.bf16.mxu1 %v279_v0 }
  0x16   :  { %134 = vmatpush1.bf16.msra.mxu0 %v253_v8  ;;  %243 = vmatpush1.bf16.msra.mxu1 %v253_v8 }
  0x17   :  { %135 = vmatprep.subr.bf16.mxu0 %v279_v0  ;;  %235 = vmatprep.subr.bf16.mxu1 %v279_v0 }
  0x1a   :  { %136 = vmatpush1.bf16.msra.mxu0 %v254_v9  ;;  %244 = vmatpush1.bf16.msra.mxu1 %v254_v9 }
  0x1b   :  { %137 = vmatprep.subr.bf16.mxu0 %v279_v0  ;;  %236 = vmatprep.subr.bf16.mxu1 %v279_v0 }
  0x1e   :  { %138 = vmatpush1.bf16.msra.mxu0 %v255_v10  ;;  %245 = vmatpush1.bf16.msra.mxu1 %v255_v10 }
  0x1f   :  { %139 = vmatprep.subr.bf16.mxu0 %v279_v0  ;;  %237 = vmatprep.subr.bf16.mxu1 %v279_v0 }
  0x22   :  { %140 = vmatpush1.bf16.msra.mxu0 %v256_v11  ;;  %246 = vmatpush1.bf16.msra.mxu1 %v256_v11 }
  0x25   :  { %156 = vmatmul.mubr.bf16.vlgmr.msra.gmra.mrb[0].mxu0 %v257_v12  ;;  %164 = vmatmul.mubr.bf16.vlgmr.msra.gmra.mrb[0].mxu1 %v260_v13 }
  0xf8   :  { %v157_v15 = vpop.f32.mrb[0].mxu0  ;;  %v165_v16 = vpop.f32.mrb[0].mxu1 }
  0xf9   :  { %v158_v17 = vadd.f32 %v209_v14, %v157_v15  ;;  %v166_v18 = vadd.f32 %v209_v14, %v165_v16  ;;  %v159_v19 = vpop.f32.mrb[1].mxu0  ;;  %v167_v20 = vpop.f32.mrb[1].mxu1 }
  0xfa   :  { %v160_v21 = vpop.f32.mrb[2].mxu0  ;;  %v168_v22 = vpop.f32.mrb[2].mxu1 }
  0xfb   :  { %v225_v23 = vmul.f32 -1.442695, %v158_v17  ;;  %v227_v24 = vmul.f32 -1.442695, %v166_v18  ;;  %v161_v25 = vadd.f32 %v209_v14, %v160_v21  ;;  %v169_v26 = vadd.f32 %v209_v14, %v168_v22  ;;  %v162_v27 = vpop.f32.mrb[3].mxu0  ;;  %v170_v28 = vpop.f32.mrb[3].mxu1 }
  0xfd   :  { %263 = vpow2.f32 %v225_v23  ;;  %v226_v29 = vmul.f32 -1.442695, %v161_v25  ;;  %v228_v30 = vmul.f32 -1.442695, %v169_v26 }
  0xfe   :  { %265 = vpow2.f32 %v227_v24 }
  0xff   :  { %267 = vpow2.f32 %v226_v29 }
 0x100   :  { %269 = vpow2.f32 %v228_v30 }
 0x107   :  { %v264_v31 = vpop.eup %263 }
 0x108   :  { %v266_v32 = vpop.eup %265  ;;  %v184_v33 = vadd.f32 1.0, %v264_v31 }
 0x109   :  { %v268_v34 = vpop.eup %267  ;;  %v186_v35 = vadd.f32 1.0, %v266_v32 }
 0x10a   :  { %v270_v36 = vpop.eup %269  ;;  %271 = vrcp.f32 %v184_v33  ;;  %v185_v37 = vadd.f32 1.0, %v268_v34 }
 0x10b   :  { %273 = vrcp.f32 %v186_v35  ;;  %v187_v38 = vadd.f32 1.0, %v270_v36 }
 0x10c   :  { %275 = vrcp.f32 %v185_v37 }
 0x10d   :  { %277 = vrcp.f32 %v187_v38 }
 0x114   :  { %v272_v39 = vpop.eup %271 }
 0x115   :  { %v274_v40 = vpop.eup %273  ;;  %v196_v41 = vmul.f32 %v272_v39, %v158_v17 }
 0x116   :  { %v276_v42 = vpop.eup %275  ;;  %v198_v43 = vmul.f32 %v274_v40, %v166_v18 }
 0x117   :  { %v278_v44 = vpop.eup %277  ;;  %201 = vst.msk [vmem:[%s357_s3] sm:$0xff] %vm200_vm1, %v196_v41  ;;  %v197_v45 = vmul.f32 %v276_v42, %v161_v25 }
 0x118   :  { %203 = vst.msk [vmem:[%s357_s3 + $0x10] sm:$0xff] %vm200_vm1, %v198_v43  ;;  %v199_v46 = vmul.f32 %v278_v44, %v169_v26 }
 0x119   :  { %202 = vst.msk [vmem:[%s357_s3 + $0x8] sm:$0xff] %vm200_vm1, %v197_v45 }
 0x11a   :  { %204 = vst.msk [vmem:[%s357_s3 + $0x18] sm:$0xff] %vm200_vm1, %v199_v46 }

// kernel: _forward.57
= control target key start
LH: loop header
LB: loop body
LE: loop exit
PB: predicated region body
PF: predicated region fallthrough
CT: control target
= control target key end

     0   :  { %vm84_vm0 = vcmask 785408   ;;  %s300_s1 = inlined_call_operand.vmem [shape: bf16[96,128], index: 1, kind: input, shape index: {}]   ;;  %s301_s0 = inlined_call_operand.vmem [shape: bf16[32,96], index: 0, kind: input, shape index: {}]   ;;  %s302_s2 = inlined_call_operand.vmem [shape: f32[1,128], index: 2, kind: input, shape index: {}]   ;;  %s303_s3 = inlined_call_operand.vmem [shape: f32[32,128], index: 3, kind: output, shape index: {}]  }
   0x1   :  { %v215_v0 = vld [vmem:[%s300_s1] sm:$0xff]   ;;  %v216_v1 = vld [vmem:[%s300_s1 + $0x8] sm:$0xff]   ;;  %v217_v2 = vld [vmem:[%s300_s1 + $0x10] sm:$0xff]  }
   0x2   :  { %199 = vmatprep.subr.bf16.mxu0 %v215_v0  ;;  %v221_v3 = vld [vmem:[%s301_s0] sm:$0xff]   ;;  %v218_v4 = vld [vmem:[%s300_s1 + $0x18] sm:$0xff]   ;;  %v220_v6 = vld [vmem:[%s300_s1 + $0x28] sm:$0xff]  }
   0x3   :  { %200 = vmatpush3.bf16.msra.mxu0 %v215_v0  ;;  %211 = vmatprep.mubr.msk.bf16.mxu0 %vm84_vm0, %v221_v3  ;;  %v219_v5 = vld [vmem:[%s300_s1 + $0x20] sm:$0xff]   ;;  %v222_v7 = vld [vmem:[%s301_s0 + $0x8] sm:$0xff]  }
   0x4   :  { %201 = vmatprep.subr.bf16.mxu0 %v216_v1  ;;  %v176_v8 = vld [vmem:[%s302_s2] ss:$0 sm:$0xff] }
   0x7   :  { %202 = vmatpush3.bf16.msra.mxu0 %v216_v1 }
   0x8   :  { %203 = vmatprep.subr.bf16.mxu0 %v217_v2 }
   0xb   :  { %204 = vmatpush3.bf16.msra.mxu0 %v217_v2 }
   0xc   :  { %205 = vmatprep.subr.bf16.mxu0 %v218_v4 }
   0xf   :  { %206 = vmatpush3.bf16.msra.mxu0 %v218_v4 }
  0x10   :  { %207 = vmatprep.subr.bf16.mxu0 %v219_v5 }
  0x13   :  { %208 = vmatpush3.bf16.msra.mxu0 %v219_v5 }
  0x14   :  { %209 = vmatprep.subr.bf16.mxu0 %v220_v6 }
  0x17   :  { %210 = vmatpush3.bf16.msra.mxu0 %v220_v6 }
  0x1a   :  { %212 = vmatmul.mubr.msk.bf16.vlgmr.msra.gmra.mrb[0].mxu0 %vm84_vm0, %v222_v7 }
  0xed   :  { %v213_v9 = vpop.f32.mrb[0].mxu0 }
  0xee   :  { %v134_v10 = vadd.f32 %v213_v9, %v176_v8  ;;  %v125_v11 = vpop.f32.mrb[1].mxu0 }
  0xef   :  { %v126_v12 = vadd.f32 %v176_v8, %v125_v11  ;;  %v214_v13 = vpop.f32.mrb[2].mxu0 }
  0xf0   :  { %v189_v14 = vmul.f32 -1.442695, %v134_v10  ;;  %v137_v15 = vadd.f32 %v214_v13, %v176_v8  ;;  %v128_v16 = vpop.f32.mrb[3].mxu0 }
  0xf1   :  { %v187_v17 = vmul.f32 -1.442695, %v126_v12  ;;  %v129_v18 = vadd.f32 %v176_v8, %v128_v16 }
  0xf2   :  { %223 = vpow2.f32 %v189_v14  ;;  %v190_v19 = vmul.f32 -1.442695, %v137_v15 }
  0xf3   :  { %225 = vpow2.f32 %v187_v17  ;;  %v188_v20 = vmul.f32 -1.442695, %v129_v18 }
  0xf4   :  { %227 = vpow2.f32 %v190_v19 }
  0xf5   :  { %229 = vpow2.f32 %v188_v20 }
  0xfc   :  { %v224_v21 = vpop.eup %223 }
  0xfd   :  { %v226_v22 = vpop.eup %225  ;;  %v154_v23 = vadd.f32 1.0, %v224_v21 }
  0xfe   :  { %v228_v24 = vpop.eup %227  ;;  %v152_v25 = vadd.f32 1.0, %v226_v22 }
  0xff   :  { %v230_v26 = vpop.eup %229  ;;  %231 = vrcp.f32 %v154_v23  ;;  %v155_v27 = vadd.f32 1.0, %v228_v24 }
 0x100   :  { %233 = vrcp.f32 %v152_v25  ;;  %v153_v28 = vadd.f32 1.0, %v230_v26 }
 0x101   :  { %235 = vrcp.f32 %v155_v27 }
 0x102   :  { %237 = vrcp.f32 %v153_v28 }
 0x109   :  { %v232_v29 = vpop.eup %231 }
 0x10a   :  { %v234_v30 = vpop.eup %233  ;;  %v166_v31 = vmul.f32 %v232_v29, %v134_v10 }
 0x10b   :  { %v236_v32 = vpop.eup %235  ;;  %v164_v33 = vmul.f32 %v234_v30, %v126_v12 }
 0x10c   :  { %v238_v34 = vpop.eup %237  ;;  %170 = vst [vmem:[%s303_s3 + $0x10] sm:$0xff] %v166_v31  ;;  %v167_v35 = vmul.f32 %v236_v32, %v137_v15 }
 0x10d   :  { %168 = vst [vmem:[%s303_s3] sm:$0xff] %v164_v33  ;;  %v165_v36 = vmul.f32 %v238_v34, %v129_v18 }
 0x10e   :  { %171 = vst [vmem:[%s303_s3 + $0x18] sm:$0xff] %v167_v35 }
 0x10f   :  { %169 = vst [vmem:[%s303_s3 + $0x8] sm:$0xff] %v165_v36 }

// kernel: _forward.53
= control target key start
LH: loop header
LB: loop body
LE: loop exit
PB: predicated region body
PF: predicated region fallthrough
CT: control target
= control target key end

     0   :  { %vm372_vm0 = vcmask 523264   ;;  %s934_s1 = inlined_call_operand.vmem [shape: bf16[576,64], index: 1, kind: input, shape index: {}]   ;;  %s935_s0 = inlined_call_operand.vmem [shape: bf16[32,576], index: 0, kind: input, shape index: {}]   ;;  %s936_s2 = inlined_call_operand.vmem [shape: f32[1,64], index: 2, kind: input, shape index: {}]   ;;  %s937_s3 = inlined_call_operand.vmem [shape: f32[32,64], index: 3, kind: output, shape index: {}]  }
   0x1   :  { %v689_v0 = vld [vmem:[%s934_s1 + $0x40] sm:$0xff]   ;;  %v693_v4 = vld [vmem:[%s934_s1 + $0x48] sm:$0xff]   ;;  %v697_v8 = vld [vmem:[%s934_s1 + $0x50] sm:$0xff]  }
   0x2   :  { %v690_v1 = vld [vmem:[%s934_s1] sm:$0xff]   ;;  %615 = vmatprep.subr.bf16.mxu0 %v689_v0  ;;  %v694_v5 = vld [vmem:[%s934_s1 + $0x8] sm:$0xff]   ;;  %v698_v9 = vld [vmem:[%s934_s1 + $0x10] sm:$0xff]  }
   0x3   :  { %v691_v2 = vld [vmem:[%s934_s1 + $0xc0] sm:$0xff]   ;;  %616 = vmatpush3.bf16.msra.mxu0 %v690_v1  ;;  %v695_v6 = vld [vmem:[%s934_s1 + $0xc8] sm:$0xff]   ;;  %v699_v10 = vld [vmem:[%s934_s1 + $0xd0] sm:$0xff]  }
   0x4   :  { %v692_v3 = vld [vmem:[%s934_s1 + $0x80] sm:$0xff]   ;;  %643 = vmatprep.subr.bf16.mxu1 %v691_v2  ;;  %617 = vmatprep.subr.bf16.mxu0 %v693_v4  ;;  %v696_v7 = vld [vmem:[%s934_s1 + $0x88] sm:$0xff]   ;;  %v700_v11 = vld [vmem:[%s934_s1 + $0x90] sm:$0xff]  }
   0x5   :  { %644 = vmatpush3.bf16.msra.mxu1 %v692_v3  ;;  %v701_v12 = vld [vmem:[%s934_s1 + $0x58] sm:$0xff]   ;;  %v705_v16 = vld [vmem:[%s934_s1 + $0x60] sm:$0xff]   ;;  %v709_v20 = vld [vmem:[%s934_s1 + $0x68] sm:$0xff]  }
   0x6   :  { %645 = vmatprep.subr.bf16.mxu1 %v695_v6  ;;  %v702_v13 = vld [vmem:[%s934_s1 + $0x18] sm:$0xff]   ;;  %v706_v17 = vld [vmem:[%s934_s1 + $0x20] sm:$0xff]   ;;  %v710_v21 = vld [vmem:[%s934_s1 + $0x28] sm:$0xff]  }
   0x7   :  { %618 = vmatpush3.bf16.msra.mxu0 %v694_v5  ;;  %v703_v14 = vld [vmem:[%s934_s1 + $0xd8] sm:$0xff]   ;;  %v707_v18 = vld [vmem:[%s934_s1 + $0xe0] sm:$0xff]   ;;  %v711_v22 = vld [vmem:[%s934_s1 + $0xe8] sm:$0xff]  }
   0x8   :  { %619 = vmatprep.subr.bf16.mxu0 %v697_v8  ;;  %v704_v15 = vld [vmem:[%s934_s1 + $0x98] sm:$0xff]   ;;  %v708_v19 = vld [vmem:[%s934_s1 + $0xa0] sm:$0xff]   ;;  %v712_v23 = vld [vmem:[%s934_s1 + $0xa8] sm:$0xff]  }
   0x9   :  { %646 = vmatpush3.bf16.msra.mxu1 %v696_v7  ;;  %v713_v24 = vld [vmem:[%s934_s1 + $0x70] sm:$0xff]   ;;  %v717_v28 = vld [vmem:[%s934_s1 + $0x78] sm:$0xff]   ;;  %v724_v34 = vld [vmem:[%s934_s1 + $0x100] sm:$0xff]  }
   0xa   :  { %647 = vmatprep.subr.bf16.mxu1 %v699_v10  ;;  %v714_v25 = vld [vmem:[%s934_s1 + $0x30] sm:$0xff]   ;;  %v718_v29 = vld [vmem:[%s934_s1 + $0x38] sm:$0xff]   ;;  %v727_v36 = vld [vmem:[%s935_s0 + $0xc] ss:$20 sps:$4 sm:$0xff]  }
   0xb   :  { %620 = vmatpush3.bf16.msra.mxu0 %v698_v9  ;;  %v715_v26 = vld [vmem:[%s934_s1 + $0xf0] sm:$0xff]   ;;  %v719_v30 = vld [vmem:[%s934_s1 + $0xf8] sm:$0xff]   ;;  %v728_v37 = vld [vmem:[%s934_s1 + $0x108] sm:$0xff]   ;;  %460 = vmatprep.mubr.bf16.mxu1 %v727_v36 }
   0xc   :  { %621 = vmatprep.subr.bf16.mxu0 %v701_v12  ;;  %v716_v27 = vld [vmem:[%s934_s1 + $0xb0] sm:$0xff]   ;;  %v722_v32 = vld [vmem:[%s935_s0 + $0x4] ss:$20 sps:$4 sm:$0xff]   ;;  %v725_v35 = vld [vmem:[%s935_s0 + $0x8] ss:$20 sps:$4 sm:$0xff]  }
   0xd   :  { %648 = vmatpush3.bf16.msra.mxu1 %v700_v11  ;;  %v720_v31 = vld [vmem:[%s935_s0] ss:$20 sps:$4 sm:$0xff]   ;;  %v723_v33 = vld [vmem:[%s934_s1 + $0xb8] sm:$0xff]   ;;  %411 = vmatprep.mubr.bf16.mxu0 %v722_v32  ;;  %v735_v42 = vld [vmem:[%s935_s0 + $0x30] ss:$20 sps:$4 sm:$0xff]  }
   0xe   :  { %649 = vmatprep.subr.bf16.mxu1 %v703_v14  ;;  %v729_v38 = vld [vmem:[%s935_s0 + $0x2c] ss:$20 sps:$4 sm:$0xff]   ;;  %v731_v39 = vld [vmem:[%s935_s0 + $0x28] ss:$20 sps:$4 sm:$0xff]   ;;  %v732_v40 = vld [vmem:[%s934_s1 + $0x110] sm:$0xff]  }
   0xf   :  { %622 = vmatpush3.bf16.msra.mxu0 %v702_v13  ;;  %v733_v41 = vld [vmem:[%s935_s0 + $0x34] ss:$20 sps:$4 sm:$0xff]   ;;  %v736_v43 = vld [vmem:[%s934_s1 + $0x118] sm:$0xff]   ;;  %v737_v44 = vld [vmem:[%s935_s0 + $0x10] ss:$20 sps:$4 sm:$0xff]  }
  0x10   :  { %623 = vmatprep.subr.bf16.mxu0 %v705_v16  ;;  %v738_v45 = vld [vmem:[%s935_s0 + $0x38] ss:$20 sps:$4 sm:$0xff]   ;;  %v562_v47 = vld [vmem:[%s936_s2] ss:$0 sm:$0xff] }
  0x11   :  { %650 = vmatpush3.bf16.msra.mxu1 %v704_v15 }
  0x12   :  { %651 = vmatprep.subr.bf16.mxu1 %v707_v18 }
  0x13   :  { %624 = vmatpush3.bf16.msra.mxu0 %v706_v17 }
  0x14   :  { %625 = vmatprep.subr.bf16.mxu0 %v709_v20 }
  0x15   :  { %652 = vmatpush3.bf16.msra.mxu1 %v708_v19 }
  0x16   :  { %653 = vmatprep.subr.bf16.mxu1 %v711_v22 }
  0x17   :  { %626 = vmatpush3.bf16.msra.mxu0 %v710_v21 }
  0x18   :  { %627 = vmatprep.subr.bf16.mxu0 %v713_v24 }
  0x19   :  { %654 = vmatpush3.bf16.msra.mxu1 %v712_v23 }
  0x1a   :  { %655 = vmatprep.subr.bf16.mxu1 %v715_v26 }
  0x1b   :  { %628 = vmatpush3.bf16.msra.mxu0 %v714_v25 }
  0x1c   :  { %629 = vmatprep.subr.bf16.mxu0 %v717_v28 }
  0x1d   :  { %656 = vmatpush3.bf16.msra.mxu1 %v716_v27 }
  0x1e   :  { %657 = vmatprep.subr.bf16.mxu1 %v719_v30 }
  0x1f   :  { %630 = vmatpush3.bf16.msra.mxu0 %v718_v29 }
  0x20   :  { %677 = vmatprep.subr.bf16.mxu0 %v724_v34 }
  0x21   :  { %658 = vmatpush3.bf16.msra.mxu1 %v723_v33 }
  0x22   :  { %412 = vmatmul.mubr.bf16.vlgmr.msra.gmra.mrb[0].mxu0 %v720_v31 }
  0x23   :  { %678 = vmatpush3.bf16.msra.mxu0 %v724_v34  ;;  %419 = vmatprep.mubr.bf16.mxu0 %v729_v38 }
  0x24   :  { %461 = vmatmul.mubr.bf16.vlgmr.msra.gmra.mrb[0].mxu1 %v725_v35  ;;  %679 = vmatprep.subr.bf16.mxu0 %v728_v37 }
  0x25   :  { %468 = vmatprep.mubr.bf16.mxu1 %v733_v41 }
  0x27   :  { %680 = vmatpush3.bf16.msra.mxu0 %v728_v37 }
  0x28   :  { %681 = vmatprep.subr.bf16.mxu0 %v732_v40 }
  0x2a   :  { %420 = vmatmul.mubr.bf16.gmra.mrb[4].mxu0 %v731_v39 }
  0x2b   :  { %685 = vmatprep.mubr.msk.bf16.mxu0 %vm372_vm0, %v737_v44  ;;  %682 = vmatpush3.bf16.msra.mxu0 %v732_v40 }
  0x2c   :  { %469 = vmatmul.mubr.bf16.gmra.mrb[4].mxu1 %v735_v42  ;;  %683 = vmatprep.subr.bf16.mxu0 %v736_v43 }
  0x2f   :  { %684 = vmatpush3.bf16.msra.mxu0 %v736_v43 }
  0x32   :  { %686 = vmatmul.mubr.msk.bf16.vlgmr.msra.gmra.mrb[8].mxu0 %vm372_vm0, %v738_v45 }
  0xf5   :  { %v631_v46 = vpop.f32.mrb[0].mxu0 }
  0xf6   :  { %v632_v48 = vpop.f32.mrb[1].mxu0 }
  0xf7   :  { %v633_v49 = vadd.f32 %v632_v48, %v631_v46  ;;  %v634_v50 = vpop.f32.mrb[2].mxu0  ;;  %v659_v51 = vpop.f32.mrb[0].mxu1 }
  0xf8   :  { %v635_v52 = vpop.f32.mrb[3].mxu0  ;;  %v660_v55 = vpop.f32.mrb[1].mxu1 }
  0xf9   :  { %v414_v53 = vadd.f32 %v633_v49, %v562_v47  ;;  %v636_v54 = vadd.f32 %v635_v52, %v634_v50  ;;  %v661_v56 = vadd.f32 %v660_v55, %v659_v51  ;;  %v662_v57 = vpop.f32.mrb[2].mxu1 }
  0xfa   :  { %v663_v59 = vpop.f32.mrb[3].mxu1 }
  0xfb   :  { %v417_v58 = vadd.f32 %v636_v54, %v562_v47  ;;  %v664_v60 = vadd.f32 %v663_v59, %v662_v57  ;;  %v463_v61 = vadd.f32 %v661_v56, %v414_v53 }
  0xfd   :  { %v637_v62 = vpop.f32.mrb[4].mxu0  ;;  %v466_v0 = vadd.f32 %v664_v60, %v417_v58 }
  0xfe   :  { %v638_v63 = vpop.f32.mrb[5].mxu0 }
  0xff   :  { %v639_v1 = vadd.f32 %v638_v63, %v637_v62  ;;  %v640_v2 = vpop.f32.mrb[6].mxu0  ;;  %v665_v3 = vpop.f32.mrb[4].mxu1 }
 0x100   :  { %v641_v4 = vpop.f32.mrb[7].mxu0  ;;  %v666_v7 = vpop.f32.mrb[5].mxu1 }
 0x101   :  { %v422_v5 = vadd.f32 %v639_v1, %v562_v47  ;;  %v642_v6 = vadd.f32 %v641_v4, %v640_v2  ;;  %v667_v8 = vadd.f32 %v666_v7, %v665_v3  ;;  %v668_v9 = vpop.f32.mrb[6].mxu1 }
 0x102   :  { %v669_v11 = vpop.f32.mrb[7].mxu1 }
 0x103   :  { %v425_v10 = vadd.f32 %v642_v6, %v562_v47  ;;  %v670_v12 = vadd.f32 %v669_v11, %v668_v9  ;;  %v471_v13 = vadd.f32 %v667_v8, %v422_v5 }
 0x105   :  { %v687_v14 = vpop.f32.mrb[8].mxu0  ;;  %v474_v15 = vadd.f32 %v670_v12, %v425_v10 }
 0x106   :  { %v520_v16 = vadd.f32 %v687_v14, %v471_v13  ;;  %v511_v17 = vpop.f32.mrb[9].mxu0 }
 0x107   :  { %v512_v18 = vadd.f32 %v511_v17, %v463_v61  ;;  %v688_v19 = vpop.f32.mrb[10].mxu0 }
 0x108   :  { %v613_v20 = vmul.f32 -1.442695, %v520_v16  ;;  %v523_v21 = vadd.f32 %v688_v19, %v474_v15  ;;  %v514_v22 = vpop.f32.mrb[11].mxu0 }
 0x109   :  { %v611_v23 = vmul.f32 -1.442695, %v512_v18  ;;  %v515_v24 = vadd.f32 %v514_v22, %v466_v0 }
 0x10a   :  { %739 = vpow2.f32 %v613_v20  ;;  %v614_v25 = vmul.f32 -1.442695, %v523_v21 }
 0x10b   :  { %741 = vpow2.f32 %v611_v23  ;;  %v612_v26 = vmul.f32 -1.442695, %v515_v24 }
 0x10c   :  { %743 = vpow2.f32 %v614_v25 }
 0x10d   :  { %745 = vpow2.f32 %v612_v26 }
 0x114   :  { %v740_v27 = vpop.eup %739 }
 0x115   :  { %v742_v28 = vpop.eup %741  ;;  %v540_v29 = vadd.f32 1.0, %v740_v27 }
 0x116   :  { %v744_v30 = vpop.eup %743  ;;  %v538_v31 = vadd.f32 1.0, %v742_v28 }
 0x117   :  { %v746_v32 = vpop.eup %745  ;;  %747 = vrcp.f32 %v540_v29  ;;  %v541_v33 = vadd.f32 1.0, %v744_v30 }
 0x118   :  { %749 = vrcp.f32 %v538_v31  ;;  %v539_v34 = vadd.f32 1.0, %v746_v32 }
 0x119   :  { %751 = vrcp.f32 %v541_v33 }
 0x11a   :  { %753 = vrcp.f32 %v539_v34 }
 0x121   :  { %v748_v35 = vpop.eup %747 }
 0x122   :  { %v750_v36 = vpop.eup %749  ;;  %v552_v37 = vmul.f32 %v748_v35, %v520_v16 }
 0x123   :  { %v752_v38 = vpop.eup %751  ;;  %v550_v39 = vmul.f32 %v750_v36, %v512_v18 }
 0x124   :  { %v754_v40 = vpop.eup %753  ;;  %556 = vst.msk [vmem:[%s937_s3 + $0x10] sm:$0xff] %vm372_vm0, %v552_v37  ;;  %v553_v41 = vmul.f32 %v752_v38, %v523_v21 }
 0x125   :  { %554 = vst.msk [vmem:[%s937_s3] sm:$0xff] %vm372_vm0, %v550_v39  ;;  %v551_v42 = vmul.f32 %v754_v40, %v515_v24 }
 0x126   :  { %557 = vst.msk [vmem:[%s937_s3 + $0x18] sm:$0xff] %vm372_vm0, %v553_v41 }
 0x127   :  { %555 = vst.msk [vmem:[%s937_s3 + $0x8] sm:$0xff] %vm372_vm0, %v551_v42 }

// kernel: _forward.59
= control target key start
LH: loop header
LB: loop body
LE: loop exit
PB: predicated region body
PF: predicated region fallthrough
CT: control target
= control target key end

     0   :  { %v192_v0 = vmov 0.0   ;;  %vm193_vm0 = vmmov 0   ;;  %s247_s1 = inlined_call_operand.vmem [shape: bf16[128,128], index: 1, kind: input, shape index: {}]   ;;  %s248_s0 = inlined_call_operand.vmem [shape: bf16[8,128], index: 0, kind: input, shape index: {}]   ;;  %s249_s2 = inlined_call_operand.vmem [shape: f32[1,128], index: 2, kind: input, shape index: {}]   ;;  %s250_s3 = inlined_call_operand.vmem [shape: f32[8,128], index: 3, kind: output, shape index: {}]  }
   0x1   :  { %158 = vmatprep.subr.bf16.mxu0 %v192_v0  ;;  %v180_v1 = vld [vmem:[%s247_s1] sm:$0xff]   ;;  %174 = vmatprep.mubr.msk.bf16.mxu0 %vm193_vm0, %v192_v0  ;;  %v181_v2 = vld [vmem:[%s247_s1 + $0x8] sm:$0xff]   ;;  %v182_v3 = vld [vmem:[%s247_s1 + $0x10] sm:$0xff]  }
   0x2   :  { %159 = vmatpush3.bf16.msra.mxu0 %v180_v1  ;;  %v183_v4 = vld [vmem:[%s247_s1 + $0x18] sm:$0xff]   ;;  %v184_v5 = vld [vmem:[%s247_s1 + $0x20] sm:$0xff]   ;;  %v185_v6 = vld [vmem:[%s247_s1 + $0x28] sm:$0xff]  }
   0x3   :  { %160 = vmatprep.subr.bf16.mxu0 %v192_v0  ;;  %v186_v7 = vld [vmem:[%s247_s1 + $0x30] sm:$0xff]   ;;  %v187_v8 = vld [vmem:[%s247_s1 + $0x38] sm:$0xff]   ;;  %v15_v9 = vld [vmem:[%s248_s0] sm:$0xf] }
   0x4   :  { %v139_v10 = vld [vmem:[%s249_s2] ss:$0 sm:$0xff] }
   0x6   :  { %161 = vmatpush3.bf16.msra.mxu0 %v181_v2 }
   0x7   :  { %162 = vmatprep.subr.bf16.mxu0 %v192_v0 }
   0xa   :  { %163 = vmatpush3.bf16.msra.mxu0 %v182_v3 }
   0xb   :  { %164 = vmatprep.subr.bf16.mxu0 %v192_v0 }
   0xe   :  { %165 = vmatpush3.bf16.msra.mxu0 %v183_v4 }
   0xf   :  { %166 = vmatprep.subr.bf16.mxu0 %v192_v0 }
  0x12   :  { %167 = vmatpush3.bf16.msra.mxu0 %v184_v5 }
  0x13   :  { %168 = vmatprep.subr.bf16.mxu0 %v192_v0 }
  0x16   :  { %169 = vmatpush3.bf16.msra.mxu0 %v185_v6 }
  0x17   :  { %170 = vmatprep.subr.bf16.mxu0 %v192_v0 }
  0x1a   :  { %171 = vmatpush3.bf16.msra.mxu0 %v186_v7 }
  0x1b   :  { %172 = vmatprep.subr.bf16.mxu0 %v192_v0 }
  0x1e   :  { %173 = vmatpush3.bf16.msra.mxu0 %v187_v8 }
  0x21   :  { %175 = vmatmul.mubr.bf16.vlgmr.msra.gmra.mrb[0].mxu0 %v15_v9 }
  0xf4   :  { %v121_v11 = vpop.f32.mrb[0].mxu0 }
  0xf5   :  { %v122_v12 = vadd.f32 %v139_v10, %v121_v11  ;;  %v176_v13 = vpop.f32.mrb[1].mxu0 }
  0xf6   :  { %v124_v14 = vpop.f32.mrb[2].mxu0 }
  0xf7   :  { %v148_v15 = vmul.f32 -1.442695, %v122_v12  ;;  %v177_v16 = vpop.f32.mrb[3].mxu0 }
  0xf9   :  { %188 = vpow2.f32 %v148_v15 }
 0x103   :  { %v189_v17 = vpop.eup %188 }
 0x104   :  { %v130_v18 = vadd.f32 1.0, %v189_v17 }
 0x106   :  { %190 = vrcp.f32 %v130_v18 }
 0x110   :  { %v191_v19 = vpop.eup %190 }
 0x111   :  { %v133_v20 = vmul.f32 %v191_v19, %v122_v12 }
 0x113   :  { %134 = vst [vmem:[%s250_s3] sm:$0xff] %v133_v20 }

// kernel: _forward.61
= control target key start
LH: loop header
LB: loop body
LE: loop exit
PB: predicated region body
PF: predicated region fallthrough
CT: control target
= control target key end

     0   :  { %v358_v1 = vmov 0.0   ;;  %vm359_vm0 = vmmov 0   ;;  %vm178_vm1 = vcmask 261120   ;;  %s448_s1 = inlined_call_operand.vmem [shape: bf16[288,32], index: 1, kind: input, shape index: {}]   ;;  %s449_s0 = inlined_call_operand.vmem [shape: bf16[8,288], index: 0, kind: input, shape index: {}]   ;;  %s450_s2 = inlined_call_operand.vmem [shape: f32[1,32], index: 2, kind: input, shape index: {}]   ;;  %s451_s3 = inlined_call_operand.vmem [shape: f32[8,32], index: 3, kind: output, shape index: {}]  }
   0x1   :  { %v333_v0 = vld [vmem:[%s448_s1 + $0x40] sm:$0xff]   ;;  %323 = vmatprep.subr.bf16.mxu1 %v358_v1  ;;  %327 = vmatprep.mubr.msk.bf16.mxu1 %vm359_vm0, %v358_v1  ;;  %v335_v3 = vld [vmem:[%s448_s1 + $0x48] sm:$0xff]   ;;  %v337_v5 = vld [vmem:[%s448_s1 + $0x50] sm:$0xff]  }
   0x2   :  { %v334_v2 = vld [vmem:[%s448_s1] sm:$0xff]   ;;  %298 = vmatprep.subr.bf16.mxu0 %v333_v0  ;;  %v336_v4 = vld [vmem:[%s448_s1 + $0x8] sm:$0xff]   ;;  %v338_v6 = vld [vmem:[%s448_s1 + $0x10] sm:$0xff]  }
   0x3   :  { %299 = vmatpush3.bf16.msra.mxu0 %v334_v2  ;;  %v339_v7 = vld [vmem:[%s448_s1 + $0x58] sm:$0xff]   ;;  %v341_v9 = vld [vmem:[%s448_s1 + $0x60] sm:$0xff]   ;;  %v343_v12 = vld [vmem:[%s448_s1 + $0x68] sm:$0xff]  }
   0x4   :  { %300 = vmatprep.subr.bf16.mxu0 %v335_v3  ;;  %v340_v8 = vld [vmem:[%s448_s1 + $0x18] sm:$0xff]   ;;  %v347_v10 = vld [vmem:[%s448_s1 + $0x80] sm:$0xff]   ;;  %v353_v15 = vld [vmem:[%s448_s1 + $0x88] sm:$0xff]  }
   0x5   :  { %v342_v11 = vld [vmem:[%s448_s1 + $0x20] sm:$0xff]   ;;  %324 = vmatpush3.bf16.msra.mxu1 %v347_v10  ;;  %v344_v16 = vld [vmem:[%s448_s1 + $0x28] sm:$0xff]   ;;  %v345_v17 = vld [vmem:[%s448_s1 + $0x70] sm:$0xff]  }
   0x6   :  { %325 = vmatprep.subr.bf16.mxu1 %v358_v1  ;;  %v15_v13 = vld [vmem:[%s449_s0] sm:$0xff]  ;;  %v352_v18 = vld [vmem:[%s449_s0 + $0x8] ss:$0 sps:$4 sm:$0xff]   ;;  %v346_v19 = vld [vmem:[%s448_s1 + $0x30] sm:$0xff]  }
   0x7   :  { %301 = vmatpush3.bf16.msra.mxu0 %v336_v4  ;;  %v276_v14 = vcombine.high %v15_v13, %v15_v13  ;;  %v348_v20 = vld [vmem:[%s448_s1 + $0x78] sm:$0xff]   ;;  %v275_v22 = vcombine.low %v15_v13, %v15_v13  ;;  %v274_v29 = vld [vmem:[%s450_s2] ss:$0 sm:$0xff] }
   0x8   :  { %302 = vmatprep.subr.bf16.mxu0 %v337_v5  ;;  %v349_v21 = vld [vmem:[%s448_s1 + $0x38] sm:$0xff]  }
   0x9   :  { %214 = vmatprep.mubr.bf16.mxu0 %v276_v14  ;;  %326 = vmatpush3.bf16.msra.mxu1 %v353_v15 }
   0xb   :  { %303 = vmatpush3.bf16.msra.mxu0 %v338_v6 }
   0xc   :  { %304 = vmatprep.subr.bf16.mxu0 %v339_v7  ;;  %328 = vmatmul.mubr.msk.bf16.vlgmr.msra.gmra.mrb[0].mxu1 %vm178_vm1, %v352_v18 }
   0xf   :  { %305 = vmatpush3.bf16.msra.mxu0 %v340_v8 }
  0x10   :  { %306 = vmatprep.subr.bf16.mxu0 %v341_v9 }
  0x13   :  { %307 = vmatpush3.bf16.msra.mxu0 %v342_v11 }
  0x14   :  { %308 = vmatprep.subr.bf16.mxu0 %v343_v12 }
  0x17   :  { %309 = vmatpush3.bf16.msra.mxu0 %v344_v16 }
  0x18   :  { %310 = vmatprep.subr.bf16.mxu0 %v345_v17 }
  0x1b   :  { %311 = vmatpush3.bf16.msra.mxu0 %v346_v19 }
  0x1c   :  { %312 = vmatprep.subr.bf16.mxu0 %v348_v20 }
  0x1f   :  { %313 = vmatpush3.bf16.msra.mxu0 %v349_v21 }
  0x22   :  { %215 = vmatmul.mubr.bf16.vlgmr.msra.gmra.mrb[0].mxu0 %v275_v22 }
  0xdf   :  { %v256_v23 = vpop.f32.mrb[0].mxu1 }
  0xe0   :  { %v329_v24 = vpop.f32.mrb[1].mxu1 }
  0xe1   :  { %v259_v25 = vpop.f32.mrb[2].mxu1 }
  0xe2   :  { %v330_v26 = vpop.f32.mrb[3].mxu1 }
  0xf5   :  { %v314_v27 = vpop.f32.mrb[0].mxu0 }
  0xf6   :  { %v315_v28 = vpop.f32.mrb[1].mxu0 }
  0xf7   :  { %v316_v30 = vadd.f32 %v315_v28, %v314_v27  ;;  %v317_v31 = vpop.f32.mrb[2].mxu0 }
  0xf8   :  { %v318_v32 = vpop.f32.mrb[3].mxu0 }
  0xf9   :  { %v217_v33 = vadd.f32 %v316_v30, %v274_v29 }
  0xfb   :  { %v257_v34 = vadd.f32 %v256_v23, %v217_v33 }
  0xfd   :  { %v297_v35 = vmul.f32 -1.442695, %v257_v34 }
  0xff   :  { %354 = vpow2.f32 %v297_v35 }
 0x109   :  { %v355_v36 = vpop.eup %354 }
 0x10a   :  { %v265_v37 = vadd.f32 1.0, %v355_v36 }
 0x10c   :  { %356 = vrcp.f32 %v265_v37 }
 0x116   :  { %v357_v38 = vpop.eup %356 }
 0x117   :  { %v268_v39 = vmul.f32 %v357_v38, %v257_v34 }
 0x119   :  { %269 = vst.msk [vmem:[%s451_s3] sm:$0xff] %vm178_vm1, %v268_v39 }

// kernel: _forward.58
= control target key start
LH: loop header
LB: loop body
LE: loop exit
PB: predicated region body
PF: predicated region fallthrough
CT: control target
= control target key end

     0   :  { %vm1135_vm0 = vmmov 0   ;;  %s1393_s1 = inlined_call_operand.vmem [shape: bf16[1152,128], index: 1, kind: input, shape index: {}]   ;;  %s1394_s0 = inlined_call_operand.vmem [shape: bf16[8,1152], index: 0, kind: input, shape index: {}]   ;;  %s1395_s2 = inlined_call_operand.vmem [shape: f32[1,128], index: 2, kind: input, shape index: {}]   ;;  %s1396_s3 = inlined_call_operand.vmem [shape: f32[8,128], index: 3, kind: output, shape index: {}]  }
   0x1   :  { %v1049_v0 = vld [vmem:[%s1393_s1 + $0x40] sm:$0xff]   ;;  %v1053_v4 = vld [vmem:[%s1393_s1 + $0x48] sm:$0xff]   ;;  %v1057_v8 = vld [vmem:[%s1393_s1 + $0x50] sm:$0xff]  }
   0x2   :  { %v1050_v1 = vld [vmem:[%s1393_s1] sm:$0xff]   ;;  %930 = vmatprep.subr.bf16.mxu0 %v1049_v0  ;;  %v1054_v5 = vld [vmem:[%s1393_s1 + $0x8] sm:$0xff]   ;;  %v1058_v9 = vld [vmem:[%s1393_s1 + $0x10] sm:$0xff]  }
   0x3   :  { %v1051_v2 = vld [vmem:[%s1393_s1 + $0xc0] sm:$0xff]   ;;  %931 = vmatpush3.bf16.msra.mxu0 %v1050_v1  ;;  %v1055_v6 = vld [vmem:[%s1393_s1 + $0xc8] sm:$0xff]   ;;  %v1059_v10 = vld [vmem:[%s1393_s1 + $0xd0] sm:$0xff]  }
   0x4   :  { %v1052_v3 = vld [vmem:[%s1393_s1 + $0x80] sm:$0xff]   ;;  %952 = vmatprep.subr.bf16.mxu1 %v1051_v2  ;;  %932 = vmatprep.subr.bf16.mxu0 %v1053_v4  ;;  %v1056_v7 = vld [vmem:[%s1393_s1 + $0x88] sm:$0xff]   ;;  %v1060_v11 = vld [vmem:[%s1393_s1 + $0x90] sm:$0xff]  }
   0x5   :  { %953 = vmatpush3.bf16.msra.mxu1 %v1052_v3  ;;  %v1061_v12 = vld [vmem:[%s1393_s1 + $0x58] sm:$0xff]   ;;  %v1065_v16 = vld [vmem:[%s1393_s1 + $0x60] sm:$0xff]   ;;  %v1069_v20 = vld [vmem:[%s1393_s1 + $0x68] sm:$0xff]  }
   0x6   :  { %954 = vmatprep.subr.bf16.mxu1 %v1055_v6  ;;  %v1062_v13 = vld [vmem:[%s1393_s1 + $0x18] sm:$0xff]   ;;  %v1066_v17 = vld [vmem:[%s1393_s1 + $0x20] sm:$0xff]   ;;  %v1070_v21 = vld [vmem:[%s1393_s1 + $0x28] sm:$0xff]  }
   0x7   :  { %933 = vmatpush3.bf16.msra.mxu0 %v1054_v5  ;;  %v1063_v14 = vld [vmem:[%s1393_s1 + $0xd8] sm:$0xff]   ;;  %v1067_v18 = vld [vmem:[%s1393_s1 + $0xe0] sm:$0xff]   ;;  %v1071_v22 = vld [vmem:[%s1393_s1 + $0xe8] sm:$0xff]  }
   0x8   :  { %934 = vmatprep.subr.bf16.mxu0 %v1057_v8  ;;  %v1064_v15 = vld [vmem:[%s1393_s1 + $0x98] sm:$0xff]   ;;  %v1068_v19 = vld [vmem:[%s1393_s1 + $0xa0] sm:$0xff]   ;;  %v1072_v23 = vld [vmem:[%s1393_s1 + $0xa8] sm:$0xff]  }
   0x9   :  { %955 = vmatpush3.bf16.msra.mxu1 %v1056_v7  ;;  %v1073_v24 = vld [vmem:[%s1393_s1 + $0x70] sm:$0xff]   ;;  %v1077_v28 = vld [vmem:[%s1393_s1 + $0x78] sm:$0xff]   ;;  %v15_v31 = vld [vmem:[%s1394_s0] sm:$0xff] }
   0xa   :  { %956 = vmatprep.subr.bf16.mxu1 %v1059_v10  ;;  %v1074_v25 = vld [vmem:[%s1393_s1 + $0x30] sm:$0xff]   ;;  %v1078_v29 = vld [vmem:[%s1393_s1 + $0x38] sm:$0xff]   ;;  %v848_v32 = vcombine.low %v15_v31, %v15_v31  ;;  %v849_v33 = vcombine.high %v15_v31, %v15_v31  ;;  %v1083_v35 = vld [vmem:[%s1393_s1 + $0x140] sm:$0xff]  }
   0xb   :  { %935 = vmatpush3.bf16.msra.mxu0 %v1058_v9  ;;  %v1075_v26 = vld [vmem:[%s1393_s1 + $0xf0] sm:$0xff]   ;;  %v1079_v30 = vld [vmem:[%s1393_s1 + $0xf8] sm:$0xff]   ;;  %v16_v36 = vld [vmem:[%s1394_s0 + $0x8] sm:$0xff]  ;;  %v1134_v9 = vmov 0.0  }
   0xc   :  { %936 = vmatprep.subr.bf16.mxu0 %v1061_v12  ;;  %v1076_v27 = vld [vmem:[%s1393_s1 + $0xb0] sm:$0xff]   ;;  %v1082_v34 = vld [vmem:[%s1393_s1 + $0xb8] sm:$0xff]   ;;  %667 = vmatprep.mubr.bf16.mxu0 %v849_v33  ;;  %v850_v37 = vcombine.low %v16_v36, %v16_v36  ;;  %v851_v38 = vcombine.high %v16_v36, %v16_v36  ;;  %v1086_v39 = vld [vmem:[%s1393_s1 + $0x100] sm:$0xff]  }
   0xd   :  { %957 = vmatpush3.bf16.msra.mxu1 %v1060_v11  ;;  %v1087_v40 = vld [vmem:[%s1393_s1 + $0x1c0] sm:$0xff]   ;;  %v1089_v42 = vld [vmem:[%s1393_s1 + $0x148] sm:$0xff]   ;;  %v1093_v46 = vld [vmem:[%s1393_s1 + $0x150] sm:$0xff]  }
   0xe   :  { %958 = vmatprep.subr.bf16.mxu1 %v1063_v14  ;;  %707 = vmatprep.mubr.bf16.mxu1 %v851_v38  ;;  %v1088_v41 = vld [vmem:[%s1393_s1 + $0x180] sm:$0xff]   ;;  %v1090_v43 = vld [vmem:[%s1393_s1 + $0x108] sm:$0xff]   ;;  %v1094_v47 = vld [vmem:[%s1393_s1 + $0x110] sm:$0xff]  }
   0xf   :  { %937 = vmatpush3.bf16.msra.mxu0 %v1062_v13  ;;  %v1091_v44 = vld [vmem:[%s1393_s1 + $0x1c8] sm:$0xff]   ;;  %v1095_v48 = vld [vmem:[%s1393_s1 + $0x1d0] sm:$0xff]   ;;  %v1097_v50 = vld [vmem:[%s1393_s1 + $0x158] sm:$0xff]  }
  0x10   :  { %938 = vmatprep.subr.bf16.mxu0 %v1065_v16  ;;  %v1092_v45 = vld [vmem:[%s1393_s1 + $0x188] sm:$0xff]   ;;  %v1096_v49 = vld [vmem:[%s1393_s1 + $0x190] sm:$0xff]   ;;  %v1098_v51 = vld [vmem:[%s1393_s1 + $0x118] sm:$0xff]  }
  0x11   :  { %959 = vmatpush3.bf16.msra.mxu1 %v1064_v15  ;;  %v1099_v52 = vld [vmem:[%s1393_s1 + $0x1d8] sm:$0xff]   ;;  %v1101_v54 = vld [vmem:[%s1393_s1 + $0x160] sm:$0xff]   ;;  %v1105_v58 = vld [vmem:[%s1393_s1 + $0x168] sm:$0xff]  }
  0x12   :  { %960 = vmatprep.subr.bf16.mxu1 %v1067_v18  ;;  %v1100_v53 = vld [vmem:[%s1393_s1 + $0x198] sm:$0xff]   ;;  %v1102_v55 = vld [vmem:[%s1393_s1 + $0x120] sm:$0xff]   ;;  %v1106_v59 = vld [vmem:[%s1393_s1 + $0x128] sm:$0xff]  }
  0x13   :  { %939 = vmatpush3.bf16.msra.mxu0 %v1066_v17  ;;  %v1103_v56 = vld [vmem:[%s1393_s1 + $0x1e0] sm:$0xff]   ;;  %v1107_v60 = vld [vmem:[%s1393_s1 + $0x1e8] sm:$0xff]   ;;  %v1109_v62 = vld [vmem:[%s1393_s1 + $0x170] sm:$0xff]  }
  0x14   :  { %940 = vmatprep.subr.bf16.mxu0 %v1069_v20  ;;  %v1104_v57 = vld [vmem:[%s1393_s1 + $0x1a0] sm:$0xff]   ;;  %v1108_v61 = vld [vmem:[%s1393_s1 + $0x1a8] sm:$0xff]   ;;  %v1110_v63 = vld [vmem:[%s1393_s1 + $0x130] sm:$0xff]  }
  0x15   :  { %961 = vmatpush3.bf16.msra.mxu1 %v1068_v19  ;;  %v1111_v0 = vld [vmem:[%s1393_s1 + $0x1f0] sm:$0xff]   ;;  %v1113_v2 = vld [vmem:[%s1393_s1 + $0x178] sm:$0xff]   ;;  %v1121_v13 = vld [vmem:[%s1393_s1 + $0x200] sm:$0xff]  }
  0x16   :  { %962 = vmatprep.subr.bf16.mxu1 %v1071_v22  ;;  %v1112_v1 = vld [vmem:[%s1393_s1 + $0x1b0] sm:$0xff]   ;;  %v1114_v3 = vld [vmem:[%s1393_s1 + $0x138] sm:$0xff]   ;;  %v1122_v14 = vld [vmem:[%s1393_s1 + $0x208] sm:$0xff]  }
  0x17   :  { %941 = vmatpush3.bf16.msra.mxu0 %v1070_v21  ;;  %v1115_v4 = vld [vmem:[%s1393_s1 + $0x1f8] sm:$0xff]   ;;  %v17_v5 = vld [vmem:[%s1394_s0 + $0x10] sm:$0xff]  ;;  %v1125_v17 = vld [vmem:[%s1393_s1 + $0x220] sm:$0xff]  }
  0x18   :  { %942 = vmatprep.subr.bf16.mxu0 %v1073_v24  ;;  %v852_v6 = vcombine.low %v17_v5, %v17_v5  ;;  %v853_v7 = vcombine.high %v17_v5, %v17_v5  ;;  %v1118_v8 = vld [vmem:[%s1393_s1 + $0x1b8] sm:$0xff]   ;;  %v1123_v15 = vld [vmem:[%s1393_s1 + $0x210] sm:$0xff]   ;;  %v1126_v18 = vld [vmem:[%s1393_s1 + $0x228] sm:$0xff]  }
  0x19   :  { %963 = vmatpush3.bf16.msra.mxu1 %v1072_v23  ;;  %v18_v10 = vld [vmem:[%s1394_s0 + $0x18] sm:$0xff]  ;;  %v1127_v19 = vld [vmem:[%s1393_s1 + $0x230] sm:$0xff]   ;;  %v1129_v21 = vld [vmem:[%s1394_s0 + $0x20] ss:$0 sps:$4 sm:$0xff]  }
  0x1a   :  { %964 = vmatprep.subr.bf16.mxu1 %v1075_v26  ;;  %v854_v11 = vcombine.low %v18_v10, %v18_v10  ;;  %v855_v12 = vcombine.high %v18_v10, %v18_v10  ;;  %v1124_v16 = vld [vmem:[%s1393_s1 + $0x218] sm:$0xff]   ;;  %v847_v23 = vld [vmem:[%s1395_s2] ss:$0 sm:$0xff] }
  0x1b   :  { %943 = vmatpush3.bf16.msra.mxu0 %v1074_v25  ;;  %v1128_v20 = vld [vmem:[%s1393_s1 + $0x238] sm:$0xff]  }
  0x1c   :  { %944 = vmatprep.subr.bf16.mxu0 %v1077_v28 }
  0x1d   :  { %965 = vmatpush3.bf16.msra.mxu1 %v1076_v27 }
  0x1e   :  { %966 = vmatprep.subr.bf16.mxu1 %v1079_v30 }
  0x1f   :  { %945 = vmatpush3.bf16.msra.mxu0 %v1078_v29 }
  0x20   :  { %974 = vmatprep.subr.bf16.mxu0 %v1083_v35 }
  0x21   :  { %967 = vmatpush3.bf16.msra.mxu1 %v1082_v34 }
  0x22   :  { %668 = vmatmul.mubr.bf16.vlgmr.msra.gmra.mrb[0].mxu0 %v848_v32  ;;  %996 = vmatprep.subr.bf16.mxu1 %v1087_v40 }
  0x23   :  { %975 = vmatpush3.bf16.msra.mxu0 %v1086_v39  ;;  %747 = vmatprep.mubr.bf16.mxu0 %v853_v7 }
  0x24   :  { %708 = vmatmul.mubr.bf16.vlgmr.msra.gmra.mrb[0].mxu1 %v850_v37  ;;  %976 = vmatprep.subr.bf16.mxu0 %v1089_v42 }
  0x25   :  { %997 = vmatpush3.bf16.msra.mxu1 %v1088_v41  ;;  %787 = vmatprep.mubr.bf16.mxu1 %v855_v12 }
  0x26   :  { %998 = vmatprep.subr.bf16.mxu1 %v1091_v44 }
  0x27   :  { %977 = vmatpush3.bf16.msra.mxu0 %v1090_v43 }
  0x28   :  { %978 = vmatprep.subr.bf16.mxu0 %v1093_v46 }
  0x29   :  { %999 = vmatpush3.bf16.msra.mxu1 %v1092_v45 }
  0x2a   :  { %1000 = vmatprep.subr.bf16.mxu1 %v1095_v48 }
  0x2b   :  { %979 = vmatpush3.bf16.msra.mxu0 %v1094_v47 }
  0x2c   :  { %980 = vmatprep.subr.bf16.mxu0 %v1097_v50 }
  0x2d   :  { %1001 = vmatpush3.bf16.msra.mxu1 %v1096_v49 }
  0x2e   :  { %1002 = vmatprep.subr.bf16.mxu1 %v1099_v52 }
  0x2f   :  { %981 = vmatpush3.bf16.msra.mxu0 %v1098_v51 }
  0x30   :  { %982 = vmatprep.subr.bf16.mxu0 %v1101_v54 }
  0x31   :  { %1003 = vmatpush3.bf16.msra.mxu1 %v1100_v53 }
  0x32   :  { %1004 = vmatprep.subr.bf16.mxu1 %v1103_v56 }
  0x33   :  { %983 = vmatpush3.bf16.msra.mxu0 %v1102_v55 }
  0x34   :  { %984 = vmatprep.subr.bf16.mxu0 %v1105_v58 }
  0x35   :  { %1005 = vmatpush3.bf16.msra.mxu1 %v1104_v57 }
  0x36   :  { %1006 = vmatprep.subr.bf16.mxu1 %v1107_v60 }
  0x37   :  { %985 = vmatpush3.bf16.msra.mxu0 %v1106_v59 }
  0x38   :  { %986 = vmatprep.subr.bf16.mxu0 %v1109_v62 }
  0x39   :  { %1007 = vmatpush3.bf16.msra.mxu1 %v1108_v61 }
  0x3a   :  { %1008 = vmatprep.subr.bf16.mxu1 %v1111_v0 }
  0x3b   :  { %987 = vmatpush3.bf16.msra.mxu0 %v1110_v63 }
  0x3c   :  { %988 = vmatprep.subr.bf16.mxu0 %v1113_v2 }
  0x3d   :  { %1009 = vmatpush3.bf16.msra.mxu1 %v1112_v1 }
  0x3e   :  { %1010 = vmatprep.subr.bf16.mxu1 %v1115_v4 }
  0x3f   :  { %989 = vmatpush3.bf16.msra.mxu0 %v1114_v3 }
  0x40   :  { %1027 = vmatprep.subr.bf16.mxu0 %v1134_v9 }
  0x41   :  { %1011 = vmatpush3.bf16.msra.mxu1 %v1118_v8 }
  0x42   :  { %748 = vmatmul.mubr.bf16.vlgmr.msra.gmra.mrb[4].mxu0 %v852_v6 }
  0x43   :  { %1028 = vmatpush3.bf16.msra.mxu0 %v1121_v13  ;;  %1043 = vmatprep.mubr.msk.bf16.mxu0 %vm1135_vm0, %v1134_v9 }
  0x44   :  { %788 = vmatmul.mubr.bf16.vlgmr.msra.gmra.mrb[4].mxu1 %v854_v11  ;;  %1029 = vmatprep.subr.bf16.mxu0 %v1134_v9 }
  0x47   :  { %1030 = vmatpush3.bf16.msra.mxu0 %v1122_v14 }
  0x48   :  { %1031 = vmatprep.subr.bf16.mxu0 %v1134_v9 }
  0x4b   :  { %1032 = vmatpush3.bf16.msra.mxu0 %v1123_v15 }
  0x4c   :  { %1033 = vmatprep.subr.bf16.mxu0 %v1134_v9 }
  0x4f   :  { %1034 = vmatpush3.bf16.msra.mxu0 %v1124_v16 }
  0x50   :  { %1035 = vmatprep.subr.bf16.mxu0 %v1134_v9 }
  0x53   :  { %1036 = vmatpush3.bf16.msra.mxu0 %v1125_v17 }
  0x54   :  { %1037 = vmatprep.subr.bf16.mxu0 %v1134_v9 }
  0x57   :  { %1038 = vmatpush3.bf16.msra.mxu0 %v1126_v18 }
  0x58   :  { %1039 = vmatprep.subr.bf16.mxu0 %v1134_v9 }
  0x5b   :  { %1040 = vmatpush3.bf16.msra.mxu0 %v1127_v19 }
  0x5c   :  { %1041 = vmatprep.subr.bf16.mxu0 %v1134_v9 }
  0x5f   :  { %1042 = vmatpush3.bf16.msra.mxu0 %v1128_v20 }
  0x62   :  { %1044 = vmatmul.mubr.bf16.vlgmr.msra.gmra.mrb[8].mxu0 %v1129_v21 }
  0xf5   :  { %v946_v22 = vpop.f32.mrb[0].mxu0 }
  0xf6   :  { %v947_v24 = vpop.f32.mrb[1].mxu0 }
  0xf7   :  { %v948_v25 = vadd.f32 %v947_v24, %v946_v22  ;;  %v949_v26 = vpop.f32.mrb[2].mxu0  ;;  %v968_v27 = vpop.f32.mrb[0].mxu1 }
  0xf8   :  { %v950_v28 = vpop.f32.mrb[3].mxu0  ;;  %v969_v29 = vpop.f32.mrb[1].mxu1 }
  0xf9   :  { %v670_v30 = vadd.f32 %v948_v25, %v847_v23  ;;  %v970_v31 = vadd.f32 %v969_v29, %v968_v27  ;;  %v971_v32 = vpop.f32.mrb[2].mxu1 }
  0xfa   :  { %v972_v33 = vpop.f32.mrb[3].mxu1 }
  0xfb   :  { %v710_v34 = vadd.f32 %v970_v31, %v670_v30 }
 0x115   :  { %v990_v35 = vpop.f32.mrb[4].mxu0 }
 0x116   :  { %v991_v36 = vpop.f32.mrb[5].mxu0 }
 0x117   :  { %v992_v37 = vadd.f32 %v991_v36, %v990_v35  ;;  %v993_v38 = vpop.f32.mrb[6].mxu0  ;;  %v1012_v39 = vpop.f32.mrb[4].mxu1 }
 0x118   :  { %v994_v40 = vpop.f32.mrb[7].mxu0  ;;  %v1013_v41 = vpop.f32.mrb[5].mxu1 }
 0x119   :  { %v750_v42 = vadd.f32 %v992_v37, %v710_v34  ;;  %v1014_v43 = vadd.f32 %v1013_v41, %v1012_v39  ;;  %v1015_v44 = vpop.f32.mrb[6].mxu1 }
 0x11a   :  { %v1016_v45 = vpop.f32.mrb[7].mxu1 }
 0x11b   :  { %v790_v46 = vadd.f32 %v1014_v43, %v750_v42 }
 0x135   :  { %v829_v47 = vpop.f32.mrb[8].mxu0 }
 0x136   :  { %v830_v48 = vadd.f32 %v829_v47, %v790_v46  ;;  %v1045_v49 = vpop.f32.mrb[9].mxu0 }
 0x137   :  { %v832_v50 = vpop.f32.mrb[10].mxu0 }
 0x138   :  { %v929_v51 = vmul.f32 -1.442695, %v830_v48  ;;  %v1046_v52 = vpop.f32.mrb[11].mxu0 }
 0x13a   :  { %1130 = vpow2.f32 %v929_v51 }
 0x144   :  { %v1131_v53 = vpop.eup %1130 }
 0x145   :  { %v838_v54 = vadd.f32 1.0, %v1131_v53 }
 0x147   :  { %1132 = vrcp.f32 %v838_v54 }
 0x151   :  { %v1133_v55 = vpop.eup %1132 }
 0x152   :  { %v841_v56 = vmul.f32 %v1133_v55, %v830_v48 }
 0x154   :  { %842 = vst [vmem:[%s1396_s3] sm:$0xff] %v841_v56 }

// kernel: _forward.60
= control target key start
LH: loop header
LB: loop body
LE: loop exit
PB: predicated region body
PF: predicated region fallthrough
CT: control target
= control target key end

     0   :  { %v146_v0 = vmov 0.0   ;;  %vm147_vm0 = vmmov 0   ;;  %vm55_vm1 = vcmask 523264   ;;  %vm106_vm2 = vcmask 261120   ;;  %s189_s1 = inlined_call_operand.vmem [shape: bf16[64,32], index: 1, kind: input, shape index: {}]   ;;  %s190_s0 = inlined_call_operand.vmem [shape: bf16[8,64], index: 0, kind: input, shape index: {}]   ;;  %s191_s2 = inlined_call_operand.vmem [shape: f32[1,32], index: 2, kind: input, shape index: {}]   ;;  %s192_s3 = inlined_call_operand.vmem [shape: f32[8,32], index: 3, kind: output, shape index: {}]  }
   0x1   :  { %124 = vmatprep.subr.bf16.mxu0 %v146_v0  ;;  %v138_v1 = vld [vmem:[%s189_s1] sm:$0xff]   ;;  %132 = vmatprep.mubr.msk.bf16.mxu0 %vm147_vm0, %v146_v0  ;;  %v139_v2 = vld [vmem:[%s189_s1 + $0x8] sm:$0xff]   ;;  %v140_v3 = vld [vmem:[%s189_s1 + $0x10] sm:$0xff]  }
   0x2   :  { %125 = vmatpush3.bf16.msra.mxu0 %v138_v1  ;;  %v141_v4 = vld [vmem:[%s189_s1 + $0x18] sm:$0xff]   ;;  %v15_v5 = vld [vmem:[%s190_s0] sm:$0xf] }
   0x3   :  { %126 = vmatprep.subr.bf16.mxu0 %v146_v0  ;;  %v112_v6 = vld [vmem:[%s191_s2] ss:$0 sm:$0xff] }
   0x6   :  { %127 = vmatpush3.bf16.msra.mxu0 %v139_v2 }
   0x7   :  { %128 = vmatprep.subr.bf16.mxu0 %v146_v0 }
   0xa   :  { %129 = vmatpush3.bf16.msra.mxu0 %v140_v3 }
   0xb   :  { %130 = vmatprep.subr.bf16.mxu0 %v146_v0 }
   0xe   :  { %131 = vmatpush3.bf16.msra.mxu0 %v141_v4 }
  0x11   :  { %133 = vmatmul.mubr.msk.bf16.vlgmr.msra.gmra.mrb[0].mxu0 %vm55_vm1, %v15_v5 }
  0xe4   :  { %v93_v7 = vpop.f32.mrb[0].mxu0 }
  0xe5   :  { %v94_v8 = vadd.f32 %v112_v6, %v93_v7  ;;  %v134_v9 = vpop.f32.mrb[1].mxu0 }
  0xe6   :  { %v96_v10 = vpop.f32.mrb[2].mxu0 }
  0xe7   :  { %v118_v11 = vmul.f32 -1.442695, %v94_v8  ;;  %v135_v12 = vpop.f32.mrb[3].mxu0 }
  0xe9   :  { %142 = vpow2.f32 %v118_v11 }
  0xf3   :  { %v143_v13 = vpop.eup %142 }
  0xf4   :  { %v102_v14 = vadd.f32 1.0, %v143_v13 }
  0xf6   :  { %144 = vrcp.f32 %v102_v14 }
 0x100   :  { %v145_v15 = vpop.eup %144 }
 0x101   :  { %v105_v16 = vmul.f32 %v145_v15, %v94_v8 }
 0x103   :  { %107 = vst.msk [vmem:[%s192_s3] sm:$0xff] %vm106_vm2, %v105_v16 }

// kernel: _forward.67
= control target key start
LH: loop header
LB: loop body
LE: loop exit
PB: predicated region body
PF: predicated region fallthrough
CT: control target
= control target key end

     0   :  { %v217_v0 = vmov 0   ;;  %vm125_vm0 = vcmask 523264   ;;  %s283_s1 = inlined_call_operand.vmem [shape: bf16[192,128], index: 1, kind: input, shape index: {}]   ;;  %s284_s0 = inlined_call_operand.vmem [shape: bf16[8,192], index: 0, kind: input, shape index: {}]   ;;  %s285_s2 = inlined_call_operand.vmem [shape: f32[1,128], index: 2, kind: input, shape index: {}]   ;;  %s286_s3 = inlined_call_operand.vmem [shape: f32[8,128], index: 3, kind: output, shape index: {}]  }
   0x1   :  { %129 = vmatprep.subr.bf16.mxu0 %v217_v0  ;;  %v199_v1 = vld [vmem:[%s283_s1] sm:$0xff]   ;;  %v200_v2 = vld [vmem:[%s283_s1 + $0x8] sm:$0xff]   ;;  %v201_v3 = vld [vmem:[%s283_s1 + $0x10] sm:$0xff]  }
   0x2   :  { %130 = vmatpush1.bf16.msra.mxu0 %v199_v1  ;;  %v202_v4 = vld [vmem:[%s283_s1 + $0x18] sm:$0xff]   ;;  %v15_v5 = vld [vmem:[%s284_s0] sm:$0xff]  ;;  %v204_v8 = vld [vmem:[%s283_s1 + $0x28] sm:$0xff]  }
   0x3   :  { %131 = vmatprep.subr.bf16.mxu0 %v217_v0  ;;  %v183_v6 = vcombine.high %v15_v5, %v15_v5  ;;  %v203_v7 = vld [vmem:[%s283_s1 + $0x20] sm:$0xff]   ;;  %v205_v9 = vld [vmem:[%s283_s1 + $0x30] sm:$0xff]   ;;  %v206_v10 = vld [vmem:[%s283_s1 + $0x38] sm:$0xff]   ;;  %v182_v15 = vcombine.low %v15_v5, %v15_v5 }
   0x4   :  { %v207_v11 = vld [vmem:[%s283_s1 + $0x40] sm:$0xff]   ;;  %v208_v12 = vld [vmem:[%s283_s1 + $0x48] sm:$0xff]   ;;  %v209_v13 = vld [vmem:[%s283_s1 + $0x50] sm:$0xff]  }
   0x5   :  { %196 = vmatprep.mubr.msk.bf16.mxu0 %vm125_vm0, %v183_v6  ;;  %v210_v14 = vld [vmem:[%s283_s1 + $0x58] sm:$0xff]   ;;  %v181_v16 = vld [vmem:[%s285_s2] ss:$0 sm:$0xff] }
   0x6   :  { %132 = vmatpush1.bf16.msra.mxu0 %v200_v2 }
   0x7   :  { %133 = vmatprep.subr.bf16.mxu0 %v217_v0 }
   0xa   :  { %134 = vmatpush1.bf16.msra.mxu0 %v201_v3 }
   0xb   :  { %135 = vmatprep.subr.bf16.mxu0 %v217_v0 }
   0xe   :  { %136 = vmatpush1.bf16.msra.mxu0 %v202_v4 }
   0xf   :  { %137 = vmatprep.subr.bf16.mxu0 %v217_v0 }
  0x12   :  { %138 = vmatpush1.bf16.msra.mxu0 %v203_v7 }
  0x13   :  { %139 = vmatprep.subr.bf16.mxu0 %v217_v0 }
  0x16   :  { %140 = vmatpush1.bf16.msra.mxu0 %v204_v8 }
  0x17   :  { %141 = vmatprep.subr.bf16.mxu0 %v217_v0 }
  0x1a   :  { %142 = vmatpush1.bf16.msra.mxu0 %v205_v9 }
  0x1b   :  { %143 = vmatprep.subr.bf16.mxu0 %v217_v0 }
  0x1e   :  { %144 = vmatpush1.bf16.msra.mxu0 %v206_v10 }
  0x1f   :  { %145 = vmatprep.subr.bf16.mxu0 %v217_v0 }
  0x22   :  { %146 = vmatpush1.bf16.msra.mxu0 %v207_v11 }
  0x23   :  { %147 = vmatprep.subr.bf16.mxu0 %v217_v0 }
  0x26   :  { %148 = vmatpush1.bf16.msra.mxu0 %v208_v12 }
  0x27   :  { %149 = vmatprep.subr.bf16.mxu0 %v217_v0 }
  0x2a   :  { %150 = vmatpush1.bf16.msra.mxu0 %v209_v13 }
  0x2b   :  { %151 = vmatprep.subr.bf16.mxu0 %v217_v0 }
  0x2e   :  { %152 = vmatpush1.bf16.msra.mxu0 %v210_v14 }
  0x31   :  { %162 = vmatmul.mubr.bf16.vlgmr.msra.gmra.mrb[0].mxu0 %v182_v15 }
 0x104   :  { %v163_v17 = vpop.f32.mrb[0].mxu0 }
 0x105   :  { %v164_v18 = vadd.f32 %v181_v16, %v163_v17  ;;  %v165_v19 = vpop.f32.mrb[1].mxu0 }
 0x106   :  { %v166_v20 = vpop.f32.mrb[2].mxu0 }
 0x107   :  { %v197_v21 = vmul.f32 -1.442695, %v164_v18  ;;  %v167_v22 = vpop.f32.mrb[3].mxu0 }
 0x109   :  { %213 = vpow2.f32 %v197_v21 }
 0x113   :  { %v214_v23 = vpop.eup %213 }
 0x114   :  { %v172_v24 = vadd.f32 1.0, %v214_v23 }
 0x116   :  { %215 = vrcp.f32 %v172_v24 }
 0x120   :  { %v216_v25 = vpop.eup %215 }
 0x121   :  { %v175_v26 = vmul.f32 %v216_v25, %v164_v18 }
 0x123   :  { %176 = vst [vmem:[%s286_s3] sm:$0xff] %v175_v26 }

// kernel: _forward.66
= control target key start
LH: loop header
LB: loop body
LE: loop exit
PB: predicated region body
PF: predicated region fallthrough
CT: control target
= control target key end

     0   :  { %v145_v0 = vmov 0.0   ;;  %vm146_vm0 = vmmov 0   ;;  %vm55_vm1 = vcmask 523264   ;;  %s190_s1 = inlined_call_operand.vmem [shape: bf16[64,64], index: 1, kind: input, shape index: {}]   ;;  %s191_s0 = inlined_call_operand.vmem [shape: bf16[8,64], index: 0, kind: input, shape index: {}]   ;;  %s192_s2 = inlined_call_operand.vmem [shape: f32[1,64], index: 2, kind: input, shape index: {}]   ;;  %s193_s3 = inlined_call_operand.vmem [shape: f32[8,64], index: 3, kind: output, shape index: {}]  }
   0x1   :  { %123 = vmatprep.subr.bf16.mxu0 %v145_v0  ;;  %v137_v1 = vld [vmem:[%s190_s1] sm:$0xff]   ;;  %131 = vmatprep.mubr.msk.bf16.mxu0 %vm146_vm0, %v145_v0  ;;  %v138_v2 = vld [vmem:[%s190_s1 + $0x8] sm:$0xff]   ;;  %v139_v3 = vld [vmem:[%s190_s1 + $0x10] sm:$0xff]  }
   0x2   :  { %124 = vmatpush3.bf16.msra.mxu0 %v137_v1  ;;  %v140_v4 = vld [vmem:[%s190_s1 + $0x18] sm:$0xff]   ;;  %v15_v5 = vld [vmem:[%s191_s0] sm:$0xf] }
   0x3   :  { %125 = vmatprep.subr.bf16.mxu0 %v145_v0  ;;  %v111_v6 = vld [vmem:[%s192_s2] ss:$0 sm:$0xff] }
   0x6   :  { %126 = vmatpush3.bf16.msra.mxu0 %v138_v2 }
   0x7   :  { %127 = vmatprep.subr.bf16.mxu0 %v145_v0 }
   0xa   :  { %128 = vmatpush3.bf16.msra.mxu0 %v139_v3 }
   0xb   :  { %129 = vmatprep.subr.bf16.mxu0 %v145_v0 }
   0xe   :  { %130 = vmatpush3.bf16.msra.mxu0 %v140_v4 }
  0x11   :  { %132 = vmatmul.mubr.msk.bf16.vlgmr.msra.gmra.mrb[0].mxu0 %vm55_vm1, %v15_v5 }
  0xe4   :  { %v93_v7 = vpop.f32.mrb[0].mxu0 }
  0xe5   :  { %v94_v8 = vadd.f32 %v111_v6, %v93_v7  ;;  %v133_v9 = vpop.f32.mrb[1].mxu0 }
  0xe6   :  { %v96_v10 = vpop.f32.mrb[2].mxu0 }
  0xe7   :  { %v117_v11 = vmul.f32 -1.442695, %v94_v8  ;;  %v134_v12 = vpop.f32.mrb[3].mxu0 }
  0xe9   :  { %141 = vpow2.f32 %v117_v11 }
  0xf3   :  { %v142_v13 = vpop.eup %141 }
  0xf4   :  { %v102_v14 = vadd.f32 1.0, %v142_v13 }
  0xf6   :  { %143 = vrcp.f32 %v102_v14 }
 0x100   :  { %v144_v15 = vpop.eup %143 }
 0x101   :  { %v105_v16 = vmul.f32 %v144_v15, %v94_v8 }
 0x103   :  { %106 = vst.msk [vmem:[%s193_s3] sm:$0xff] %vm55_vm1, %v105_v16 }

// kernel: _forward.69
= control target key start
LH: loop header
LB: loop body
LE: loop exit
PB: predicated region body
PF: predicated region fallthrough
CT: control target
= control target key end

     0   :  { %v49_v9 = vlaneseq  ;;  %v408_v10 = vmov 1966171168   ;;  %s534_s1 = inlined_call_operand.vmem [shape: bf16[256,256], index: 1, kind: input, shape index: {}]   ;;  %s535_s0 = inlined_call_operand.vmem [shape: bf16[2,256], index: 0, kind: input, shape index: {}]   ;;  %s536_s2 = inlined_call_operand.vmem [shape: f32[1,256], index: 2, kind: input, shape index: {}]   ;;  %s537_s3 = inlined_call_operand.vmem [shape: f32[2,256], index: 3, kind: output, shape index: {}]  }
   0x1   :  { %v352_v0 = vld [vmem:[%s534_s1 + $0x4] ss:$8 sps:$4 sm:$0xff]   ;;  %v354_v1 = vld [vmem:[%s534_s1] ss:$8 sps:$4 sm:$0xff]   ;;  %v355_v2 = vld [vmem:[%s534_s1 + $0x14] ss:$8 sps:$4 sm:$0xff]   ;;  %v69_v11 = vunpack.c.l.s4 %v408_v10 }
   0x2   :  { %244 = vmatprep.subr.bf16.mxu0 %v352_v0  ;;  %v357_v3 = vld [vmem:[%s534_s1 + $0x10] ss:$8 sps:$4 sm:$0xff]   ;;  %v358_v4 = vld [vmem:[%s534_s1 + $0x24] ss:$8 sps:$4 sm:$0xff]   ;;  %v360_v5 = vld [vmem:[%s534_s1 + $0x20] ss:$8 sps:$4 sm:$0xff]  }
   0x3   :  { %245 = vmatpush1.bf16.msra.mxu0 %v354_v1  ;;  %v361_v6 = vld [vmem:[%s534_s1 + $0x34] ss:$8 sps:$4 sm:$0xff]   ;;  %v363_v7 = vld [vmem:[%s534_s1 + $0x30] ss:$8 sps:$4 sm:$0xff]   ;;  %v364_v8 = vld [vmem:[%s534_s1 + $0x44] ss:$8 sps:$4 sm:$0xff]   ;;  %v70_v15 = vunpack.c.0.s8 %v69_v11 }
   0x4   :  { %246 = vmatprep.subr.bf16.mxu0 %v355_v2  ;;  %v366_v12 = vld [vmem:[%s534_s1 + $0x40] ss:$8 sps:$4 sm:$0xff]   ;;  %v367_v13 = vld [vmem:[%s534_s1 + $0x54] ss:$8 sps:$4 sm:$0xff]   ;;  %v50_v14 = vshrl.u32 %v49_v9, 7 }
   0x5   :  { %v369_v16 = vld [vmem:[%s534_s1 + $0x50] ss:$8 sps:$4 sm:$0xff]   ;;  %v370_v17 = vld [vmem:[%s534_s1 + $0x64] ss:$8 sps:$4 sm:$0xff]   ;;  %v372_v21 = vld [vmem:[%s534_s1 + $0x60] ss:$8 sps:$4 sm:$0xff]  }
   0x6   :  { %v73_v18 = vsub.s32 %v70_v15, %v50_v14  ;;  %v315_v19 = vld.sshfl [vmem:[%s535_s0] sm:$0x11 pattern:$0x75316420]  ;;  %v373_v22 = vld [vmem:[%s534_s1 + $0x74] ss:$8 sps:$4 sm:$0xff]  }
   0x7   :  { %247 = vmatpush1.bf16.msra.mxu0 %v357_v3  ;;  %v67_v20 = vcombine.high %v315_v19, %v315_v19  ;;  %v375_v24 = vld [vmem:[%s534_s1 + $0x70] ss:$8 sps:$4 sm:$0xff]   ;;  %v376_v25 = vld [vmem:[%s534_s1 + $0x84] ss:$8 sps:$4 sm:$0xff]   ;;  %v378_v26 = vld [vmem:[%s534_s1 + $0x80] ss:$8 sps:$4 sm:$0xff]  }
   0x8   :  { %248 = vmatprep.subr.bf16.mxu0 %v358_v4  ;;  %v379_v27 = vld [vmem:[%s534_s1 + $0x94] ss:$8 sps:$4 sm:$0xff]   ;;  %v381_v28 = vld [vmem:[%s534_s1 + $0x90] ss:$8 sps:$4 sm:$0xff]   ;;  %v382_v29 = vld [vmem:[%s534_s1 + $0xa4] ss:$8 sps:$4 sm:$0xff]   ;;  %v74_v41 = vrot.slane %v315_v19, %v73_v18 }
   0x9   :  { %v81_v23 = vrot.slane %v67_v20, %v73_v18  ;;  %v384_v30 = vld [vmem:[%s534_s1 + $0xa0] ss:$8 sps:$4 sm:$0xff]   ;;  %v385_v31 = vld [vmem:[%s534_s1 + $0xb4] ss:$8 sps:$4 sm:$0xff]   ;;  %v387_v32 = vld [vmem:[%s534_s1 + $0xb0] ss:$8 sps:$4 sm:$0xff]  }
   0xa   :  { %v388_v33 = vld [vmem:[%s534_s1 + $0xc4] ss:$8 sps:$4 sm:$0xff]   ;;  %v390_v34 = vld [vmem:[%s534_s1 + $0xc0] ss:$8 sps:$4 sm:$0xff]   ;;  %v391_v35 = vld [vmem:[%s534_s1 + $0xd4] ss:$8 sps:$4 sm:$0xff]  }
   0xb   :  { %249 = vmatpush1.bf16.msra.mxu0 %v360_v5  ;;  %276 = vmatprep.mubr.bf16.mxu0 %v81_v23  ;;  %v393_v36 = vld [vmem:[%s534_s1 + $0xd0] ss:$8 sps:$4 sm:$0xff]   ;;  %v394_v37 = vld [vmem:[%s534_s1 + $0xe4] ss:$8 sps:$4 sm:$0xff]   ;;  %v396_v38 = vld [vmem:[%s534_s1 + $0xe0] ss:$8 sps:$4 sm:$0xff]  }
   0xc   :  { %250 = vmatprep.subr.bf16.mxu0 %v361_v6  ;;  %v397_v39 = vld [vmem:[%s534_s1 + $0xf4] ss:$8 sps:$4 sm:$0xff]   ;;  %v399_v40 = vld [vmem:[%s534_s1 + $0xf0] ss:$8 sps:$4 sm:$0xff]   ;;  %v51_v42 = vsub.s32 0, %v50_v14  ;;  %v55_v44 = vsub.s32 1, %v50_v14 }
   0xd   :  { %v47_v43 = vld [vmem:[%s536_s2] sm:$0x3] }
   0xe   :  { %v52_v45 = vrot.slane %v47_v43, %v51_v42  ;;  %v56_v46 = vrot.slane %v47_v43, %v55_v44 }
   0xf   :  { %251 = vmatpush1.bf16.msra.mxu0 %v363_v7 }
  0x10   :  { %252 = vmatprep.subr.bf16.mxu0 %v364_v8 }
  0x13   :  { %253 = vmatpush1.bf16.msra.mxu0 %v366_v12 }
  0x14   :  { %254 = vmatprep.subr.bf16.mxu0 %v367_v13 }
  0x17   :  { %255 = vmatpush1.bf16.msra.mxu0 %v369_v16 }
  0x18   :  { %256 = vmatprep.subr.bf16.mxu0 %v370_v17 }
  0x1b   :  { %257 = vmatpush1.bf16.msra.mxu0 %v372_v21 }
  0x1c   :  { %258 = vmatprep.subr.bf16.mxu0 %v373_v22 }
  0x1f   :  { %259 = vmatpush1.bf16.msra.mxu0 %v375_v24 }
  0x20   :  { %260 = vmatprep.subr.bf16.mxu0 %v376_v25 }
  0x23   :  { %261 = vmatpush1.bf16.msra.mxu0 %v378_v26 }
  0x24   :  { %262 = vmatprep.subr.bf16.mxu0 %v379_v27 }
  0x27   :  { %263 = vmatpush1.bf16.msra.mxu0 %v381_v28 }
  0x28   :  { %264 = vmatprep.subr.bf16.mxu0 %v382_v29 }
  0x2b   :  { %265 = vmatpush1.bf16.msra.mxu0 %v384_v30 }
  0x2c   :  { %266 = vmatprep.subr.bf16.mxu0 %v385_v31 }
  0x2f   :  { %267 = vmatpush1.bf16.msra.mxu0 %v387_v32 }
  0x30   :  { %268 = vmatprep.subr.bf16.mxu0 %v388_v33 }
  0x33   :  { %269 = vmatpush1.bf16.msra.mxu0 %v390_v34 }
  0x34   :  { %270 = vmatprep.subr.bf16.mxu0 %v391_v35 }
  0x37   :  { %271 = vmatpush1.bf16.msra.mxu0 %v393_v36 }
  0x38   :  { %272 = vmatprep.subr.bf16.mxu0 %v394_v37 }
  0x3b   :  { %273 = vmatpush1.bf16.msra.mxu0 %v396_v38 }
  0x3c   :  { %274 = vmatprep.subr.bf16.mxu0 %v397_v39 }
  0x3f   :  { %275 = vmatpush1.bf16.msra.mxu0 %v399_v40 }
  0x42   :  { %277 = vmatmul.mubr.bf16.vlgmr.msra.gmra.mrb[0].mxu0 %v74_v41 }
 0x115   :  { %v278_v47 = vpop.f32.mrb[0].mxu0 }
 0x116   :  { %v279_v48 = vadd.f32 %v278_v47, %v52_v45  ;;  %v280_v49 = vpop.f32.mrb[1].mxu0 }
 0x117   :  { %v281_v50 = vadd.f32 %v280_v49, %v56_v46  ;;  %v282_v51 = vpop.f32.mrb[2].mxu0 }
 0x118   :  { %v348_v52 = vmul.f32 -1.442695, %v279_v48  ;;  %v283_v53 = vpop.f32.mrb[3].mxu0 }
 0x119   :  { %v349_v54 = vmul.f32 -1.442695, %v281_v50 }
 0x11a   :  { %400 = vpow2.f32 %v348_v52 }
 0x11b   :  { %402 = vpow2.f32 %v349_v54 }
 0x124   :  { %v401_v55 = vpop.eup %400 }
 0x125   :  { %v403_v56 = vpop.eup %402  ;;  %v291_v57 = vadd.f32 1.0, %v401_v55 }
 0x126   :  { %v292_v58 = vadd.f32 1.0, %v403_v56 }
 0x127   :  { %404 = vrcp.f32 %v291_v57 }
 0x128   :  { %406 = vrcp.f32 %v292_v58 }
 0x131   :  { %v405_v59 = vpop.eup %404 }
 0x132   :  { %v407_v60 = vpop.eup %406  ;;  %v297_v61 = vmul.f32 %v405_v59, %v279_v48 }
 0x133   :  { %v298_v62 = vmul.f32 %v407_v60, %v281_v50 }
 0x135   :  { %v301_v63 = vcombine.low %v297_v61, %v298_v62 }
 0x137   :  { %350 = vst.sshfl [vmem:[%s537_s3] sm:$0x33 pattern:$0x76325410] %v301_v63 }

// kernel: _forward.70
= control target key start
LH: loop header
LB: loop body
LE: loop exit
PB: predicated region body
PF: predicated region fallthrough
CT: control target
= control target key end

     0   :  { %v193_v0 = vmov 0.0   ;;  %vm194_vm0 = vmmov 0   ;;  %vm134_vm1 = vcmask 517120   ;;  %s248_s1 = inlined_call_operand.vmem [shape: bf16[128,64], index: 1, kind: input, shape index: {}]   ;;  %s249_s0 = inlined_call_operand.vmem [shape: bf16[2,128], index: 0, kind: input, shape index: {}]   ;;  %s250_s2 = inlined_call_operand.vmem [shape: f32[1,64], index: 2, kind: input, shape index: {}]   ;;  %s251_s3 = inlined_call_operand.vmem [shape: f32[2,64], index: 3, kind: output, shape index: {}]  }
   0x1   :  { %159 = vmatprep.subr.bf16.mxu0 %v193_v0  ;;  %v181_v1 = vld [vmem:[%s248_s1] sm:$0xff]   ;;  %175 = vmatprep.mubr.msk.bf16.mxu0 %vm194_vm0, %v193_v0  ;;  %v182_v2 = vld [vmem:[%s248_s1 + $0x8] sm:$0xff]   ;;  %v183_v3 = vld [vmem:[%s248_s1 + $0x10] sm:$0xff]  }
   0x2   :  { %160 = vmatpush3.bf16.msra.mxu0 %v181_v1  ;;  %v184_v4 = vld [vmem:[%s248_s1 + $0x18] sm:$0xff]   ;;  %v185_v5 = vld [vmem:[%s248_s1 + $0x20] sm:$0xff]   ;;  %v186_v6 = vld [vmem:[%s248_s1 + $0x28] sm:$0xff]  }
   0x3   :  { %161 = vmatprep.subr.bf16.mxu0 %v193_v0  ;;  %v187_v7 = vld [vmem:[%s248_s1 + $0x30] sm:$0xff]   ;;  %v188_v8 = vld [vmem:[%s248_s1 + $0x38] sm:$0xff]   ;;  %v15_v9 = vld [vmem:[%s249_s0] sm:$0x1] }
   0x4   :  { %v140_v10 = vld [vmem:[%s250_s2] ss:$0 sm:$0xff] }
   0x6   :  { %162 = vmatpush3.bf16.msra.mxu0 %v182_v2 }
   0x7   :  { %163 = vmatprep.subr.bf16.mxu0 %v193_v0 }
   0xa   :  { %164 = vmatpush3.bf16.msra.mxu0 %v183_v3 }
   0xb   :  { %165 = vmatprep.subr.bf16.mxu0 %v193_v0 }
   0xe   :  { %166 = vmatpush3.bf16.msra.mxu0 %v184_v4 }
   0xf   :  { %167 = vmatprep.subr.bf16.mxu0 %v193_v0 }
  0x12   :  { %168 = vmatpush3.bf16.msra.mxu0 %v185_v5 }
  0x13   :  { %169 = vmatprep.subr.bf16.mxu0 %v193_v0 }
  0x16   :  { %170 = vmatpush3.bf16.msra.mxu0 %v186_v6 }
  0x17   :  { %171 = vmatprep.subr.bf16.mxu0 %v193_v0 }
  0x1a   :  { %172 = vmatpush3.bf16.msra.mxu0 %v187_v7 }
  0x1b   :  { %173 = vmatprep.subr.bf16.mxu0 %v193_v0 }
  0x1e   :  { %174 = vmatpush3.bf16.msra.mxu0 %v188_v8 }
  0x21   :  { %176 = vmatmul.mubr.bf16.vlgmr.msra.gmra.mrb[0].mxu0 %v15_v9 }
  0xf4   :  { %v121_v11 = vpop.f32.mrb[0].mxu0 }
  0xf5   :  { %v122_v12 = vadd.f32 %v140_v10, %v121_v11  ;;  %v177_v13 = vpop.f32.mrb[1].mxu0 }
  0xf6   :  { %v124_v14 = vpop.f32.mrb[2].mxu0 }
  0xf7   :  { %v149_v15 = vmul.f32 -1.442695, %v122_v12  ;;  %v178_v16 = vpop.f32.mrb[3].mxu0 }
  0xf9   :  { %189 = vpow2.f32 %v149_v15 }
 0x103   :  { %v190_v17 = vpop.eup %189 }
 0x104   :  { %v130_v18 = vadd.f32 1.0, %v190_v17 }
 0x106   :  { %191 = vrcp.f32 %v130_v18 }
 0x110   :  { %v192_v19 = vpop.eup %191 }
 0x111   :  { %v133_v20 = vmul.f32 %v192_v19, %v122_v12 }
 0x113   :  { %135 = vst.msk [vmem:[%s251_s3] sm:$0x3] %vm134_vm1, %v133_v20 }

// kernel: _forward.68
= control target key start
LH: loop header
LB: loop body
LE: loop exit
PB: predicated region body
PF: predicated region fallthrough
CT: control target
= control target key end

     0   :  { %v163_v36 = vlaneseq  ;;  %v1593_v37 = vmov 1966171168   ;;  %s2089_s1 = inlined_call_operand.vmem [shape: bf16[1152,256], index: 1, kind: input, shape index: {}]   ;;  %s2090_s0 = inlined_call_operand.vmem [shape: bf16[2,1152], index: 0, kind: input, shape index: {}]   ;;  %s2091_s2 = inlined_call_operand.vmem [shape: f32[1,256], index: 2, kind: input, shape index: {}]   ;;  %s2092_s3 = inlined_call_operand.vmem [shape: f32[2,256], index: 3, kind: output, shape index: {}]  }
   0x1   :  { %v1368_v0 = vld [vmem:[%s2089_s1 + $0x4] ss:$8 sps:$4 sm:$0xff]   ;;  %v1372_v2 = vld [vmem:[%s2089_s1] ss:$8 sps:$4 sm:$0xff]   ;;  %v1374_v4 = vld [vmem:[%s2089_s1 + $0x14] ss:$8 sps:$4 sm:$0xff]   ;;  %v177_v38 = vunpack.c.l.s4 %v1593_v37 }
   0x2   :  { %v1370_v1 = vld [vmem:[%s2089_s1 + $0x204] ss:$8 sps:$4 sm:$0xff]   ;;  %967 = vmatprep.subr.bf16.mxu1 %v1368_v0  ;;  %v1373_v3 = vld [vmem:[%s2089_s1 + $0x200] ss:$8 sps:$4 sm:$0xff]   ;;  %v1376_v5 = vld [vmem:[%s2089_s1 + $0x214] ss:$8 sps:$4 sm:$0xff]  }
   0x3   :  { %1049 = vmatprep.subr.bf16.mxu0 %v1370_v1  ;;  %968 = vmatpush1.bf16.msra.mxu1 %v1372_v2  ;;  %v1378_v6 = vld [vmem:[%s2089_s1 + $0x10] ss:$8 sps:$4 sm:$0xff]   ;;  %v1380_v8 = vld [vmem:[%s2089_s1 + $0x24] ss:$8 sps:$4 sm:$0xff]   ;;  %v1384_v10 = vld [vmem:[%s2089_s1 + $0x20] ss:$8 sps:$4 sm:$0xff]   ;;  %v178_v43 = vunpack.c.0.s8 %v177_v38 }
   0x4   :  { %1050 = vmatpush1.bf16.msra.mxu0 %v1373_v3  ;;  %969 = vmatprep.subr.bf16.mxu1 %v1374_v4  ;;  %v1379_v7 = vld [vmem:[%s2089_s1 + $0x210] ss:$8 sps:$4 sm:$0xff]   ;;  %v1382_v9 = vld [vmem:[%s2089_s1 + $0x224] ss:$8 sps:$4 sm:$0xff]   ;;  %v1385_v11 = vld [vmem:[%s2089_s1 + $0x220] ss:$8 sps:$4 sm:$0xff]  }
   0x5   :  { %1051 = vmatprep.subr.bf16.mxu0 %v1376_v5  ;;  %v1386_v12 = vld [vmem:[%s2089_s1 + $0x34] ss:$8 sps:$4 sm:$0xff]   ;;  %v1390_v14 = vld [vmem:[%s2089_s1 + $0x30] ss:$8 sps:$4 sm:$0xff]   ;;  %v1392_v16 = vld [vmem:[%s2089_s1 + $0x44] ss:$8 sps:$4 sm:$0xff]  }
   0x6   :  { %v1388_v13 = vld [vmem:[%s2089_s1 + $0x234] ss:$8 sps:$4 sm:$0xff]   ;;  %v1391_v15 = vld [vmem:[%s2089_s1 + $0x230] ss:$8 sps:$4 sm:$0xff]   ;;  %v1394_v17 = vld [vmem:[%s2089_s1 + $0x244] ss:$8 sps:$4 sm:$0xff]  }
   0x7   :  { %970 = vmatpush1.bf16.msra.mxu1 %v1378_v6  ;;  %v1396_v18 = vld [vmem:[%s2089_s1 + $0x40] ss:$8 sps:$4 sm:$0xff]   ;;  %v1398_v20 = vld [vmem:[%s2089_s1 + $0x54] ss:$8 sps:$4 sm:$0xff]   ;;  %v1402_v22 = vld [vmem:[%s2089_s1 + $0x50] ss:$8 sps:$4 sm:$0xff]  }
   0x8   :  { %1052 = vmatpush1.bf16.msra.mxu0 %v1379_v7  ;;  %971 = vmatprep.subr.bf16.mxu1 %v1380_v8  ;;  %v1397_v19 = vld [vmem:[%s2089_s1 + $0x240] ss:$8 sps:$4 sm:$0xff]   ;;  %v1400_v21 = vld [vmem:[%s2089_s1 + $0x254] ss:$8 sps:$4 sm:$0xff]   ;;  %v1403_v23 = vld [vmem:[%s2089_s1 + $0x250] ss:$8 sps:$4 sm:$0xff]  }
   0x9   :  { %1053 = vmatprep.subr.bf16.mxu0 %v1382_v9  ;;  %v1404_v24 = vld [vmem:[%s2089_s1 + $0x64] ss:$8 sps:$4 sm:$0xff]   ;;  %v1408_v26 = vld [vmem:[%s2089_s1 + $0x60] ss:$8 sps:$4 sm:$0xff]   ;;  %v1410_v28 = vld [vmem:[%s2089_s1 + $0x74] ss:$8 sps:$4 sm:$0xff]  }
   0xa   :  { %v1406_v25 = vld [vmem:[%s2089_s1 + $0x264] ss:$8 sps:$4 sm:$0xff]   ;;  %v1409_v27 = vld [vmem:[%s2089_s1 + $0x260] ss:$8 sps:$4 sm:$0xff]   ;;  %v1412_v29 = vld [vmem:[%s2089_s1 + $0x274] ss:$8 sps:$4 sm:$0xff]  }
   0xb   :  { %972 = vmatpush1.bf16.msra.mxu1 %v1384_v10  ;;  %v1414_v30 = vld [vmem:[%s2089_s1 + $0x70] ss:$8 sps:$4 sm:$0xff]   ;;  %v1416_v32 = vld [vmem:[%s2089_s1 + $0x84] ss:$8 sps:$4 sm:$0xff]   ;;  %v1420_v34 = vld [vmem:[%s2089_s1 + $0x80] ss:$8 sps:$4 sm:$0xff]  }
   0xc   :  { %1054 = vmatpush1.bf16.msra.mxu0 %v1385_v11  ;;  %973 = vmatprep.subr.bf16.mxu1 %v1386_v12  ;;  %v1415_v31 = vld [vmem:[%s2089_s1 + $0x270] ss:$8 sps:$4 sm:$0xff]   ;;  %v1418_v33 = vld [vmem:[%s2089_s1 + $0x284] ss:$8 sps:$4 sm:$0xff]   ;;  %v1421_v35 = vld [vmem:[%s2089_s1 + $0x280] ss:$8 sps:$4 sm:$0xff]  }
   0xd   :  { %1055 = vmatprep.subr.bf16.mxu0 %v1388_v13  ;;  %v1422_v39 = vld [vmem:[%s2089_s1 + $0x94] ss:$8 sps:$4 sm:$0xff]   ;;  %v1426_v41 = vld [vmem:[%s2089_s1 + $0x90] ss:$8 sps:$4 sm:$0xff]   ;;  %v1732_v42 = vshrl.u32 %v163_v36, 7  ;;  %v15_v52 = vld [vmem:[%s2090_s0] sm:$0xff] }
   0xe   :  { %v1424_v40 = vld [vmem:[%s2089_s1 + $0x294] ss:$8 sps:$4 sm:$0xff]   ;;  %v1427_v44 = vld [vmem:[%s2089_s1 + $0x290] ss:$8 sps:$4 sm:$0xff]   ;;  %v1428_v45 = vld [vmem:[%s2089_s1 + $0xa4] ss:$8 sps:$4 sm:$0xff]   ;;  %v175_v55 = vcombine.high %v15_v52, %v15_v52 }
   0xf   :  { %974 = vmatpush1.bf16.msra.mxu1 %v1390_v14  ;;  %v1430_v46 = vld [vmem:[%s2089_s1 + $0x2a4] ss:$8 sps:$4 sm:$0xff]   ;;  %v1432_v47 = vld [vmem:[%s2089_s1 + $0xa0] ss:$8 sps:$4 sm:$0xff]   ;;  %v1750_v49 = vsub.s32 %v178_v43, %v1732_v42  ;;  %v1434_v50 = vld [vmem:[%s2089_s1 + $0xb4] ss:$8 sps:$4 sm:$0xff]  }
  0x10   :  { %1056 = vmatpush1.bf16.msra.mxu0 %v1391_v15  ;;  %975 = vmatprep.subr.bf16.mxu1 %v1392_v16  ;;  %v1433_v48 = vld [vmem:[%s2089_s1 + $0x2a0] ss:$8 sps:$4 sm:$0xff]   ;;  %v1436_v51 = vld [vmem:[%s2089_s1 + $0x2b4] ss:$8 sps:$4 sm:$0xff]   ;;  %v1438_v53 = vld [vmem:[%s2089_s1 + $0xb0] ss:$8 sps:$4 sm:$0xff]  }
  0x11   :  { %1057 = vmatprep.subr.bf16.mxu0 %v1394_v17  ;;  %v182_v54 = vrot.slane %v15_v52, %v1750_v49  ;;  %v1439_v56 = vld [vmem:[%s2089_s1 + $0x2b0] ss:$8 sps:$4 sm:$0xff]   ;;  %v1440_v57 = vld [vmem:[%s2089_s1 + $0xc4] ss:$8 sps:$4 sm:$0xff]   ;;  %v189_v60 = vrot.slane %v175_v55, %v1750_v49  ;;  %v1444_v61 = vld [vmem:[%s2089_s1 + $0xc0] ss:$8 sps:$4 sm:$0xff]  }
  0x12   :  { %v1442_v58 = vld [vmem:[%s2089_s1 + $0x2c4] ss:$8 sps:$4 sm:$0xff]   ;;  %v1445_v0 = vld [vmem:[%s2089_s1 + $0x2c0] ss:$8 sps:$4 sm:$0xff]   ;;  %v1446_v1 = vld [vmem:[%s2089_s1 + $0xd4] ss:$8 sps:$4 sm:$0xff]  }
  0x13   :  { %976 = vmatpush1.bf16.msra.mxu1 %v1396_v18  ;;  %v190_v59 = vcombine.high %v182_v54, %v182_v54  ;;  %v191_v63 = vcombine.high %v189_v60, %v189_v60  ;;  %v1448_v2 = vld [vmem:[%s2089_s1 + $0x2d4] ss:$8 sps:$4 sm:$0xff]   ;;  %v1450_v4 = vld [vmem:[%s2089_s1 + $0xd0] ss:$8 sps:$4 sm:$0xff]   ;;  %v1452_v6 = vld [vmem:[%s2089_s1 + $0xe4] ss:$8 sps:$4 sm:$0xff]   ;;  %v1829_v17 = vrot.slane %v182_v54, %v1750_v49  ;;  %v1832_v18 = vrot.slane %v189_v60, %v1750_v49 }
  0x14   :  { %1058 = vmatpush1.bf16.msra.mxu0 %v1397_v19  ;;  %977 = vmatprep.subr.bf16.mxu1 %v1398_v20  ;;  %v1451_v5 = vld [vmem:[%s2089_s1 + $0x2d0] ss:$8 sps:$4 sm:$0xff]   ;;  %v1454_v7 = vld [vmem:[%s2089_s1 + $0x2e4] ss:$8 sps:$4 sm:$0xff]   ;;  %v1456_v8 = vld [vmem:[%s2089_s1 + $0xe0] ss:$8 sps:$4 sm:$0xff]  }
  0x15   :  { %1059 = vmatprep.subr.bf16.mxu0 %v1400_v21  ;;  %v212_v62 = vrot.slane %v190_v59, %v1750_v49  ;;  %v219_v3 = vrot.slane %v191_v63, %v1750_v49  ;;  %v1457_v9 = vld [vmem:[%s2089_s1 + $0x2e0] ss:$8 sps:$4 sm:$0xff]   ;;  %v1458_v10 = vld [vmem:[%s2089_s1 + $0xf4] ss:$8 sps:$4 sm:$0xff]   ;;  %v1462_v12 = vld [vmem:[%s2089_s1 + $0xf0] ss:$8 sps:$4 sm:$0xff]  }
  0x16   :  { %v1460_v11 = vld [vmem:[%s2089_s1 + $0x2f4] ss:$8 sps:$4 sm:$0xff]   ;;  %v1463_v13 = vld [vmem:[%s2089_s1 + $0x2f0] ss:$8 sps:$4 sm:$0xff]   ;;  %v1466_v14 = vld [vmem:[%s2089_s1 + $0x104] ss:$8 sps:$4 sm:$0xff]  }
  0x17   :  { %978 = vmatpush1.bf16.msra.mxu1 %v1402_v22  ;;  %999 = vmatprep.mubr.bf16.mxu1 %v212_v62  ;;  %v1470_v15 = vld [vmem:[%s2089_s1 + $0x304] ss:$8 sps:$4 sm:$0xff]   ;;  %v1464_v16 = vld [vmem:[%s2089_s1 + $0x100] ss:$8 sps:$4 sm:$0xff]   ;;  %v1473_v20 = vld [vmem:[%s2089_s1 + $0x114] ss:$8 sps:$4 sm:$0xff]   ;;  %v222_v22 = vcombine.high %v212_v62, %v212_v62 }
  0x18   :  { %1060 = vmatpush1.bf16.msra.mxu0 %v1403_v23  ;;  %979 = vmatprep.subr.bf16.mxu1 %v1404_v24  ;;  %v1468_v19 = vld [vmem:[%s2089_s1 + $0x300] ss:$8 sps:$4 sm:$0xff]   ;;  %v1476_v21 = vld [vmem:[%s2089_s1 + $0x314] ss:$8 sps:$4 sm:$0xff]   ;;  %v223_v23 = vcombine.high %v219_v3, %v219_v3  ;;  %v1471_v24 = vld [vmem:[%s2089_s1 + $0x110] ss:$8 sps:$4 sm:$0xff]  }
  0x19   :  { %1061 = vmatprep.subr.bf16.mxu0 %v1406_v25  ;;  %1081 = vmatprep.mubr.bf16.mxu0 %v219_v3  ;;  %v1474_v25 = vld [vmem:[%s2089_s1 + $0x310] ss:$8 sps:$4 sm:$0xff]   ;;  %v1489_v36 = vld [vmem:[%s2089_s1 + $0x140] ss:$8 sps:$4 sm:$0xff]   ;;  %v1497_v38 = vld [vmem:[%s2089_s1 + $0x154] ss:$8 sps:$4 sm:$0xff]  }
  0x1a   :  { %v1492_v37 = vld [vmem:[%s2089_s1 + $0x340] ss:$8 sps:$4 sm:$0xff]   ;;  %v1503_v43 = vld [vmem:[%s2089_s1 + $0x164] ss:$8 sps:$4 sm:$0xff]   ;;  %v1519_v60 = vld [vmem:[%s2089_s1 + $0x190] ss:$8 sps:$4 sm:$0xff]  }
  0x1b   :  { %980 = vmatpush1.bf16.msra.mxu1 %v1408_v26  ;;  %v1479_v26 = vld [vmem:[%s2089_s1 + $0x124] ss:$8 sps:$4 sm:$0xff]   ;;  %v1513_v54 = vld [vmem:[%s2089_s1 + $0x180] ss:$8 sps:$4 sm:$0xff]   ;;  %v1536_v3 = vld [vmem:[%s2089_s1 + $0x3b4] ss:$8 sps:$4 sm:$0xff]  }
  0x1c   :  { %1062 = vmatpush1.bf16.msra.mxu0 %v1409_v27  ;;  %981 = vmatprep.subr.bf16.mxu1 %v1410_v28  ;;  %v1482_v27 = vld [vmem:[%s2089_s1 + $0x324] ss:$8 sps:$4 sm:$0xff]   ;;  %v1477_v28 = vld [vmem:[%s2089_s1 + $0x120] ss:$8 sps:$4 sm:$0xff]  }
  0x1d   :  { %1063 = vmatprep.subr.bf16.mxu0 %v1412_v29  ;;  %v1480_v29 = vld [vmem:[%s2089_s1 + $0x320] ss:$8 sps:$4 sm:$0xff]   ;;  %v1515_v52 = vld [vmem:[%s2089_s1 + $0x184] ss:$8 sps:$4 sm:$0xff]  }
  0x1e   :  { %v1516_v55 = vld [vmem:[%s2089_s1 + $0x380] ss:$8 sps:$4 sm:$0xff]   ;;  %v1527_v62 = vld [vmem:[%s2089_s1 + $0x1a4] ss:$8 sps:$4 sm:$0xff]  }
  0x1f   :  { %982 = vmatpush1.bf16.msra.mxu1 %v1414_v30  ;;  %v1485_v30 = vld [vmem:[%s2089_s1 + $0x134] ss:$8 sps:$4 sm:$0xff]   ;;  %v1530_v63 = vld [vmem:[%s2089_s1 + $0x3a4] ss:$8 sps:$4 sm:$0xff]  }
  0x20   :  { %1064 = vmatpush1.bf16.msra.mxu0 %v1415_v31  ;;  %983 = vmatprep.subr.bf16.mxu1 %v1416_v32  ;;  %v1488_v31 = vld [vmem:[%s2089_s1 + $0x334] ss:$8 sps:$4 sm:$0xff]   ;;  %v1483_v32 = vld [vmem:[%s2089_s1 + $0x130] ss:$8 sps:$4 sm:$0xff]  }
  0x21   :  { %1065 = vmatprep.subr.bf16.mxu0 %v1418_v33  ;;  %v1486_v33 = vld [vmem:[%s2089_s1 + $0x330] ss:$8 sps:$4 sm:$0xff]  }
  0x23   :  { %984 = vmatpush1.bf16.msra.mxu1 %v1420_v34  ;;  %v1491_v34 = vld [vmem:[%s2089_s1 + $0x144] ss:$8 sps:$4 sm:$0xff]  }
  0x24   :  { %1066 = vmatpush1.bf16.msra.mxu0 %v1421_v35  ;;  %985 = vmatprep.subr.bf16.mxu1 %v1422_v39  ;;  %v1494_v35 = vld [vmem:[%s2089_s1 + $0x344] ss:$8 sps:$4 sm:$0xff]   ;;  %v1500_v39 = vld [vmem:[%s2089_s1 + $0x354] ss:$8 sps:$4 sm:$0xff]  }
  0x25   :  { %1067 = vmatprep.subr.bf16.mxu0 %v1424_v40  ;;  %v1495_v40 = vld [vmem:[%s2089_s1 + $0x150] ss:$8 sps:$4 sm:$0xff]  }
  0x27   :  { %986 = vmatpush1.bf16.msra.mxu1 %v1426_v41  ;;  %v1498_v41 = vld [vmem:[%s2089_s1 + $0x350] ss:$8 sps:$4 sm:$0xff]  }
  0x28   :  { %1068 = vmatpush1.bf16.msra.mxu0 %v1427_v44  ;;  %987 = vmatprep.subr.bf16.mxu1 %v1428_v45  ;;  %v1506_v44 = vld [vmem:[%s2089_s1 + $0x364] ss:$8 sps:$4 sm:$0xff]   ;;  %v1501_v45 = vld [vmem:[%s2089_s1 + $0x160] ss:$8 sps:$4 sm:$0xff]  }
  0x29   :  { %1069 = vmatprep.subr.bf16.mxu0 %v1430_v46  ;;  %v1504_v46 = vld [vmem:[%s2089_s1 + $0x360] ss:$8 sps:$4 sm:$0xff]  }
  0x2b   :  { %988 = vmatpush1.bf16.msra.mxu1 %v1432_v47  ;;  %v1509_v47 = vld [vmem:[%s2089_s1 + $0x174] ss:$8 sps:$4 sm:$0xff]  }
  0x2c   :  { %1070 = vmatpush1.bf16.msra.mxu0 %v1433_v48  ;;  %989 = vmatprep.subr.bf16.mxu1 %v1434_v50  ;;  %v1512_v48 = vld [vmem:[%s2089_s1 + $0x374] ss:$8 sps:$4 sm:$0xff]   ;;  %v1507_v50 = vld [vmem:[%s2089_s1 + $0x170] ss:$8 sps:$4 sm:$0xff]  }
  0x2d   :  { %1071 = vmatprep.subr.bf16.mxu0 %v1436_v51  ;;  %v1510_v51 = vld [vmem:[%s2089_s1 + $0x370] ss:$8 sps:$4 sm:$0xff]  }
  0x2f   :  { %990 = vmatpush1.bf16.msra.mxu1 %v1438_v53  ;;  %v1518_v53 = vld [vmem:[%s2089_s1 + $0x384] ss:$8 sps:$4 sm:$0xff]  }
  0x30   :  { %1072 = vmatpush1.bf16.msra.mxu0 %v1439_v56  ;;  %991 = vmatprep.subr.bf16.mxu1 %v1440_v57  ;;  %v1938_v56 = vld.sshfl [vmem:[%s2090_s0 + $0x8] sm:$0x1 pattern:$0x75316420]  ;;  %v1521_v57 = vld [vmem:[%s2089_s1 + $0x194] ss:$8 sps:$4 sm:$0xff]  }
  0x31   :  { %1073 = vmatprep.subr.bf16.mxu0 %v1442_v58  ;;  %v1524_v58 = vld [vmem:[%s2089_s1 + $0x394] ss:$8 sps:$4 sm:$0xff]   ;;  %v237_v59 = vrot.slane %v1938_v56, %v1750_v49 }
  0x33   :  { %992 = vmatpush1.bf16.msra.mxu1 %v1444_v61  ;;  %v1522_v61 = vld [vmem:[%s2089_s1 + $0x390] ss:$8 sps:$4 sm:$0xff]  }
  0x34   :  { %1074 = vmatpush1.bf16.msra.mxu0 %v1445_v0  ;;  %993 = vmatprep.subr.bf16.mxu1 %v1446_v1  ;;  %v1525_v0 = vld [vmem:[%s2089_s1 + $0x1a0] ss:$8 sps:$4 sm:$0xff]  }
  0x35   :  { %1075 = vmatprep.subr.bf16.mxu0 %v1448_v2  ;;  %v1528_v1 = vld [vmem:[%s2089_s1 + $0x3a0] ss:$8 sps:$4 sm:$0xff]   ;;  %v1533_v2 = vld [vmem:[%s2089_s1 + $0x1b4] ss:$8 sps:$4 sm:$0xff]  }
  0x37   :  { %994 = vmatpush1.bf16.msra.mxu1 %v1450_v4  ;;  %v1531_v4 = vld [vmem:[%s2089_s1 + $0x1b0] ss:$8 sps:$4 sm:$0xff]  }
  0x38   :  { %1076 = vmatpush1.bf16.msra.mxu0 %v1451_v5  ;;  %995 = vmatprep.subr.bf16.mxu1 %v1452_v6  ;;  %v1534_v5 = vld [vmem:[%s2089_s1 + $0x3b0] ss:$8 sps:$4 sm:$0xff]   ;;  %v1539_v6 = vld [vmem:[%s2089_s1 + $0x1c4] ss:$8 sps:$4 sm:$0xff]  }
  0x39   :  { %1077 = vmatprep.subr.bf16.mxu0 %v1454_v7  ;;  %v1542_v7 = vld [vmem:[%s2089_s1 + $0x3c4] ss:$8 sps:$4 sm:$0xff]  }
  0x3b   :  { %996 = vmatpush1.bf16.msra.mxu1 %v1456_v8  ;;  %v1537_v8 = vld [vmem:[%s2089_s1 + $0x1c0] ss:$8 sps:$4 sm:$0xff]  }
  0x3c   :  { %1078 = vmatpush1.bf16.msra.mxu0 %v1457_v9  ;;  %997 = vmatprep.subr.bf16.mxu1 %v1458_v10  ;;  %v1540_v9 = vld [vmem:[%s2089_s1 + $0x3c0] ss:$8 sps:$4 sm:$0xff]   ;;  %v1545_v10 = vld [vmem:[%s2089_s1 + $0x1d4] ss:$8 sps:$4 sm:$0xff]  }
  0x3d   :  { %1079 = vmatprep.subr.bf16.mxu0 %v1460_v11  ;;  %v1548_v11 = vld [vmem:[%s2089_s1 + $0x3d4] ss:$8 sps:$4 sm:$0xff]  }
  0x3f   :  { %998 = vmatpush1.bf16.msra.mxu1 %v1462_v12  ;;  %v1543_v12 = vld [vmem:[%s2089_s1 + $0x1d0] ss:$8 sps:$4 sm:$0xff]  }
  0x40   :  { %1080 = vmatpush1.bf16.msra.mxu0 %v1463_v13  ;;  %1008 = vmatprep.subr.bf16.mxu1 %v1466_v14  ;;  %v1546_v13 = vld [vmem:[%s2089_s1 + $0x3d0] ss:$8 sps:$4 sm:$0xff]   ;;  %v1551_v14 = vld [vmem:[%s2089_s1 + $0x1e4] ss:$8 sps:$4 sm:$0xff]  }
  0x41   :  { %1090 = vmatprep.subr.bf16.mxu0 %v1470_v15  ;;  %v1554_v15 = vld [vmem:[%s2089_s1 + $0x3e4] ss:$8 sps:$4 sm:$0xff]  }
  0x42   :  { %1000 = vmatmul.mubr.bf16.vlgmr.msra.gmra.mrb[0].mxu1 %v1829_v17 }
  0x43   :  { %1082 = vmatmul.mubr.bf16.vlgmr.msra.gmra.mrb[0].mxu0 %v1832_v18  ;;  %1009 = vmatpush1.bf16.msra.mxu1 %v1464_v16  ;;  %v1549_v16 = vld [vmem:[%s2089_s1 + $0x1e0] ss:$8 sps:$4 sm:$0xff]  }
  0x44   :  { %1091 = vmatpush1.bf16.msra.mxu0 %v1468_v19  ;;  %1010 = vmatprep.subr.bf16.mxu1 %v1473_v20  ;;  %v1552_v19 = vld [vmem:[%s2089_s1 + $0x3e0] ss:$8 sps:$4 sm:$0xff]   ;;  %v1557_v20 = vld [vmem:[%s2089_s1 + $0x1f4] ss:$8 sps:$4 sm:$0xff]  }
  0x45   :  { %1092 = vmatprep.subr.bf16.mxu0 %v1476_v21  ;;  %1040 = vmatprep.mubr.bf16.mxu1 %v222_v22  ;;  %v1560_v21 = vld [vmem:[%s2089_s1 + $0x3f4] ss:$8 sps:$4 sm:$0xff]   ;;  %v1555_v22 = vld [vmem:[%s2089_s1 + $0x1f0] ss:$8 sps:$4 sm:$0xff]  }
  0x46   :  { %1122 = vmatprep.mubr.bf16.mxu0 %v223_v23  ;;  %v1558_v23 = vld [vmem:[%s2089_s1 + $0x3f0] ss:$8 sps:$4 sm:$0xff]  }
  0x47   :  { %1011 = vmatpush1.bf16.msra.mxu1 %v1471_v24  ;;  %v1563_v24 = vld [vmem:[%s2089_s1 + $0x404] ss:$8 sps:$4 sm:$0xff]  }
  0x48   :  { %1093 = vmatpush1.bf16.msra.mxu0 %v1474_v25  ;;  %1012 = vmatprep.subr.bf16.mxu1 %v1479_v26  ;;  %v220_v25 = vcombine.high %v1829_v17, %v1829_v17  ;;  %v221_v26 = vcombine.high %v1832_v18, %v1832_v18  ;;  %v1564_v17 = vld [vmem:[%s2089_s1 + $0x410] ss:$8 sps:$4 sm:$0xff]   ;;  %v1569_v18 = vld [vmem:[%s2089_s1 + $0x424] ss:$8 sps:$4 sm:$0xff]  }
  0x49   :  { %1094 = vmatprep.subr.bf16.mxu0 %v1482_v27  ;;  %v1561_v27 = vld [vmem:[%s2089_s1 + $0x400] ss:$8 sps:$4 sm:$0xff]  }
  0x4b   :  { %1013 = vmatpush1.bf16.msra.mxu1 %v1477_v28  ;;  %v1566_v28 = vld [vmem:[%s2089_s1 + $0x414] ss:$8 sps:$4 sm:$0xff]  }
  0x4c   :  { %1095 = vmatpush1.bf16.msra.mxu0 %v1480_v29  ;;  %1014 = vmatprep.subr.bf16.mxu1 %v1485_v30  ;;  %v1594_v29 = vmov 0   ;;  %v1567_v30 = vld [vmem:[%s2089_s1 + $0x420] ss:$8 sps:$4 sm:$0xff]  }
  0x4d   :  { %1096 = vmatprep.subr.bf16.mxu0 %v1488_v31  ;;  %v1572_v31 = vld [vmem:[%s2089_s1 + $0x434] ss:$8 sps:$4 sm:$0xff]  }
  0x4f   :  { %1015 = vmatpush1.bf16.msra.mxu1 %v1483_v32  ;;  %v1570_v32 = vld [vmem:[%s2089_s1 + $0x430] ss:$8 sps:$4 sm:$0xff]  }
  0x50   :  { %1097 = vmatpush1.bf16.msra.mxu0 %v1486_v33  ;;  %1016 = vmatprep.subr.bf16.mxu1 %v1491_v34  ;;  %v1575_v33 = vld [vmem:[%s2089_s1 + $0x444] ss:$8 sps:$4 sm:$0xff]   ;;  %v1573_v34 = vld [vmem:[%s2089_s1 + $0x440] ss:$8 sps:$4 sm:$0xff]  }
  0x51   :  { %1098 = vmatprep.subr.bf16.mxu0 %v1494_v35  ;;  %v1578_v35 = vld [vmem:[%s2089_s1 + $0x454] ss:$8 sps:$4 sm:$0xff]  }
  0x53   :  { %1017 = vmatpush1.bf16.msra.mxu1 %v1489_v36  ;;  %v1576_v36 = vld [vmem:[%s2089_s1 + $0x450] ss:$8 sps:$4 sm:$0xff]  }
  0x54   :  { %1099 = vmatpush1.bf16.msra.mxu0 %v1492_v37  ;;  %1018 = vmatprep.subr.bf16.mxu1 %v1497_v38  ;;  %v1581_v37 = vld [vmem:[%s2089_s1 + $0x464] ss:$8 sps:$4 sm:$0xff]   ;;  %v1579_v38 = vld [vmem:[%s2089_s1 + $0x460] ss:$8 sps:$4 sm:$0xff]  }
  0x55   :  { %1100 = vmatprep.subr.bf16.mxu0 %v1500_v39  ;;  %v1584_v39 = vld [vmem:[%s2089_s1 + $0x474] ss:$8 sps:$4 sm:$0xff]  }
  0x57   :  { %1019 = vmatpush1.bf16.msra.mxu1 %v1495_v40  ;;  %v1582_v40 = vld [vmem:[%s2089_s1 + $0x470] ss:$8 sps:$4 sm:$0xff]  }
  0x58   :  { %1101 = vmatpush1.bf16.msra.mxu0 %v1498_v41  ;;  %1020 = vmatprep.subr.bf16.mxu1 %v1503_v43 }
  0x59   :  { %1102 = vmatprep.subr.bf16.mxu0 %v1506_v44 }
  0x5b   :  { %1021 = vmatpush1.bf16.msra.mxu1 %v1501_v45 }
  0x5c   :  { %1103 = vmatpush1.bf16.msra.mxu0 %v1504_v46  ;;  %1022 = vmatprep.subr.bf16.mxu1 %v1509_v47  ;;  %v165_v46 = vsub.s32 0, %v1732_v42  ;;  %v161_v47 = vld [vmem:[%s2091_s2] sm:$0x3] }
  0x5d   :  { %1104 = vmatprep.subr.bf16.mxu0 %v1512_v48  ;;  %v169_v48 = vsub.s32 1, %v1732_v42 }
  0x5f   :  { %1023 = vmatpush1.bf16.msra.mxu1 %v1507_v50  ;;  %v166_v50 = vrot.slane %v161_v47, %v165_v46 }
  0x60   :  { %1105 = vmatpush1.bf16.msra.mxu0 %v1510_v51  ;;  %1024 = vmatprep.subr.bf16.mxu1 %v1515_v52  ;;  %v170_v51 = vrot.slane %v161_v47, %v169_v48 }
  0x61   :  { %1106 = vmatprep.subr.bf16.mxu0 %v1518_v53 }
  0x63   :  { %1025 = vmatpush1.bf16.msra.mxu1 %v1513_v54 }
  0x64   :  { %1107 = vmatpush1.bf16.msra.mxu0 %v1516_v55  ;;  %1026 = vmatprep.subr.bf16.mxu1 %v1521_v57 }
  0x65   :  { %1108 = vmatprep.subr.bf16.mxu0 %v1524_v58 }
  0x67   :  { %1027 = vmatpush1.bf16.msra.mxu1 %v1519_v60 }
  0x68   :  { %1109 = vmatpush1.bf16.msra.mxu0 %v1522_v61  ;;  %1028 = vmatprep.subr.bf16.mxu1 %v1527_v62 }
  0x69   :  { %1110 = vmatprep.subr.bf16.mxu0 %v1530_v63 }
  0x6b   :  { %1029 = vmatpush1.bf16.msra.mxu1 %v1525_v0 }
  0x6c   :  { %1111 = vmatpush1.bf16.msra.mxu0 %v1528_v1  ;;  %1030 = vmatprep.subr.bf16.mxu1 %v1533_v2 }
  0x6d   :  { %1112 = vmatprep.subr.bf16.mxu0 %v1536_v3 }
  0x6f   :  { %1031 = vmatpush1.bf16.msra.mxu1 %v1531_v4 }
  0x70   :  { %1113 = vmatpush1.bf16.msra.mxu0 %v1534_v5  ;;  %1032 = vmatprep.subr.bf16.mxu1 %v1539_v6 }
  0x71   :  { %1114 = vmatprep.subr.bf16.mxu0 %v1542_v7 }
  0x73   :  { %1033 = vmatpush1.bf16.msra.mxu1 %v1537_v8 }
  0x74   :  { %1115 = vmatpush1.bf16.msra.mxu0 %v1540_v9  ;;  %1034 = vmatprep.subr.bf16.mxu1 %v1545_v10 }
  0x75   :  { %1116 = vmatprep.subr.bf16.mxu0 %v1548_v11 }
  0x77   :  { %1035 = vmatpush1.bf16.msra.mxu1 %v1543_v12 }
  0x78   :  { %1117 = vmatpush1.bf16.msra.mxu0 %v1546_v13  ;;  %1036 = vmatprep.subr.bf16.mxu1 %v1551_v14 }
  0x79   :  { %1118 = vmatprep.subr.bf16.mxu0 %v1554_v15 }
  0x7b   :  { %1037 = vmatpush1.bf16.msra.mxu1 %v1549_v16 }
  0x7c   :  { %1119 = vmatpush1.bf16.msra.mxu0 %v1552_v19  ;;  %1038 = vmatprep.subr.bf16.mxu1 %v1557_v20 }
  0x7d   :  { %1120 = vmatprep.subr.bf16.mxu0 %v1560_v21 }
  0x7f   :  { %1039 = vmatpush1.bf16.msra.mxu1 %v1555_v22 }
  0x80   :  { %1121 = vmatpush1.bf16.msra.mxu0 %v1558_v23 }
  0x81   :  { %1131 = vmatprep.subr.bf16.mxu0 %v1563_v24 }
  0x82   :  { %1041 = vmatmul.mubr.bf16.vlgmr.msra.gmra.mrb[0].mxu1 %v220_v25 }
  0x83   :  { %1123 = vmatmul.mubr.bf16.vlgmr.msra.gmra.mrb[0].mxu0 %v221_v26 }
  0x84   :  { %1132 = vmatpush1.bf16.msra.mxu0 %v1561_v27  ;;  %1163 = vmatprep.mubr.bf16.mxu0 %v1594_v29 }
  0x85   :  { %1133 = vmatprep.subr.bf16.mxu0 %v1566_v28 }
  0x88   :  { %1134 = vmatpush1.bf16.msra.mxu0 %v1564_v17 }
  0x89   :  { %1135 = vmatprep.subr.bf16.mxu0 %v1569_v18 }
  0x8c   :  { %1136 = vmatpush1.bf16.msra.mxu0 %v1567_v30 }
  0x8d   :  { %1137 = vmatprep.subr.bf16.mxu0 %v1572_v31 }
  0x90   :  { %1138 = vmatpush1.bf16.msra.mxu0 %v1570_v32 }
  0x91   :  { %1139 = vmatprep.subr.bf16.mxu0 %v1575_v33 }
  0x94   :  { %1140 = vmatpush1.bf16.msra.mxu0 %v1573_v34 }
  0x95   :  { %1141 = vmatprep.subr.bf16.mxu0 %v1578_v35 }
  0x98   :  { %1142 = vmatpush1.bf16.msra.mxu0 %v1576_v36 }
  0x99   :  { %1143 = vmatprep.subr.bf16.mxu0 %v1581_v37 }
  0x9c   :  { %1144 = vmatpush1.bf16.msra.mxu0 %v1579_v38 }
  0x9d   :  { %1145 = vmatprep.subr.bf16.mxu0 %v1584_v39 }
  0xa0   :  { %1146 = vmatpush1.bf16.msra.mxu0 %v1582_v40 }
  0xa3   :  { %1164 = vmatmul.mubr.bf16.vlgmr.msra.gmra.mrb[0].mxu0 %v237_v59 }
 0x155   :  { %v1042_v41 = vpop.f32.mrb[0].mxu1 }
 0x156   :  { %v1044_v43 = vpop.f32.mrb[1].mxu1  ;;  %v1350_v52 = vadd.f32 %v1042_v41, %v166_v50 }
 0x157   :  { %v1046_v44 = vpop.f32.mrb[2].mxu1  ;;  %v1352_v53 = vadd.f32 %v1044_v43, %v170_v51 }
 0x158   :  { %v1047_v45 = vpop.f32.mrb[3].mxu1 }
 0x176   :  { %v1165_v54 = vpop.f32.mrb[0].mxu0 }
 0x177   :  { %v1351_v55 = vadd.f32 %v1350_v52, %v1165_v54  ;;  %v1167_v49 = vpop.f32.mrb[1].mxu0 }
 0x178   :  { %v1353_v56 = vadd.f32 %v1352_v53, %v1167_v49  ;;  %v1169_v57 = vpop.f32.mrb[2].mxu0 }
 0x179   :  { %v1347_v58 = vmul.f32 -1.442695, %v1351_v55  ;;  %v1170_v59 = vpop.f32.mrb[3].mxu0 }
 0x17a   :  { %v1348_v60 = vmul.f32 -1.442695, %v1353_v56 }
 0x17b   :  { %1585 = vpow2.f32 %v1347_v58 }
 0x17c   :  { %1587 = vpow2.f32 %v1348_v60 }
 0x185   :  { %v1586_v61 = vpop.eup %1585 }
 0x186   :  { %v1588_v62 = vpop.eup %1587  ;;  %v1178_v63 = vadd.f32 1.0, %v1586_v61 }
 0x187   :  { %v1179_v0 = vadd.f32 1.0, %v1588_v62 }
 0x188   :  { %1589 = vrcp.f32 %v1178_v63 }
 0x189   :  { %1591 = vrcp.f32 %v1179_v0 }
 0x192   :  { %v1590_v42 = vpop.eup %1589 }
 0x193   :  { %v1592_v1 = vpop.eup %1591  ;;  %v1184_v2 = vmul.f32 %v1590_v42, %v1351_v55 }
 0x194   :  { %v1185_v3 = vmul.f32 %v1592_v1, %v1353_v56 }
 0x196   :  { %v1188_v4 = vcombine.low %v1184_v2, %v1185_v3 }
 0x198   :  { %1349 = vst.sshfl [vmem:[%s2092_s3] sm:$0x33 pattern:$0x76325410] %v1188_v4 }

// kernel: _forward.71
= control target key start
LH: loop header
LB: loop body
LE: loop exit
PB: predicated region body
PF: predicated region fallthrough
CT: control target
= control target key end

     0   :  { %v636_v21 = vmov 1966171168   ;;  %v100_v23 = vlaneseq  ;;  %v637_v40 = vmov 0.0   ;;  %vm638_vm0 = vmmov 0   ;;  %s776_s1 = inlined_call_operand.vmem [shape: bf16[576,64], index: 1, kind: input, shape index: {}]   ;;  %s777_s0 = inlined_call_operand.vmem [shape: bf16[2,576], index: 0, kind: input, shape index: {}]   ;;  %s778_s2 = inlined_call_operand.vmem [shape: f32[1,64], index: 2, kind: input, shape index: {}]   ;;  %s779_s3 = inlined_call_operand.vmem [shape: f32[2,64], index: 3, kind: output, shape index: {}]  }
   0x1   :  { %v595_v0 = vld [vmem:[%s776_s1 + $0x40] sm:$0xff]   ;;  %v599_v4 = vld [vmem:[%s776_s1 + $0x48] sm:$0xff]   ;;  %v603_v8 = vld [vmem:[%s776_s1 + $0x50] sm:$0xff]   ;;  %v98_v22 = vunpack.c.l.s4 %v636_v21  ;;  %vm355_vm1 = vcmask 523264   ;;  %vm486_vm2 = vcmask 517120  }
   0x2   :  { %v596_v1 = vld [vmem:[%s776_s1] sm:$0xff]   ;;  %531 = vmatprep.subr.bf16.mxu0 %v595_v0  ;;  %v600_v5 = vld [vmem:[%s776_s1 + $0x8] sm:$0xff]   ;;  %v604_v9 = vld [vmem:[%s776_s1 + $0x10] sm:$0xff]   ;;  %v101_v29 = vshrl.u32 %v100_v23, 7 }
   0x3   :  { %v597_v2 = vld [vmem:[%s776_s1 + $0xc0] sm:$0xff]   ;;  %532 = vmatpush3.bf16.msra.mxu0 %v596_v1  ;;  %v601_v6 = vld [vmem:[%s776_s1 + $0xc8] sm:$0xff]   ;;  %v605_v10 = vld [vmem:[%s776_s1 + $0xd0] sm:$0xff]   ;;  %v99_v28 = vunpack.c.0.s8 %v98_v22 }
   0x4   :  { %v598_v3 = vld [vmem:[%s776_s1 + $0x80] sm:$0xff]   ;;  %553 = vmatprep.subr.bf16.mxu1 %v597_v2  ;;  %533 = vmatprep.subr.bf16.mxu0 %v599_v4  ;;  %v602_v7 = vld [vmem:[%s776_s1 + $0x88] sm:$0xff]   ;;  %v606_v11 = vld [vmem:[%s776_s1 + $0x90] sm:$0xff]  }
   0x5   :  { %554 = vmatpush3.bf16.msra.mxu1 %v598_v3  ;;  %v607_v12 = vld [vmem:[%s776_s1 + $0x58] sm:$0xff]   ;;  %v611_v16 = vld [vmem:[%s776_s1 + $0x60] sm:$0xff]   ;;  %v615_v20 = vld [vmem:[%s776_s1 + $0x68] sm:$0xff]   ;;  %v102_v34 = vsub.s32 %v99_v28, %v101_v29 }
   0x6   :  { %555 = vmatprep.subr.bf16.mxu1 %v601_v6  ;;  %v608_v13 = vld [vmem:[%s776_s1 + $0x18] sm:$0xff]   ;;  %v612_v17 = vld [vmem:[%s776_s1 + $0x20] sm:$0xff]   ;;  %v616_v24 = vld [vmem:[%s776_s1 + $0x28] sm:$0xff]  }
   0x7   :  { %534 = vmatpush3.bf16.msra.mxu0 %v600_v5  ;;  %v609_v14 = vld [vmem:[%s776_s1 + $0xd8] sm:$0xff]   ;;  %v613_v18 = vld [vmem:[%s776_s1 + $0xe0] sm:$0xff]   ;;  %v617_v25 = vld [vmem:[%s776_s1 + $0xe8] sm:$0xff]  }
   0x8   :  { %535 = vmatprep.subr.bf16.mxu0 %v603_v8  ;;  %v610_v15 = vld [vmem:[%s776_s1 + $0x98] sm:$0xff]   ;;  %v614_v19 = vld [vmem:[%s776_s1 + $0xa0] sm:$0xff]   ;;  %v618_v26 = vld [vmem:[%s776_s1 + $0xa8] sm:$0xff]  }
   0x9   :  { %556 = vmatpush3.bf16.msra.mxu1 %v602_v7  ;;  %v619_v27 = vld [vmem:[%s776_s1 + $0x70] sm:$0xff]   ;;  %v623_v33 = vld [vmem:[%s776_s1 + $0x78] sm:$0xff]   ;;  %v15_v37 = vld [vmem:[%s777_s0] sm:$0x1f] }
   0xa   :  { %557 = vmatprep.subr.bf16.mxu1 %v605_v10  ;;  %v620_v30 = vld [vmem:[%s776_s1 + $0x30] sm:$0xff]   ;;  %v624_v35 = vld [vmem:[%s776_s1 + $0x38] sm:$0xff]   ;;  %v103_v38 = vrot.slane %v15_v37, %v102_v34  ;;  %v628_v44 = vld [vmem:[%s776_s1 + $0x100] sm:$0xff]   ;;  %v96_v48 = vcombine.high %v15_v37, %v15_v37 }
   0xb   :  { %536 = vmatpush3.bf16.msra.mxu0 %v604_v9  ;;  %v621_v31 = vld [vmem:[%s776_s1 + $0xf0] sm:$0xff]   ;;  %v625_v36 = vld [vmem:[%s776_s1 + $0xf8] sm:$0xff]   ;;  %v629_v47 = vld [vmem:[%s776_s1 + $0x108] sm:$0xff]  }
   0xc   :  { %537 = vmatprep.subr.bf16.mxu0 %v607_v12  ;;  %v622_v32 = vld [vmem:[%s776_s1 + $0xb0] sm:$0xff]   ;;  %v627_v39 = vld [vmem:[%s776_s1 + $0xb8] sm:$0xff]   ;;  %v111_v41 = vcombine.high %v103_v38, %v103_v38  ;;  %v118_v42 = vrot.slane %v103_v38, %v102_v34  ;;  %v110_v50 = vrot.slane %v96_v48, %v102_v34  ;;  %v492_v54 = vld [vmem:[%s778_s2] ss:$0 sm:$0xff] }
   0xd   :  { %558 = vmatpush3.bf16.msra.mxu1 %v606_v11  ;;  %v630_v49 = vld [vmem:[%s776_s1 + $0x110] sm:$0xff]   ;;  %v631_v51 = vld [vmem:[%s776_s1 + $0x118] sm:$0xff]  }
   0xe   :  { %559 = vmatprep.subr.bf16.mxu1 %v609_v14  ;;  %v132_v43 = vrot.slane %v111_v41, %v102_v34  ;;  %v133_v45 = vcombine.high %v118_v42, %v118_v42  ;;  %v125_v52 = vrot.slane %v110_v50, %v102_v34 }
   0xf   :  { %538 = vmatpush3.bf16.msra.mxu0 %v608_v13 }
  0x10   :  { %539 = vmatprep.subr.bf16.mxu0 %v611_v16  ;;  %391 = vmatprep.mubr.bf16.mxu0 %v132_v43  ;;  %v134_v46 = vcombine.high %v132_v43, %v132_v43 }
  0x11   :  { %560 = vmatpush3.bf16.msra.mxu1 %v610_v15 }
  0x12   :  { %561 = vmatprep.subr.bf16.mxu1 %v613_v18  ;;  %431 = vmatprep.mubr.bf16.mxu1 %v134_v46 }
  0x13   :  { %540 = vmatpush3.bf16.msra.mxu0 %v612_v17 }
  0x14   :  { %541 = vmatprep.subr.bf16.mxu0 %v615_v20 }
  0x15   :  { %562 = vmatpush3.bf16.msra.mxu1 %v614_v19 }
  0x16   :  { %563 = vmatprep.subr.bf16.mxu1 %v617_v25 }
  0x17   :  { %542 = vmatpush3.bf16.msra.mxu0 %v616_v24 }
  0x18   :  { %543 = vmatprep.subr.bf16.mxu0 %v619_v27 }
  0x19   :  { %564 = vmatpush3.bf16.msra.mxu1 %v618_v26 }
  0x1a   :  { %565 = vmatprep.subr.bf16.mxu1 %v621_v31 }
  0x1b   :  { %544 = vmatpush3.bf16.msra.mxu0 %v620_v30 }
  0x1c   :  { %545 = vmatprep.subr.bf16.mxu0 %v623_v33 }
  0x1d   :  { %566 = vmatpush3.bf16.msra.mxu1 %v622_v32 }
  0x1e   :  { %567 = vmatprep.subr.bf16.mxu1 %v625_v36 }
  0x1f   :  { %546 = vmatpush3.bf16.msra.mxu0 %v624_v35 }
  0x20   :  { %580 = vmatprep.subr.bf16.mxu0 %v637_v40 }
  0x21   :  { %568 = vmatpush3.bf16.msra.mxu1 %v627_v39 }
  0x22   :  { %392 = vmatmul.mubr.bf16.vlgmr.msra.gmra.mrb[0].mxu0 %v118_v42 }
  0x23   :  { %581 = vmatpush3.bf16.msra.mxu0 %v628_v44  ;;  %588 = vmatprep.mubr.msk.bf16.mxu0 %vm638_vm0, %v637_v40 }
  0x24   :  { %432 = vmatmul.mubr.bf16.vlgmr.msra.gmra.mrb[0].mxu1 %v133_v45  ;;  %582 = vmatprep.subr.bf16.mxu0 %v637_v40 }
  0x27   :  { %583 = vmatpush3.bf16.msra.mxu0 %v629_v47 }
  0x28   :  { %584 = vmatprep.subr.bf16.mxu0 %v637_v40 }
  0x2b   :  { %585 = vmatpush3.bf16.msra.mxu0 %v630_v49 }
  0x2c   :  { %586 = vmatprep.subr.bf16.mxu0 %v637_v40 }
  0x2f   :  { %587 = vmatpush3.bf16.msra.mxu0 %v631_v51 }
  0x32   :  { %589 = vmatmul.mubr.msk.bf16.vlgmr.msra.gmra.mrb[4].mxu0 %vm355_vm1, %v125_v52 }
  0xf5   :  { %v547_v53 = vpop.f32.mrb[0].mxu0 }
  0xf6   :  { %v548_v55 = vpop.f32.mrb[1].mxu0 }
  0xf7   :  { %v549_v56 = vadd.f32 %v548_v55, %v547_v53  ;;  %v550_v57 = vpop.f32.mrb[2].mxu0  ;;  %v569_v58 = vpop.f32.mrb[0].mxu1 }
  0xf8   :  { %v551_v59 = vpop.f32.mrb[3].mxu0  ;;  %v570_v60 = vpop.f32.mrb[1].mxu1 }
  0xf9   :  { %v394_v61 = vadd.f32 %v549_v56, %v492_v54  ;;  %v571_v62 = vadd.f32 %v570_v60, %v569_v58  ;;  %v572_v63 = vpop.f32.mrb[2].mxu1 }
  0xfa   :  { %v573_v0 = vpop.f32.mrb[3].mxu1 }
  0xfb   :  { %v434_v1 = vadd.f32 %v571_v62, %v394_v61 }
 0x105   :  { %v473_v2 = vpop.f32.mrb[4].mxu0 }
 0x106   :  { %v474_v3 = vadd.f32 %v473_v2, %v434_v1  ;;  %v590_v4 = vpop.f32.mrb[5].mxu0 }
 0x107   :  { %v476_v5 = vpop.f32.mrb[6].mxu0 }
 0x108   :  { %v530_v6 = vmul.f32 -1.442695, %v474_v3  ;;  %v591_v7 = vpop.f32.mrb[7].mxu0 }
 0x10a   :  { %632 = vpow2.f32 %v530_v6 }
 0x114   :  { %v633_v8 = vpop.eup %632 }
 0x115   :  { %v482_v9 = vadd.f32 1.0, %v633_v8 }
 0x117   :  { %634 = vrcp.f32 %v482_v9 }
 0x121   :  { %v635_v10 = vpop.eup %634 }
 0x122   :  { %v485_v11 = vmul.f32 %v635_v10, %v474_v3 }
 0x124   :  { %487 = vst.msk [vmem:[%s779_s3] sm:$0x3] %vm486_vm2, %v485_v11 }

// kernel: _forward.76
= control target key start
LH: loop header
LB: loop body
LE: loop exit
PB: predicated region body
PF: predicated region fallthrough
CT: control target
= control target key end

     0   :  { %v192_v0 = vmov 0.0   ;;  %vm193_vm0 = vmmov 0   ;;  %s247_s1 = inlined_call_operand.vmem [shape: bf16[128,128], index: 1, kind: input, shape index: {}]   ;;  %s248_s0 = inlined_call_operand.vmem [shape: bf16[2,128], index: 0, kind: input, shape index: {}]   ;;  %s249_s2 = inlined_call_operand.vmem [shape: f32[1,128], index: 2, kind: input, shape index: {}]   ;;  %s250_s3 = inlined_call_operand.vmem [shape: f32[2,128], index: 3, kind: output, shape index: {}]  }
   0x1   :  { %158 = vmatprep.subr.bf16.mxu0 %v192_v0  ;;  %v180_v1 = vld [vmem:[%s247_s1] sm:$0xff]   ;;  %174 = vmatprep.mubr.msk.bf16.mxu0 %vm193_vm0, %v192_v0  ;;  %v181_v2 = vld [vmem:[%s247_s1 + $0x8] sm:$0xff]   ;;  %v182_v3 = vld [vmem:[%s247_s1 + $0x10] sm:$0xff]  }
   0x2   :  { %159 = vmatpush3.bf16.msra.mxu0 %v180_v1  ;;  %v183_v4 = vld [vmem:[%s247_s1 + $0x18] sm:$0xff]   ;;  %v184_v5 = vld [vmem:[%s247_s1 + $0x20] sm:$0xff]   ;;  %v185_v6 = vld [vmem:[%s247_s1 + $0x28] sm:$0xff]  }
   0x3   :  { %160 = vmatprep.subr.bf16.mxu0 %v192_v0  ;;  %v186_v7 = vld [vmem:[%s247_s1 + $0x30] sm:$0xff]   ;;  %v187_v8 = vld [vmem:[%s247_s1 + $0x38] sm:$0xff]   ;;  %v15_v9 = vld [vmem:[%s248_s0] sm:$0x1] }
   0x4   :  { %v139_v10 = vld [vmem:[%s249_s2] ss:$0 sm:$0xff] }
   0x6   :  { %161 = vmatpush3.bf16.msra.mxu0 %v181_v2 }
   0x7   :  { %162 = vmatprep.subr.bf16.mxu0 %v192_v0 }
   0xa   :  { %163 = vmatpush3.bf16.msra.mxu0 %v182_v3 }
   0xb   :  { %164 = vmatprep.subr.bf16.mxu0 %v192_v0 }
   0xe   :  { %165 = vmatpush3.bf16.msra.mxu0 %v183_v4 }
   0xf   :  { %166 = vmatprep.subr.bf16.mxu0 %v192_v0 }
  0x12   :  { %167 = vmatpush3.bf16.msra.mxu0 %v184_v5 }
  0x13   :  { %168 = vmatprep.subr.bf16.mxu0 %v192_v0 }
  0x16   :  { %169 = vmatpush3.bf16.msra.mxu0 %v185_v6 }
  0x17   :  { %170 = vmatprep.subr.bf16.mxu0 %v192_v0 }
  0x1a   :  { %171 = vmatpush3.bf16.msra.mxu0 %v186_v7 }
  0x1b   :  { %172 = vmatprep.subr.bf16.mxu0 %v192_v0 }
  0x1e   :  { %173 = vmatpush3.bf16.msra.mxu0 %v187_v8 }
  0x21   :  { %175 = vmatmul.mubr.bf16.vlgmr.msra.gmra.mrb[0].mxu0 %v15_v9 }
  0xf4   :  { %v121_v11 = vpop.f32.mrb[0].mxu0 }
  0xf5   :  { %v122_v12 = vadd.f32 %v139_v10, %v121_v11  ;;  %v176_v13 = vpop.f32.mrb[1].mxu0 }
  0xf6   :  { %v124_v14 = vpop.f32.mrb[2].mxu0 }
  0xf7   :  { %v148_v15 = vmul.f32 -1.442695, %v122_v12  ;;  %v177_v16 = vpop.f32.mrb[3].mxu0 }
  0xf9   :  { %188 = vpow2.f32 %v148_v15 }
 0x103   :  { %v189_v17 = vpop.eup %188 }
 0x104   :  { %v130_v18 = vadd.f32 1.0, %v189_v17 }
 0x106   :  { %190 = vrcp.f32 %v130_v18 }
 0x110   :  { %v191_v19 = vpop.eup %190 }
 0x111   :  { %v133_v20 = vmul.f32 %v191_v19, %v122_v12 }
 0x113   :  { %134 = vst [vmem:[%s250_s3] sm:$0x3] %v133_v20 }

// kernel: _forward.77
= control target key start
LH: loop header
LB: loop body
LE: loop exit
PB: predicated region body
PF: predicated region fallthrough
CT: control target
= control target key end

     0   :  { %v593_v1 = vmov 0   ;;  %v66_v25 = vlaneseq  ;;  %v594_v26 = vmov 1966171168   ;;  %s773_s1 = inlined_call_operand.vmem [shape: bf16[384,256], index: 1, kind: input, shape index: {}]   ;;  %s774_s0 = inlined_call_operand.vmem [shape: bf16[2,384], index: 0, kind: input, shape index: {}]   ;;  %s775_s2 = inlined_call_operand.vmem [shape: f32[1,256], index: 2, kind: input, shape index: {}]   ;;  %s776_s3 = inlined_call_operand.vmem [shape: f32[2,256], index: 3, kind: output, shape index: {}]  }
   0x1   :  { %v513_v0 = vld [vmem:[%s773_s1 + $0x4] ss:$8 sps:$4 sm:$0xff]   ;;  %416 = vmatprep.mubr.bf16.mxu0 %v593_v1  ;;  %v515_v2 = vld [vmem:[%s773_s1] ss:$8 sps:$4 sm:$0xff]   ;;  %v516_v3 = vld [vmem:[%s773_s1 + $0x14] ss:$8 sps:$4 sm:$0xff]   ;;  %v86_v27 = vunpack.c.l.s4 %v594_v26 }
   0x2   :  { %343 = vmatprep.subr.bf16.mxu1 %v513_v0  ;;  %v518_v4 = vld [vmem:[%s773_s1 + $0x10] ss:$8 sps:$4 sm:$0xff]   ;;  %v519_v5 = vld [vmem:[%s773_s1 + $0x24] ss:$8 sps:$4 sm:$0xff]   ;;  %v521_v6 = vld [vmem:[%s773_s1 + $0x20] ss:$8 sps:$4 sm:$0xff]  }
   0x3   :  { %344 = vmatpush1.bf16.msra.mxu1 %v515_v2  ;;  %v522_v7 = vld [vmem:[%s773_s1 + $0x34] ss:$8 sps:$4 sm:$0xff]   ;;  %v524_v8 = vld [vmem:[%s773_s1 + $0x30] ss:$8 sps:$4 sm:$0xff]   ;;  %v537_v9 = vld [vmem:[%s773_s1 + $0x104] ss:$8 sps:$4 sm:$0xff]   ;;  %v87_v33 = vunpack.c.0.s8 %v86_v27 }
   0x4   :  { %345 = vmatprep.subr.bf16.mxu1 %v516_v3  ;;  %v525_v10 = vld [vmem:[%s773_s1 + $0x44] ss:$8 sps:$4 sm:$0xff]   ;;  %v541_v11 = vld [vmem:[%s773_s1 + $0x100] ss:$8 sps:$4 sm:$0xff]   ;;  %384 = vmatprep.subr.bf16.mxu0 %v537_v9  ;;  %v543_v12 = vld [vmem:[%s773_s1 + $0x114] ss:$8 sps:$4 sm:$0xff]  }
   0x5   :  { %385 = vmatpush1.bf16.msra.mxu0 %v541_v11  ;;  %v527_v13 = vld [vmem:[%s773_s1 + $0x40] ss:$8 sps:$4 sm:$0xff]   ;;  %v528_v14 = vld [vmem:[%s773_s1 + $0x54] ss:$8 sps:$4 sm:$0xff]   ;;  %v547_v15 = vld [vmem:[%s773_s1 + $0x110] ss:$8 sps:$4 sm:$0xff]  }
   0x6   :  { %386 = vmatprep.subr.bf16.mxu0 %v543_v12  ;;  %v549_v16 = vld [vmem:[%s773_s1 + $0x124] ss:$8 sps:$4 sm:$0xff]   ;;  %v530_v17 = vld [vmem:[%s773_s1 + $0x50] ss:$8 sps:$4 sm:$0xff]   ;;  %v553_v18 = vld [vmem:[%s773_s1 + $0x120] ss:$8 sps:$4 sm:$0xff]  }
   0x7   :  { %346 = vmatpush1.bf16.msra.mxu1 %v518_v4  ;;  %v555_v19 = vld [vmem:[%s773_s1 + $0x134] ss:$8 sps:$4 sm:$0xff]   ;;  %v531_v20 = vld [vmem:[%s773_s1 + $0x64] ss:$8 sps:$4 sm:$0xff]   ;;  %v559_v21 = vld [vmem:[%s773_s1 + $0x130] ss:$8 sps:$4 sm:$0xff]  }
   0x8   :  { %347 = vmatprep.subr.bf16.mxu1 %v519_v5  ;;  %v533_v22 = vld [vmem:[%s773_s1 + $0x60] ss:$8 sps:$4 sm:$0xff]   ;;  %v561_v23 = vld [vmem:[%s773_s1 + $0x144] ss:$8 sps:$4 sm:$0xff]   ;;  %v534_v24 = vld [vmem:[%s773_s1 + $0x74] ss:$8 sps:$4 sm:$0xff]  }
   0x9   :  { %387 = vmatpush1.bf16.msra.mxu0 %v547_v15  ;;  %v536_v28 = vld [vmem:[%s773_s1 + $0x70] ss:$8 sps:$4 sm:$0xff]   ;;  %v565_v29 = vld [vmem:[%s773_s1 + $0x140] ss:$8 sps:$4 sm:$0xff]   ;;  %v567_v30 = vld [vmem:[%s773_s1 + $0x154] ss:$8 sps:$4 sm:$0xff]  }
   0xa   :  { %388 = vmatprep.subr.bf16.mxu0 %v549_v16  ;;  %v539_v31 = vld [vmem:[%s773_s1 + $0x84] ss:$8 sps:$4 sm:$0xff]   ;;  %v699_v32 = vshrl.u32 %v66_v25, 7  ;;  %v571_v34 = vld [vmem:[%s773_s1 + $0x150] ss:$8 sps:$4 sm:$0xff]  }
   0xb   :  { %348 = vmatpush1.bf16.msra.mxu1 %v521_v6  ;;  %v542_v35 = vld [vmem:[%s773_s1 + $0x80] ss:$8 sps:$4 sm:$0xff]   ;;  %v573_v36 = vld [vmem:[%s773_s1 + $0x164] ss:$8 sps:$4 sm:$0xff]   ;;  %v545_v37 = vld [vmem:[%s773_s1 + $0x94] ss:$8 sps:$4 sm:$0xff]  }
   0xc   :  { %349 = vmatprep.subr.bf16.mxu1 %v522_v7  ;;  %v455_v38 = vld.sshfl [vmem:[%s774_s0] sm:$0x13 pattern:$0x75316420]  ;;  %v90_v40 = vsub.s32 %v87_v33, %v699_v32  ;;  %v548_v42 = vld [vmem:[%s773_s1 + $0x90] ss:$8 sps:$4 sm:$0xff]  }
   0xd   :  { %389 = vmatpush1.bf16.msra.mxu0 %v553_v18  ;;  %v84_v39 = vcombine.high %v455_v38, %v455_v38  ;;  %v577_v41 = vld [vmem:[%s773_s1 + $0x160] ss:$8 sps:$4 sm:$0xff]   ;;  %v579_v43 = vld [vmem:[%s773_s1 + $0x174] ss:$8 sps:$4 sm:$0xff]   ;;  %v551_v45 = vld [vmem:[%s773_s1 + $0xa4] ss:$8 sps:$4 sm:$0xff]  }
   0xe   :  { %390 = vmatprep.subr.bf16.mxu0 %v555_v19  ;;  %v91_v46 = vrot.slane %v455_v38, %v90_v40  ;;  %v583_v47 = vld [vmem:[%s773_s1 + $0x170] ss:$8 sps:$4 sm:$0xff]   ;;  %v554_v48 = vld [vmem:[%s773_s1 + $0xa0] ss:$8 sps:$4 sm:$0xff]   ;;  %v557_v49 = vld [vmem:[%s773_s1 + $0xb4] ss:$8 sps:$4 sm:$0xff]  }
   0xf   :  { %350 = vmatpush1.bf16.msra.mxu1 %v524_v8  ;;  %v98_v44 = vrot.slane %v84_v39, %v90_v40  ;;  %v560_v51 = vld [vmem:[%s773_s1 + $0xb0] ss:$8 sps:$4 sm:$0xff]   ;;  %v563_v52 = vld [vmem:[%s773_s1 + $0xc4] ss:$8 sps:$4 sm:$0xff]   ;;  %v566_v53 = vld [vmem:[%s773_s1 + $0xc0] ss:$8 sps:$4 sm:$0xff]  }
  0x10   :  { %351 = vmatprep.subr.bf16.mxu1 %v525_v10  ;;  %v99_v50 = vcombine.high %v91_v46, %v91_v46  ;;  %v569_v54 = vld [vmem:[%s773_s1 + $0xd4] ss:$8 sps:$4 sm:$0xff]   ;;  %v572_v55 = vld [vmem:[%s773_s1 + $0xd0] ss:$8 sps:$4 sm:$0xff]   ;;  %v575_v56 = vld [vmem:[%s773_s1 + $0xe4] ss:$8 sps:$4 sm:$0xff]  }
  0x11   :  { %391 = vmatpush1.bf16.msra.mxu0 %v559_v21  ;;  %375 = vmatprep.mubr.bf16.mxu1 %v98_v44  ;;  %v578_v57 = vld [vmem:[%s773_s1 + $0xe0] ss:$8 sps:$4 sm:$0xff]   ;;  %v581_v58 = vld [vmem:[%s773_s1 + $0xf4] ss:$8 sps:$4 sm:$0xff]   ;;  %v584_v59 = vld [vmem:[%s773_s1 + $0xf0] ss:$8 sps:$4 sm:$0xff]  }
  0x12   :  { %392 = vmatprep.subr.bf16.mxu0 %v561_v23  ;;  %v68_v0 = vsub.s32 0, %v699_v32  ;;  %v64_v1 = vld [vmem:[%s775_s2] sm:$0x3]  ;;  %v72_v2 = vsub.s32 1, %v699_v32 }
  0x13   :  { %352 = vmatpush1.bf16.msra.mxu1 %v527_v13 }
  0x14   :  { %353 = vmatprep.subr.bf16.mxu1 %v528_v14  ;;  %v69_v3 = vrot.slane %v64_v1, %v68_v0  ;;  %v73_v4 = vrot.slane %v64_v1, %v72_v2 }
  0x15   :  { %393 = vmatpush1.bf16.msra.mxu0 %v565_v29 }
  0x16   :  { %394 = vmatprep.subr.bf16.mxu0 %v567_v30 }
  0x17   :  { %354 = vmatpush1.bf16.msra.mxu1 %v530_v17 }
  0x18   :  { %355 = vmatprep.subr.bf16.mxu1 %v531_v20 }
  0x19   :  { %395 = vmatpush1.bf16.msra.mxu0 %v571_v34 }
  0x1a   :  { %396 = vmatprep.subr.bf16.mxu0 %v573_v36 }
  0x1b   :  { %356 = vmatpush1.bf16.msra.mxu1 %v533_v22 }
  0x1c   :  { %357 = vmatprep.subr.bf16.mxu1 %v534_v24 }
  0x1d   :  { %397 = vmatpush1.bf16.msra.mxu0 %v577_v41 }
  0x1e   :  { %398 = vmatprep.subr.bf16.mxu0 %v579_v43 }
  0x1f   :  { %358 = vmatpush1.bf16.msra.mxu1 %v536_v28 }
  0x20   :  { %359 = vmatprep.subr.bf16.mxu1 %v539_v31 }
  0x21   :  { %399 = vmatpush1.bf16.msra.mxu0 %v583_v47 }
  0x23   :  { %360 = vmatpush1.bf16.msra.mxu1 %v542_v35 }
  0x24   :  { %361 = vmatprep.subr.bf16.mxu1 %v545_v37  ;;  %417 = vmatmul.mubr.bf16.vlgmr.msra.gmra.mrb[0].mxu0 %v99_v50 }
  0x27   :  { %362 = vmatpush1.bf16.msra.mxu1 %v548_v42 }
  0x28   :  { %363 = vmatprep.subr.bf16.mxu1 %v551_v45 }
  0x2b   :  { %364 = vmatpush1.bf16.msra.mxu1 %v554_v48 }
  0x2c   :  { %365 = vmatprep.subr.bf16.mxu1 %v557_v49 }
  0x2f   :  { %366 = vmatpush1.bf16.msra.mxu1 %v560_v51 }
  0x30   :  { %367 = vmatprep.subr.bf16.mxu1 %v563_v52 }
  0x33   :  { %368 = vmatpush1.bf16.msra.mxu1 %v566_v53 }
  0x34   :  { %369 = vmatprep.subr.bf16.mxu1 %v569_v54 }
  0x37   :  { %370 = vmatpush1.bf16.msra.mxu1 %v572_v55 }
  0x38   :  { %371 = vmatprep.subr.bf16.mxu1 %v575_v56 }
  0x3b   :  { %372 = vmatpush1.bf16.msra.mxu1 %v578_v57 }
  0x3c   :  { %373 = vmatprep.subr.bf16.mxu1 %v581_v58 }
  0x3f   :  { %374 = vmatpush1.bf16.msra.mxu1 %v584_v59 }
  0x42   :  { %376 = vmatmul.mubr.bf16.vlgmr.msra.gmra.mrb[0].mxu1 %v91_v46 }
  0xf7   :  { %v418_v60 = vpop.f32.mrb[0].mxu0 }
  0xf8   :  { %v420_v61 = vpop.f32.mrb[1].mxu0 }
  0xf9   :  { %v422_v62 = vpop.f32.mrb[2].mxu0 }
  0xfa   :  { %v423_v63 = vpop.f32.mrb[3].mxu0 }
 0x115   :  { %v377_v5 = vpop.f32.mrb[0].mxu1 }
 0x116   :  { %v378_v6 = vadd.f32 %v377_v5, %v69_v3  ;;  %v379_v7 = vpop.f32.mrb[1].mxu1 }
 0x117   :  { %v380_v8 = vadd.f32 %v379_v7, %v73_v4  ;;  %v381_v9 = vpop.f32.mrb[2].mxu1 }
 0x118   :  { %v419_v10 = vadd.f32 %v418_v60, %v378_v6  ;;  %v382_v11 = vpop.f32.mrb[3].mxu1 }
 0x119   :  { %v421_v12 = vadd.f32 %v420_v61, %v380_v8 }
 0x11a   :  { %v504_v13 = vmul.f32 -1.442695, %v419_v10 }
 0x11b   :  { %v505_v14 = vmul.f32 -1.442695, %v421_v12 }
 0x11c   :  { %585 = vpow2.f32 %v504_v13 }
 0x11d   :  { %587 = vpow2.f32 %v505_v14 }
 0x126   :  { %v586_v15 = vpop.eup %585 }
 0x127   :  { %v588_v16 = vpop.eup %587  ;;  %v431_v17 = vadd.f32 1.0, %v586_v15 }
 0x128   :  { %v432_v18 = vadd.f32 1.0, %v588_v16 }
 0x129   :  { %589 = vrcp.f32 %v431_v17 }
 0x12a   :  { %591 = vrcp.f32 %v432_v18 }
 0x133   :  { %v590_v19 = vpop.eup %589 }
 0x134   :  { %v592_v20 = vpop.eup %591  ;;  %v437_v21 = vmul.f32 %v590_v19, %v419_v10 }
 0x135   :  { %v438_v22 = vmul.f32 %v592_v20, %v421_v12 }
 0x137   :  { %v441_v23 = vcombine.low %v437_v21, %v438_v22 }
 0x139   :  { %506 = vst.sshfl [vmem:[%s776_s3] sm:$0x33 pattern:$0x76325410] %v441_v23 }

// kernel: _forward.81
= control target key start
LH: loop header
LB: loop body
LE: loop exit
PB: predicated region body
PF: predicated region fallthrough
CT: control target
= control target key end

     0   :  { %v133_v0 = vmov 0.0   ;;  %vm134_vm0 = vmmov 0   ;;  %vm55_vm1 = vcmask 523264   ;;  %s176_s1 = inlined_call_operand.vmem [shape: bf16[64,128], index: 1, kind: input, shape index: {}]   ;;  %s177_s0 = inlined_call_operand.vmem [shape: bf16[2,64], index: 0, kind: input, shape index: {}]   ;;  %s178_s2 = inlined_call_operand.vmem [shape: f32[1,128], index: 2, kind: input, shape index: {}]   ;;  %s179_s3 = inlined_call_operand.vmem [shape: f32[2,128], index: 3, kind: output, shape index: {}]  }
   0x1   :  { %115 = vmatprep.subr.bf16.mxu0 %v133_v0  ;;  %v129_v1 = vld [vmem:[%s176_s1] sm:$0xff]   ;;  %123 = vmatprep.mubr.msk.bf16.mxu0 %vm134_vm0, %v133_v0  ;;  %v130_v2 = vld [vmem:[%s176_s1 + $0x8] sm:$0xff]   ;;  %v131_v3 = vld [vmem:[%s176_s1 + $0x10] sm:$0xff]  }
   0x2   :  { %116 = vmatpush3.bf16.msra.mxu0 %v129_v1  ;;  %v132_v4 = vld [vmem:[%s176_s1 + $0x18] sm:$0xff]   ;;  %v15_v5 = vld [vmem:[%s177_s0] sm:$0x1] }
   0x3   :  { %117 = vmatprep.subr.bf16.mxu0 %v133_v0  ;;  %v104_v6 = vld [vmem:[%s178_s2] ss:$0 sm:$0xff] }
   0x6   :  { %118 = vmatpush3.bf16.msra.mxu0 %v130_v2 }
   0x7   :  { %119 = vmatprep.subr.bf16.mxu0 %v133_v0 }
   0xa   :  { %120 = vmatpush3.bf16.msra.mxu0 %v131_v3 }
   0xb   :  { %121 = vmatprep.subr.bf16.mxu0 %v133_v0 }
   0xe   :  { %122 = vmatpush3.bf16.msra.mxu0 %v132_v4 }
  0x11   :  { %124 = vmatmul.mubr.msk.bf16.vlgmr.msra.gmra.mrb[0].mxu0 %vm55_vm1, %v15_v5 }
  0xe4   :  { %v93_v7 = vpop.f32.mrb[0].mxu0 }
  0xe5   :  { %v94_v8 = vadd.f32 %v104_v6, %v93_v7  ;;  %v125_v9 = vpop.f32.mrb[1].mxu0 }
  0xe6   :  { %v96_v10 = vpop.f32.mrb[2].mxu0 }
  0xe7   :  { %99 = vst [vmem:[%s179_s3] sm:$0x3] %v94_v8  ;;  %v126_v11 = vpop.f32.mrb[3].mxu0 }

// kernel: _forward.78
= control target key start
LH: loop header
LB: loop body
LE: loop exit
PB: predicated region body
PF: predicated region fallthrough
CT: control target
= control target key end

     0   :  { %v290_v6 = vmov 1966171168   ;;  %v67_v8 = vlaneseq  ;;  %s368_s1 = inlined_call_operand.vmem [shape: bf16[256,128], index: 1, kind: input, shape index: {}]   ;;  %s369_s0 = inlined_call_operand.vmem [shape: bf16[2,256], index: 0, kind: input, shape index: {}]   ;;  %s370_s2 = inlined_call_operand.vmem [shape: f32[1,128], index: 2, kind: input, shape index: {}]   ;;  %s371_s3 = inlined_call_operand.vmem [shape: f32[2,128], index: 3, kind: output, shape index: {}]  }
   0x1   :  { %v270_v0 = vld [vmem:[%s368_s1 + $0x40] sm:$0xff]   ;;  %v272_v2 = vld [vmem:[%s368_s1 + $0x48] sm:$0xff]   ;;  %v274_v4 = vld [vmem:[%s368_s1 + $0x50] sm:$0xff]   ;;  %v65_v7 = vunpack.c.l.s4 %v290_v6 }
   0x2   :  { %v271_v1 = vld [vmem:[%s368_s1] sm:$0xff]   ;;  %247 = vmatprep.subr.bf16.mxu0 %v270_v0  ;;  %v273_v3 = vld [vmem:[%s368_s1 + $0x8] sm:$0xff]   ;;  %v275_v5 = vld [vmem:[%s368_s1 + $0x10] sm:$0xff]   ;;  %v68_v12 = vshrl.u32 %v67_v8, 7 }
   0x3   :  { %248 = vmatpush3.bf16.msra.mxu0 %v271_v1  ;;  %v276_v9 = vld [vmem:[%s368_s1 + $0x58] sm:$0xff]   ;;  %v66_v11 = vunpack.c.0.s8 %v65_v7  ;;  %v278_v13 = vld [vmem:[%s368_s1 + $0x60] sm:$0xff]   ;;  %v280_v16 = vld [vmem:[%s368_s1 + $0x68] sm:$0xff]  }
   0x4   :  { %249 = vmatprep.subr.bf16.mxu0 %v272_v2  ;;  %v277_v10 = vld [vmem:[%s368_s1 + $0x18] sm:$0xff]   ;;  %v279_v14 = vld [vmem:[%s368_s1 + $0x20] sm:$0xff]   ;;  %v281_v19 = vld [vmem:[%s368_s1 + $0x28] sm:$0xff]  }
   0x5   :  { %v69_v15 = vsub.s32 %v66_v11, %v68_v12  ;;  %v229_v17 = vld.sshfl [vmem:[%s369_s0] sm:$0x11 pattern:$0x75316420]  ;;  %v282_v21 = vld [vmem:[%s368_s1 + $0x70] sm:$0xff]   ;;  %v284_v23 = vld [vmem:[%s368_s1 + $0x78] sm:$0xff]  }
   0x6   :  { %v63_v18 = vcombine.high %v229_v17, %v229_v17  ;;  %v283_v22 = vld [vmem:[%s368_s1 + $0x30] sm:$0xff]   ;;  %v285_v24 = vld [vmem:[%s368_s1 + $0x38] sm:$0xff]   ;;  %v228_v27 = vld [vmem:[%s370_s2] ss:$0 sm:$0xff] }
   0x7   :  { %250 = vmatpush3.bf16.msra.mxu0 %v273_v3  ;;  %v70_v25 = vrot.slane %v229_v17, %v69_v15 }
   0x8   :  { %251 = vmatprep.subr.bf16.mxu0 %v274_v4  ;;  %v77_v20 = vrot.slane %v63_v18, %v69_v15 }
   0xa   :  { %208 = vmatprep.mubr.bf16.mxu0 %v77_v20 }
   0xb   :  { %252 = vmatpush3.bf16.msra.mxu0 %v275_v5 }
   0xc   :  { %253 = vmatprep.subr.bf16.mxu0 %v276_v9 }
   0xf   :  { %254 = vmatpush3.bf16.msra.mxu0 %v277_v10 }
  0x10   :  { %255 = vmatprep.subr.bf16.mxu0 %v278_v13 }
  0x13   :  { %256 = vmatpush3.bf16.msra.mxu0 %v279_v14 }
  0x14   :  { %257 = vmatprep.subr.bf16.mxu0 %v280_v16 }
  0x17   :  { %258 = vmatpush3.bf16.msra.mxu0 %v281_v19 }
  0x18   :  { %259 = vmatprep.subr.bf16.mxu0 %v282_v21 }
  0x1b   :  { %260 = vmatpush3.bf16.msra.mxu0 %v283_v22 }
  0x1c   :  { %261 = vmatprep.subr.bf16.mxu0 %v284_v23 }
  0x1f   :  { %262 = vmatpush3.bf16.msra.mxu0 %v285_v24 }
  0x22   :  { %209 = vmatmul.mubr.bf16.vlgmr.msra.gmra.mrb[0].mxu0 %v70_v25 }
  0xf5   :  { %v263_v26 = vpop.f32.mrb[0].mxu0 }
  0xf6   :  { %v264_v28 = vpop.f32.mrb[1].mxu0 }
  0xf7   :  { %v265_v29 = vadd.f32 %v264_v28, %v263_v26  ;;  %v266_v30 = vpop.f32.mrb[2].mxu0 }
  0xf8   :  { %v267_v31 = vpop.f32.mrb[3].mxu0 }
  0xf9   :  { %v211_v32 = vadd.f32 %v265_v29, %v228_v27 }
  0xfb   :  { %v246_v33 = vmul.f32 -1.442695, %v211_v32 }
  0xfd   :  { %286 = vpow2.f32 %v246_v33 }
 0x107   :  { %v287_v34 = vpop.eup %286 }
 0x108   :  { %v219_v35 = vadd.f32 1.0, %v287_v34 }
 0x10a   :  { %288 = vrcp.f32 %v219_v35 }
 0x114   :  { %v289_v36 = vpop.eup %288 }
 0x115   :  { %v222_v37 = vmul.f32 %v289_v36, %v211_v32 }
 0x117   :  { %223 = vst [vmem:[%s371_s3] sm:$0x3] %v222_v37 }

// kernel: _forward.83
= control target key start
LH: loop header
LB: loop body
LE: loop exit
PB: predicated region body
PF: predicated region fallthrough
CT: control target
= control target key end

     0   :  { %v145_v0 = vmov 0.0   ;;  %vm146_vm0 = vmmov 0   ;;  %vm55_vm1 = vcmask 523264   ;;  %s188_s1 = inlined_call_operand.vmem [shape: bf16[64,128], index: 1, kind: input, shape index: {}]   ;;  %s189_s0 = inlined_call_operand.vmem [shape: bf16[2,64], index: 0, kind: input, shape index: {}]   ;;  %s190_s2 = inlined_call_operand.vmem [shape: f32[1,128], index: 2, kind: input, shape index: {}]   ;;  %s191_s3 = inlined_call_operand.vmem [shape: f32[2,128], index: 3, kind: output, shape index: {}]  }
   0x1   :  { %123 = vmatprep.subr.bf16.mxu0 %v145_v0  ;;  %v137_v1 = vld [vmem:[%s188_s1] sm:$0xff]   ;;  %131 = vmatprep.mubr.msk.bf16.mxu0 %vm146_vm0, %v145_v0  ;;  %v138_v2 = vld [vmem:[%s188_s1 + $0x8] sm:$0xff]   ;;  %v139_v3 = vld [vmem:[%s188_s1 + $0x10] sm:$0xff]  }
   0x2   :  { %124 = vmatpush3.bf16.msra.mxu0 %v137_v1  ;;  %v140_v4 = vld [vmem:[%s188_s1 + $0x18] sm:$0xff]   ;;  %v15_v5 = vld [vmem:[%s189_s0] sm:$0x1] }
   0x3   :  { %125 = vmatprep.subr.bf16.mxu0 %v145_v0  ;;  %v111_v6 = vld [vmem:[%s190_s2] ss:$0 sm:$0xff] }
   0x6   :  { %126 = vmatpush3.bf16.msra.mxu0 %v138_v2 }
   0x7   :  { %127 = vmatprep.subr.bf16.mxu0 %v145_v0 }
   0xa   :  { %128 = vmatpush3.bf16.msra.mxu0 %v139_v3 }
   0xb   :  { %129 = vmatprep.subr.bf16.mxu0 %v145_v0 }
   0xe   :  { %130 = vmatpush3.bf16.msra.mxu0 %v140_v4 }
  0x11   :  { %132 = vmatmul.mubr.msk.bf16.vlgmr.msra.gmra.mrb[0].mxu0 %vm55_vm1, %v15_v5 }
  0xe4   :  { %v93_v7 = vpop.f32.mrb[0].mxu0 }
  0xe5   :  { %v94_v8 = vadd.f32 %v111_v6, %v93_v7  ;;  %v133_v9 = vpop.f32.mrb[1].mxu0 }
  0xe6   :  { %v96_v10 = vpop.f32.mrb[2].mxu0 }
  0xe7   :  { %v117_v11 = vmul.f32 -1.442695, %v94_v8  ;;  %v134_v12 = vpop.f32.mrb[3].mxu0 }
  0xe9   :  { %141 = vpow2.f32 %v117_v11 }
  0xf3   :  { %v142_v13 = vpop.eup %141 }
  0xf4   :  { %v102_v14 = vadd.f32 1.0, %v142_v13 }
  0xf6   :  { %143 = vrcp.f32 %v102_v14 }
 0x100   :  { %v144_v15 = vpop.eup %143 }
 0x101   :  { %v105_v16 = vmul.f32 %v144_v15, %v94_v8 }
 0x103   :  { %106 = vst [vmem:[%s191_s3] sm:$0x3] %v105_v16 }

// kernel: _forward.82
= control target key start
LH: loop header
LB: loop body
LE: loop exit
PB: predicated region body
PF: predicated region fallthrough
CT: control target
= control target key end

     0   :  { %v134_v0 = vmov 0.0   ;;  %vm135_vm0 = vmmov 0   ;;  %vm55_vm1 = vcmask 523264   ;;  %vm99_vm2 = vcmask 517120   ;;  %s177_s1 = inlined_call_operand.vmem [shape: bf16[64,64], index: 1, kind: input, shape index: {}]   ;;  %s178_s0 = inlined_call_operand.vmem [shape: bf16[2,64], index: 0, kind: input, shape index: {}]   ;;  %s179_s2 = inlined_call_operand.vmem [shape: f32[1,64], index: 2, kind: input, shape index: {}]   ;;  %s180_s3 = inlined_call_operand.vmem [shape: f32[2,64], index: 3, kind: output, shape index: {}]  }
   0x1   :  { %116 = vmatprep.subr.bf16.mxu0 %v134_v0  ;;  %v130_v1 = vld [vmem:[%s177_s1] sm:$0xff]   ;;  %124 = vmatprep.mubr.msk.bf16.mxu0 %vm135_vm0, %v134_v0  ;;  %v131_v2 = vld [vmem:[%s177_s1 + $0x8] sm:$0xff]   ;;  %v132_v3 = vld [vmem:[%s177_s1 + $0x10] sm:$0xff]  }
   0x2   :  { %117 = vmatpush3.bf16.msra.mxu0 %v130_v1  ;;  %v133_v4 = vld [vmem:[%s177_s1 + $0x18] sm:$0xff]   ;;  %v15_v5 = vld [vmem:[%s178_s0] sm:$0x1] }
   0x3   :  { %118 = vmatprep.subr.bf16.mxu0 %v134_v0  ;;  %v105_v6 = vld [vmem:[%s179_s2] ss:$0 sm:$0xff] }
   0x6   :  { %119 = vmatpush3.bf16.msra.mxu0 %v131_v2 }
   0x7   :  { %120 = vmatprep.subr.bf16.mxu0 %v134_v0 }
   0xa   :  { %121 = vmatpush3.bf16.msra.mxu0 %v132_v3 }
   0xb   :  { %122 = vmatprep.subr.bf16.mxu0 %v134_v0 }
   0xe   :  { %123 = vmatpush3.bf16.msra.mxu0 %v133_v4 }
  0x11   :  { %125 = vmatmul.mubr.msk.bf16.vlgmr.msra.gmra.mrb[0].mxu0 %vm55_vm1, %v15_v5 }
  0xe4   :  { %v93_v7 = vpop.f32.mrb[0].mxu0 }
  0xe5   :  { %v94_v8 = vadd.f32 %v105_v6, %v93_v7  ;;  %v126_v9 = vpop.f32.mrb[1].mxu0 }
  0xe6   :  { %v96_v10 = vpop.f32.mrb[2].mxu0 }
  0xe7   :  { %100 = vst.msk [vmem:[%s180_s3] sm:$0x3] %vm99_vm2, %v94_v8  ;;  %v127_v11 = vpop.f32.mrb[3].mxu0 }

// kernel: _forward.79
= control target key start
LH: loop header
LB: loop body
LE: loop exit
PB: predicated region body
PF: predicated region fallthrough
CT: control target
= control target key end

     0   :  { %v81_v38 = vlaneseq  ;;  %v729_v39 = vmov 1966171168   ;;  %s956_s1 = inlined_call_operand.vmem [shape: bf16[512,256], index: 1, kind: input, shape index: {}]   ;;  %s957_s0 = inlined_call_operand.vmem [shape: bf16[2,512], index: 0, kind: input, shape index: {}]   ;;  %s958_s2 = inlined_call_operand.vmem [shape: f32[1,256], index: 2, kind: input, shape index: {}]   ;;  %s959_s3 = inlined_call_operand.vmem [shape: f32[2,256], index: 3, kind: output, shape index: {}]  }
   0x1   :  { %v625_v0 = vld [vmem:[%s956_s1 + $0x4] ss:$8 sps:$4 sm:$0xff]   ;;  %v629_v2 = vld [vmem:[%s956_s1] ss:$8 sps:$4 sm:$0xff]   ;;  %v631_v4 = vld [vmem:[%s956_s1 + $0x14] ss:$8 sps:$4 sm:$0xff]   ;;  %v101_v40 = vunpack.c.l.s4 %v729_v39 }
   0x2   :  { %v627_v1 = vld [vmem:[%s956_s1 + $0x104] ss:$8 sps:$4 sm:$0xff]   ;;  %440 = vmatprep.subr.bf16.mxu1 %v625_v0  ;;  %v630_v3 = vld [vmem:[%s956_s1 + $0x100] ss:$8 sps:$4 sm:$0xff]   ;;  %v633_v5 = vld [vmem:[%s956_s1 + $0x114] ss:$8 sps:$4 sm:$0xff]  }
   0x3   :  { %481 = vmatprep.subr.bf16.mxu0 %v627_v1  ;;  %441 = vmatpush1.bf16.msra.mxu1 %v629_v2  ;;  %v635_v6 = vld [vmem:[%s956_s1 + $0x10] ss:$8 sps:$4 sm:$0xff]   ;;  %v637_v8 = vld [vmem:[%s956_s1 + $0x24] ss:$8 sps:$4 sm:$0xff]   ;;  %v641_v10 = vld [vmem:[%s956_s1 + $0x20] ss:$8 sps:$4 sm:$0xff]   ;;  %v102_v46 = vunpack.c.0.s8 %v101_v40 }
   0x4   :  { %482 = vmatpush1.bf16.msra.mxu0 %v630_v3  ;;  %442 = vmatprep.subr.bf16.mxu1 %v631_v4  ;;  %v636_v7 = vld [vmem:[%s956_s1 + $0x110] ss:$8 sps:$4 sm:$0xff]   ;;  %v639_v9 = vld [vmem:[%s956_s1 + $0x124] ss:$8 sps:$4 sm:$0xff]   ;;  %v642_v11 = vld [vmem:[%s956_s1 + $0x120] ss:$8 sps:$4 sm:$0xff]  }
   0x5   :  { %483 = vmatprep.subr.bf16.mxu0 %v633_v5  ;;  %v643_v12 = vld [vmem:[%s956_s1 + $0x34] ss:$8 sps:$4 sm:$0xff]   ;;  %v647_v14 = vld [vmem:[%s956_s1 + $0x30] ss:$8 sps:$4 sm:$0xff]   ;;  %v649_v16 = vld [vmem:[%s956_s1 + $0x44] ss:$8 sps:$4 sm:$0xff]  }
   0x6   :  { %v645_v13 = vld [vmem:[%s956_s1 + $0x134] ss:$8 sps:$4 sm:$0xff]   ;;  %v648_v15 = vld [vmem:[%s956_s1 + $0x130] ss:$8 sps:$4 sm:$0xff]   ;;  %v651_v17 = vld [vmem:[%s956_s1 + $0x144] ss:$8 sps:$4 sm:$0xff]  }
   0x7   :  { %443 = vmatpush1.bf16.msra.mxu1 %v635_v6  ;;  %v653_v18 = vld [vmem:[%s956_s1 + $0x40] ss:$8 sps:$4 sm:$0xff]   ;;  %v655_v20 = vld [vmem:[%s956_s1 + $0x54] ss:$8 sps:$4 sm:$0xff]   ;;  %v659_v22 = vld [vmem:[%s956_s1 + $0x50] ss:$8 sps:$4 sm:$0xff]  }
   0x8   :  { %484 = vmatpush1.bf16.msra.mxu0 %v636_v7  ;;  %444 = vmatprep.subr.bf16.mxu1 %v637_v8  ;;  %v654_v19 = vld [vmem:[%s956_s1 + $0x140] ss:$8 sps:$4 sm:$0xff]   ;;  %v657_v21 = vld [vmem:[%s956_s1 + $0x154] ss:$8 sps:$4 sm:$0xff]   ;;  %v660_v23 = vld [vmem:[%s956_s1 + $0x150] ss:$8 sps:$4 sm:$0xff]  }
   0x9   :  { %485 = vmatprep.subr.bf16.mxu0 %v639_v9  ;;  %v661_v24 = vld [vmem:[%s956_s1 + $0x64] ss:$8 sps:$4 sm:$0xff]   ;;  %v665_v26 = vld [vmem:[%s956_s1 + $0x60] ss:$8 sps:$4 sm:$0xff]   ;;  %v667_v28 = vld [vmem:[%s956_s1 + $0x74] ss:$8 sps:$4 sm:$0xff]  }
   0xa   :  { %v663_v25 = vld [vmem:[%s956_s1 + $0x164] ss:$8 sps:$4 sm:$0xff]   ;;  %v666_v27 = vld [vmem:[%s956_s1 + $0x160] ss:$8 sps:$4 sm:$0xff]   ;;  %v669_v29 = vld [vmem:[%s956_s1 + $0x174] ss:$8 sps:$4 sm:$0xff]  }
   0xb   :  { %445 = vmatpush1.bf16.msra.mxu1 %v641_v10  ;;  %v671_v30 = vld [vmem:[%s956_s1 + $0x70] ss:$8 sps:$4 sm:$0xff]   ;;  %v673_v32 = vld [vmem:[%s956_s1 + $0x84] ss:$8 sps:$4 sm:$0xff]   ;;  %v677_v34 = vld [vmem:[%s956_s1 + $0x80] ss:$8 sps:$4 sm:$0xff]  }
   0xc   :  { %486 = vmatpush1.bf16.msra.mxu0 %v642_v11  ;;  %446 = vmatprep.subr.bf16.mxu1 %v643_v12  ;;  %v672_v31 = vld [vmem:[%s956_s1 + $0x170] ss:$8 sps:$4 sm:$0xff]   ;;  %v675_v33 = vld [vmem:[%s956_s1 + $0x184] ss:$8 sps:$4 sm:$0xff]   ;;  %v678_v35 = vld [vmem:[%s956_s1 + $0x180] ss:$8 sps:$4 sm:$0xff]  }
   0xd   :  { %487 = vmatprep.subr.bf16.mxu0 %v645_v13  ;;  %v679_v36 = vld [vmem:[%s956_s1 + $0x94] ss:$8 sps:$4 sm:$0xff]   ;;  %v683_v41 = vld [vmem:[%s956_s1 + $0x90] ss:$8 sps:$4 sm:$0xff]   ;;  %v685_v43 = vld [vmem:[%s956_s1 + $0xa4] ss:$8 sps:$4 sm:$0xff]  }
   0xe   :  { %v681_v37 = vld [vmem:[%s956_s1 + $0x194] ss:$8 sps:$4 sm:$0xff]   ;;  %v684_v42 = vld [vmem:[%s956_s1 + $0x190] ss:$8 sps:$4 sm:$0xff]   ;;  %v687_v44 = vld [vmem:[%s956_s1 + $0x1a4] ss:$8 sps:$4 sm:$0xff]  }
   0xf   :  { %447 = vmatpush1.bf16.msra.mxu1 %v647_v14  ;;  %v876_v45 = vshrl.u32 %v81_v38, 7  ;;  %v689_v47 = vld [vmem:[%s956_s1 + $0xa0] ss:$8 sps:$4 sm:$0xff]   ;;  %v691_v49 = vld [vmem:[%s956_s1 + $0xb4] ss:$8 sps:$4 sm:$0xff]  }
  0x10   :  { %488 = vmatpush1.bf16.msra.mxu0 %v648_v15  ;;  %448 = vmatprep.subr.bf16.mxu1 %v649_v16  ;;  %v690_v48 = vld [vmem:[%s956_s1 + $0x1a0] ss:$8 sps:$4 sm:$0xff]   ;;  %v693_v50 = vld [vmem:[%s956_s1 + $0x1b4] ss:$8 sps:$4 sm:$0xff]   ;;  %v695_v53 = vld [vmem:[%s956_s1 + $0xb0] ss:$8 sps:$4 sm:$0xff]  }
  0x11   :  { %489 = vmatprep.subr.bf16.mxu0 %v651_v17  ;;  %v105_v51 = vsub.s32 %v102_v46, %v876_v45  ;;  %v552_v52 = vld.sshfl [vmem:[%s957_s0] sm:$0x33 pattern:$0x75316420]  ;;  %v696_v54 = vld [vmem:[%s956_s1 + $0x1b0] ss:$8 sps:$4 sm:$0xff]  }
  0x12   :  { %v99_v55 = vcombine.high %v552_v52, %v552_v52  ;;  %v697_v56 = vld [vmem:[%s956_s1 + $0xc4] ss:$8 sps:$4 sm:$0xff]   ;;  %v701_v59 = vld [vmem:[%s956_s1 + $0xc0] ss:$8 sps:$4 sm:$0xff]   ;;  %v703_v62 = vld [vmem:[%s956_s1 + $0xd4] ss:$8 sps:$4 sm:$0xff]  }
  0x13   :  { %449 = vmatpush1.bf16.msra.mxu1 %v653_v18  ;;  %v699_v57 = vld [vmem:[%s956_s1 + $0x1c4] ss:$8 sps:$4 sm:$0xff]   ;;  %v702_v60 = vld [vmem:[%s956_s1 + $0x1c0] ss:$8 sps:$4 sm:$0xff]   ;;  %v705_v63 = vld [vmem:[%s956_s1 + $0x1d4] ss:$8 sps:$4 sm:$0xff]   ;;  %v106_v8 = vrot.slane %v552_v52, %v105_v51 }
  0x14   :  { %490 = vmatpush1.bf16.msra.mxu0 %v654_v19  ;;  %450 = vmatprep.subr.bf16.mxu1 %v655_v20  ;;  %v113_v58 = vrot.slane %v99_v55, %v105_v51  ;;  %v707_v0 = vld [vmem:[%s956_s1 + $0xd0] ss:$8 sps:$4 sm:$0xff]   ;;  %v709_v2 = vld [vmem:[%s956_s1 + $0xe4] ss:$8 sps:$4 sm:$0xff]   ;;  %v713_v4 = vld [vmem:[%s956_s1 + $0xe0] ss:$8 sps:$4 sm:$0xff]  }
  0x15   :  { %491 = vmatprep.subr.bf16.mxu0 %v657_v21  ;;  %v708_v1 = vld [vmem:[%s956_s1 + $0x1d0] ss:$8 sps:$4 sm:$0xff]   ;;  %v711_v3 = vld [vmem:[%s956_s1 + $0x1e4] ss:$8 sps:$4 sm:$0xff]   ;;  %v714_v5 = vld [vmem:[%s956_s1 + $0x1e0] ss:$8 sps:$4 sm:$0xff]   ;;  %v114_v11 = vcombine.high %v106_v8, %v106_v8 }
  0x16   :  { %v115_v61 = vcombine.high %v113_v58, %v113_v58  ;;  %472 = vmatprep.mubr.bf16.mxu1 %v113_v58  ;;  %v715_v6 = vld [vmem:[%s956_s1 + $0xf4] ss:$8 sps:$4 sm:$0xff]   ;;  %v719_v9 = vld [vmem:[%s956_s1 + $0xf0] ss:$8 sps:$4 sm:$0xff]   ;;  %v83_v12 = vsub.s32 0, %v876_v45  ;;  %v87_v14 = vsub.s32 1, %v876_v45 }
  0x17   :  { %451 = vmatpush1.bf16.msra.mxu1 %v659_v22  ;;  %v717_v7 = vld [vmem:[%s956_s1 + $0x1f4] ss:$8 sps:$4 sm:$0xff]   ;;  %v720_v10 = vld [vmem:[%s956_s1 + $0x1f0] ss:$8 sps:$4 sm:$0xff]   ;;  %v79_v13 = vld [vmem:[%s958_s2] sm:$0x3] }
  0x18   :  { %492 = vmatpush1.bf16.msra.mxu0 %v660_v23  ;;  %452 = vmatprep.subr.bf16.mxu1 %v661_v24  ;;  %v84_v15 = vrot.slane %v79_v13, %v83_v12  ;;  %v88_v16 = vrot.slane %v79_v13, %v87_v14 }
  0x19   :  { %493 = vmatprep.subr.bf16.mxu0 %v663_v25  ;;  %513 = vmatprep.mubr.bf16.mxu0 %v115_v61 }
  0x1b   :  { %453 = vmatpush1.bf16.msra.mxu1 %v665_v26 }
  0x1c   :  { %494 = vmatpush1.bf16.msra.mxu0 %v666_v27  ;;  %454 = vmatprep.subr.bf16.mxu1 %v667_v28 }
  0x1d   :  { %495 = vmatprep.subr.bf16.mxu0 %v669_v29 }
  0x1f   :  { %455 = vmatpush1.bf16.msra.mxu1 %v671_v30 }
  0x20   :  { %496 = vmatpush1.bf16.msra.mxu0 %v672_v31  ;;  %456 = vmatprep.subr.bf16.mxu1 %v673_v32 }
  0x21   :  { %497 = vmatprep.subr.bf16.mxu0 %v675_v33 }
  0x23   :  { %457 = vmatpush1.bf16.msra.mxu1 %v677_v34 }
  0x24   :  { %498 = vmatpush1.bf16.msra.mxu0 %v678_v35  ;;  %458 = vmatprep.subr.bf16.mxu1 %v679_v36 }
  0x25   :  { %499 = vmatprep.subr.bf16.mxu0 %v681_v37 }
  0x27   :  { %459 = vmatpush1.bf16.msra.mxu1 %v683_v41 }
  0x28   :  { %500 = vmatpush1.bf16.msra.mxu0 %v684_v42  ;;  %460 = vmatprep.subr.bf16.mxu1 %v685_v43 }
  0x29   :  { %501 = vmatprep.subr.bf16.mxu0 %v687_v44 }
  0x2b   :  { %461 = vmatpush1.bf16.msra.mxu1 %v689_v47 }
  0x2c   :  { %502 = vmatpush1.bf16.msra.mxu0 %v690_v48  ;;  %462 = vmatprep.subr.bf16.mxu1 %v691_v49 }
  0x2d   :  { %503 = vmatprep.subr.bf16.mxu0 %v693_v50 }
  0x2f   :  { %463 = vmatpush1.bf16.msra.mxu1 %v695_v53 }
  0x30   :  { %504 = vmatpush1.bf16.msra.mxu0 %v696_v54  ;;  %464 = vmatprep.subr.bf16.mxu1 %v697_v56 }
  0x31   :  { %505 = vmatprep.subr.bf16.mxu0 %v699_v57 }
  0x33   :  { %465 = vmatpush1.bf16.msra.mxu1 %v701_v59 }
  0x34   :  { %506 = vmatpush1.bf16.msra.mxu0 %v702_v60  ;;  %466 = vmatprep.subr.bf16.mxu1 %v703_v62 }
  0x35   :  { %507 = vmatprep.subr.bf16.mxu0 %v705_v63 }
  0x37   :  { %467 = vmatpush1.bf16.msra.mxu1 %v707_v0 }
  0x38   :  { %508 = vmatpush1.bf16.msra.mxu0 %v708_v1  ;;  %468 = vmatprep.subr.bf16.mxu1 %v709_v2 }
  0x39   :  { %509 = vmatprep.subr.bf16.mxu0 %v711_v3 }
  0x3b   :  { %469 = vmatpush1.bf16.msra.mxu1 %v713_v4 }
  0x3c   :  { %510 = vmatpush1.bf16.msra.mxu0 %v714_v5  ;;  %470 = vmatprep.subr.bf16.mxu1 %v715_v6 }
  0x3d   :  { %511 = vmatprep.subr.bf16.mxu0 %v717_v7 }
  0x3f   :  { %471 = vmatpush1.bf16.msra.mxu1 %v719_v9 }
  0x40   :  { %512 = vmatpush1.bf16.msra.mxu0 %v720_v10 }
  0x42   :  { %473 = vmatmul.mubr.bf16.vlgmr.msra.gmra.mrb[0].mxu1 %v106_v8 }
  0x43   :  { %514 = vmatmul.mubr.bf16.vlgmr.msra.gmra.mrb[0].mxu0 %v114_v11 }
 0x115   :  { %v474_v17 = vpop.f32.mrb[0].mxu1 }
 0x116   :  { %v515_v18 = vpop.f32.mrb[0].mxu0  ;;  %v475_v19 = vadd.f32 %v474_v17, %v84_v15  ;;  %v476_v20 = vpop.f32.mrb[1].mxu1 }
 0x117   :  { %v517_v21 = vpop.f32.mrb[1].mxu0  ;;  %v477_v22 = vadd.f32 %v476_v20, %v88_v16  ;;  %v478_v23 = vpop.f32.mrb[2].mxu1 }
 0x118   :  { %v519_v24 = vpop.f32.mrb[2].mxu0  ;;  %v516_v25 = vadd.f32 %v515_v18, %v475_v19  ;;  %v479_v26 = vpop.f32.mrb[3].mxu1 }
 0x119   :  { %v520_v27 = vpop.f32.mrb[3].mxu0  ;;  %v518_v28 = vadd.f32 %v517_v21, %v477_v22 }
 0x11a   :  { %v617_v29 = vmul.f32 -1.442695, %v516_v25 }
 0x11b   :  { %v618_v30 = vmul.f32 -1.442695, %v518_v28 }
 0x11c   :  { %721 = vpow2.f32 %v617_v29 }
 0x11d   :  { %723 = vpow2.f32 %v618_v30 }
 0x126   :  { %v722_v31 = vpop.eup %721 }
 0x127   :  { %v724_v32 = vpop.eup %723  ;;  %v528_v33 = vadd.f32 1.0, %v722_v31 }
 0x128   :  { %v529_v34 = vadd.f32 1.0, %v724_v32 }
 0x129   :  { %725 = vrcp.f32 %v528_v33 }
 0x12a   :  { %727 = vrcp.f32 %v529_v34 }
 0x133   :  { %v726_v35 = vpop.eup %725 }
 0x134   :  { %v728_v36 = vpop.eup %727  ;;  %v534_v37 = vmul.f32 %v726_v35, %v516_v25 }
 0x135   :  { %v535_v38 = vmul.f32 %v728_v36, %v518_v28 }
 0x137   :  { %v538_v39 = vcombine.low %v534_v37, %v535_v38 }
 0x139   :  { %619 = vst.sshfl [vmem:[%s959_s3] sm:$0x33 pattern:$0x76325410] %v538_v39 }

// kernel: _forward.84
= control target key start
LH: loop header
LB: loop body
LE: loop exit
PB: predicated region body
PF: predicated region fallthrough
CT: control target
= control target key end

     0   :  { %v181_v0 = vmov 0.0   ;;  %vm182_vm0 = vmmov 0   ;;  %vm127_vm1 = vcmask 517120   ;;  %s236_s1 = inlined_call_operand.vmem [shape: bf16[128,64], index: 1, kind: input, shape index: {}]   ;;  %s237_s0 = inlined_call_operand.vmem [shape: bf16[2,128], index: 0, kind: input, shape index: {}]   ;;  %s238_s2 = inlined_call_operand.vmem [shape: f32[1,64], index: 2, kind: input, shape index: {}]   ;;  %s239_s3 = inlined_call_operand.vmem [shape: f32[2,64], index: 3, kind: output, shape index: {}]  }
   0x1   :  { %151 = vmatprep.subr.bf16.mxu0 %v181_v0  ;;  %v173_v1 = vld [vmem:[%s236_s1] sm:$0xff]   ;;  %167 = vmatprep.mubr.msk.bf16.mxu0 %vm182_vm0, %v181_v0  ;;  %v174_v2 = vld [vmem:[%s236_s1 + $0x8] sm:$0xff]   ;;  %v175_v3 = vld [vmem:[%s236_s1 + $0x10] sm:$0xff]  }
   0x2   :  { %152 = vmatpush3.bf16.msra.mxu0 %v173_v1  ;;  %v176_v4 = vld [vmem:[%s236_s1 + $0x18] sm:$0xff]   ;;  %v177_v5 = vld [vmem:[%s236_s1 + $0x20] sm:$0xff]   ;;  %v178_v6 = vld [vmem:[%s236_s1 + $0x28] sm:$0xff]  }
   0x3   :  { %153 = vmatprep.subr.bf16.mxu0 %v181_v0  ;;  %v179_v7 = vld [vmem:[%s236_s1 + $0x30] sm:$0xff]   ;;  %v180_v8 = vld [vmem:[%s236_s1 + $0x38] sm:$0xff]   ;;  %v15_v9 = vld [vmem:[%s237_s0] sm:$0x1] }
   0x4   :  { %v133_v10 = vld [vmem:[%s238_s2] ss:$0 sm:$0xff] }
   0x6   :  { %154 = vmatpush3.bf16.msra.mxu0 %v174_v2 }
   0x7   :  { %155 = vmatprep.subr.bf16.mxu0 %v181_v0 }
   0xa   :  { %156 = vmatpush3.bf16.msra.mxu0 %v175_v3 }
   0xb   :  { %157 = vmatprep.subr.bf16.mxu0 %v181_v0 }
   0xe   :  { %158 = vmatpush3.bf16.msra.mxu0 %v176_v4 }
   0xf   :  { %159 = vmatprep.subr.bf16.mxu0 %v181_v0 }
  0x12   :  { %160 = vmatpush3.bf16.msra.mxu0 %v177_v5 }
  0x13   :  { %161 = vmatprep.subr.bf16.mxu0 %v181_v0 }
  0x16   :  { %162 = vmatpush3.bf16.msra.mxu0 %v178_v6 }
  0x17   :  { %163 = vmatprep.subr.bf16.mxu0 %v181_v0 }
  0x1a   :  { %164 = vmatpush3.bf16.msra.mxu0 %v179_v7 }
  0x1b   :  { %165 = vmatprep.subr.bf16.mxu0 %v181_v0 }
  0x1e   :  { %166 = vmatpush3.bf16.msra.mxu0 %v180_v8 }
  0x21   :  { %168 = vmatmul.mubr.bf16.vlgmr.msra.gmra.mrb[0].mxu0 %v15_v9 }
  0xf4   :  { %v121_v11 = vpop.f32.mrb[0].mxu0 }
  0xf5   :  { %v122_v12 = vadd.f32 %v133_v10, %v121_v11  ;;  %v169_v13 = vpop.f32.mrb[1].mxu0 }
  0xf6   :  { %v124_v14 = vpop.f32.mrb[2].mxu0 }
  0xf7   :  { %128 = vst.msk [vmem:[%s239_s3] sm:$0x3] %vm127_vm1, %v122_v12  ;;  %v170_v15 = vpop.f32.mrb[3].mxu0 }

// kernel: _forward.85
= control target key start
LH: loop header
LB: loop body
LE: loop exit
PB: predicated region body
PF: predicated region fallthrough
CT: control target
= control target key end

     0   :  { %v247_v1 = vmov 0   ;;  %v34_v18 = vlaneseq  ;;  %s325_s1 = inlined_call_operand.vmem [shape: bf16[128,256], index: 1, kind: input, shape index: {}]   ;;  %s326_s0 = inlined_call_operand.vmem [shape: bf16[2,128], index: 0, kind: input, shape index: {}]   ;;  %s327_s2 = inlined_call_operand.vmem [shape: f32[1,256], index: 2, kind: input, shape index: {}]   ;;  %s328_s3 = inlined_call_operand.vmem [shape: f32[2,256], index: 3, kind: output, shape index: {}]  }
   0x1   :  { %v215_v0 = vld [vmem:[%s325_s1 + $0x4] ss:$8 sps:$4 sm:$0xff]   ;;  %156 = vmatprep.mubr.bf16.mxu0 %v247_v1  ;;  %v217_v2 = vld [vmem:[%s325_s1] ss:$8 sps:$4 sm:$0xff]   ;;  %v218_v3 = vld [vmem:[%s325_s1 + $0x14] ss:$8 sps:$4 sm:$0xff]  }
   0x2   :  { %124 = vmatprep.subr.bf16.mxu0 %v215_v0  ;;  %v220_v4 = vld [vmem:[%s325_s1 + $0x10] ss:$8 sps:$4 sm:$0xff]   ;;  %v221_v5 = vld [vmem:[%s325_s1 + $0x24] ss:$8 sps:$4 sm:$0xff]   ;;  %v223_v6 = vld [vmem:[%s325_s1 + $0x20] ss:$8 sps:$4 sm:$0xff]  }
   0x3   :  { %125 = vmatpush1.bf16.msra.mxu0 %v217_v2  ;;  %v224_v7 = vld [vmem:[%s325_s1 + $0x34] ss:$8 sps:$4 sm:$0xff]   ;;  %v226_v8 = vld [vmem:[%s325_s1 + $0x30] ss:$8 sps:$4 sm:$0xff]   ;;  %v227_v9 = vld [vmem:[%s325_s1 + $0x44] ss:$8 sps:$4 sm:$0xff]  }
   0x4   :  { %126 = vmatprep.subr.bf16.mxu0 %v218_v3  ;;  %v229_v10 = vld [vmem:[%s325_s1 + $0x40] ss:$8 sps:$4 sm:$0xff]   ;;  %v230_v11 = vld [vmem:[%s325_s1 + $0x54] ss:$8 sps:$4 sm:$0xff]   ;;  %v232_v12 = vld [vmem:[%s325_s1 + $0x50] ss:$8 sps:$4 sm:$0xff]  }
   0x5   :  { %v233_v13 = vld [vmem:[%s325_s1 + $0x64] ss:$8 sps:$4 sm:$0xff]   ;;  %v235_v14 = vld [vmem:[%s325_s1 + $0x60] ss:$8 sps:$4 sm:$0xff]   ;;  %v236_v15 = vld [vmem:[%s325_s1 + $0x74] ss:$8 sps:$4 sm:$0xff]  }
   0x6   :  { %v238_v16 = vld [vmem:[%s325_s1 + $0x70] ss:$8 sps:$4 sm:$0xff]   ;;  %v15_v17 = vld [vmem:[%s326_s0] sm:$0x1]  ;;  %v35_v19 = vshrl.u32 %v34_v18, 7 }
   0x7   :  { %127 = vmatpush1.bf16.msra.mxu0 %v220_v4  ;;  %v32_v21 = vld [vmem:[%s327_s2] sm:$0x3] }
   0x8   :  { %128 = vmatprep.subr.bf16.mxu0 %v221_v5  ;;  %v36_v20 = vsub.s32 0, %v35_v19  ;;  %v40_v22 = vsub.s32 1, %v35_v19 }
   0xa   :  { %v37_v23 = vrot.slane %v32_v21, %v36_v20  ;;  %v41_v24 = vrot.slane %v32_v21, %v40_v22 }
   0xb   :  { %129 = vmatpush1.bf16.msra.mxu0 %v223_v6 }
   0xc   :  { %130 = vmatprep.subr.bf16.mxu0 %v224_v7 }
   0xf   :  { %131 = vmatpush1.bf16.msra.mxu0 %v226_v8 }
  0x10   :  { %132 = vmatprep.subr.bf16.mxu0 %v227_v9 }
  0x13   :  { %133 = vmatpush1.bf16.msra.mxu0 %v229_v10 }
  0x14   :  { %134 = vmatprep.subr.bf16.mxu0 %v230_v11 }
  0x17   :  { %135 = vmatpush1.bf16.msra.mxu0 %v232_v12 }
  0x18   :  { %136 = vmatprep.subr.bf16.mxu0 %v233_v13 }
  0x1b   :  { %137 = vmatpush1.bf16.msra.mxu0 %v235_v14 }
  0x1c   :  { %138 = vmatprep.subr.bf16.mxu0 %v236_v15 }
  0x1f   :  { %139 = vmatpush1.bf16.msra.mxu0 %v238_v16 }
  0x22   :  { %157 = vmatmul.mubr.bf16.vlgmr.msra.gmra.mrb[0].mxu0 %v15_v17 }
  0xf5   :  { %v158_v25 = vpop.f32.mrb[0].mxu0 }
  0xf6   :  { %v159_v26 = vadd.f32 %v158_v25, %v37_v23  ;;  %v160_v27 = vpop.f32.mrb[1].mxu0 }
  0xf7   :  { %v161_v28 = vadd.f32 %v160_v27, %v41_v24  ;;  %v162_v29 = vpop.f32.mrb[2].mxu0 }
  0xf8   :  { %v211_v30 = vmul.f32 -1.442695, %v159_v26  ;;  %v163_v31 = vpop.f32.mrb[3].mxu0 }
  0xf9   :  { %v212_v32 = vmul.f32 -1.442695, %v161_v28 }
  0xfa   :  { %239 = vpow2.f32 %v211_v30 }
  0xfb   :  { %241 = vpow2.f32 %v212_v32 }
 0x104   :  { %v240_v33 = vpop.eup %239 }
 0x105   :  { %v242_v34 = vpop.eup %241  ;;  %v171_v35 = vadd.f32 1.0, %v240_v33 }
 0x106   :  { %v172_v36 = vadd.f32 1.0, %v242_v34 }
 0x107   :  { %243 = vrcp.f32 %v171_v35 }
 0x108   :  { %245 = vrcp.f32 %v172_v36 }
 0x111   :  { %v244_v37 = vpop.eup %243 }
 0x112   :  { %v246_v38 = vpop.eup %245  ;;  %v177_v39 = vmul.f32 %v244_v37, %v159_v26 }
 0x113   :  { %v178_v40 = vmul.f32 %v246_v38, %v161_v28 }
 0x115   :  { %v181_v41 = vcombine.low %v177_v39, %v178_v40 }
 0x117   :  { %213 = vst.sshfl [vmem:[%s328_s3] sm:$0x33 pattern:$0x76325410] %v181_v41 }

// kernel: _forward.86
= control target key start
LH: loop header
LB: loop body
LE: loop exit
PB: predicated region body
PF: predicated region fallthrough
CT: control target
= control target key end

     0   :  { %v571_v1 = vmov 0   ;;  %v67_v57 = vlaneseq  ;;  %s751_s1 = inlined_call_operand.vmem [shape: bf16[384,256], index: 1, kind: input, shape index: {}]   ;;  %s752_s0 = inlined_call_operand.vmem [shape: bf16[8,384], index: 0, kind: input, shape index: {}]   ;;  %s753_s2 = inlined_call_operand.vmem [shape: f32[1,256], index: 2, kind: input, shape index: {}]   ;;  %s754_s3 = inlined_call_operand.vmem [shape: f32[8,256], index: 3, kind: output, shape index: {}]  }
   0x1   :  { %v488_v0 = vld [vmem:[%s751_s1 + $0x4] ss:$8 sps:$4 sm:$0xff]   ;;  %401 = vmatprep.mubr.bf16.mxu0 %v571_v1  ;;  %v490_v2 = vld [vmem:[%s751_s1] ss:$8 sps:$4 sm:$0xff]   ;;  %v491_v3 = vld [vmem:[%s751_s1 + $0x14] ss:$8 sps:$4 sm:$0xff]  }
   0x2   :  { %328 = vmatprep.subr.bf16.mxu1 %v488_v0  ;;  %v493_v4 = vld [vmem:[%s751_s1 + $0x10] ss:$8 sps:$4 sm:$0xff]   ;;  %v494_v5 = vld [vmem:[%s751_s1 + $0x24] ss:$8 sps:$4 sm:$0xff]   ;;  %v496_v6 = vld [vmem:[%s751_s1 + $0x20] ss:$8 sps:$4 sm:$0xff]  }
   0x3   :  { %329 = vmatpush1.bf16.msra.mxu1 %v490_v2  ;;  %v497_v7 = vld [vmem:[%s751_s1 + $0x34] ss:$8 sps:$4 sm:$0xff]   ;;  %v499_v8 = vld [vmem:[%s751_s1 + $0x30] ss:$8 sps:$4 sm:$0xff]   ;;  %v512_v9 = vld [vmem:[%s751_s1 + $0x104] ss:$8 sps:$4 sm:$0xff]  }
   0x4   :  { %330 = vmatprep.subr.bf16.mxu1 %v491_v3  ;;  %v500_v10 = vld [vmem:[%s751_s1 + $0x44] ss:$8 sps:$4 sm:$0xff]   ;;  %v516_v11 = vld [vmem:[%s751_s1 + $0x100] ss:$8 sps:$4 sm:$0xff]   ;;  %369 = vmatprep.subr.bf16.mxu0 %v512_v9  ;;  %v518_v12 = vld [vmem:[%s751_s1 + $0x114] ss:$8 sps:$4 sm:$0xff]  }
   0x5   :  { %370 = vmatpush1.bf16.msra.mxu0 %v516_v11  ;;  %v502_v13 = vld [vmem:[%s751_s1 + $0x40] ss:$8 sps:$4 sm:$0xff]   ;;  %v503_v14 = vld [vmem:[%s751_s1 + $0x54] ss:$8 sps:$4 sm:$0xff]   ;;  %v522_v15 = vld [vmem:[%s751_s1 + $0x110] ss:$8 sps:$4 sm:$0xff]  }
   0x6   :  { %371 = vmatprep.subr.bf16.mxu0 %v518_v12  ;;  %v524_v16 = vld [vmem:[%s751_s1 + $0x124] ss:$8 sps:$4 sm:$0xff]   ;;  %v505_v17 = vld [vmem:[%s751_s1 + $0x50] ss:$8 sps:$4 sm:$0xff]   ;;  %v528_v18 = vld [vmem:[%s751_s1 + $0x120] ss:$8 sps:$4 sm:$0xff]  }
   0x7   :  { %331 = vmatpush1.bf16.msra.mxu1 %v493_v4  ;;  %v530_v19 = vld [vmem:[%s751_s1 + $0x134] ss:$8 sps:$4 sm:$0xff]   ;;  %v506_v20 = vld [vmem:[%s751_s1 + $0x64] ss:$8 sps:$4 sm:$0xff]   ;;  %v534_v21 = vld [vmem:[%s751_s1 + $0x130] ss:$8 sps:$4 sm:$0xff]  }
   0x8   :  { %332 = vmatprep.subr.bf16.mxu1 %v494_v5  ;;  %v508_v22 = vld [vmem:[%s751_s1 + $0x60] ss:$8 sps:$4 sm:$0xff]   ;;  %v536_v23 = vld [vmem:[%s751_s1 + $0x144] ss:$8 sps:$4 sm:$0xff]   ;;  %v509_v24 = vld [vmem:[%s751_s1 + $0x74] ss:$8 sps:$4 sm:$0xff]  }
   0x9   :  { %372 = vmatpush1.bf16.msra.mxu0 %v522_v15  ;;  %v511_v25 = vld [vmem:[%s751_s1 + $0x70] ss:$8 sps:$4 sm:$0xff]   ;;  %v540_v26 = vld [vmem:[%s751_s1 + $0x140] ss:$8 sps:$4 sm:$0xff]   ;;  %v542_v27 = vld [vmem:[%s751_s1 + $0x154] ss:$8 sps:$4 sm:$0xff]  }
   0xa   :  { %373 = vmatprep.subr.bf16.mxu0 %v524_v16  ;;  %v514_v28 = vld [vmem:[%s751_s1 + $0x84] ss:$8 sps:$4 sm:$0xff]   ;;  %v546_v29 = vld [vmem:[%s751_s1 + $0x150] ss:$8 sps:$4 sm:$0xff]   ;;  %v517_v30 = vld [vmem:[%s751_s1 + $0x80] ss:$8 sps:$4 sm:$0xff]  }
   0xb   :  { %333 = vmatpush1.bf16.msra.mxu1 %v496_v6  ;;  %v548_v31 = vld [vmem:[%s751_s1 + $0x164] ss:$8 sps:$4 sm:$0xff]   ;;  %v520_v32 = vld [vmem:[%s751_s1 + $0x94] ss:$8 sps:$4 sm:$0xff]   ;;  %v552_v35 = vld [vmem:[%s751_s1 + $0x160] ss:$8 sps:$4 sm:$0xff]  }
   0xc   :  { %334 = vmatprep.subr.bf16.mxu1 %v497_v7  ;;  %v15_v33 = vld [vmem:[%s752_s0] sm:$0xff]  ;;  %v523_v36 = vld [vmem:[%s751_s1 + $0x90] ss:$8 sps:$4 sm:$0xff]   ;;  %v554_v37 = vld [vmem:[%s751_s1 + $0x174] ss:$8 sps:$4 sm:$0xff]   ;;  %v68_v58 = vshrl.u32 %v67_v57, 7 }
   0xd   :  { %374 = vmatpush1.bf16.msra.mxu0 %v528_v18  ;;  %v431_v34 = vcombine.high %v15_v33, %v15_v33  ;;  %v526_v38 = vld [vmem:[%s751_s1 + $0xa4] ss:$8 sps:$4 sm:$0xff]   ;;  %v558_v39 = vld [vmem:[%s751_s1 + $0x170] ss:$8 sps:$4 sm:$0xff]   ;;  %v529_v40 = vld [vmem:[%s751_s1 + $0xa0] ss:$8 sps:$4 sm:$0xff]   ;;  %v430_v52 = vcombine.low %v15_v33, %v15_v33 }
   0xe   :  { %375 = vmatprep.subr.bf16.mxu0 %v530_v19  ;;  %v532_v41 = vld [vmem:[%s751_s1 + $0xb4] ss:$8 sps:$4 sm:$0xff]   ;;  %v562_v42 = vld [vmem:[%s752_s0 + $0x8] ss:$0 sps:$4 sm:$0xff]   ;;  %v535_v43 = vld [vmem:[%s751_s1 + $0xb0] ss:$8 sps:$4 sm:$0xff]  }
   0xf   :  { %335 = vmatpush1.bf16.msra.mxu1 %v499_v8  ;;  %360 = vmatprep.mubr.bf16.mxu1 %v431_v34  ;;  %v538_v44 = vld [vmem:[%s751_s1 + $0xc4] ss:$8 sps:$4 sm:$0xff]   ;;  %v541_v45 = vld [vmem:[%s751_s1 + $0xc0] ss:$8 sps:$4 sm:$0xff]   ;;  %v544_v46 = vld [vmem:[%s751_s1 + $0xd4] ss:$8 sps:$4 sm:$0xff]  }
  0x10   :  { %336 = vmatprep.subr.bf16.mxu1 %v500_v10  ;;  %v547_v47 = vld [vmem:[%s751_s1 + $0xd0] ss:$8 sps:$4 sm:$0xff]   ;;  %v550_v48 = vld [vmem:[%s751_s1 + $0xe4] ss:$8 sps:$4 sm:$0xff]   ;;  %v553_v49 = vld [vmem:[%s751_s1 + $0xe0] ss:$8 sps:$4 sm:$0xff]  }
  0x11   :  { %376 = vmatpush1.bf16.msra.mxu0 %v534_v21  ;;  %v556_v50 = vld [vmem:[%s751_s1 + $0xf4] ss:$8 sps:$4 sm:$0xff]   ;;  %v559_v51 = vld [vmem:[%s751_s1 + $0xf0] ss:$8 sps:$4 sm:$0xff]   ;;  %v69_v59 = vsub.s32 0, %v68_v58  ;;  %v73_v61 = vsub.s32 1, %v68_v58 }
  0x12   :  { %377 = vmatprep.subr.bf16.mxu0 %v536_v23  ;;  %v65_v60 = vld [vmem:[%s753_s2] sm:$0x3] }
  0x13   :  { %337 = vmatpush1.bf16.msra.mxu1 %v502_v13  ;;  %v70_v62 = vrot.slane %v65_v60, %v69_v59  ;;  %v74_v63 = vrot.slane %v65_v60, %v73_v61 }
  0x14   :  { %338 = vmatprep.subr.bf16.mxu1 %v503_v14 }
  0x15   :  { %378 = vmatpush1.bf16.msra.mxu0 %v540_v26 }
  0x16   :  { %379 = vmatprep.subr.bf16.mxu0 %v542_v27 }
  0x17   :  { %339 = vmatpush1.bf16.msra.mxu1 %v505_v17 }
  0x18   :  { %340 = vmatprep.subr.bf16.mxu1 %v506_v20 }
  0x19   :  { %380 = vmatpush1.bf16.msra.mxu0 %v546_v29 }
  0x1a   :  { %381 = vmatprep.subr.bf16.mxu0 %v548_v31 }
  0x1b   :  { %341 = vmatpush1.bf16.msra.mxu1 %v508_v22 }
  0x1c   :  { %342 = vmatprep.subr.bf16.mxu1 %v509_v24 }
  0x1d   :  { %382 = vmatpush1.bf16.msra.mxu0 %v552_v35 }
  0x1e   :  { %383 = vmatprep.subr.bf16.mxu0 %v554_v37 }
  0x1f   :  { %343 = vmatpush1.bf16.msra.mxu1 %v511_v25 }
  0x20   :  { %344 = vmatprep.subr.bf16.mxu1 %v514_v28 }
  0x21   :  { %384 = vmatpush1.bf16.msra.mxu0 %v558_v39 }
  0x23   :  { %345 = vmatpush1.bf16.msra.mxu1 %v517_v30 }
  0x24   :  { %346 = vmatprep.subr.bf16.mxu1 %v520_v32  ;;  %402 = vmatmul.mubr.bf16.vlgmr.msra.gmra.mrb[0].mxu0 %v562_v42 }
  0x27   :  { %347 = vmatpush1.bf16.msra.mxu1 %v523_v36 }
  0x28   :  { %348 = vmatprep.subr.bf16.mxu1 %v526_v38 }
  0x2b   :  { %349 = vmatpush1.bf16.msra.mxu1 %v529_v40 }
  0x2c   :  { %350 = vmatprep.subr.bf16.mxu1 %v532_v41 }
  0x2f   :  { %351 = vmatpush1.bf16.msra.mxu1 %v535_v43 }
  0x30   :  { %352 = vmatprep.subr.bf16.mxu1 %v538_v44 }
  0x33   :  { %353 = vmatpush1.bf16.msra.mxu1 %v541_v45 }
  0x34   :  { %354 = vmatprep.subr.bf16.mxu1 %v544_v46 }
  0x37   :  { %355 = vmatpush1.bf16.msra.mxu1 %v547_v47 }
  0x38   :  { %356 = vmatprep.subr.bf16.mxu1 %v550_v48 }
  0x3b   :  { %357 = vmatpush1.bf16.msra.mxu1 %v553_v49 }
  0x3c   :  { %358 = vmatprep.subr.bf16.mxu1 %v556_v50 }
  0x3f   :  { %359 = vmatpush1.bf16.msra.mxu1 %v559_v51 }
  0x42   :  { %361 = vmatmul.mubr.bf16.vlgmr.msra.gmra.mrb[0].mxu1 %v430_v52 }
  0xf7   :  { %v403_v53 = vpop.f32.mrb[0].mxu0 }
  0xf8   :  { %v405_v54 = vpop.f32.mrb[1].mxu0 }
  0xf9   :  { %v407_v55 = vpop.f32.mrb[2].mxu0 }
  0xfa   :  { %v408_v56 = vpop.f32.mrb[3].mxu0 }
 0x115   :  { %v362_v0 = vpop.f32.mrb[0].mxu1 }
 0x116   :  { %v363_v1 = vadd.f32 %v362_v0, %v70_v62  ;;  %v364_v2 = vpop.f32.mrb[1].mxu1 }
 0x117   :  { %v365_v3 = vadd.f32 %v364_v2, %v74_v63  ;;  %v366_v4 = vpop.f32.mrb[2].mxu1 }
 0x118   :  { %v404_v5 = vadd.f32 %v403_v53, %v363_v1  ;;  %v367_v6 = vpop.f32.mrb[3].mxu1 }
 0x119   :  { %v406_v7 = vadd.f32 %v405_v54, %v365_v3 }
 0x11a   :  { %v481_v8 = vmul.f32 -1.442695, %v404_v5 }
 0x11b   :  { %v482_v9 = vmul.f32 -1.442695, %v406_v7 }
 0x11c   :  { %563 = vpow2.f32 %v481_v8 }
 0x11d   :  { %565 = vpow2.f32 %v482_v9 }
 0x126   :  { %v564_v10 = vpop.eup %563 }
 0x127   :  { %v566_v11 = vpop.eup %565  ;;  %v416_v12 = vadd.f32 1.0, %v564_v10 }
 0x128   :  { %v417_v13 = vadd.f32 1.0, %v566_v11 }
 0x129   :  { %567 = vrcp.f32 %v416_v12 }
 0x12a   :  { %569 = vrcp.f32 %v417_v13 }
 0x133   :  { %v568_v14 = vpop.eup %567 }
 0x134   :  { %v570_v15 = vpop.eup %569  ;;  %v422_v16 = vmul.f32 %v568_v14, %v404_v5 }
 0x135   :  { %v423_v17 = vmul.f32 %v570_v15, %v406_v7 }
 0x136   :  { %424 = vst [vmem:[%s754_s3] sm:$0xff] %v422_v16 }
 0x137   :  { %425 = vst [vmem:[%s754_s3 + $0x8] sm:$0xff] %v423_v17 }

// kernel: _forward.88
= control target key start
LH: loop header
LB: loop body
LE: loop exit
PB: predicated region body
PF: predicated region fallthrough
CT: control target
= control target key end

     0   :  { %v618_v35 = vmov 0.0   ;;  %vm619_vm0 = vmmov 0   ;;  %vm330_vm1 = vcmask 523264   ;;  %s763_s1 = inlined_call_operand.vmem [shape: bf16[576,128], index: 1, kind: input, shape index: {}]   ;;  %s764_s0 = inlined_call_operand.vmem [shape: bf16[8,576], index: 0, kind: input, shape index: {}]   ;;  %s765_s2 = inlined_call_operand.vmem [shape: f32[1,128], index: 2, kind: input, shape index: {}]   ;;  %s766_s3 = inlined_call_operand.vmem [shape: f32[8,128], index: 3, kind: output, shape index: {}]  }
   0x1   :  { %v573_v0 = vld [vmem:[%s763_s1 + $0x40] sm:$0xff]   ;;  %v577_v4 = vld [vmem:[%s763_s1 + $0x48] sm:$0xff]   ;;  %v581_v8 = vld [vmem:[%s763_s1 + $0x50] sm:$0xff]  }
   0x2   :  { %v574_v1 = vld [vmem:[%s763_s1] sm:$0xff]   ;;  %510 = vmatprep.subr.bf16.mxu0 %v573_v0  ;;  %v578_v5 = vld [vmem:[%s763_s1 + $0x8] sm:$0xff]   ;;  %v582_v9 = vld [vmem:[%s763_s1 + $0x10] sm:$0xff]  }
   0x3   :  { %v575_v2 = vld [vmem:[%s763_s1 + $0xc0] sm:$0xff]   ;;  %511 = vmatpush3.bf16.msra.mxu0 %v574_v1  ;;  %v579_v6 = vld [vmem:[%s763_s1 + $0xc8] sm:$0xff]   ;;  %v583_v10 = vld [vmem:[%s763_s1 + $0xd0] sm:$0xff]  }
   0x4   :  { %v576_v3 = vld [vmem:[%s763_s1 + $0x80] sm:$0xff]   ;;  %532 = vmatprep.subr.bf16.mxu1 %v575_v2  ;;  %512 = vmatprep.subr.bf16.mxu0 %v577_v4  ;;  %v580_v7 = vld [vmem:[%s763_s1 + $0x88] sm:$0xff]   ;;  %v584_v11 = vld [vmem:[%s763_s1 + $0x90] sm:$0xff]  }
   0x5   :  { %533 = vmatpush3.bf16.msra.mxu1 %v576_v3  ;;  %v585_v12 = vld [vmem:[%s763_s1 + $0x58] sm:$0xff]   ;;  %v589_v16 = vld [vmem:[%s763_s1 + $0x60] sm:$0xff]   ;;  %v593_v20 = vld [vmem:[%s763_s1 + $0x68] sm:$0xff]  }
   0x6   :  { %534 = vmatprep.subr.bf16.mxu1 %v579_v6  ;;  %v586_v13 = vld [vmem:[%s763_s1 + $0x18] sm:$0xff]   ;;  %v590_v17 = vld [vmem:[%s763_s1 + $0x20] sm:$0xff]   ;;  %v594_v21 = vld [vmem:[%s763_s1 + $0x28] sm:$0xff]  }
   0x7   :  { %513 = vmatpush3.bf16.msra.mxu0 %v578_v5  ;;  %v587_v14 = vld [vmem:[%s763_s1 + $0xd8] sm:$0xff]   ;;  %v591_v18 = vld [vmem:[%s763_s1 + $0xe0] sm:$0xff]   ;;  %v595_v22 = vld [vmem:[%s763_s1 + $0xe8] sm:$0xff]  }
   0x8   :  { %514 = vmatprep.subr.bf16.mxu0 %v581_v8  ;;  %v588_v15 = vld [vmem:[%s763_s1 + $0x98] sm:$0xff]   ;;  %v592_v19 = vld [vmem:[%s763_s1 + $0xa0] sm:$0xff]   ;;  %v596_v23 = vld [vmem:[%s763_s1 + $0xa8] sm:$0xff]  }
   0x9   :  { %535 = vmatpush3.bf16.msra.mxu1 %v580_v7  ;;  %v597_v24 = vld [vmem:[%s763_s1 + $0x70] sm:$0xff]   ;;  %v601_v28 = vld [vmem:[%s763_s1 + $0x78] sm:$0xff]   ;;  %v15_v31 = vld [vmem:[%s764_s0] sm:$0xff] }
   0xa   :  { %536 = vmatprep.subr.bf16.mxu1 %v583_v10  ;;  %v598_v25 = vld [vmem:[%s763_s1 + $0x30] sm:$0xff]   ;;  %v602_v29 = vld [vmem:[%s763_s1 + $0x38] sm:$0xff]   ;;  %v467_v32 = vcombine.low %v15_v31, %v15_v31  ;;  %v468_v33 = vcombine.high %v15_v31, %v15_v31  ;;  %v16_v36 = vld [vmem:[%s764_s0 + $0x8] sm:$0xff] }
   0xb   :  { %515 = vmatpush3.bf16.msra.mxu0 %v582_v9  ;;  %v599_v26 = vld [vmem:[%s763_s1 + $0xf0] sm:$0xff]   ;;  %v603_v30 = vld [vmem:[%s763_s1 + $0xf8] sm:$0xff]   ;;  %v469_v37 = vcombine.low %v16_v36, %v16_v36  ;;  %v470_v38 = vcombine.high %v16_v36, %v16_v36  ;;  %v610_v39 = vld [vmem:[%s763_s1 + $0x100] sm:$0xff]  }
   0xc   :  { %516 = vmatprep.subr.bf16.mxu0 %v585_v12  ;;  %v600_v27 = vld [vmem:[%s763_s1 + $0xb0] sm:$0xff]   ;;  %v607_v34 = vld [vmem:[%s763_s1 + $0xb8] sm:$0xff]   ;;  %366 = vmatprep.mubr.bf16.mxu0 %v468_v33  ;;  %v611_v40 = vld [vmem:[%s763_s1 + $0x108] sm:$0xff]  }
   0xd   :  { %537 = vmatpush3.bf16.msra.mxu1 %v584_v11  ;;  %406 = vmatprep.mubr.bf16.mxu1 %v470_v38  ;;  %v612_v41 = vld [vmem:[%s763_s1 + $0x110] sm:$0xff]   ;;  %v613_v42 = vld [vmem:[%s763_s1 + $0x118] sm:$0xff]   ;;  %v466_v45 = vld [vmem:[%s765_s2] ss:$0 sm:$0xff] }
   0xe   :  { %538 = vmatprep.subr.bf16.mxu1 %v587_v14  ;;  %v606_v43 = vld [vmem:[%s764_s0 + $0x10] ss:$0 sps:$4 sm:$0xff]  }
   0xf   :  { %517 = vmatpush3.bf16.msra.mxu0 %v586_v13 }
  0x10   :  { %518 = vmatprep.subr.bf16.mxu0 %v589_v16 }
  0x11   :  { %539 = vmatpush3.bf16.msra.mxu1 %v588_v15 }
  0x12   :  { %540 = vmatprep.subr.bf16.mxu1 %v591_v18 }
  0x13   :  { %519 = vmatpush3.bf16.msra.mxu0 %v590_v17 }
  0x14   :  { %520 = vmatprep.subr.bf16.mxu0 %v593_v20 }
  0x15   :  { %541 = vmatpush3.bf16.msra.mxu1 %v592_v19 }
  0x16   :  { %542 = vmatprep.subr.bf16.mxu1 %v595_v22 }
  0x17   :  { %521 = vmatpush3.bf16.msra.mxu0 %v594_v21 }
  0x18   :  { %522 = vmatprep.subr.bf16.mxu0 %v597_v24 }
  0x19   :  { %543 = vmatpush3.bf16.msra.mxu1 %v596_v23 }
  0x1a   :  { %544 = vmatprep.subr.bf16.mxu1 %v599_v26 }
  0x1b   :  { %523 = vmatpush3.bf16.msra.mxu0 %v598_v25 }
  0x1c   :  { %524 = vmatprep.subr.bf16.mxu0 %v601_v28 }
  0x1d   :  { %545 = vmatpush3.bf16.msra.mxu1 %v600_v27 }
  0x1e   :  { %546 = vmatprep.subr.bf16.mxu1 %v603_v30 }
  0x1f   :  { %525 = vmatpush3.bf16.msra.mxu0 %v602_v29 }
  0x20   :  { %559 = vmatprep.subr.bf16.mxu0 %v618_v35 }
  0x21   :  { %547 = vmatpush3.bf16.msra.mxu1 %v607_v34 }
  0x22   :  { %367 = vmatmul.mubr.bf16.vlgmr.msra.gmra.mrb[0].mxu0 %v467_v32 }
  0x23   :  { %560 = vmatpush3.bf16.msra.mxu0 %v610_v39  ;;  %567 = vmatprep.mubr.msk.bf16.mxu0 %vm619_vm0, %v618_v35 }
  0x24   :  { %407 = vmatmul.mubr.bf16.vlgmr.msra.gmra.mrb[0].mxu1 %v469_v37  ;;  %561 = vmatprep.subr.bf16.mxu0 %v618_v35 }
  0x27   :  { %562 = vmatpush3.bf16.msra.mxu0 %v611_v40 }
  0x28   :  { %563 = vmatprep.subr.bf16.mxu0 %v618_v35 }
  0x2b   :  { %564 = vmatpush3.bf16.msra.mxu0 %v612_v41 }
  0x2c   :  { %565 = vmatprep.subr.bf16.mxu0 %v618_v35 }
  0x2f   :  { %566 = vmatpush3.bf16.msra.mxu0 %v613_v42 }
  0x32   :  { %568 = vmatmul.mubr.msk.bf16.vlgmr.msra.gmra.mrb[4].mxu0 %vm330_vm1, %v606_v43 }
  0xf5   :  { %v526_v44 = vpop.f32.mrb[0].mxu0 }
  0xf6   :  { %v527_v46 = vpop.f32.mrb[1].mxu0 }
  0xf7   :  { %v528_v47 = vadd.f32 %v527_v46, %v526_v44  ;;  %v529_v48 = vpop.f32.mrb[2].mxu0  ;;  %v548_v49 = vpop.f32.mrb[0].mxu1 }
  0xf8   :  { %v530_v50 = vpop.f32.mrb[3].mxu0  ;;  %v549_v51 = vpop.f32.mrb[1].mxu1 }
  0xf9   :  { %v369_v52 = vadd.f32 %v528_v47, %v466_v45  ;;  %v550_v53 = vadd.f32 %v549_v51, %v548_v49  ;;  %v551_v54 = vpop.f32.mrb[2].mxu1 }
  0xfa   :  { %v552_v55 = vpop.f32.mrb[3].mxu1 }
  0xfb   :  { %v409_v56 = vadd.f32 %v550_v53, %v369_v52 }
 0x105   :  { %v448_v57 = vpop.f32.mrb[4].mxu0 }
 0x106   :  { %v449_v58 = vadd.f32 %v448_v57, %v409_v56  ;;  %v569_v59 = vpop.f32.mrb[5].mxu0 }
 0x107   :  { %v451_v60 = vpop.f32.mrb[6].mxu0 }
 0x108   :  { %v509_v61 = vmul.f32 -1.442695, %v449_v58  ;;  %v570_v62 = vpop.f32.mrb[7].mxu0 }
 0x10a   :  { %614 = vpow2.f32 %v509_v61 }
 0x114   :  { %v615_v63 = vpop.eup %614 }
 0x115   :  { %v457_v0 = vadd.f32 1.0, %v615_v63 }
 0x117   :  { %616 = vrcp.f32 %v457_v0 }
 0x121   :  { %v617_v1 = vpop.eup %616 }
 0x122   :  { %v460_v2 = vmul.f32 %v617_v1, %v449_v58 }
 0x124   :  { %461 = vst [vmem:[%s766_s3] sm:$0xff] %v460_v2 }

// kernel: _forward.87
= control target key start
LH: loop header
LB: loop body
LE: loop exit
PB: predicated region body
PF: predicated region fallthrough
CT: control target
= control target key end

     0   :  { %vm1136_vm0 = vmmov 0   ;;  %vm842_vm1 = vcmask 523264   ;;  %s1394_s1 = inlined_call_operand.vmem [shape: bf16[1152,64], index: 1, kind: input, shape index: {}]   ;;  %s1395_s0 = inlined_call_operand.vmem [shape: bf16[8,1152], index: 0, kind: input, shape index: {}]   ;;  %s1396_s2 = inlined_call_operand.vmem [shape: f32[1,64], index: 2, kind: input, shape index: {}]   ;;  %s1397_s3 = inlined_call_operand.vmem [shape: f32[8,64], index: 3, kind: output, shape index: {}]  }
   0x1   :  { %v1050_v0 = vld [vmem:[%s1394_s1 + $0x40] sm:$0xff]   ;;  %v1054_v4 = vld [vmem:[%s1394_s1 + $0x48] sm:$0xff]   ;;  %v1058_v8 = vld [vmem:[%s1394_s1 + $0x50] sm:$0xff]  }
   0x2   :  { %v1051_v1 = vld [vmem:[%s1394_s1] sm:$0xff]   ;;  %931 = vmatprep.subr.bf16.mxu0 %v1050_v0  ;;  %v1055_v5 = vld [vmem:[%s1394_s1 + $0x8] sm:$0xff]   ;;  %v1059_v9 = vld [vmem:[%s1394_s1 + $0x10] sm:$0xff]  }
   0x3   :  { %v1052_v2 = vld [vmem:[%s1394_s1 + $0xc0] sm:$0xff]   ;;  %932 = vmatpush3.bf16.msra.mxu0 %v1051_v1  ;;  %v1056_v6 = vld [vmem:[%s1394_s1 + $0xc8] sm:$0xff]   ;;  %v1060_v10 = vld [vmem:[%s1394_s1 + $0xd0] sm:$0xff]  }
   0x4   :  { %v1053_v3 = vld [vmem:[%s1394_s1 + $0x80] sm:$0xff]   ;;  %953 = vmatprep.subr.bf16.mxu1 %v1052_v2  ;;  %933 = vmatprep.subr.bf16.mxu0 %v1054_v4  ;;  %v1057_v7 = vld [vmem:[%s1394_s1 + $0x88] sm:$0xff]   ;;  %v1061_v11 = vld [vmem:[%s1394_s1 + $0x90] sm:$0xff]  }
   0x5   :  { %954 = vmatpush3.bf16.msra.mxu1 %v1053_v3  ;;  %v1062_v12 = vld [vmem:[%s1394_s1 + $0x58] sm:$0xff]   ;;  %v1066_v16 = vld [vmem:[%s1394_s1 + $0x60] sm:$0xff]   ;;  %v1070_v20 = vld [vmem:[%s1394_s1 + $0x68] sm:$0xff]  }
   0x6   :  { %955 = vmatprep.subr.bf16.mxu1 %v1056_v6  ;;  %v1063_v13 = vld [vmem:[%s1394_s1 + $0x18] sm:$0xff]   ;;  %v1067_v17 = vld [vmem:[%s1394_s1 + $0x20] sm:$0xff]   ;;  %v1071_v21 = vld [vmem:[%s1394_s1 + $0x28] sm:$0xff]  }
   0x7   :  { %934 = vmatpush3.bf16.msra.mxu0 %v1055_v5  ;;  %v1064_v14 = vld [vmem:[%s1394_s1 + $0xd8] sm:$0xff]   ;;  %v1068_v18 = vld [vmem:[%s1394_s1 + $0xe0] sm:$0xff]   ;;  %v1072_v22 = vld [vmem:[%s1394_s1 + $0xe8] sm:$0xff]  }
   0x8   :  { %935 = vmatprep.subr.bf16.mxu0 %v1058_v8  ;;  %v1065_v15 = vld [vmem:[%s1394_s1 + $0x98] sm:$0xff]   ;;  %v1069_v19 = vld [vmem:[%s1394_s1 + $0xa0] sm:$0xff]   ;;  %v1073_v23 = vld [vmem:[%s1394_s1 + $0xa8] sm:$0xff]  }
   0x9   :  { %956 = vmatpush3.bf16.msra.mxu1 %v1057_v7  ;;  %v1074_v24 = vld [vmem:[%s1394_s1 + $0x70] sm:$0xff]   ;;  %v1078_v28 = vld [vmem:[%s1394_s1 + $0x78] sm:$0xff]   ;;  %v15_v31 = vld [vmem:[%s1395_s0] sm:$0xff] }
   0xa   :  { %957 = vmatprep.subr.bf16.mxu1 %v1060_v10  ;;  %v1075_v25 = vld [vmem:[%s1394_s1 + $0x30] sm:$0xff]   ;;  %v1079_v29 = vld [vmem:[%s1394_s1 + $0x38] sm:$0xff]   ;;  %v849_v32 = vcombine.low %v15_v31, %v15_v31  ;;  %v850_v33 = vcombine.high %v15_v31, %v15_v31  ;;  %v1084_v35 = vld [vmem:[%s1394_s1 + $0x140] sm:$0xff]  }
   0xb   :  { %936 = vmatpush3.bf16.msra.mxu0 %v1059_v9  ;;  %v1076_v26 = vld [vmem:[%s1394_s1 + $0xf0] sm:$0xff]   ;;  %v1080_v30 = vld [vmem:[%s1394_s1 + $0xf8] sm:$0xff]   ;;  %v16_v36 = vld [vmem:[%s1395_s0 + $0x8] sm:$0xff]  ;;  %v1135_v9 = vmov 0.0  }
   0xc   :  { %937 = vmatprep.subr.bf16.mxu0 %v1062_v12  ;;  %v1077_v27 = vld [vmem:[%s1394_s1 + $0xb0] sm:$0xff]   ;;  %v1083_v34 = vld [vmem:[%s1394_s1 + $0xb8] sm:$0xff]   ;;  %667 = vmatprep.mubr.bf16.mxu0 %v850_v33  ;;  %v851_v37 = vcombine.low %v16_v36, %v16_v36  ;;  %v852_v38 = vcombine.high %v16_v36, %v16_v36  ;;  %v1087_v39 = vld [vmem:[%s1394_s1 + $0x100] sm:$0xff]  }
   0xd   :  { %958 = vmatpush3.bf16.msra.mxu1 %v1061_v11  ;;  %v1088_v40 = vld [vmem:[%s1394_s1 + $0x1c0] sm:$0xff]   ;;  %v1090_v42 = vld [vmem:[%s1394_s1 + $0x148] sm:$0xff]   ;;  %v1094_v46 = vld [vmem:[%s1394_s1 + $0x150] sm:$0xff]  }
   0xe   :  { %959 = vmatprep.subr.bf16.mxu1 %v1064_v14  ;;  %707 = vmatprep.mubr.bf16.mxu1 %v852_v38  ;;  %v1089_v41 = vld [vmem:[%s1394_s1 + $0x180] sm:$0xff]   ;;  %v1091_v43 = vld [vmem:[%s1394_s1 + $0x108] sm:$0xff]   ;;  %v1095_v47 = vld [vmem:[%s1394_s1 + $0x110] sm:$0xff]  }
   0xf   :  { %938 = vmatpush3.bf16.msra.mxu0 %v1063_v13  ;;  %v1092_v44 = vld [vmem:[%s1394_s1 + $0x1c8] sm:$0xff]   ;;  %v1096_v48 = vld [vmem:[%s1394_s1 + $0x1d0] sm:$0xff]   ;;  %v1098_v50 = vld [vmem:[%s1394_s1 + $0x158] sm:$0xff]  }
  0x10   :  { %939 = vmatprep.subr.bf16.mxu0 %v1066_v16  ;;  %v1093_v45 = vld [vmem:[%s1394_s1 + $0x188] sm:$0xff]   ;;  %v1097_v49 = vld [vmem:[%s1394_s1 + $0x190] sm:$0xff]   ;;  %v1099_v51 = vld [vmem:[%s1394_s1 + $0x118] sm:$0xff]  }
  0x11   :  { %960 = vmatpush3.bf16.msra.mxu1 %v1065_v15  ;;  %v1100_v52 = vld [vmem:[%s1394_s1 + $0x1d8] sm:$0xff]   ;;  %v1102_v54 = vld [vmem:[%s1394_s1 + $0x160] sm:$0xff]   ;;  %v1106_v58 = vld [vmem:[%s1394_s1 + $0x168] sm:$0xff]  }
  0x12   :  { %961 = vmatprep.subr.bf16.mxu1 %v1068_v18  ;;  %v1101_v53 = vld [vmem:[%s1394_s1 + $0x198] sm:$0xff]   ;;  %v1103_v55 = vld [vmem:[%s1394_s1 + $0x120] sm:$0xff]   ;;  %v1107_v59 = vld [vmem:[%s1394_s1 + $0x128] sm:$0xff]  }
  0x13   :  { %940 = vmatpush3.bf16.msra.mxu0 %v1067_v17  ;;  %v1104_v56 = vld [vmem:[%s1394_s1 + $0x1e0] sm:$0xff]   ;;  %v1108_v60 = vld [vmem:[%s1394_s1 + $0x1e8] sm:$0xff]   ;;  %v1110_v62 = vld [vmem:[%s1394_s1 + $0x170] sm:$0xff]  }
  0x14   :  { %941 = vmatprep.subr.bf16.mxu0 %v1070_v20  ;;  %v1105_v57 = vld [vmem:[%s1394_s1 + $0x1a0] sm:$0xff]   ;;  %v1109_v61 = vld [vmem:[%s1394_s1 + $0x1a8] sm:$0xff]   ;;  %v1111_v63 = vld [vmem:[%s1394_s1 + $0x130] sm:$0xff]  }
  0x15   :  { %962 = vmatpush3.bf16.msra.mxu1 %v1069_v19  ;;  %v1112_v0 = vld [vmem:[%s1394_s1 + $0x1f0] sm:$0xff]   ;;  %v1114_v2 = vld [vmem:[%s1394_s1 + $0x178] sm:$0xff]   ;;  %v1122_v13 = vld [vmem:[%s1394_s1 + $0x200] sm:$0xff]  }
  0x16   :  { %963 = vmatprep.subr.bf16.mxu1 %v1072_v22  ;;  %v1113_v1 = vld [vmem:[%s1394_s1 + $0x1b0] sm:$0xff]   ;;  %v1115_v3 = vld [vmem:[%s1394_s1 + $0x138] sm:$0xff]   ;;  %v1123_v14 = vld [vmem:[%s1394_s1 + $0x208] sm:$0xff]  }
  0x17   :  { %942 = vmatpush3.bf16.msra.mxu0 %v1071_v21  ;;  %v1116_v4 = vld [vmem:[%s1394_s1 + $0x1f8] sm:$0xff]   ;;  %v17_v5 = vld [vmem:[%s1395_s0 + $0x10] sm:$0xff]  ;;  %v1126_v17 = vld [vmem:[%s1394_s1 + $0x220] sm:$0xff]  }
  0x18   :  { %943 = vmatprep.subr.bf16.mxu0 %v1074_v24  ;;  %v853_v6 = vcombine.low %v17_v5, %v17_v5  ;;  %v854_v7 = vcombine.high %v17_v5, %v17_v5  ;;  %v1119_v8 = vld [vmem:[%s1394_s1 + $0x1b8] sm:$0xff]   ;;  %v1124_v15 = vld [vmem:[%s1394_s1 + $0x210] sm:$0xff]   ;;  %v1127_v18 = vld [vmem:[%s1394_s1 + $0x228] sm:$0xff]  }
  0x19   :  { %964 = vmatpush3.bf16.msra.mxu1 %v1073_v23  ;;  %v18_v10 = vld [vmem:[%s1395_s0 + $0x18] sm:$0xff]  ;;  %v1128_v19 = vld [vmem:[%s1394_s1 + $0x230] sm:$0xff]   ;;  %v1130_v21 = vld [vmem:[%s1395_s0 + $0x20] ss:$0 sps:$4 sm:$0xff]  }
  0x1a   :  { %965 = vmatprep.subr.bf16.mxu1 %v1076_v26  ;;  %v855_v11 = vcombine.low %v18_v10, %v18_v10  ;;  %v856_v12 = vcombine.high %v18_v10, %v18_v10  ;;  %v1125_v16 = vld [vmem:[%s1394_s1 + $0x218] sm:$0xff]   ;;  %v848_v23 = vld [vmem:[%s1396_s2] ss:$0 sm:$0xff] }
  0x1b   :  { %944 = vmatpush3.bf16.msra.mxu0 %v1075_v25  ;;  %v1129_v20 = vld [vmem:[%s1394_s1 + $0x238] sm:$0xff]  }
  0x1c   :  { %945 = vmatprep.subr.bf16.mxu0 %v1078_v28 }
  0x1d   :  { %966 = vmatpush3.bf16.msra.mxu1 %v1077_v27 }
  0x1e   :  { %967 = vmatprep.subr.bf16.mxu1 %v1080_v30 }
  0x1f   :  { %946 = vmatpush3.bf16.msra.mxu0 %v1079_v29 }
  0x20   :  { %975 = vmatprep.subr.bf16.mxu0 %v1084_v35 }
  0x21   :  { %968 = vmatpush3.bf16.msra.mxu1 %v1083_v34 }
  0x22   :  { %668 = vmatmul.mubr.bf16.vlgmr.msra.gmra.mrb[0].mxu0 %v849_v32  ;;  %997 = vmatprep.subr.bf16.mxu1 %v1088_v40 }
  0x23   :  { %976 = vmatpush3.bf16.msra.mxu0 %v1087_v39  ;;  %747 = vmatprep.mubr.bf16.mxu0 %v854_v7 }
  0x24   :  { %708 = vmatmul.mubr.bf16.vlgmr.msra.gmra.mrb[0].mxu1 %v851_v37  ;;  %977 = vmatprep.subr.bf16.mxu0 %v1090_v42 }
  0x25   :  { %998 = vmatpush3.bf16.msra.mxu1 %v1089_v41  ;;  %787 = vmatprep.mubr.bf16.mxu1 %v856_v12 }
  0x26   :  { %999 = vmatprep.subr.bf16.mxu1 %v1092_v44 }
  0x27   :  { %978 = vmatpush3.bf16.msra.mxu0 %v1091_v43 }
  0x28   :  { %979 = vmatprep.subr.bf16.mxu0 %v1094_v46 }
  0x29   :  { %1000 = vmatpush3.bf16.msra.mxu1 %v1093_v45 }
  0x2a   :  { %1001 = vmatprep.subr.bf16.mxu1 %v1096_v48 }
  0x2b   :  { %980 = vmatpush3.bf16.msra.mxu0 %v1095_v47 }
  0x2c   :  { %981 = vmatprep.subr.bf16.mxu0 %v1098_v50 }
  0x2d   :  { %1002 = vmatpush3.bf16.msra.mxu1 %v1097_v49 }
  0x2e   :  { %1003 = vmatprep.subr.bf16.mxu1 %v1100_v52 }
  0x2f   :  { %982 = vmatpush3.bf16.msra.mxu0 %v1099_v51 }
  0x30   :  { %983 = vmatprep.subr.bf16.mxu0 %v1102_v54 }
  0x31   :  { %1004 = vmatpush3.bf16.msra.mxu1 %v1101_v53 }
  0x32   :  { %1005 = vmatprep.subr.bf16.mxu1 %v1104_v56 }
  0x33   :  { %984 = vmatpush3.bf16.msra.mxu0 %v1103_v55 }
  0x34   :  { %985 = vmatprep.subr.bf16.mxu0 %v1106_v58 }
  0x35   :  { %1006 = vmatpush3.bf16.msra.mxu1 %v1105_v57 }
  0x36   :  { %1007 = vmatprep.subr.bf16.mxu1 %v1108_v60 }
  0x37   :  { %986 = vmatpush3.bf16.msra.mxu0 %v1107_v59 }
  0x38   :  { %987 = vmatprep.subr.bf16.mxu0 %v1110_v62 }
  0x39   :  { %1008 = vmatpush3.bf16.msra.mxu1 %v1109_v61 }
  0x3a   :  { %1009 = vmatprep.subr.bf16.mxu1 %v1112_v0 }
  0x3b   :  { %988 = vmatpush3.bf16.msra.mxu0 %v1111_v63 }
  0x3c   :  { %989 = vmatprep.subr.bf16.mxu0 %v1114_v2 }
  0x3d   :  { %1010 = vmatpush3.bf16.msra.mxu1 %v1113_v1 }
  0x3e   :  { %1011 = vmatprep.subr.bf16.mxu1 %v1116_v4 }
  0x3f   :  { %990 = vmatpush3.bf16.msra.mxu0 %v1115_v3 }
  0x40   :  { %1028 = vmatprep.subr.bf16.mxu0 %v1135_v9 }
  0x41   :  { %1012 = vmatpush3.bf16.msra.mxu1 %v1119_v8 }
  0x42   :  { %748 = vmatmul.mubr.bf16.vlgmr.msra.gmra.mrb[4].mxu0 %v853_v6 }
  0x43   :  { %1029 = vmatpush3.bf16.msra.mxu0 %v1122_v13  ;;  %1044 = vmatprep.mubr.msk.bf16.mxu0 %vm1136_vm0, %v1135_v9 }
  0x44   :  { %788 = vmatmul.mubr.bf16.vlgmr.msra.gmra.mrb[4].mxu1 %v855_v11  ;;  %1030 = vmatprep.subr.bf16.mxu0 %v1135_v9 }
  0x47   :  { %1031 = vmatpush3.bf16.msra.mxu0 %v1123_v14 }
  0x48   :  { %1032 = vmatprep.subr.bf16.mxu0 %v1135_v9 }
  0x4b   :  { %1033 = vmatpush3.bf16.msra.mxu0 %v1124_v15 }
  0x4c   :  { %1034 = vmatprep.subr.bf16.mxu0 %v1135_v9 }
  0x4f   :  { %1035 = vmatpush3.bf16.msra.mxu0 %v1125_v16 }
  0x50   :  { %1036 = vmatprep.subr.bf16.mxu0 %v1135_v9 }
  0x53   :  { %1037 = vmatpush3.bf16.msra.mxu0 %v1126_v17 }
  0x54   :  { %1038 = vmatprep.subr.bf16.mxu0 %v1135_v9 }
  0x57   :  { %1039 = vmatpush3.bf16.msra.mxu0 %v1127_v18 }
  0x58   :  { %1040 = vmatprep.subr.bf16.mxu0 %v1135_v9 }
  0x5b   :  { %1041 = vmatpush3.bf16.msra.mxu0 %v1128_v19 }
  0x5c   :  { %1042 = vmatprep.subr.bf16.mxu0 %v1135_v9 }
  0x5f   :  { %1043 = vmatpush3.bf16.msra.mxu0 %v1129_v20 }
  0x62   :  { %1045 = vmatmul.mubr.bf16.vlgmr.msra.gmra.mrb[8].mxu0 %v1130_v21 }
  0xf5   :  { %v947_v22 = vpop.f32.mrb[0].mxu0 }
  0xf6   :  { %v948_v24 = vpop.f32.mrb[1].mxu0 }
  0xf7   :  { %v949_v25 = vadd.f32 %v948_v24, %v947_v22  ;;  %v950_v26 = vpop.f32.mrb[2].mxu0  ;;  %v969_v27 = vpop.f32.mrb[0].mxu1 }
  0xf8   :  { %v951_v28 = vpop.f32.mrb[3].mxu0  ;;  %v970_v29 = vpop.f32.mrb[1].mxu1 }
  0xf9   :  { %v670_v30 = vadd.f32 %v949_v25, %v848_v23  ;;  %v971_v31 = vadd.f32 %v970_v29, %v969_v27  ;;  %v972_v32 = vpop.f32.mrb[2].mxu1 }
  0xfa   :  { %v973_v33 = vpop.f32.mrb[3].mxu1 }
  0xfb   :  { %v710_v34 = vadd.f32 %v971_v31, %v670_v30 }
 0x115   :  { %v991_v35 = vpop.f32.mrb[4].mxu0 }
 0x116   :  { %v992_v36 = vpop.f32.mrb[5].mxu0 }
 0x117   :  { %v993_v37 = vadd.f32 %v992_v36, %v991_v35  ;;  %v994_v38 = vpop.f32.mrb[6].mxu0  ;;  %v1013_v39 = vpop.f32.mrb[4].mxu1 }
 0x118   :  { %v995_v40 = vpop.f32.mrb[7].mxu0  ;;  %v1014_v41 = vpop.f32.mrb[5].mxu1 }
 0x119   :  { %v750_v42 = vadd.f32 %v993_v37, %v710_v34  ;;  %v1015_v43 = vadd.f32 %v1014_v41, %v1013_v39  ;;  %v1016_v44 = vpop.f32.mrb[6].mxu1 }
 0x11a   :  { %v1017_v45 = vpop.f32.mrb[7].mxu1 }
 0x11b   :  { %v790_v46 = vadd.f32 %v1015_v43, %v750_v42 }
 0x135   :  { %v829_v47 = vpop.f32.mrb[8].mxu0 }
 0x136   :  { %v830_v48 = vadd.f32 %v829_v47, %v790_v46  ;;  %v1046_v49 = vpop.f32.mrb[9].mxu0 }
 0x137   :  { %v832_v50 = vpop.f32.mrb[10].mxu0 }
 0x138   :  { %v930_v51 = vmul.f32 -1.442695, %v830_v48  ;;  %v1047_v52 = vpop.f32.mrb[11].mxu0 }
 0x13a   :  { %1131 = vpow2.f32 %v930_v51 }
 0x144   :  { %v1132_v53 = vpop.eup %1131 }
 0x145   :  { %v838_v54 = vadd.f32 1.0, %v1132_v53 }
 0x147   :  { %1133 = vrcp.f32 %v838_v54 }
 0x151   :  { %v1134_v55 = vpop.eup %1133 }
 0x152   :  { %v841_v56 = vmul.f32 %v1134_v55, %v830_v48 }
 0x154   :  { %843 = vst.msk [vmem:[%s1397_s3] sm:$0xff] %vm842_vm1, %v841_v56 }

// kernel: _forward.90
= control target key start
LH: loop header
LB: loop body
LE: loop exit
PB: predicated region body
PF: predicated region fallthrough
CT: control target
= control target key end

     0   :  { %s654_s1 = inlined_call_operand.vmem [shape: bf16[384,128], index: 1, kind: input, shape index: {}]   ;;  %s655_s0 = inlined_call_operand.vmem [shape: bf16[32,384], index: 0, kind: input, shape index: {}]   ;;  %s656_s2 = inlined_call_operand.vmem [shape: f32[1,128], index: 2, kind: input, shape index: {}]   ;;  %s657_s3 = inlined_call_operand.vmem [shape: f32[32,128], index: 3, kind: output, shape index: {}]  }
   0x1   :  { %v481_v0 = vld [vmem:[%s654_s1 + $0x40] sm:$0xff]   ;;  %v483_v2 = vld [vmem:[%s654_s1 + $0x48] sm:$0xff]   ;;  %v486_v5 = vld [vmem:[%s654_s1 + $0x50] sm:$0xff]  }
   0x2   :  { %v482_v1 = vld [vmem:[%s654_s1] sm:$0xff]   ;;  %423 = vmatprep.subr.bf16.mxu0 %v481_v0  ;;  %v485_v4 = vld [vmem:[%s654_s1 + $0x8] sm:$0xff]   ;;  %v488_v7 = vld [vmem:[%s654_s1 + $0x10] sm:$0xff]  }
   0x3   :  { %424 = vmatpush3.bf16.msra.mxu0 %v482_v1  ;;  %v484_v3 = vld [vmem:[%s654_s1 + $0x80] sm:$0xff]   ;;  %v487_v6 = vld [vmem:[%s654_s1 + $0x88] sm:$0xff]   ;;  %v489_v8 = vld [vmem:[%s654_s1 + $0x58] sm:$0xff]  }
   0x4   :  { %425 = vmatprep.subr.bf16.mxu0 %v483_v2  ;;  %461 = vmatprep.subr.bf16.mxu1 %v484_v3  ;;  %v490_v9 = vld [vmem:[%s654_s1 + $0x90] sm:$0xff]   ;;  %v491_v10 = vld [vmem:[%s654_s1 + $0x18] sm:$0xff]   ;;  %v492_v11 = vld [vmem:[%s654_s1 + $0x60] sm:$0xff]  }
   0x5   :  { %462 = vmatpush3.bf16.msra.mxu1 %v484_v3  ;;  %v493_v12 = vld [vmem:[%s654_s1 + $0x98] sm:$0xff]   ;;  %v494_v13 = vld [vmem:[%s654_s1 + $0x20] sm:$0xff]   ;;  %v495_v15 = vld [vmem:[%s654_s1 + $0x68] sm:$0xff]  }
   0x6   :  { %463 = vmatprep.subr.bf16.mxu1 %v487_v6  ;;  %v496_v14 = vld [vmem:[%s654_s1 + $0xa0] sm:$0xff]   ;;  %v497_v16 = vld [vmem:[%s654_s1 + $0x28] sm:$0xff]   ;;  %v498_v18 = vld [vmem:[%s654_s1 + $0x70] sm:$0xff]  }
   0x7   :  { %426 = vmatpush3.bf16.msra.mxu0 %v485_v4  ;;  %v499_v17 = vld [vmem:[%s654_s1 + $0xa8] sm:$0xff]   ;;  %v500_v19 = vld [vmem:[%s654_s1 + $0x30] sm:$0xff]   ;;  %v501_v20 = vld [vmem:[%s654_s1 + $0x78] sm:$0xff]  }
   0x8   :  { %427 = vmatprep.subr.bf16.mxu0 %v486_v5  ;;  %v502_v21 = vld [vmem:[%s654_s1 + $0xb0] sm:$0xff]   ;;  %v503_v23 = vld [vmem:[%s654_s1 + $0x38] sm:$0xff]   ;;  %v504_v26 = vld [vmem:[%s655_s0] ss:$12 sps:$4 sm:$0xff]  }
   0x9   :  { %464 = vmatpush3.bf16.msra.mxu1 %v487_v6  ;;  %v506_v22 = vld [vmem:[%s655_s0 + $0x4] ss:$12 sps:$4 sm:$0xff]   ;;  %v508_v24 = vld [vmem:[%s655_s0 + $0x8] ss:$12 sps:$4 sm:$0xff]   ;;  %v507_v25 = vld [vmem:[%s654_s1 + $0xb8] sm:$0xff]  }
   0xa   :  { %465 = vmatprep.subr.bf16.mxu1 %v490_v9  ;;  %286 = vmatprep.mubr.bf16.mxu0 %v506_v22  ;;  %v510_v27 = vld [vmem:[%s655_s0 + $0x1c] ss:$12 sps:$4 sm:$0xff]   ;;  %v509_v28 = vld [vmem:[%s655_s0 + $0x20] ss:$12 sps:$4 sm:$0xff]   ;;  %v512_v29 = vld [vmem:[%s655_s0 + $0x18] ss:$12 sps:$4 sm:$0xff]  }
   0xb   :  { %428 = vmatpush3.bf16.msra.mxu0 %v488_v7  ;;  %477 = vmatprep.mubr.bf16.mxu1 %v508_v24  ;;  %v388_v32 = vld [vmem:[%s656_s2] ss:$0 sm:$0xff] }
   0xc   :  { %429 = vmatprep.subr.bf16.mxu0 %v489_v8 }
   0xd   :  { %466 = vmatpush3.bf16.msra.mxu1 %v490_v9 }
   0xe   :  { %467 = vmatprep.subr.bf16.mxu1 %v493_v12 }
   0xf   :  { %430 = vmatpush3.bf16.msra.mxu0 %v491_v10 }
  0x10   :  { %431 = vmatprep.subr.bf16.mxu0 %v492_v11 }
  0x11   :  { %468 = vmatpush3.bf16.msra.mxu1 %v493_v12 }
  0x12   :  { %469 = vmatprep.subr.bf16.mxu1 %v496_v14 }
  0x13   :  { %432 = vmatpush3.bf16.msra.mxu0 %v494_v13 }
  0x14   :  { %433 = vmatprep.subr.bf16.mxu0 %v495_v15 }
  0x15   :  { %470 = vmatpush3.bf16.msra.mxu1 %v496_v14 }
  0x16   :  { %471 = vmatprep.subr.bf16.mxu1 %v499_v17 }
  0x17   :  { %434 = vmatpush3.bf16.msra.mxu0 %v497_v16 }
  0x18   :  { %435 = vmatprep.subr.bf16.mxu0 %v498_v18 }
  0x19   :  { %472 = vmatpush3.bf16.msra.mxu1 %v499_v17 }
  0x1a   :  { %473 = vmatprep.subr.bf16.mxu1 %v502_v21 }
  0x1b   :  { %436 = vmatpush3.bf16.msra.mxu0 %v500_v19 }
  0x1c   :  { %437 = vmatprep.subr.bf16.mxu0 %v501_v20 }
  0x1d   :  { %474 = vmatpush3.bf16.msra.mxu1 %v502_v21 }
  0x1e   :  { %475 = vmatprep.subr.bf16.mxu1 %v507_v25 }
  0x1f   :  { %438 = vmatpush3.bf16.msra.mxu0 %v503_v23 }
  0x21   :  { %476 = vmatpush3.bf16.msra.mxu1 %v507_v25 }
  0x22   :  { %287 = vmatmul.mubr.bf16.vlgmr.msra.gmra.mrb[0].mxu0 %v504_v26 }
  0x23   :  { %294 = vmatprep.mubr.bf16.mxu0 %v510_v27 }
  0x24   :  { %478 = vmatmul.mubr.bf16.vlgmr.msra.gmra.mrb[0].mxu1 %v509_v28 }
  0x2a   :  { %295 = vmatmul.mubr.bf16.gmra.mrb[4].mxu0 %v512_v29 }
  0xf5   :  { %v439_v30 = vpop.f32.mrb[0].mxu0 }
  0xf6   :  { %v440_v31 = vpop.f32.mrb[1].mxu0 }
  0xf7   :  { %v441_v33 = vadd.f32 %v440_v31, %v439_v30  ;;  %v442_v34 = vpop.f32.mrb[2].mxu0  ;;  %v479_v36 = vpop.f32.mrb[0].mxu1 }
  0xf8   :  { %v443_v35 = vpop.f32.mrb[3].mxu0  ;;  %v337_v39 = vpop.f32.mrb[1].mxu1 }
  0xf9   :  { %v444_v37 = vadd.f32 %v443_v35, %v442_v34  ;;  %v289_v38 = vadd.f32 %v441_v33, %v388_v32  ;;  %v480_v40 = vpop.f32.mrb[2].mxu1 }
  0xfa   :  { %v340_v43 = vpop.f32.mrb[3].mxu1 }
  0xfb   :  { %v338_v41 = vadd.f32 %v337_v39, %v289_v38  ;;  %v292_v42 = vadd.f32 %v444_v37, %v388_v32 }
  0xfd   :  { %v419_v44 = vmul.f32 -1.442695, %v338_v41  ;;  %v341_v45 = vadd.f32 %v340_v43, %v292_v42  ;;  %v445_v46 = vpop.f32.mrb[4].mxu0 }
  0xfe   :  { %v446_v47 = vpop.f32.mrb[5].mxu0 }
  0xff   :  { %513 = vpow2.f32 %v419_v44  ;;  %v420_v48 = vmul.f32 -1.442695, %v341_v45  ;;  %v447_v49 = vadd.f32 %v446_v47, %v445_v46  ;;  %v448_v50 = vpop.f32.mrb[6].mxu0 }
 0x100   :  { %v449_v51 = vpop.f32.mrb[7].mxu0 }
 0x101   :  { %515 = vpow2.f32 %v420_v48  ;;  %v297_v52 = vadd.f32 %v447_v49, %v388_v32  ;;  %v450_v53 = vadd.f32 %v449_v51, %v448_v50 }
 0x103   :  { %v346_v54 = vadd.f32 %v479_v36, %v297_v52  ;;  %v300_v55 = vadd.f32 %v450_v53, %v388_v32 }
 0x105   :  { %v421_v56 = vmul.f32 -1.442695, %v346_v54  ;;  %v349_v57 = vadd.f32 %v480_v40, %v300_v55 }
 0x107   :  { %517 = vpow2.f32 %v421_v56  ;;  %v422_v58 = vmul.f32 -1.442695, %v349_v57 }
 0x109   :  { %v514_v59 = vpop.eup %513  ;;  %519 = vpow2.f32 %v422_v58 }
 0x10a   :  { %v364_v60 = vadd.f32 1.0, %v514_v59 }
 0x10b   :  { %v516_v61 = vpop.eup %515 }
 0x10c   :  { %521 = vrcp.f32 %v364_v60  ;;  %v365_v62 = vadd.f32 1.0, %v516_v61 }
 0x10e   :  { %523 = vrcp.f32 %v365_v62 }
 0x111   :  { %v518_v63 = vpop.eup %517 }
 0x112   :  { %v366_v0 = vadd.f32 1.0, %v518_v63 }
 0x113   :  { %v520_v1 = vpop.eup %519 }
 0x114   :  { %525 = vrcp.f32 %v366_v0  ;;  %v367_v2 = vadd.f32 1.0, %v520_v1 }
 0x116   :  { %v522_v3 = vpop.eup %521  ;;  %527 = vrcp.f32 %v367_v2 }
 0x117   :  { %v376_v4 = vmul.f32 %v522_v3, %v338_v41 }
 0x118   :  { %v524_v5 = vpop.eup %523 }
 0x119   :  { %380 = vst [vmem:[%s657_s3] sm:$0xff] %v376_v4  ;;  %v377_v6 = vmul.f32 %v524_v5, %v341_v45 }
 0x11b   :  { %381 = vst [vmem:[%s657_s3 + $0x8] sm:$0xff] %v377_v6 }
 0x11e   :  { %v526_v7 = vpop.eup %525 }
 0x11f   :  { %v378_v8 = vmul.f32 %v526_v7, %v346_v54 }
 0x120   :  { %v528_v9 = vpop.eup %527 }
 0x121   :  { %382 = vst [vmem:[%s657_s3 + $0x10] sm:$0xff] %v378_v8  ;;  %v379_v10 = vmul.f32 %v528_v9, %v349_v57 }
 0x123   :  { %383 = vst [vmem:[%s657_s3 + $0x18] sm:$0xff] %v379_v10 }

// kernel: _forward.91
= control target key start
LH: loop header
LB: loop body
LE: loop exit
PB: predicated region body
PF: predicated region fallthrough
CT: control target
= control target key end

     0   :  { %vm372_vm0 = vcmask 523264   ;;  %vm554_vm1 = vcmask 261120   ;;  %s929_s1 = inlined_call_operand.vmem [shape: bf16[576,32], index: 1, kind: input, shape index: {}]   ;;  %s930_s0 = inlined_call_operand.vmem [shape: bf16[32,576], index: 0, kind: input, shape index: {}]   ;;  %s931_s2 = inlined_call_operand.vmem [shape: f32[1,32], index: 2, kind: input, shape index: {}]   ;;  %s932_s3 = inlined_call_operand.vmem [shape: f32[32,32], index: 3, kind: output, shape index: {}]  }
   0x1   :  { %v690_v0 = vld [vmem:[%s929_s1 + $0x40] sm:$0xff]   ;;  %v694_v4 = vld [vmem:[%s929_s1 + $0x48] sm:$0xff]   ;;  %v698_v8 = vld [vmem:[%s929_s1 + $0x50] sm:$0xff]  }
   0x2   :  { %v691_v1 = vld [vmem:[%s929_s1] sm:$0xff]   ;;  %616 = vmatprep.subr.bf16.mxu0 %v690_v0  ;;  %v695_v5 = vld [vmem:[%s929_s1 + $0x8] sm:$0xff]   ;;  %v699_v9 = vld [vmem:[%s929_s1 + $0x10] sm:$0xff]  }
   0x3   :  { %v692_v2 = vld [vmem:[%s929_s1 + $0xc0] sm:$0xff]   ;;  %617 = vmatpush3.bf16.msra.mxu0 %v691_v1  ;;  %v696_v6 = vld [vmem:[%s929_s1 + $0xc8] sm:$0xff]   ;;  %v700_v10 = vld [vmem:[%s929_s1 + $0xd0] sm:$0xff]  }
   0x4   :  { %v693_v3 = vld [vmem:[%s929_s1 + $0x80] sm:$0xff]   ;;  %644 = vmatprep.subr.bf16.mxu1 %v692_v2  ;;  %618 = vmatprep.subr.bf16.mxu0 %v694_v4  ;;  %v697_v7 = vld [vmem:[%s929_s1 + $0x88] sm:$0xff]   ;;  %v701_v11 = vld [vmem:[%s929_s1 + $0x90] sm:$0xff]  }
   0x5   :  { %645 = vmatpush3.bf16.msra.mxu1 %v693_v3  ;;  %v702_v12 = vld [vmem:[%s929_s1 + $0x58] sm:$0xff]   ;;  %v706_v16 = vld [vmem:[%s929_s1 + $0x60] sm:$0xff]   ;;  %v710_v20 = vld [vmem:[%s929_s1 + $0x68] sm:$0xff]  }
   0x6   :  { %646 = vmatprep.subr.bf16.mxu1 %v696_v6  ;;  %v703_v13 = vld [vmem:[%s929_s1 + $0x18] sm:$0xff]   ;;  %v707_v17 = vld [vmem:[%s929_s1 + $0x20] sm:$0xff]   ;;  %v711_v21 = vld [vmem:[%s929_s1 + $0x28] sm:$0xff]  }
   0x7   :  { %619 = vmatpush3.bf16.msra.mxu0 %v695_v5  ;;  %v704_v14 = vld [vmem:[%s929_s1 + $0xd8] sm:$0xff]   ;;  %v708_v18 = vld [vmem:[%s929_s1 + $0xe0] sm:$0xff]   ;;  %v712_v22 = vld [vmem:[%s929_s1 + $0xe8] sm:$0xff]  }
   0x8   :  { %620 = vmatprep.subr.bf16.mxu0 %v698_v8  ;;  %v705_v15 = vld [vmem:[%s929_s1 + $0x98] sm:$0xff]   ;;  %v709_v19 = vld [vmem:[%s929_s1 + $0xa0] sm:$0xff]   ;;  %v713_v23 = vld [vmem:[%s929_s1 + $0xa8] sm:$0xff]  }
   0x9   :  { %647 = vmatpush3.bf16.msra.mxu1 %v697_v7  ;;  %v714_v24 = vld [vmem:[%s929_s1 + $0x70] sm:$0xff]   ;;  %v718_v28 = vld [vmem:[%s929_s1 + $0x78] sm:$0xff]   ;;  %v725_v34 = vld [vmem:[%s929_s1 + $0x100] sm:$0xff]  }
   0xa   :  { %648 = vmatprep.subr.bf16.mxu1 %v700_v10  ;;  %v715_v25 = vld [vmem:[%s929_s1 + $0x30] sm:$0xff]   ;;  %v719_v29 = vld [vmem:[%s929_s1 + $0x38] sm:$0xff]   ;;  %v728_v36 = vld [vmem:[%s930_s0 + $0xc] ss:$20 sps:$4 sm:$0xff]  }
   0xb   :  { %621 = vmatpush3.bf16.msra.mxu0 %v699_v9  ;;  %v716_v26 = vld [vmem:[%s929_s1 + $0xf0] sm:$0xff]   ;;  %v720_v30 = vld [vmem:[%s929_s1 + $0xf8] sm:$0xff]   ;;  %v729_v37 = vld [vmem:[%s929_s1 + $0x108] sm:$0xff]   ;;  %460 = vmatprep.mubr.bf16.mxu1 %v728_v36 }
   0xc   :  { %622 = vmatprep.subr.bf16.mxu0 %v702_v12  ;;  %v717_v27 = vld [vmem:[%s929_s1 + $0xb0] sm:$0xff]   ;;  %v723_v32 = vld [vmem:[%s930_s0 + $0x4] ss:$20 sps:$4 sm:$0xff]   ;;  %v726_v35 = vld [vmem:[%s930_s0 + $0x8] ss:$20 sps:$4 sm:$0xff]  }
   0xd   :  { %649 = vmatpush3.bf16.msra.mxu1 %v701_v11  ;;  %v721_v31 = vld [vmem:[%s930_s0] ss:$20 sps:$4 sm:$0xff]   ;;  %v724_v33 = vld [vmem:[%s929_s1 + $0xb8] sm:$0xff]   ;;  %411 = vmatprep.mubr.bf16.mxu0 %v723_v32  ;;  %v736_v42 = vld [vmem:[%s930_s0 + $0x30] ss:$20 sps:$4 sm:$0xff]  }
   0xe   :  { %650 = vmatprep.subr.bf16.mxu1 %v704_v14  ;;  %v730_v38 = vld [vmem:[%s930_s0 + $0x2c] ss:$20 sps:$4 sm:$0xff]   ;;  %v732_v39 = vld [vmem:[%s930_s0 + $0x28] ss:$20 sps:$4 sm:$0xff]   ;;  %v733_v40 = vld [vmem:[%s929_s1 + $0x110] sm:$0xff]  }
   0xf   :  { %623 = vmatpush3.bf16.msra.mxu0 %v703_v13  ;;  %v734_v41 = vld [vmem:[%s930_s0 + $0x34] ss:$20 sps:$4 sm:$0xff]   ;;  %v737_v43 = vld [vmem:[%s929_s1 + $0x118] sm:$0xff]   ;;  %v738_v44 = vld [vmem:[%s930_s0 + $0x10] ss:$20 sps:$4 sm:$0xff]  }
  0x10   :  { %624 = vmatprep.subr.bf16.mxu0 %v706_v16  ;;  %v739_v45 = vld [vmem:[%s930_s0 + $0x38] ss:$20 sps:$4 sm:$0xff]   ;;  %v563_v47 = vld [vmem:[%s931_s2] ss:$0 sm:$0xff] }
  0x11   :  { %651 = vmatpush3.bf16.msra.mxu1 %v705_v15 }
  0x12   :  { %652 = vmatprep.subr.bf16.mxu1 %v708_v18 }
  0x13   :  { %625 = vmatpush3.bf16.msra.mxu0 %v707_v17 }
  0x14   :  { %626 = vmatprep.subr.bf16.mxu0 %v710_v20 }
  0x15   :  { %653 = vmatpush3.bf16.msra.mxu1 %v709_v19 }
  0x16   :  { %654 = vmatprep.subr.bf16.mxu1 %v712_v22 }
  0x17   :  { %627 = vmatpush3.bf16.msra.mxu0 %v711_v21 }
  0x18   :  { %628 = vmatprep.subr.bf16.mxu0 %v714_v24 }
  0x19   :  { %655 = vmatpush3.bf16.msra.mxu1 %v713_v23 }
  0x1a   :  { %656 = vmatprep.subr.bf16.mxu1 %v716_v26 }
  0x1b   :  { %629 = vmatpush3.bf16.msra.mxu0 %v715_v25 }
  0x1c   :  { %630 = vmatprep.subr.bf16.mxu0 %v718_v28 }
  0x1d   :  { %657 = vmatpush3.bf16.msra.mxu1 %v717_v27 }
  0x1e   :  { %658 = vmatprep.subr.bf16.mxu1 %v720_v30 }
  0x1f   :  { %631 = vmatpush3.bf16.msra.mxu0 %v719_v29 }
  0x20   :  { %678 = vmatprep.subr.bf16.mxu0 %v725_v34 }
  0x21   :  { %659 = vmatpush3.bf16.msra.mxu1 %v724_v33 }
  0x22   :  { %412 = vmatmul.mubr.bf16.vlgmr.msra.gmra.mrb[0].mxu0 %v721_v31 }
  0x23   :  { %679 = vmatpush3.bf16.msra.mxu0 %v725_v34  ;;  %419 = vmatprep.mubr.bf16.mxu0 %v730_v38 }
  0x24   :  { %461 = vmatmul.mubr.bf16.vlgmr.msra.gmra.mrb[0].mxu1 %v726_v35  ;;  %680 = vmatprep.subr.bf16.mxu0 %v729_v37 }
  0x25   :  { %468 = vmatprep.mubr.bf16.mxu1 %v734_v41 }
  0x27   :  { %681 = vmatpush3.bf16.msra.mxu0 %v729_v37 }
  0x28   :  { %682 = vmatprep.subr.bf16.mxu0 %v733_v40 }
  0x2a   :  { %420 = vmatmul.mubr.bf16.gmra.mrb[4].mxu0 %v732_v39 }
  0x2b   :  { %686 = vmatprep.mubr.msk.bf16.mxu0 %vm372_vm0, %v738_v44  ;;  %683 = vmatpush3.bf16.msra.mxu0 %v733_v40 }
  0x2c   :  { %469 = vmatmul.mubr.bf16.gmra.mrb[4].mxu1 %v736_v42  ;;  %684 = vmatprep.subr.bf16.mxu0 %v737_v43 }
  0x2f   :  { %685 = vmatpush3.bf16.msra.mxu0 %v737_v43 }
  0x32   :  { %687 = vmatmul.mubr.msk.bf16.vlgmr.msra.gmra.mrb[8].mxu0 %vm372_vm0, %v739_v45 }
  0xf5   :  { %v632_v46 = vpop.f32.mrb[0].mxu0 }
  0xf6   :  { %v633_v48 = vpop.f32.mrb[1].mxu0 }
  0xf7   :  { %v634_v49 = vadd.f32 %v633_v48, %v632_v46  ;;  %v635_v50 = vpop.f32.mrb[2].mxu0  ;;  %v660_v51 = vpop.f32.mrb[0].mxu1 }
  0xf8   :  { %v636_v52 = vpop.f32.mrb[3].mxu0  ;;  %v661_v55 = vpop.f32.mrb[1].mxu1 }
  0xf9   :  { %v414_v53 = vadd.f32 %v634_v49, %v563_v47  ;;  %v637_v54 = vadd.f32 %v636_v52, %v635_v50  ;;  %v662_v56 = vadd.f32 %v661_v55, %v660_v51  ;;  %v663_v57 = vpop.f32.mrb[2].mxu1 }
  0xfa   :  { %v664_v59 = vpop.f32.mrb[3].mxu1 }
  0xfb   :  { %v417_v58 = vadd.f32 %v637_v54, %v563_v47  ;;  %v665_v60 = vadd.f32 %v664_v59, %v663_v57  ;;  %v463_v61 = vadd.f32 %v662_v56, %v414_v53 }
  0xfd   :  { %v638_v62 = vpop.f32.mrb[4].mxu0  ;;  %v466_v0 = vadd.f32 %v665_v60, %v417_v58 }
  0xfe   :  { %v639_v63 = vpop.f32.mrb[5].mxu0 }
  0xff   :  { %v640_v1 = vadd.f32 %v639_v63, %v638_v62  ;;  %v641_v2 = vpop.f32.mrb[6].mxu0  ;;  %v666_v3 = vpop.f32.mrb[4].mxu1 }
 0x100   :  { %v642_v4 = vpop.f32.mrb[7].mxu0  ;;  %v667_v7 = vpop.f32.mrb[5].mxu1 }
 0x101   :  { %v422_v5 = vadd.f32 %v640_v1, %v563_v47  ;;  %v643_v6 = vadd.f32 %v642_v4, %v641_v2  ;;  %v668_v8 = vadd.f32 %v667_v7, %v666_v3  ;;  %v669_v9 = vpop.f32.mrb[6].mxu1 }
 0x102   :  { %v670_v11 = vpop.f32.mrb[7].mxu1 }
 0x103   :  { %v425_v10 = vadd.f32 %v643_v6, %v563_v47  ;;  %v671_v12 = vadd.f32 %v670_v11, %v669_v9  ;;  %v471_v13 = vadd.f32 %v668_v8, %v422_v5 }
 0x105   :  { %v688_v14 = vpop.f32.mrb[8].mxu0  ;;  %v474_v15 = vadd.f32 %v671_v12, %v425_v10 }
 0x106   :  { %v520_v16 = vadd.f32 %v688_v14, %v471_v13  ;;  %v511_v17 = vpop.f32.mrb[9].mxu0 }
 0x107   :  { %v512_v18 = vadd.f32 %v511_v17, %v463_v61  ;;  %v689_v19 = vpop.f32.mrb[10].mxu0 }
 0x108   :  { %v614_v20 = vmul.f32 -1.442695, %v520_v16  ;;  %v523_v21 = vadd.f32 %v689_v19, %v474_v15  ;;  %v514_v22 = vpop.f32.mrb[11].mxu0 }
 0x109   :  { %v612_v23 = vmul.f32 -1.442695, %v512_v18  ;;  %v515_v24 = vadd.f32 %v514_v22, %v466_v0 }
 0x10a   :  { %740 = vpow2.f32 %v614_v20  ;;  %v615_v25 = vmul.f32 -1.442695, %v523_v21 }
 0x10b   :  { %742 = vpow2.f32 %v612_v23  ;;  %v613_v26 = vmul.f32 -1.442695, %v515_v24 }
 0x10c   :  { %744 = vpow2.f32 %v615_v25 }
 0x10d   :  { %746 = vpow2.f32 %v613_v26 }
 0x114   :  { %v741_v27 = vpop.eup %740 }
 0x115   :  { %v743_v28 = vpop.eup %742  ;;  %v540_v29 = vadd.f32 1.0, %v741_v27 }
 0x116   :  { %v745_v30 = vpop.eup %744  ;;  %v538_v31 = vadd.f32 1.0, %v743_v28 }
 0x117   :  { %v747_v32 = vpop.eup %746  ;;  %748 = vrcp.f32 %v540_v29  ;;  %v541_v33 = vadd.f32 1.0, %v745_v30 }
 0x118   :  { %750 = vrcp.f32 %v538_v31  ;;  %v539_v34 = vadd.f32 1.0, %v747_v32 }
 0x119   :  { %752 = vrcp.f32 %v541_v33 }
 0x11a   :  { %754 = vrcp.f32 %v539_v34 }
 0x121   :  { %v749_v35 = vpop.eup %748 }
 0x122   :  { %v751_v36 = vpop.eup %750  ;;  %v552_v37 = vmul.f32 %v749_v35, %v520_v16 }
 0x123   :  { %v753_v38 = vpop.eup %752  ;;  %v550_v39 = vmul.f32 %v751_v36, %v512_v18 }
 0x124   :  { %v755_v40 = vpop.eup %754  ;;  %557 = vst.msk [vmem:[%s932_s3 + $0x10] sm:$0xff] %vm554_vm1, %v552_v37  ;;  %v553_v41 = vmul.f32 %v753_v38, %v523_v21 }
 0x125   :  { %555 = vst.msk [vmem:[%s932_s3] sm:$0xff] %vm554_vm1, %v550_v39  ;;  %v551_v42 = vmul.f32 %v755_v40, %v515_v24 }
 0x126   :  { %558 = vst.msk [vmem:[%s932_s3 + $0x18] sm:$0xff] %vm554_vm1, %v553_v41 }
 0x127   :  { %556 = vst.msk [vmem:[%s932_s3 + $0x8] sm:$0xff] %vm554_vm1, %v551_v42 }

// kernel: _forward.93
= control target key start
LH: loop header
LB: loop body
LE: loop exit
PB: predicated region body
PF: predicated region fallthrough
CT: control target
= control target key end

     0   :  { %v354_v1 = vmov 0   ;;  %vm141_vm0 = vcmask 523264   ;;  %s441_s0 = inlined_call_operand.vmem [shape: bf16[32,192], index: 0, kind: input, shape index: {}]   ;;  %s442_s1 = inlined_call_operand.vmem [shape: bf16[192,128], index: 1, kind: input, shape index: {}]   ;;  %s443_s2 = inlined_call_operand.vmem [shape: f32[1,128], index: 2, kind: input, shape index: {}]   ;;  %s444_s3 = inlined_call_operand.hbm [shape: f32[32,128], index: 3, kind: output, shape index: {}]  }
   0x1   :  { %v296_v0 = vld [vmem:[%s442_s1] sm:$0xff]   ;;  %148 = vmatprep.subr.bf16.mxu0 %v354_v1  ;;  %268 = vmatprep.subr.bf16.mxu1 %v354_v1  ;;  %v297_v2 = vld [vmem:[%s442_s1 + $0x8] sm:$0xff]   ;;  %v298_v3 = vld [vmem:[%s442_s1 + $0x10] sm:$0xff]  }
   0x2   :  { %149 = vmatpush1.bf16.msra.mxu0 %v296_v0  ;;  %280 = vmatpush1.bf16.msra.mxu1 %v296_v0  ;;  %v299_v4 = vld [vmem:[%s442_s1 + $0x18] sm:$0xff]   ;;  %v310_v5 = vld [vmem:[%s441_s0 + $0x4] ss:$8 sps:$4 sm:$0xff]  }
   0x3   :  { %150 = vmatprep.subr.bf16.mxu0 %v354_v1  ;;  %269 = vmatprep.subr.bf16.mxu1 %v354_v1  ;;  %v300_v6 = vld [vmem:[%s442_s1 + $0x20] sm:$0xff]   ;;  %v313_v7 = vld [vmem:[%s441_s0 + $0x14] ss:$8 sps:$4 sm:$0xff]  }
   0x6   :  { %151 = vmatpush1.bf16.msra.mxu0 %v297_v2  ;;  %281 = vmatpush1.bf16.msra.mxu1 %v297_v2 }
   0x7   :  { %152 = vmatprep.subr.bf16.mxu0 %v354_v1  ;;  %270 = vmatprep.subr.bf16.mxu1 %v354_v1 }
   0xa   :  { %153 = vmatpush1.bf16.msra.mxu0 %v298_v3  ;;  %282 = vmatpush1.bf16.msra.mxu1 %v298_v3 }
   0xb   :  { %154 = vmatprep.subr.bf16.mxu0 %v354_v1  ;;  %271 = vmatprep.subr.bf16.mxu1 %v354_v1 }
   0xe   :  { %155 = vmatpush1.bf16.msra.mxu0 %v299_v4  ;;  %283 = vmatpush1.bf16.msra.mxu1 %v299_v4 }
   0xf   :  { %156 = vmatprep.subr.bf16.mxu0 %v354_v1  ;;  %272 = vmatprep.subr.bf16.mxu1 %v354_v1 }
  0x10   :  { %8 = vsyncpa [#allocation3], 0  ;;  %262 = vmatprep.mubr.msk.bf16.mxu0 %vm141_vm0, %v310_v5  ;;  %263 = vmatprep.mubr.msk.bf16.mxu1 %vm141_vm0, %v313_v7  ;;  %v301_v8 = vld [vmem:[%s442_s1 + $0x28] sm:$0xff]   ;;  %v302_v9 = vld [vmem:[%s442_s1 + $0x30] sm:$0xff]  }
  0x11   :  { %v303_v10 = vld [vmem:[%s442_s1 + $0x38] sm:$0xff]   ;;  %v304_v11 = vld [vmem:[%s442_s1 + $0x40] sm:$0xff]   ;;  %v305_v12 = vld [vmem:[%s442_s1 + $0x48] sm:$0xff]  }
  0x12   :  { %157 = vmatpush1.bf16.msra.mxu0 %v300_v6  ;;  %284 = vmatpush1.bf16.msra.mxu1 %v300_v6  ;;  %v306_v13 = vld [vmem:[%s442_s1 + $0x50] sm:$0xff]   ;;  %v307_v14 = vld [vmem:[%s442_s1 + $0x58] sm:$0xff]   ;;  %v308_v15 = vld [vmem:[%s441_s0] ss:$8 sps:$4 sm:$0xff]  }
  0x13   :  { %158 = vmatprep.subr.bf16.mxu0 %v354_v1  ;;  %273 = vmatprep.subr.bf16.mxu1 %v354_v1  ;;  %v311_v16 = vld [vmem:[%s441_s0 + $0x10] ss:$8 sps:$4 sm:$0xff]   ;;  %v245_v17 = vld [vmem:[%s443_s2] ss:$0 sm:$0xff]  ;;  %s355_s0 = smov [#allocation2]  }
  0x14   :  { %s234_s1 = sshll.u32 %s355_s0, 4  ;;  %s235_s1 = int_to_ptr.vmem [resolvable:$true] %s234_s1 }
  0x15   :  { %s330_s2 = scalar_lea.vmem %s235_s1, 512  ;;  %p335_p1 = scmp.lt.s32.totalorder %s235_s1, %s235_s1 }
  0x16   :  { %159 = vmatpush1.bf16.msra.mxu0 %v301_v8  ;;  %285 = vmatpush1.bf16.msra.mxu1 %v301_v8  ;;  %p331_p0 = scmp.ne.s32.totalorder %s235_s1, %s330_s2  ;;  %p336_p2 = scmp.lt.s32.totalorder %s330_s2, %s330_s2 }
  0x17   :  { %160 = vmatprep.subr.bf16.mxu0 %v354_v1  ;;  %274 = vmatprep.subr.bf16.mxu1 %v354_v1 }
  0x18   :  { %p337_p3 = por %p336_p2, %p335_p1 }
  0x1a   :  { %161 = vmatpush1.bf16.msra.mxu0 %v302_v9  ;;  %286 = vmatpush1.bf16.msra.mxu1 %v302_v9  ;;  %p338_p4 = pnand %p337_p3, %p331_p0 }
  0x1b   :  { %162 = vmatprep.subr.bf16.mxu0 %v354_v1  ;;  %275 = vmatprep.subr.bf16.mxu1 %v354_v1 }
  0x1e   :  { %163 = vmatpush1.bf16.msra.mxu0 %v303_v10  ;;  %287 = vmatpush1.bf16.msra.mxu1 %v303_v10 }
  0x1f   :  { %164 = vmatprep.subr.bf16.mxu0 %v354_v1  ;;  %276 = vmatprep.subr.bf16.mxu1 %v354_v1 }
  0x22   :  { %165 = vmatpush1.bf16.msra.mxu0 %v304_v11  ;;  %288 = vmatpush1.bf16.msra.mxu1 %v304_v11 }
  0x23   :  { %166 = vmatprep.subr.bf16.mxu0 %v354_v1  ;;  %277 = vmatprep.subr.bf16.mxu1 %v354_v1 }
  0x26   :  { %167 = vmatpush1.bf16.msra.mxu0 %v305_v12  ;;  %289 = vmatpush1.bf16.msra.mxu1 %v305_v12 }
  0x27   :  { %168 = vmatprep.subr.bf16.mxu0 %v354_v1  ;;  %278 = vmatprep.subr.bf16.mxu1 %v354_v1 }
  0x2a   :  { %169 = vmatpush1.bf16.msra.mxu0 %v306_v13  ;;  %290 = vmatpush1.bf16.msra.mxu1 %v306_v13 }
  0x2b   :  { %170 = vmatprep.subr.bf16.mxu0 %v354_v1  ;;  %279 = vmatprep.subr.bf16.mxu1 %v354_v1 }
  0x2e   :  { %171 = vmatpush1.bf16.msra.mxu0 %v307_v14  ;;  %291 = vmatpush1.bf16.msra.mxu1 %v307_v14 }
  0x31   :  { %181 = vmatmul.mubr.bf16.vlgmr.msra.gmra.mrb[0].mxu0 %v308_v15  ;;  %189 = vmatmul.mubr.bf16.vlgmr.msra.gmra.mrb[0].mxu1 %v311_v16 }
 0x104   :  { %v182_v18 = vpop.f32.mrb[0].mxu0  ;;  %v190_v19 = vpop.f32.mrb[0].mxu1 }
 0x105   :  { %v183_v20 = vadd.f32 %v245_v17, %v182_v18  ;;  %v191_v21 = vadd.f32 %v245_v17, %v190_v19  ;;  %v184_v22 = vpop.f32.mrb[1].mxu0  ;;  %v192_v23 = vpop.f32.mrb[1].mxu1 }
 0x106   :  { %v185_v24 = vpop.f32.mrb[2].mxu0  ;;  %v193_v25 = vpop.f32.mrb[2].mxu1 }
 0x107   :  { %v264_v26 = vmul.f32 -1.442695, %v183_v20  ;;  %v266_v27 = vmul.f32 -1.442695, %v191_v21  ;;  %v186_v28 = vadd.f32 %v245_v17, %v185_v24  ;;  %v194_v29 = vadd.f32 %v245_v17, %v193_v25  ;;  %v187_v30 = vpop.f32.mrb[3].mxu0  ;;  %v195_v31 = vpop.f32.mrb[3].mxu1 }
 0x109   :  { %314 = vpow2.f32 %v264_v26  ;;  %v265_v32 = vmul.f32 -1.442695, %v186_v28  ;;  %v267_v33 = vmul.f32 -1.442695, %v194_v29 }
 0x10a   :  { %316 = vpow2.f32 %v266_v27 }
 0x10b   :  { %318 = vpow2.f32 %v265_v32 }
 0x10c   :  { %320 = vpow2.f32 %v267_v33 }
 0x113   :  { %v315_v34 = vpop.eup %314 }
 0x114   :  { %v317_v35 = vpop.eup %316  ;;  %v209_v36 = vadd.f32 1.0, %v315_v34 }
 0x115   :  { %v319_v37 = vpop.eup %318  ;;  %v211_v38 = vadd.f32 1.0, %v317_v35 }
 0x116   :  { %v321_v39 = vpop.eup %320  ;;  %322 = vrcp.f32 %v209_v36  ;;  %v210_v40 = vadd.f32 1.0, %v319_v37 }
 0x117   :  { %324 = vrcp.f32 %v211_v38  ;;  %v212_v41 = vadd.f32 1.0, %v321_v39 }
 0x118   :  { %326 = vrcp.f32 %v210_v40 }
 0x119   :  { %328 = vrcp.f32 %v212_v41 }
 0x120   :  { %v323_v42 = vpop.eup %322 }
 0x121   :  { %v325_v43 = vpop.eup %324  ;;  %v221_v44 = vmul.f32 %v323_v42, %v183_v20 }
 0x122   :  { %v327_v45 = vpop.eup %326  ;;  %v223_v46 = vmul.f32 %v325_v43, %v191_v21 }
 0x123   :  { %v329_v47 = vpop.eup %328  ;;  %225 = vst [vmem:[#allocation2] sm:$0xff] %v221_v44  ;;  %v222_v48 = vmul.f32 %v327_v45, %v186_v28 }
 0x124   :  { %227 = vst [vmem:[#allocation2 + $0x10] sm:$0xff] %v223_v46  ;;  %v224_v49 = vmul.f32 %v329_v47, %v194_v29 }
 0x125   :  { %226 = vst [vmem:[#allocation2 + $0x8] sm:$0xff] %v222_v48 }
 0x126   :  { %228 = vst [vmem:[#allocation2 + $0x18] sm:$0xff] %v224_v49 }
 0x127   :  { %341 = shalt.err (!%p338_p4)
}
 0x128   :  { %s342_s21 = scalar_lea.hbm %s444_s3, 512 }
 0x129   :  { %p343_p5 = scmp.ne.s32.totalorder %s444_s3, %s342_s21  ;;  %p346_p6 = scmp.lt.u32.totalorder %s342_s21, %s444_s3 }
 0x12b   :  { %p348_p7 = pnand %p346_p6, %p343_p5 }
 0x12d   :  { %351 = shalt.err (!%p348_p7)
}
 0x12e   :  { %s356_s26 = smov 128   ;;  %s357_s27 = smov 8  }
 0x12f   :  { %240 = dma.vmem_to_hbm [thread:$0]  %s235_s1, 512, %s444_s3, [#allocation3], %s356_s26, %s356_s26, %s357_s27  }
 0x130   :  { %352 = dma.done.wait [#allocation3], 512  }
 0x131   :  { %353 = vsyncadd [#allocation3], 4294966784 }
 0x132   :  { %244 = vsyncpa [#allocation3], 1 }

// kernel: _forward.92
= control target key start
LH: loop header
LB: loop body
LE: loop exit
PB: predicated region body
PF: predicated region fallthrough
CT: control target
= control target key end

     0   :  { %vm204_vm0 = vcmask 261120   ;;  %vm337_vm1 = vcmask 523264   ;;  %s566_s1 = inlined_call_operand.vmem [shape: bf16[288,64], index: 1, kind: input, shape index: {}]   ;;  %s567_s0 = inlined_call_operand.vmem [shape: bf16[32,288], index: 0, kind: input, shape index: {}]   ;;  %s568_s2 = inlined_call_operand.vmem [shape: f32[1,64], index: 2, kind: input, shape index: {}]   ;;  %s569_s3 = inlined_call_operand.vmem [shape: f32[32,64], index: 3, kind: output, shape index: {}]  }
   0x1   :  { %v417_v0 = vld [vmem:[%s566_s1 + $0x40] sm:$0xff]   ;;  %v419_v2 = vld [vmem:[%s566_s1 + $0x48] sm:$0xff]   ;;  %v421_v4 = vld [vmem:[%s566_s1 + $0x50] sm:$0xff]  }
   0x2   :  { %v418_v1 = vld [vmem:[%s566_s1] sm:$0xff]   ;;  %377 = vmatprep.subr.bf16.mxu0 %v417_v0  ;;  %v420_v3 = vld [vmem:[%s566_s1 + $0x8] sm:$0xff]   ;;  %v422_v5 = vld [vmem:[%s566_s1 + $0x10] sm:$0xff]  }
   0x3   :  { %378 = vmatpush3.bf16.msra.mxu0 %v418_v1  ;;  %v423_v6 = vld [vmem:[%s566_s1 + $0x58] sm:$0xff]   ;;  %v425_v8 = vld [vmem:[%s566_s1 + $0x60] sm:$0xff]   ;;  %v427_v11 = vld [vmem:[%s566_s1 + $0x68] sm:$0xff]  }
   0x4   :  { %379 = vmatprep.subr.bf16.mxu0 %v419_v2  ;;  %v424_v7 = vld [vmem:[%s566_s1 + $0x18] sm:$0xff]   ;;  %v426_v9 = vld [vmem:[%s566_s1 + $0x20] sm:$0xff]   ;;  %v428_v12 = vld [vmem:[%s566_s1 + $0x28] sm:$0xff]  }
   0x5   :  { %v432_v10 = vld [vmem:[%s566_s1 + $0x80] sm:$0xff]   ;;  %v429_v13 = vld [vmem:[%s566_s1 + $0x70] sm:$0xff]   ;;  %v437_v15 = vld [vmem:[%s566_s1 + $0x88] sm:$0xff]  }
   0x6   :  { %409 = vmatprep.subr.bf16.mxu1 %v432_v10  ;;  %v436_v14 = vld [vmem:[%s567_s0 + $0x4] ss:$12 sps:$4 sm:$0xff]   ;;  %v438_v16 = vld [vmem:[%s567_s0 + $0x8] ss:$12 sps:$4 sm:$0xff]   ;;  %v439_v17 = vld [vmem:[%s567_s0 + $0x20] ss:$12 sps:$4 sm:$0xff]  }
   0x7   :  { %380 = vmatpush3.bf16.msra.mxu0 %v420_v3  ;;  %410 = vmatpush3.bf16.msra.mxu1 %v432_v10  ;;  %v430_v18 = vld [vmem:[%s566_s1 + $0x30] sm:$0xff]   ;;  %v431_v19 = vld [vmem:[%s566_s1 + $0x78] sm:$0xff]   ;;  %v434_v21 = vld [vmem:[%s567_s0] ss:$12 sps:$4 sm:$0xff]  }
   0x8   :  { %381 = vmatprep.subr.bf16.mxu0 %v421_v4  ;;  %243 = vmatprep.mubr.bf16.mxu0 %v436_v14  ;;  %v433_v20 = vld [vmem:[%s566_s1 + $0x38] sm:$0xff]   ;;  %v346_v30 = vld [vmem:[%s568_s2] ss:$0 sm:$0xff] }
   0x9   :  { %411 = vmatprep.subr.bf16.mxu1 %v437_v15  ;;  %413 = vmatprep.mubr.msk.bf16.mxu1 %vm204_vm0, %v438_v16  ;;  %v440_v22 = vld [vmem:[%s567_s0 + $0x1c] ss:$12 sps:$4 sm:$0xff]   ;;  %v442_v23 = vld [vmem:[%s567_s0 + $0x18] ss:$12 sps:$4 sm:$0xff]  }
   0xb   :  { %382 = vmatpush3.bf16.msra.mxu0 %v422_v5  ;;  %412 = vmatpush3.bf16.msra.mxu1 %v437_v15 }
   0xc   :  { %383 = vmatprep.subr.bf16.mxu0 %v423_v6 }
   0xe   :  { %414 = vmatmul.mubr.msk.bf16.vlgmr.msra.gmra.mrb[0].mxu1 %vm204_vm0, %v439_v17 }
   0xf   :  { %384 = vmatpush3.bf16.msra.mxu0 %v424_v7 }
  0x10   :  { %385 = vmatprep.subr.bf16.mxu0 %v425_v8 }
  0x13   :  { %386 = vmatpush3.bf16.msra.mxu0 %v426_v9 }
  0x14   :  { %387 = vmatprep.subr.bf16.mxu0 %v427_v11 }
  0x17   :  { %388 = vmatpush3.bf16.msra.mxu0 %v428_v12 }
  0x18   :  { %389 = vmatprep.subr.bf16.mxu0 %v429_v13 }
  0x1b   :  { %390 = vmatpush3.bf16.msra.mxu0 %v430_v18 }
  0x1c   :  { %391 = vmatprep.subr.bf16.mxu0 %v431_v19 }
  0x1f   :  { %392 = vmatpush3.bf16.msra.mxu0 %v433_v20 }
  0x22   :  { %244 = vmatmul.mubr.bf16.vlgmr.msra.gmra.mrb[0].mxu0 %v434_v21 }
  0x23   :  { %251 = vmatprep.mubr.bf16.mxu0 %v440_v22 }
  0x2a   :  { %252 = vmatmul.mubr.bf16.gmra.mrb[4].mxu0 %v442_v23 }
  0xe1   :  { %v415_v24 = vpop.f32.mrb[0].mxu1 }
  0xe2   :  { %v294_v25 = vpop.f32.mrb[1].mxu1 }
  0xe3   :  { %v416_v26 = vpop.f32.mrb[2].mxu1 }
  0xe4   :  { %v297_v27 = vpop.f32.mrb[3].mxu1 }
  0xf5   :  { %v393_v28 = vpop.f32.mrb[0].mxu0 }
  0xf6   :  { %v394_v29 = vpop.f32.mrb[1].mxu0 }
  0xf7   :  { %v395_v31 = vadd.f32 %v394_v29, %v393_v28  ;;  %v396_v32 = vpop.f32.mrb[2].mxu0 }
  0xf8   :  { %v397_v33 = vpop.f32.mrb[3].mxu0 }
  0xf9   :  { %v398_v34 = vadd.f32 %v397_v33, %v396_v32  ;;  %v246_v35 = vadd.f32 %v395_v31, %v346_v30 }
  0xfb   :  { %v295_v36 = vadd.f32 %v294_v25, %v246_v35  ;;  %v249_v37 = vadd.f32 %v398_v34, %v346_v30 }
  0xfd   :  { %v373_v38 = vmul.f32 -1.442695, %v295_v36  ;;  %v298_v39 = vadd.f32 %v297_v27, %v249_v37  ;;  %v399_v40 = vpop.f32.mrb[4].mxu0 }
  0xfe   :  { %v400_v41 = vpop.f32.mrb[5].mxu0 }
  0xff   :  { %443 = vpow2.f32 %v373_v38  ;;  %v374_v42 = vmul.f32 -1.442695, %v298_v39  ;;  %v401_v43 = vadd.f32 %v400_v41, %v399_v40  ;;  %v402_v44 = vpop.f32.mrb[6].mxu0 }
 0x100   :  { %v403_v45 = vpop.f32.mrb[7].mxu0 }
 0x101   :  { %445 = vpow2.f32 %v374_v42  ;;  %v254_v46 = vadd.f32 %v401_v43, %v346_v30  ;;  %v404_v47 = vadd.f32 %v403_v45, %v402_v44 }
 0x103   :  { %v303_v48 = vadd.f32 %v415_v24, %v254_v46  ;;  %v257_v49 = vadd.f32 %v404_v47, %v346_v30 }
 0x105   :  { %v375_v50 = vmul.f32 -1.442695, %v303_v48  ;;  %v306_v51 = vadd.f32 %v416_v26, %v257_v49 }
 0x107   :  { %447 = vpow2.f32 %v375_v50  ;;  %v376_v52 = vmul.f32 -1.442695, %v306_v51 }
 0x109   :  { %v444_v53 = vpop.eup %443  ;;  %449 = vpow2.f32 %v376_v52 }
 0x10a   :  { %v321_v54 = vadd.f32 1.0, %v444_v53 }
 0x10b   :  { %v446_v55 = vpop.eup %445 }
 0x10c   :  { %451 = vrcp.f32 %v321_v54  ;;  %v322_v56 = vadd.f32 1.0, %v446_v55 }
 0x10e   :  { %453 = vrcp.f32 %v322_v56 }
 0x111   :  { %v448_v57 = vpop.eup %447 }
 0x112   :  { %v323_v58 = vadd.f32 1.0, %v448_v57 }
 0x113   :  { %v450_v59 = vpop.eup %449 }
 0x114   :  { %455 = vrcp.f32 %v323_v58  ;;  %v324_v60 = vadd.f32 1.0, %v450_v59 }
 0x116   :  { %v452_v61 = vpop.eup %451  ;;  %457 = vrcp.f32 %v324_v60 }
 0x117   :  { %v333_v62 = vmul.f32 %v452_v61, %v295_v36 }
 0x118   :  { %v454_v63 = vpop.eup %453 }
 0x119   :  { %338 = vst.msk [vmem:[%s569_s3] sm:$0xff] %vm337_vm1, %v333_v62  ;;  %v334_v0 = vmul.f32 %v454_v63, %v298_v39 }
 0x11b   :  { %339 = vst.msk [vmem:[%s569_s3 + $0x8] sm:$0xff] %vm337_vm1, %v334_v0 }
 0x11e   :  { %v456_v1 = vpop.eup %455 }
 0x11f   :  { %v335_v2 = vmul.f32 %v456_v1, %v303_v48 }
 0x120   :  { %v458_v3 = vpop.eup %457 }
 0x121   :  { %340 = vst.msk [vmem:[%s569_s3 + $0x10] sm:$0xff] %vm337_vm1, %v335_v2  ;;  %v336_v4 = vmul.f32 %v458_v3, %v306_v51 }
 0x123   :  { %341 = vst.msk [vmem:[%s569_s3 + $0x18] sm:$0xff] %vm337_vm1, %v336_v4 }

</bundles_post_ra>
